<compile_context>
chip_gen: v6e
topology: v6e:2x2x1
jax: 0.10.0
libtpu: 0.0.40
codegen_flags: <defaults>
</compile_context>

<pallas_src>
import functools

import jax
import jax.numpy as jnp
from jax.experimental import pallas as pl
from jax.experimental.pallas import tpu as pltpu

# >= v5e's 16 MiB scoped default, <= physical VMEM on all chips; ~100x the
# actual in-kernel footprint at the toy config below.
_VMEM_LIMIT = 32 * 1024 * 1024


# ---------------------------------------------------------------------------
# Kernel 1: Linear(latent_dim -> 128*S*S).  Weight columns are pre-permuted to
# (y, x, c) order at init, so the wrapper's contiguous reshape to NHWC is free.
# ---------------------------------------------------------------------------
def _linear_kernel(z_ref, w_ref, b_ref, o_ref):
    z = z_ref[...].astype(jnp.bfloat16)
    o_ref[...] = jnp.dot(z, w_ref[...], preferred_element_type=jnp.float32) + b_ref[...]


def linear(z, w, b):
    B, K = z.shape
    N = w.shape[1]
    return pl.pallas_call(
        _linear_kernel,
        out_shape=jax.ShapeDtypeStruct((B, N), jnp.float32),
        grid=(1,),
        in_specs=[pl.BlockSpec((B, K), lambda i: (0, 0)),
                  pl.BlockSpec((K, N), lambda i: (0, 0)),
                  pl.BlockSpec((1, N), lambda i: (0, 0))],
        out_specs=pl.BlockSpec((B, N), lambda i: (0, 0)),
        compiler_params=pltpu.CompilerParams(dimension_semantics=("arbitrary",)),
    )(z, w, b.reshape(1, N))


# ---------------------------------------------------------------------------
# Kernel 2/3: [optional BatchNorm(Cin)] + Upsample(x2 nearest) + Conv3x3(pad=1)
#             + BatchNorm(Cout, eps) + LeakyReLU(slope)
#
# The kernel consumes the *pre-upsample* activation.  The 1-px halo is built
# in a VMEM scratch.  H-upsampling is a leading-dim broadcast; W-upsampling is
# folded into the matmuls by an even/odd output-column parity decomposition
#   we[dy] = [w[dy,0] ; w[dy,1]+w[dy,2]]   (even output columns)
#   wo[dy] = [w[dy,0]+w[dy,1] ; w[dy,2]]   (odd  output columns)
# so only 6 dots with K = 2*Cin instead of 9 with K = Cin, and 1.5x fewer MXU
# FLOPs than convolving the upsampled image.  Output is written as
# (B, 2h, w, 2*Cout) = [even | odd]; the wrapper reshape interleaves columns.
# ---------------------------------------------------------------------------
def _upconv_kernel(*args, pre_bn, eps_pre, eps, slope):
    if pre_bn:
        (x_ref, g1_ref, b1_ref, we_ref, wo_ref, bc_ref,
         g2_ref, b2_ref, o_ref, pad_scr) = args
    else:
        (x_ref, we_ref, wo_ref, bc_ref, g2_ref, b2_ref, o_ref, pad_scr) = args
        g1_ref = b1_ref = None

    B, h, w, Cin = x_ref.shape
    Cout = bc_ref.shape[-1]
    H = 2 * h
    M = B * H * w

    x = x_ref[...]                                            # (B,h,w,Cin) f32
    if pre_bn:
        # BatchNorm2d(Cin): training-mode batch stats, biased variance,
        # two-pass to avoid E[x^2]-mean^2 cancellation.  Full-width reductions.
        n0 = float(B * h * w)
        mu = jnp.sum(jnp.sum(x, axis=(0, 1)), axis=0, keepdims=True) / n0   # (1,Cin)
        d = x - mu
        var0 = jnp.sum(jnp.sum(d * d, axis=(0, 1)), axis=0, keepdims=True) / n0
        x = d * (g1_ref[...] * jax.lax.rsqrt(var0 + eps_pre)) + b1_ref[...]

    # 1-pixel zero halo built in VMEM (no wrapper jnp.pad / HBM round trip)
    pad_scr[...] = jnp.zeros_like(pad_scr)
    pad_scr[:, 1:h + 1, 1:w + 1, :] = x
    xp = pad_scr[...]                                         # (B,h+2,w+2,Cin) f32

    # W direction: parity-combined sources.  dy-independent -> hoisted out of
    # the tap loop (2 concats total instead of 6); staged in bf16 for the MXU.
    s0 = xp[:, :, 0:w, :]
    s1 = xp[:, :, 1:w + 1, :]
    s2 = xp[:, :, 2:w + 2, :]
    ev = jnp.concatenate([s0, s1], axis=-1).astype(jnp.bfloat16)   # (B,h+2,w,2Cin)
    od = jnp.concatenate([s1, s2], axis=-1).astype(jnp.bfloat16)

    # H direction: nearest-neighbour 2x upsample = leading-dim broadcast (bf16)
    def up2(t):
        t = jnp.broadcast_to(t[:, :, None, :, :], (B, h + 2, 2, w, 2 * Cin))
        return t.reshape(B, 2 * (h + 2), w, 2 * Cin)

    evu = up2(ev)
    odu = up2(od)

    acc_e = jnp.zeros((M, Cout), jnp.float32)
    acc_o = jnp.zeros((M, Cout), jnp.float32)
    for dy in range(3):
        re_ = evu[:, dy + 1:dy + 1 + H, :, :].reshape(M, 2 * Cin)
        ro_ = odu[:, dy + 1:dy + 1 + H, :, :].reshape(M, 2 * Cin)
        acc_e += jnp.dot(re_, we_ref[dy], preferred_element_type=jnp.float32)
        acc_o += jnp.dot(ro_, wo_ref[dy], preferred_element_type=jnp.float32)
    acc_e = acc_e + bc_ref[...]
    acc_o = acc_o + bc_ref[...]

    # BatchNorm(Cout, eps) over (N, 2h, 2w): training-mode, biased var, two-pass
    n = float(2 * M)
    mean = (jnp.sum(acc_e, axis=0, keepdims=True) +
            jnp.sum(acc_o, axis=0, keepdims=True)) / n
    ce = acc_e - mean
    co = acc_o - mean
    var = (jnp.sum(ce * ce, axis=0, keepdims=True) +
           jnp.sum(co * co, axis=0, keepdims=True)) / n
    scale = g2_ref[...] * jax.lax.rsqrt(var + eps)
    ye = ce * scale + b2_ref[...]
    yo = co * scale + b2_ref[...]
    ye = jnp.where(ye > 0, ye, slope * ye)                    # LeakyReLU(slope)
    yo = jnp.where(yo > 0, yo, slope * yo)

    # store [even | odd] along the last dim; wrapper reshape interleaves columns
    if Cout % 128 == 0:
        # unmasked lane-aligned half stores (no (M, 2*Cout) concat copy)
        o_ref[:, :, :, 0:Cout] = ye.reshape(B, H, w, Cout)
        o_ref[:, :, :, Cout:2 * Cout] = yo.reshape(B, H, w, Cout)
    else:
        # 2*Cout is still a multiple of 128 -> single lane-dense store
        o_ref[...] = jnp.concatenate([ye, yo], axis=-1).reshape(B, H, w, 2 * Cout)


def upsample_conv_bn_lrelu(x, we, wo, bias, gamma, beta, *,
                           pre_bn=None, eps=0.8, slope=0.2):
    """Upsample(x2) + Conv3x3(pad=1) + BatchNorm(eps) + LeakyReLU(slope).

    If `pre_bn = (gamma1, beta1, eps1)` is given, a BatchNorm over the *input*
    channels is applied first (fuses the tutorial's BN(128) preceding the
    first Upsample).  `x` is the pre-upsample NHWC activation.
    """
    B, h, w, Cin = x.shape
    Cout = bias.shape[-1]
    H = 2 * h

    inputs = [x]
    in_specs = [pl.BlockSpec((B, h, w, Cin), lambda i: (0, 0, 0, 0))]
    eps_pre = 0.0
    if pre_bn is not None:
        g1, b1, eps_pre = pre_bn
        inputs += [g1.reshape(1, Cin), b1.reshape(1, Cin)]
        in_specs += [pl.BlockSpec((1, Cin), lambda i: (0, 0)),
                     pl.BlockSpec((1, Cin), lambda i: (0, 0))]
    inputs += [we, wo, bias.reshape(1, Cout), gamma.reshape(1, Cout),
               beta.reshape(1, Cout)]
    in_specs += [pl.BlockSpec((3, 2 * Cin, Cout), lambda i: (0, 0, 0)),
                 pl.BlockSpec((3, 2 * Cin, Cout), lambda i: (0, 0, 0)),
                 pl.BlockSpec((1, Cout), lambda i: (0, 0)),
                 pl.BlockSpec((1, Cout), lambda i: (0, 0)),
                 pl.BlockSpec((1, Cout), lambda i: (0, 0))]

    kern = functools.partial(_upconv_kernel, pre_bn=pre_bn is not None,
                             eps_pre=eps_pre, eps=eps, slope=slope)
    out = pl.pallas_call(
        kern,
        out_shape=jax.ShapeDtypeStruct((B, H, w, 2 * Cout), jnp.float32),
        grid=(1,),
        in_specs=in_specs,
        out_specs=pl.BlockSpec((B, H, w, 2 * Cout), lambda i: (0, 0, 0, 0)),
        scratch_shapes=[pltpu.VMEM((B, h + 2, w + 2, Cin), jnp.float32)],
        compiler_params=pltpu.CompilerParams(
            dimension_semantics=("arbitrary",),
            vmem_limit_bytes=_VMEM_LIMIT),
    )(*inputs)
    # free contiguous reshape: interleave even/odd columns -> (B, 2h, 2w, Cout)
    return out.reshape(B, H, 2 * w, Cout)


# ---------------------------------------------------------------------------
# Kernel 4: Conv3x3(pad=1) + Tanh, lane-dense (Cout padded to 128),
#           batch-parallel grid, in-kernel halo.
# ---------------------------------------------------------------------------
def _conv_tanh_kernel(x_ref, wk_ref, b_ref, o_ref, pad_scr):
    _, H, W, Cin = x_ref.shape
    Cout = o_ref.shape[-1]
    M = H * W

    # 1-pixel zero halo in VMEM (re-zeroed every grid step; correct under
    # "parallel" grid splitting across cores)
    pad_scr[...] = jnp.zeros_like(pad_scr)
    pad_scr[:, 1:H + 1, 1:W + 1, :] = x_ref[...]
    xp = pad_scr[...]

    # dy-independent W concat hoisted out of the tap loop; bf16 MXU staging
    xcat = jnp.concatenate([xp[:, :, 0:W, :], xp[:, :, 1:W + 1, :],
                            xp[:, :, 2:W + 2, :]], axis=-1).astype(jnp.bfloat16)
    acc = jnp.zeros((M, Cout), jnp.float32)
    for dy in range(3):
        xk = xcat[:, dy:dy + H, :, :].reshape(M, 3 * Cin)
        acc += jnp.dot(xk, wk_ref[dy], preferred_element_type=jnp.float32)
    o_ref[...] = jnp.tanh(acc + b_ref[...]).reshape(1, H, W, Cout)


def conv_tanh(x, wk, b):
    # x: (B, H, W, Cin); wk: (3, 3*Cin, Cout_pad) bf16; b: (Cout_pad,)
    B, H, W, Cin = x.shape
    Cout = wk.shape[-1]
    return pl.pallas_call(
        _conv_tanh_kernel,
        out_shape=jax.ShapeDtypeStruct((B, H, W, Cout), jnp.float32),
        grid=(B,),
        in_specs=[pl.BlockSpec((1, H, W, Cin), lambda bi: (bi, 0, 0, 0)),
                  pl.BlockSpec((3, 3 * Cin, Cout), lambda bi: (0, 0, 0)),
                  pl.BlockSpec((1, Cout), lambda bi: (0, 0))],
        out_specs=pl.BlockSpec((1, H, W, Cout), lambda bi: (bi, 0, 0, 0)),
        scratch_shapes=[pltpu.VMEM((1, H + 2, W + 2, Cin), jnp.float32)],
        compiler_params=pltpu.CompilerParams(
            dimension_semantics=("parallel",),
            vmem_limit_bytes=_VMEM_LIMIT),
    )(x, wk, b.reshape(1, Cout))


# ------------------------------- parameters --------------------------------
def _parity_weights(w_hwio):
    # w: (3, 3, Cin, Cout) HWIO -> even/odd parity-combined weights (3, 2*Cin, Cout)
    we = jnp.concatenate([w_hwio[:, 0], w_hwio[:, 1] + w_hwio[:, 2]], axis=1)
    wo = jnp.concatenate([w_hwio[:, 0] + w_hwio[:, 1], w_hwio[:, 2]], axis=1)
    return we, wo


def init_params(key, latent_dim, img_size, channels):
    S = img_size // 4
    C = 128
    ks = jax.random.split(key, 8)
    std = 0.05

    # Linear: PyTorch columns are ordered (c, y, x) [view(B,128,S,S)]; permute
    # once at init to (y, x, c) so the kernel output reshapes to NHWC for free.
    w_l1 = std * jax.random.normal(ks[0], (latent_dim, C * S * S), jnp.float32)
    b_l1 = std * jax.random.normal(ks[1], (C * S * S,), jnp.float32)
    w_l1p = w_l1.reshape(latent_dim, C, S * S).transpose(0, 2, 1).reshape(latent_dim, S * S * C)
    b_l1p = b_l1.reshape(C, S * S).transpose(1, 0).reshape(S * S * C)

    # Conv1: 128 -> 128  (HWIO)
    w_c1 = std * jax.random.normal(ks[2], (3, 3, 128, 128), jnp.float32)
    b_c1 = std * jax.random.normal(ks[3], (128,), jnp.float32)
    we1, wo1 = _parity_weights(w_c1)

    # Conv2: 128 -> 64 (real 64 output channels; parity output 2*64=128 lanes)
    w_c2 = std * jax.random.normal(ks[4], (3, 3, 128, 64), jnp.float32)
    b_c2 = std * jax.random.normal(ks[5], (64,), jnp.float32)
    we2, wo2 = _parity_weights(w_c2)

    # Conv3: 64 -> channels; only Cout is zero-padded to 128 (lane-dense final
    # store, unmasked); K = 3*64 = 192 (no wasted contraction work).
    w_c3 = std * jax.random.normal(ks[6], (3, 3, 64, channels), jnp.float32)
    b_c3 = std * jax.random.normal(ks[7], (channels,), jnp.float32)
    w_c3p = jnp.pad(w_c3, ((0, 0), (0, 0), (0, 0), (0, 128 - channels)))
    b_c3p = jnp.pad(b_c3, (0, 128 - channels))
    wk3 = w_c3p.reshape(3, 3 * 64, 128)

    return dict(
        l1_w=w_l1p.astype(jnp.bfloat16), l1_b=b_l1p,
        bn1_g=jnp.ones((128,), jnp.float32), bn1_b=jnp.zeros((128,), jnp.float32),
        c1_we=we1.astype(jnp.bfloat16), c1_wo=wo1.astype(jnp.bfloat16), c1_b=b_c1,
        bn2_g=jnp.ones((128,), jnp.float32), bn2_b=jnp.zeros((128,), jnp.float32),
        c2_we=we2.astype(jnp.bfloat16), c2_wo=wo2.astype(jnp.bfloat16), c2_b=b_c2,
        bn3_g=jnp.ones((64,), jnp.float32), bn3_b=jnp.zeros((64,), jnp.float32),
        c3_wk=wk3.astype(jnp.bfloat16), c3_b=b_c3p,
    )


# --------------------------------- forward ---------------------------------
@functools.partial(jax.jit, static_argnums=(2, 3))
def generator_forward(z, p, img_size, channels):
    B = z.shape[0]
    S = img_size // 4

    # Linear -> (B, S*S*128) with columns ordered (y, x, c)
    h = linear(z, p["l1_w"], p["l1_b"])
    x = h.reshape(B, S, S, 128)                  # free contiguous reshape (NHWC)

    # BN(128) + Up(2) + Conv(128->128) + BN(eps=0.8) + LeakyReLU(0.2)  (fused)
    x = upsample_conv_bn_lrelu(x, p["c1_we"], p["c1_wo"], p["c1_b"],
                               p["bn2_g"], p["bn2_b"],
                               pre_bn=(p["bn1_g"], p["bn1_b"], 1e-5), eps=0.8)

    # Up(2) + Conv(128->64) + BN(eps=0.8) + LeakyReLU(0.2)  (fused)
    x = upsample_conv_bn_lrelu(x, p["c2_we"], p["c2_wo"], p["c2_b"],
                               p["bn3_g"], p["bn3_b"], eps=0.8)

    # Conv(64->channels, N padded to 128) + Tanh; drop pad channels afterwards
    y = conv_tanh(x, p["c3_wk"], p["c3_b"])
    return y[..., :channels].transpose(0, 3, 1, 2)           # NCHW, as in PyTorch


# ----------------------------------- main -----------------------------------
if __name__ == "__main__":
    # Module-consistent small config: opt.latent_dim=64, opt.img_size=16, opt.channels=3
    latent_dim, img_size, channels, batch = 64, 16, 3, 2

    z = jax.random.normal(jax.random.PRNGKey(0), (batch, latent_dim), jnp.float32)
    params = init_params(jax.random.PRNGKey(42), latent_dim, img_size, channels)

    img = generator_forward(z, params, img_size, channels)
    img = jax.block_until_ready(img)

    assert img.shape == (batch, channels, img_size, img_size)
    assert bool(jnp.all(jnp.isfinite(img)))
    print("KERNEL_OK")
</pallas_src>

<mosaic_0001>
module attributes {stable_mosaic.version = 11 : i64} {
  func.func @_linear_kernel(%arg0: i32, %arg1: memref<2x64xf32, #tpu.memory_space<vmem>>, %arg2: memref<64x2048xbf16, #tpu.memory_space<vmem>>, %arg3: memref<1x2048xf32, #tpu.memory_space<vmem>>, %arg4: memref<2x2048xf32, #tpu.memory_space<vmem>>) attributes {dimension_semantics = [#tpu.dimension_semantics<arbitrary>], iteration_bounds = array<i64: 1>, scalar_prefetch = 0 : i64, scratch_operands = 0 : i64, tpu.core_type = #tpu.core_type<tc>, window_params = [{pipeline_mode = #tpu.pipeline_mode<synchronous>, transform_indices = @transform_0, window_bounds = array<i64: 2, 64>}, {pipeline_mode = #tpu.pipeline_mode<synchronous>, transform_indices = @transform_1, window_bounds = array<i64: 64, 2048>}, {pipeline_mode = #tpu.pipeline_mode<synchronous>, transform_indices = @transform_2, window_bounds = array<i64: 1, 2048>}, {pipeline_mode = #tpu.pipeline_mode<synchronous>, transform_indices = @transform_3, window_bounds = array<i64: 2, 2048>}]} {
    %c0 = arith.constant 0 : index
    %c0_0 = arith.constant 0 : index
    %0 = vector.load %arg1[%c0, %c0_0] : memref<2x64xf32, #tpu.memory_space<vmem>>, vector<2x64xf32>
    %1 = arith.truncf %0 : vector<2x64xf32> to vector<2x64xbf16>
    %c0_1 = arith.constant 0 : index
    %c0_2 = arith.constant 0 : index
    %2 = vector.load %arg2[%c0_1, %c0_2] : memref<64x2048xbf16, #tpu.memory_space<vmem>>, vector<64x2048xbf16>
    %cst = arith.constant dense<0.000000e+00> : vector<2x2048xf32>
    %3 = tpu.matmul %1, %2, %cst {dimension_numbers = #tpu.dot_dimension_numbers<[1], [0], [0], [1], [0, 0, 1, 1], [], []>} : vector<2x64xbf16>, vector<64x2048xbf16>, vector<2x2048xf32> -> vector<2x2048xf32>
    %c0_3 = arith.constant 0 : index
    %c0_4 = arith.constant 0 : index
    %4 = vector.load %arg3[%c0_3, %c0_4] : memref<1x2048xf32, #tpu.memory_space<vmem>>, vector<1x2048xf32>
    %5 = vector.broadcast %4 : vector<1x2048xf32> to vector<2x2048xf32>
    %6 = arith.addf %3, %5 : vector<2x2048xf32>
    %c0_5 = arith.constant 0 : index
    %c0_6 = arith.constant 0 : index
    %7 = vector.load %arg4[%c0_5, %c0_6] : memref<2x2048xf32, #tpu.memory_space<vmem>>, vector<2x2048xf32>
    tpu.vector_store %arg4[%c0_5, %c0_6], %6 {strides = array<i32>} : memref<2x2048xf32, #tpu.memory_space<vmem>>, vector<2x2048xf32>,
    return
  }
  func.func @transform_0(%arg0: i32) -> (i32, i32) {
    %c0_i32 = arith.constant 0 : i32
    %c0_i32_0 = arith.constant 0 : i32
    %c0_i32_1 = arith.constant 0 : i32
    return %c0_i32, %c0_i32_0 : i32, i32
  }
  func.func @transform_1(%arg0: i32) -> (i32, i32) {
    %c0_i32 = arith.constant 0 : i32
    %c0_i32_0 = arith.constant 0 : i32
    %c0_i32_1 = arith.constant 0 : i32
    return %c0_i32, %c0_i32_0 : i32, i32
  }
  func.func @transform_2(%arg0: i32) -> (i32, i32) {
    %c0_i32 = arith.constant 0 : i32
    %c0_i32_0 = arith.constant 0 : i32
    %c0_i32_1 = arith.constant 0 : i32
    return %c0_i32, %c0_i32_0 : i32, i32
  }
  func.func @transform_3(%arg0: i32) -> (i32, i32) {
    %c0_i32 = arith.constant 0 : i32
    %c0_i32_0 = arith.constant 0 : i32
    %c0_i32_1 = arith.constant 0 : i32
    return %c0_i32, %c0_i32_0 : i32, i32
  }
}

module attributes {stable_mosaic.version = 11 : i64} {
  func.func @_upconv_kernel(%arg0: i32, %arg1: memref<2x4x4x128xf32, #tpu.memory_space<vmem>>, %arg2: memref<1x128xf32, #tpu.memory_space<vmem>>, %arg3: memref<1x128xf32, #tpu.memory_space<vmem>>, %arg4: memref<3x256x128xbf16, #tpu.memory_space<vmem>>, %arg5: memref<3x256x128xbf16, #tpu.memory_space<vmem>>, %arg6: memref<1x128xf32, #tpu.memory_space<vmem>>, %arg7: memref<1x128xf32, #tpu.memory_space<vmem>>, %arg8: memref<1x128xf32, #tpu.memory_space<vmem>>, %arg9: memref<2x8x4x256xf32, #tpu.memory_space<vmem>>, %arg10: memref<2x6x6x128xf32, #tpu.memory_space<vmem>>) attributes {dimension_semantics = [#tpu.dimension_semantics<arbitrary>], iteration_bounds = array<i64: 1>, scalar_prefetch = 0 : i64, scratch_operands = 1 : i64, tpu.core_type = #tpu.core_type<tc>, window_params = [{pipeline_mode = #tpu.pipeline_mode<synchronous>, transform_indices = @transform_0, window_bounds = array<i64: 2, 4, 4, 128>}, {pipeline_mode = #tpu.pipeline_mode<synchronous>, transform_indices = @transform_1, window_bounds = array<i64: 1, 128>}, {pipeline_mode = #tpu.pipeline_mode<synchronous>, transform_indices = @transform_2, window_bounds = array<i64: 1, 128>}, {pipeline_mode = #tpu.pipeline_mode<synchronous>, transform_indices = @transform_3, window_bounds = array<i64: 3, 256, 128>}, {pipeline_mode = #tpu.pipeline_mode<synchronous>, transform_indices = @transform_4, window_bounds = array<i64: 3, 256, 128>}, {pipeline_mode = #tpu.pipeline_mode<synchronous>, transform_indices = @transform_5, window_bounds = array<i64: 1, 128>}, {pipeline_mode = #tpu.pipeline_mode<synchronous>, transform_indices = @transform_6, window_bounds = array<i64: 1, 128>}, {pipeline_mode = #tpu.pipeline_mode<synchronous>, transform_indices = @transform_7, window_bounds = array<i64: 1, 128>}, {pipeline_mode = #tpu.pipeline_mode<synchronous>, transform_indices = @transform_8, window_bounds = array<i64: 2, 8, 4, 256>}]} {
    %c0 = arith.constant 0 : index
    %c0_0 = arith.constant 0 : index
    %c0_1 = arith.constant 0 : index
    %c0_2 = arith.constant 0 : index
    %0 = vector.load %arg1[%c0, %c0_0, %c0_1, %c0_2] : memref<2x4x4x128xf32, #tpu.memory_space<vmem>>, vector<2x4x4x128xf32>
    %cst = arith.constant dense<0.000000e+00> : vector<4x128xf32>
    %1 = vector.multi_reduction <add>, %0, %cst [0, 1] : vector<2x4x4x128xf32> to vector<4x128xf32>
    %cst_3 = arith.constant dense<0.000000e+00> : vector<128xf32>
    %2 = vector.multi_reduction <add>, %1, %cst_3 [0] : vector<4x128xf32> to vector<128xf32>
    %3 = vector.shape_cast %2 : vector<128xf32> to vector<1x128xf32>
    %cst_4 = arith.constant 3.200000e+01 : f32
    %4 = vector.broadcast %cst_4 : f32 to vector<1x128xf32>
    %5 = arith.divf %3, %4 : vector<1x128xf32>
    %6 = vector.shape_cast %5 : vector<1x128xf32> to vector<1x1x1x128xf32>
    %7 = vector.broadcast %6 : vector<1x1x1x128xf32> to vector<2x4x4x128xf32>
    %8 = arith.subf %0, %7 : vector<2x4x4x128xf32>
    %9 = arith.mulf %8, %8 : vector<2x4x4x128xf32>
    %cst_5 = arith.constant dense<0.000000e+00> : vector<4x128xf32>
    %10 = vector.multi_reduction <add>, %9, %cst_5 [0, 1] : vector<2x4x4x128xf32> to vector<4x128xf32>
    %cst_6 = arith.constant dense<0.000000e+00> : vector<128xf32>
    %11 = vector.multi_reduction <add>, %10, %cst_6 [0] : vector<4x128xf32> to vector<128xf32>
    %12 = vector.shape_cast %11 : vector<128xf32> to vector<1x128xf32>
    %cst_7 = arith.constant 3.200000e+01 : f32
    %13 = vector.broadcast %cst_7 : f32 to vector<1x128xf32>
    %14 = arith.divf %12, %13 : vector<1x128xf32>
    %c0_8 = arith.constant 0 : index
    %c0_9 = arith.constant 0 : index
    %15 = vector.load %arg2[%c0_8, %c0_9] : memref<1x128xf32, #tpu.memory_space<vmem>>, vector<1x128xf32>
    %cst_10 = arith.constant 9.99999974E-6 : f32
    %16 = vector.broadcast %cst_10 : f32 to vector<1x128xf32>
    %17 = arith.addf %14, %16 : vector<1x128xf32>
    %18 = math.rsqrt %17 : vector<1x128xf32>
    %19 = arith.mulf %15, %18 : vector<1x128xf32>
    %20 = vector.shape_cast %19 : vector<1x128xf32> to vector<1x1x1x128xf32>
    %21 = vector.broadcast %20 : vector<1x1x1x128xf32> to vector<2x4x4x128xf32>
    %22 = arith.mulf %8, %21 : vector<2x4x4x128xf32>
    %c0_11 = arith.constant 0 : index
    %c0_12 = arith.constant 0 : index
    %23 = vector.load %arg3[%c0_11, %c0_12] : memref<1x128xf32, #tpu.memory_space<vmem>>, vector<1x128xf32>
    %24 = vector.shape_cast %23 : vector<1x128xf32> to vector<1x1x1x128xf32>
    %25 = vector.broadcast %24 : vector<1x1x1x128xf32> to vector<2x4x4x128xf32>
    %26 = arith.addf %22, %25 : vector<2x4x4x128xf32>
    %cst_13 = arith.constant 0.000000e+00 : f32
    %27 = vector.broadcast %cst_13 : f32 to vector<2x6x6x128xf32>
    %c0_14 = arith.constant 0 : index
    %c0_15 = arith.constant 0 : index
    %c0_16 = arith.constant 0 : index
    %c0_17 = arith.constant 0 : index
    %28 = vector.load %arg10[%c0_14, %c0_15, %c0_16, %c0_17] : memref<2x6x6x128xf32, #tpu.memory_space<vmem>>, vector<2x6x6x128xf32>
    tpu.vector_store %arg10[%c0_14, %c0_15, %c0_16, %c0_17], %27 {strides = array<i32>} : memref<2x6x6x128xf32, #tpu.memory_space<vmem>>, vector<2x6x6x128xf32>,
    %c0_18 = arith.constant 0 : index
    %c1 = arith.constant 1 : index
    %c1_19 = arith.constant 1 : index
    %c0_20 = arith.constant 0 : index
    %29 = vector.load %arg10[%c0_18, %c1, %c1_19, %c0_20] : memref<2x6x6x128xf32, #tpu.memory_space<vmem>>, vector<2x4x4x128xf32>
    tpu.vector_store %arg10[%c0_18, %c1, %c1_19, %c0_20], %26 {strides = array<i32>} : memref<2x6x6x128xf32, #tpu.memory_space<vmem>>, vector<2x4x4x128xf32>,
    %c0_21 = arith.constant 0 : index
    %c0_22 = arith.constant 0 : index
    %c0_23 = arith.constant 0 : index
    %c0_24 = arith.constant 0 : index
    %30 = vector.load %arg10[%c0_21, %c0_22, %c0_23, %c0_24] : memref<2x6x6x128xf32, #tpu.memory_space<vmem>>, vector<2x6x6x128xf32>
    %31 = vector.extract_strided_slice %30 {offsets = [0, 0, 0, 0], sizes = [2, 6, 4, 128], strides = [1, 1, 1, 1]} : vector<2x6x6x128xf32> to vector<2x6x4x128xf32>
    %32 = vector.extract_strided_slice %30 {offsets = [0, 0, 1, 0], sizes = [2, 6, 4, 128], strides = [1, 1, 1, 1]} : vector<2x6x6x128xf32> to vector<2x6x4x128xf32>
    %33 = vector.extract_strided_slice %30 {offsets = [0, 0, 2, 0], sizes = [2, 6, 4, 128], strides = [1, 1, 1, 1]} : vector<2x6x6x128xf32> to vector<2x6x4x128xf32>
    %34 = tpu.concatenate %31, %32 in 3 : vector<2x6x4x128xf32>, vector<2x6x4x128xf32> -> vector<2x6x4x256xf32>
    %35 = arith.truncf %34 : vector<2x6x4x256xf32> to vector<2x6x4x256xbf16>
    %36 = tpu.concatenate %32, %33 in 3 : vector<2x6x4x128xf32>, vector<2x6x4x128xf32> -> vector<2x6x4x256xf32>
    %37 = arith.truncf %36 : vector<2x6x4x256xf32> to vector<2x6x4x256xbf16>
    %38 = vector.shape_cast %35 : vector<2x6x4x256xbf16> to vector<2x6x1x4x256xbf16>
    %39 = vector.shape_cast %38 : vector<2x6x1x4x256xbf16> to vector<2x6x1x4x256xbf16>
    %40 = vector.broadcast %39 : vector<2x6x1x4x256xbf16> to vector<2x6x2x4x256xbf16>
    %41 = vector.shape_cast %40 : vector<2x6x2x4x256xbf16> to vector<2x12x4x256xbf16>
    %42 = vector.shape_cast %37 : vector<2x6x4x256xbf16> to vector<2x6x1x4x256xbf16>
    %43 = vector.shape_cast %42 : vector<2x6x1x4x256xbf16> to vector<2x6x1x4x256xbf16>
    %44 = vector.broadcast %43 : vector<2x6x1x4x256xbf16> to vector<2x6x2x4x256xbf16>
    %45 = vector.shape_cast %44 : vector<2x6x2x4x256xbf16> to vector<2x12x4x256xbf16>
    %cst_25 = arith.constant 0.000000e+00 : f32
    %46 = vector.broadcast %cst_25 : f32 to vector<64x128xf32>
    %cst_26 = arith.constant 0.000000e+00 : f32
    %47 = vector.broadcast %cst_26 : f32 to vector<64x128xf32>
    %48 = vector.extract_strided_slice %41 {offsets = [0, 1, 0, 0], sizes = [2, 8, 4, 256], strides = [1, 1, 1, 1]} : vector<2x12x4x256xbf16> to vector<2x8x4x256xbf16>
    %49 = vector.shape_cast %48 : vector<2x8x4x256xbf16> to vector<64x256xbf16>
    %50 = vector.extract_strided_slice %45 {offsets = [0, 1, 0, 0], sizes = [2, 8, 4, 256], strides = [1, 1, 1, 1]} : vector<2x12x4x256xbf16> to vector<2x8x4x256xbf16>
    %51 = vector.shape_cast %50 : vector<2x8x4x256xbf16> to vector<64x256xbf16>
    %c0_27 = arith.constant 0 : index
    %c0_28 = arith.constant 0 : index
    %c0_29 = arith.constant 0 : index
    %52 = vector.load %arg4[%c0_27, %c0_28, %c0_29] : memref<3x256x128xbf16, #tpu.memory_space<vmem>>, vector<1x256x128xbf16>
    %53 = vector.shape_cast %52 : vector<1x256x128xbf16> to vector<256x128xbf16>
    %cst_30 = arith.constant dense<0.000000e+00> : vector<64x128xf32>
    %54 = tpu.matmul %49, %53, %cst_30 {dimension_numbers = #tpu.dot_dimension_numbers<[1], [0], [0], [1], [0, 0, 1, 1], [], []>} : vector<64x256xbf16>, vector<256x128xbf16>, vector<64x128xf32> -> vector<64x128xf32>
    %55 = arith.addf %46, %54 : vector<64x128xf32>
    %c0_31 = arith.constant 0 : index
    %c0_32 = arith.constant 0 : index
    %c0_33 = arith.constant 0 : index
    %56 = vector.load %arg5[%c0_31, %c0_32, %c0_33] : memref<3x256x128xbf16, #tpu.memory_space<vmem>>, vector<1x256x128xbf16>
    %57 = vector.shape_cast %56 : vector<1x256x128xbf16> to vector<256x128xbf16>
    %cst_34 = arith.constant dense<0.000000e+00> : vector<64x128xf32>
    %58 = tpu.matmul %51, %57, %cst_34 {dimension_numbers = #tpu.dot_dimension_numbers<[1], [0], [0], [1], [0, 0, 1, 1], [], []>} : vector<64x256xbf16>, vector<256x128xbf16>, vector<64x128xf32> -> vector<64x128xf32>
    %59 = arith.addf %47, %58 : vector<64x128xf32>
    %60 = vector.extract_strided_slice %41 {offsets = [0, 2, 0, 0], sizes = [2, 8, 4, 256], strides = [1, 1, 1, 1]} : vector<2x12x4x256xbf16> to vector<2x8x4x256xbf16>
    %61 = vector.shape_cast %60 : vector<2x8x4x256xbf16> to vector<64x256xbf16>
    %62 = vector.extract_strided_slice %45 {offsets = [0, 2, 0, 0], sizes = [2, 8, 4, 256], strides = [1, 1, 1, 1]} : vector<2x12x4x256xbf16> to vector<2x8x4x256xbf16>
    %63 = vector.shape_cast %62 : vector<2x8x4x256xbf16> to vector<64x256xbf16>
    %c1_35 = arith.constant 1 : index
    %c0_36 = arith.constant 0 : index
    %c0_37 = arith.constant 0 : index
    %64 = vector.load %arg4[%c1_35, %c0_36, %c0_37] : memref<3x256x128xbf16, #tpu.memory_space<vmem>>, vector<1x256x128xbf16>
    %65 = vector.shape_cast %64 : vector<1x256x128xbf16> to vector<256x128xbf16>
    %cst_38 = arith.constant dense<0.000000e+00> : vector<64x128xf32>
    %66 = tpu.matmul %61, %65, %cst_38 {dimension_numbers = #tpu.dot_dimension_numbers<[1], [0], [0], [1], [0, 0, 1, 1], [], []>} : vector<64x256xbf16>, vector<256x128xbf16>, vector<64x128xf32> -> vector<64x128xf32>
    %67 = arith.addf %55, %66 : vector<64x128xf32>
    %c1_39 = arith.constant 1 : index
    %c0_40 = arith.constant 0 : index
    %c0_41 = arith.constant 0 : index
    %68 = vector.load %arg5[%c1_39, %c0_40, %c0_41] : memref<3x256x128xbf16, #tpu.memory_space<vmem>>, vector<1x256x128xbf16>
    %69 = vector.shape_cast %68 : vector<1x256x128xbf16> to vector<256x128xbf16>
    %cst_42 = arith.constant dense<0.000000e+00> : vector<64x128xf32>
    %70 = tpu.matmul %63, %69, %cst_42 {dimension_numbers = #tpu.dot_dimension_numbers<[1], [0], [0], [1], [0, 0, 1, 1], [], []>} : vector<64x256xbf16>, vector<256x128xbf16>, vector<64x128xf32> -> vector<64x128xf32>
    %71 = arith.addf %59, %70 : vector<64x128xf32>
    %72 = vector.extract_strided_slice %41 {offsets = [0, 3, 0, 0], sizes = [2, 8, 4, 256], strides = [1, 1, 1, 1]} : vector<2x12x4x256xbf16> to vector<2x8x4x256xbf16>
    %73 = vector.shape_cast %72 : vector<2x8x4x256xbf16> to vector<64x256xbf16>
    %74 = vector.extract_strided_slice %45 {offsets = [0, 3, 0, 0], sizes = [2, 8, 4, 256], strides = [1, 1, 1, 1]} : vector<2x12x4x256xbf16> to vector<2x8x4x256xbf16>
    %75 = vector.shape_cast %74 : vector<2x8x4x256xbf16> to vector<64x256xbf16>
    %c2 = arith.constant 2 : index
    %c0_43 = arith.constant 0 : index
    %c0_44 = arith.constant 0 : index
    %76 = vector.load %arg4[%c2, %c0_43, %c0_44] : memref<3x256x128xbf16, #tpu.memory_space<vmem>>, vector<1x256x128xbf16>
    %77 = vector.shape_cast %76 : vector<1x256x128xbf16> to vector<256x128xbf16>
    %cst_45 = arith.constant dense<0.000000e+00> : vector<64x128xf32>
    %78 = tpu.matmul %73, %77, %cst_45 {dimension_numbers = #tpu.dot_dimension_numbers<[1], [0], [0], [1], [0, 0, 1, 1], [], []>} : vector<64x256xbf16>, vector<256x128xbf16>, vector<64x128xf32> -> vector<64x128xf32>
    %79 = arith.addf %67, %78 : vector<64x128xf32>
    %c2_46 = arith.constant 2 : index
    %c0_47 = arith.constant 0 : index
    %c0_48 = arith.constant 0 : index
    %80 = vector.load %arg5[%c2_46, %c0_47, %c0_48] : memref<3x256x128xbf16, #tpu.memory_space<vmem>>, vector<1x256x128xbf16>
    %81 = vector.shape_cast %80 : vector<1x256x128xbf16> to vector<256x128xbf16>
    %cst_49 = arith.constant dense<0.000000e+00> : vector<64x128xf32>
    %82 = tpu.matmul %75, %81, %cst_49 {dimension_numbers = #tpu.dot_dimension_numbers<[1], [0], [0], [1], [0, 0, 1, 1], [], []>} : vector<64x256xbf16>, vector<256x128xbf16>, vector<64x128xf32> -> vector<64x128xf32>
    %83 = arith.addf %71, %82 : vector<64x128xf32>
    %c0_50 = arith.constant 0 : index
    %c0_51 = arith.constant 0 : index
    %84 = vector.load %arg6[%c0_50, %c0_51] : memref<1x128xf32, #tpu.memory_space<vmem>>, vector<1x128xf32>
    %85 = vector.broadcast %84 : vector<1x128xf32> to vector<64x128xf32>
    %86 = arith.addf %79, %85 : vector<64x128xf32>
    %c0_52 = arith.constant 0 : index
    %c0_53 = arith.constant 0 : index
    %87 = vector.load %arg6[%c0_52, %c0_53] : memref<1x128xf32, #tpu.memory_space<vmem>>, vector<1x128xf32>
    %88 = vector.broadcast %87 : vector<1x128xf32> to vector<64x128xf32>
    %89 = arith.addf %83, %88 : vector<64x128xf32>
    %cst_54 = arith.constant dense<0.000000e+00> : vector<128xf32>
    %90 = vector.multi_reduction <add>, %86, %cst_54 [0] : vector<64x128xf32> to vector<128xf32>
    %91 = vector.shape_cast %90 : vector<128xf32> to vector<1x128xf32>
    %cst_55 = arith.constant dense<0.000000e+00> : vector<128xf32>
    %92 = vector.multi_reduction <add>, %89, %cst_55 [0] : vector<64x128xf32> to vector<128xf32>
    %93 = vector.shape_cast %92 : vector<128xf32> to vector<1x128xf32>
    %94 = arith.addf %91, %93 : vector<1x128xf32>
    %cst_56 = arith.constant 1.280000e+02 : f32
    %95 = vector.broadcast %cst_56 : f32 to vector<1x128xf32>
    %96 = arith.divf %94, %95 : vector<1x128xf32>
    %97 = vector.broadcast %96 : vector<1x128xf32> to vector<64x128xf32>
    %98 = arith.subf %86, %97 : vector<64x128xf32>
    %99 = vector.broadcast %96 : vector<1x128xf32> to vector<64x128xf32>
    %100 = arith.subf %89, %99 : vector<64x128xf32>
    %101 = arith.mulf %98, %98 : vector<64x128xf32>
    %cst_57 = arith.constant dense<0.000000e+00> : vector<128xf32>
    %102 = vector.multi_reduction <add>, %101, %cst_57 [0] : vector<64x128xf32> to vector<128xf32>
    %103 = vector.shape_cast %102 : vector<128xf32> to vector<1x128xf32>
    %104 = arith.mulf %100, %100 : vector<64x128xf32>
    %cst_58 = arith.constant dense<0.000000e+00> : vector<128xf32>
    %105 = vector.multi_reduction <add>, %104, %cst_58 [0] : vector<64x128xf32> to vector<128xf32>
    %106 = vector.shape_cast %105 : vector<128xf32> to vector<1x128xf32>
    %107 = arith.addf %103, %106 : vector<1x128xf32>
    %cst_59 = arith.constant 1.280000e+02 : f32
    %108 = vector.broadcast %cst_59 : f32 to vector<1x128xf32>
    %109 = arith.divf %107, %108 : vector<1x128xf32>
    %c0_60 = arith.constant 0 : index
    %c0_61 = arith.constant 0 : index
    %110 = vector.load %arg7[%c0_60, %c0_61] : memref<1x128xf32, #tpu.memory_space<vmem>>, vector<1x128xf32>
    %cst_62 = arith.constant 8.000000e-01 : f32
    %111 = vector.broadcast %cst_62 : f32 to vector<1x128xf32>
    %112 = arith.addf %109, %111 : vector<1x128xf32>
    %113 = math.rsqrt %112 : vector<1x128xf32>
    %114 = arith.mulf %110, %113 : vector<1x128xf32>
    %115 = vector.broadcast %114 : vector<1x128xf32> to vector<64x128xf32>
    %116 = arith.mulf %98, %115 : vector<64x128xf32>
    %c0_63 = arith.constant 0 : index
    %c0_64 = arith.constant 0 : index
    %117 = vector.load %arg8[%c0_63, %c0_64] : memref<1x128xf32, #tpu.memory_space<vmem>>, vector<1x128xf32>
    %118 = vector.broadcast %117 : vector<1x128xf32> to vector<64x128xf32>
    %119 = arith.addf %116, %118 : vector<64x128xf32>
    %120 = vector.broadcast %114 : vector<1x128xf32> to vector<64x128xf32>
    %121 = arith.mulf %100, %120 : vector<64x128xf32>
    %c0_65 = arith.constant 0 : index
    %c0_66 = arith.constant 0 : index
    %122 = vector.load %arg8[%c0_65, %c0_66] : memref<1x128xf32, #tpu.memory_space<vmem>>, vector<1x128xf32>
    %123 = vector.broadcast %122 : vector<1x128xf32> to vector<64x128xf32>
    %124 = arith.addf %121, %123 : vector<64x128xf32>
    %cst_67 = arith.constant 0.000000e+00 : f32
    %125 = vector.broadcast %cst_67 : f32 to vector<64x128xf32>
    %126 = arith.cmpf ogt, %119, %125 : vector<64x128xf32>
    %cst_68 = arith.constant 2.000000e-01 : f32
    %127 = vector.broadcast %cst_68 : f32 to vector<64x128xf32>
    %128 = arith.mulf %127, %119 : vector<64x128xf32>
    %129 = arith.select %126, %119, %128 : vector<64x128xi1>, vector<64x128xf32>
    %cst_69 = arith.constant 0.000000e+00 : f32
    %130 = vector.broadcast %cst_69 : f32 to vector<64x128xf32>
    %131 = arith.cmpf ogt, %124, %130 : vector<64x128xf32>
    %cst_70 = arith.constant 2.000000e-01 : f32
    %132 = vector.broadcast %cst_70 : f32 to vector<64x128xf32>
    %133 = arith.mulf %132, %124 : vector<64x128xf32>
    %134 = arith.select %131, %124, %133 : vector<64x128xi1>, vector<64x128xf32>
    %135 = vector.shape_cast %129 : vector<64x128xf32> to vector<2x8x4x128xf32>
    %c0_71 = arith.constant 0 : index
    %c0_72 = arith.constant 0 : index
    %c0_73 = arith.constant 0 : index
    %c0_74 = arith.constant 0 : index
    %136 = vector.load %arg9[%c0_71, %c0_72, %c0_73, %c0_74] : memref<2x8x4x256xf32, #tpu.memory_space<vmem>>, vector<2x8x4x128xf32>
    tpu.vector_store %arg9[%c0_71, %c0_72, %c0_73, %c0_74], %135 {strides = array<i32>} : memref<2x8x4x256xf32, #tpu.memory_space<vmem>>, vector<2x8x4x128xf32>,
    %137 = vector.shape_cast %134 : vector<64x128xf32> to vector<2x8x4x128xf32>
    %c0_75 = arith.constant 0 : index
    %c0_76 = arith.constant 0 : index
    %c0_77 = arith.constant 0 : index
    %c128 = arith.constant 128 : index
    %138 = vector.load %arg9[%c0_75, %c0_76, %c0_77, %c128] : memref<2x8x4x256xf32, #tpu.memory_space<vmem>>, vector<2x8x4x128xf32>
    tpu.vector_store %arg9[%c0_75, %c0_76, %c0_77, %c128], %137 {strides = array<i32>} : memref<2x8x4x256xf32, #tpu.memory_space<vmem>>, vector<2x8x4x128xf32>,
    return
  }
  func.func @transform_0(%arg0: i32) -> (i32, i32, i32, i32) {
    %c0_i32 = arith.constant 0 : i32
    %c0_i32_0 = arith.constant 0 : i32
    %c0_i32_1 = arith.constant 0 : i32
    %c0_i32_2 = arith.constant 0 : i32
    %c0_i32_3 = arith.constant 0 : i32
    return %c0_i32, %c0_i32_0, %c0_i32_1, %c0_i32_2 : i32, i32, i32, i32
  }
  func.func @transform_1(%arg0: i32) -> (i32, i32) {
    %c0_i32 = arith.constant 0 : i32
    %c0_i32_0 = arith.constant 0 : i32
    %c0_i32_1 = arith.constant 0 : i32
    return %c0_i32, %c0_i32_0 : i32, i32
  }
  func.func @transform_2(%arg0: i32) -> (i32, i32) {
    %c0_i32 = arith.constant 0 : i32
    %c0_i32_0 = arith.constant 0 : i32
    %c0_i32_1 = arith.constant 0 : i32
    return %c0_i32, %c0_i32_0 : i32, i32
  }
  func.func @transform_3(%arg0: i32) -> (i32, i32, i32) {
    %c0_i32 = arith.constant 0 : i32
    %c0_i32_0 = arith.constant 0 : i32
    %c0_i32_1 = arith.constant 0 : i32
    %c0_i32_2 = arith.constant 0 : i32
    return %c0_i32, %c0_i32_0, %c0_i32_1 : i32, i32, i32
  }
  func.func @transform_4(%arg0: i32) -> (i32, i32, i32) {
    %c0_i32 = arith.constant 0 : i32
    %c0_i32_0 = arith.constant 0 : i32
    %c0_i32_1 = arith.constant 0 : i32
    %c0_i32_2 = arith.constant 0 : i32
    return %c0_i32, %c0_i32_0, %c0_i32_1 : i32, i32, i32
  }
  func.func @transform_5(%arg0: i32) -> (i32, i32) {
    %c0_i32 = arith.constant 0 : i32
    %c0_i32_0 = arith.constant 0 : i32
    %c0_i32_1 = arith.constant 0 : i32
    return %c0_i32, %c0_i32_0 : i32, i32
  }
  func.func @transform_6(%arg0: i32) -> (i32, i32) {
    %c0_i32 = arith.constant 0 : i32
    %c0_i32_0 = arith.constant 0 : i32
    %c0_i32_1 = arith.constant 0 : i32
    return %c0_i32, %c0_i32_0 : i32, i32
  }
  func.func @transform_7(%arg0: i32) -> (i32, i32) {
    %c0_i32 = arith.constant 0 : i32
    %c0_i32_0 = arith.constant 0 : i32
    %c0_i32_1 = arith.constant 0 : i32
    return %c0_i32, %c0_i32_0 : i32, i32
  }
  func.func @transform_8(%arg0: i32) -> (i32, i32, i32, i32) {
    %c0_i32 = arith.constant 0 : i32
    %c0_i32_0 = arith.constant 0 : i32
    %c0_i32_1 = arith.constant 0 : i32
    %c0_i32_2 = arith.constant 0 : i32
    %c0_i32_3 = arith.constant 0 : i32
    return %c0_i32, %c0_i32_0, %c0_i32_1, %c0_i32_2 : i32, i32, i32, i32
  }
}

module attributes {stable_mosaic.version = 11 : i64} {
  func.func @_upconv_kernel(%arg0: i32, %arg1: memref<2x8x8x128xf32, #tpu.memory_space<vmem>>, %arg2: memref<3x256x64xbf16, #tpu.memory_space<vmem>>, %arg3: memref<3x256x64xbf16, #tpu.memory_space<vmem>>, %arg4: memref<1x64xf32, #tpu.memory_space<vmem>>, %arg5: memref<1x64xf32, #tpu.memory_space<vmem>>, %arg6: memref<1x64xf32, #tpu.memory_space<vmem>>, %arg7: memref<2x16x8x128xf32, #tpu.memory_space<vmem>>, %arg8: memref<2x10x10x128xf32, #tpu.memory_space<vmem>>) attributes {dimension_semantics = [#tpu.dimension_semantics<arbitrary>], iteration_bounds = array<i64: 1>, scalar_prefetch = 0 : i64, scratch_operands = 1 : i64, tpu.core_type = #tpu.core_type<tc>, window_params = [{pipeline_mode = #tpu.pipeline_mode<synchronous>, transform_indices = @transform_0, window_bounds = array<i64: 2, 8, 8, 128>}, {pipeline_mode = #tpu.pipeline_mode<synchronous>, transform_indices = @transform_1, window_bounds = array<i64: 3, 256, 64>}, {pipeline_mode = #tpu.pipeline_mode<synchronous>, transform_indices = @transform_2, window_bounds = array<i64: 3, 256, 64>}, {pipeline_mode = #tpu.pipeline_mode<synchronous>, transform_indices = @transform_3, window_bounds = array<i64: 1, 64>}, {pipeline_mode = #tpu.pipeline_mode<synchronous>, transform_indices = @transform_4, window_bounds = array<i64: 1, 64>}, {pipeline_mode = #tpu.pipeline_mode<synchronous>, transform_indices = @transform_5, window_bounds = array<i64: 1, 64>}, {pipeline_mode = #tpu.pipeline_mode<synchronous>, transform_indices = @transform_6, window_bounds = array<i64: 2, 16, 8, 128>}]} {
    %c0 = arith.constant 0 : index
    %c0_0 = arith.constant 0 : index
    %c0_1 = arith.constant 0 : index
    %c0_2 = arith.constant 0 : index
    %0 = vector.load %arg1[%c0, %c0_0, %c0_1, %c0_2] : memref<2x8x8x128xf32, #tpu.memory_space<vmem>>, vector<2x8x8x128xf32>
    %cst = arith.constant 0.000000e+00 : f32
    %1 = vector.broadcast %cst : f32 to vector<2x10x10x128xf32>
    %c0_3 = arith.constant 0 : index
    %c0_4 = arith.constant 0 : index
    %c0_5 = arith.constant 0 : index
    %c0_6 = arith.constant 0 : index
    %2 = vector.load %arg8[%c0_3, %c0_4, %c0_5, %c0_6] : memref<2x10x10x128xf32, #tpu.memory_space<vmem>>, vector<2x10x10x128xf32>
    tpu.vector_store %arg8[%c0_3, %c0_4, %c0_5, %c0_6], %1 {strides = array<i32>} : memref<2x10x10x128xf32, #tpu.memory_space<vmem>>, vector<2x10x10x128xf32>,
    %c0_7 = arith.constant 0 : index
    %c1 = arith.constant 1 : index
    %c1_8 = arith.constant 1 : index
    %c0_9 = arith.constant 0 : index
    %3 = vector.load %arg8[%c0_7, %c1, %c1_8, %c0_9] : memref<2x10x10x128xf32, #tpu.memory_space<vmem>>, vector<2x8x8x128xf32>
    tpu.vector_store %arg8[%c0_7, %c1, %c1_8, %c0_9], %0 {strides = array<i32>} : memref<2x10x10x128xf32, #tpu.memory_space<vmem>>, vector<2x8x8x128xf32>,
    %c0_10 = arith.constant 0 : index
    %c0_11 = arith.constant 0 : index
    %c0_12 = arith.constant 0 : index
    %c0_13 = arith.constant 0 : index
    %4 = vector.load %arg8[%c0_10, %c0_11, %c0_12, %c0_13] : memref<2x10x10x128xf32, #tpu.memory_space<vmem>>, vector<2x10x10x128xf32>
    %5 = vector.extract_strided_slice %4 {offsets = [0, 0, 0, 0], sizes = [2, 10, 8, 128], strides = [1, 1, 1, 1]} : vector<2x10x10x128xf32> to vector<2x10x8x128xf32>
    %6 = vector.extract_strided_slice %4 {offsets = [0, 0, 1, 0], sizes = [2, 10, 8, 128], strides = [1, 1, 1, 1]} : vector<2x10x10x128xf32> to vector<2x10x8x128xf32>
    %7 = vector.extract_strided_slice %4 {offsets = [0, 0, 2, 0], sizes = [2, 10, 8, 128], strides = [1, 1, 1, 1]} : vector<2x10x10x128xf32> to vector<2x10x8x128xf32>
    %8 = tpu.concatenate %5, %6 in 3 : vector<2x10x8x128xf32>, vector<2x10x8x128xf32> -> vector<2x10x8x256xf32>
    %9 = arith.truncf %8 : vector<2x10x8x256xf32> to vector<2x10x8x256xbf16>
    %10 = tpu.concatenate %6, %7 in 3 : vector<2x10x8x128xf32>, vector<2x10x8x128xf32> -> vector<2x10x8x256xf32>
    %11 = arith.truncf %10 : vector<2x10x8x256xf32> to vector<2x10x8x256xbf16>
    %12 = vector.shape_cast %9 : vector<2x10x8x256xbf16> to vector<2x10x1x8x256xbf16>
    %13 = vector.shape_cast %12 : vector<2x10x1x8x256xbf16> to vector<2x10x1x8x256xbf16>
    %14 = vector.broadcast %13 : vector<2x10x1x8x256xbf16> to vector<2x10x2x8x256xbf16>
    %15 = vector.shape_cast %14 : vector<2x10x2x8x256xbf16> to vector<2x20x8x256xbf16>
    %16 = vector.shape_cast %11 : vector<2x10x8x256xbf16> to vector<2x10x1x8x256xbf16>
    %17 = vector.shape_cast %16 : vector<2x10x1x8x256xbf16> to vector<2x10x1x8x256xbf16>
    %18 = vector.broadcast %17 : vector<2x10x1x8x256xbf16> to vector<2x10x2x8x256xbf16>
    %19 = vector.shape_cast %18 : vector<2x10x2x8x256xbf16> to vector<2x20x8x256xbf16>
    %cst_14 = arith.constant 0.000000e+00 : f32
    %20 = vector.broadcast %cst_14 : f32 to vector<256x64xf32>
    %cst_15 = arith.constant 0.000000e+00 : f32
    %21 = vector.broadcast %cst_15 : f32 to vector<256x64xf32>
    %22 = vector.extract_strided_slice %15 {offsets = [0, 1, 0, 0], sizes = [2, 16, 8, 256], strides = [1, 1, 1, 1]} : vector<2x20x8x256xbf16> to vector<2x16x8x256xbf16>
    %23 = vector.shape_cast %22 : vector<2x16x8x256xbf16> to vector<256x256xbf16>
    %24 = vector.extract_strided_slice %19 {offsets = [0, 1, 0, 0], sizes = [2, 16, 8, 256], strides = [1, 1, 1, 1]} : vector<2x20x8x256xbf16> to vector<2x16x8x256xbf16>
    %25 = vector.shape_cast %24 : vector<2x16x8x256xbf16> to vector<256x256xbf16>
    %c0_16 = arith.constant 0 : index
    %c0_17 = arith.constant 0 : index
    %c0_18 = arith.constant 0 : index
    %26 = vector.load %arg2[%c0_16, %c0_17, %c0_18] : memref<3x256x64xbf16, #tpu.memory_space<vmem>>, vector<1x256x64xbf16>
    %27 = vector.shape_cast %26 : vector<1x256x64xbf16> to vector<256x64xbf16>
    %cst_19 = arith.constant dense<0.000000e+00> : vector<256x64xf32>
    %28 = tpu.matmul %23, %27, %cst_19 {dimension_numbers = #tpu.dot_dimension_numbers<[1], [0], [0], [1], [0, 0, 1, 1], [], []>} : vector<256x256xbf16>, vector<256x64xbf16>, vector<256x64xf32> -> vector<256x64xf32>
    %29 = arith.addf %20, %28 : vector<256x64xf32>
    %c0_20 = arith.constant 0 : index
    %c0_21 = arith.constant 0 : index
    %c0_22 = arith.constant 0 : index
    %30 = vector.load %arg3[%c0_20, %c0_21, %c0_22] : memref<3x256x64xbf16, #tpu.memory_space<vmem>>, vector<1x256x64xbf16>
    %31 = vector.shape_cast %30 : vector<1x256x64xbf16> to vector<256x64xbf16>
    %cst_23 = arith.constant dense<0.000000e+00> : vector<256x64xf32>
    %32 = tpu.matmul %25, %31, %cst_23 {dimension_numbers = #tpu.dot_dimension_numbers<[1], [0], [0], [1], [0, 0, 1, 1], [], []>} : vector<256x256xbf16>, vector<256x64xbf16>, vector<256x64xf32> -> vector<256x64xf32>
    %33 = arith.addf %21, %32 : vector<256x64xf32>
    %34 = vector.extract_strided_slice %15 {offsets = [0, 2, 0, 0], sizes = [2, 16, 8, 256], strides = [1, 1, 1, 1]} : vector<2x20x8x256xbf16> to vector<2x16x8x256xbf16>
    %35 = vector.shape_cast %34 : vector<2x16x8x256xbf16> to vector<256x256xbf16>
    %36 = vector.extract_strided_slice %19 {offsets = [0, 2, 0, 0], sizes = [2, 16, 8, 256], strides = [1, 1, 1, 1]} : vector<2x20x8x256xbf16> to vector<2x16x8x256xbf16>
    %37 = vector.shape_cast %36 : vector<2x16x8x256xbf16> to vector<256x256xbf16>
    %c1_24 = arith.constant 1 : index
    %c0_25 = arith.constant 0 : index
    %c0_26 = arith.constant 0 : index
    %38 = vector.load %arg2[%c1_24, %c0_25, %c0_26] : memref<3x256x64xbf16, #tpu.memory_space<vmem>>, vector<1x256x64xbf16>
    %39 = vector.shape_cast %38 : vector<1x256x64xbf16> to vector<256x64xbf16>
    %cst_27 = arith.constant dense<0.000000e+00> : vector<256x64xf32>
    %40 = tpu.matmul %35, %39, %cst_27 {dimension_numbers = #tpu.dot_dimension_numbers<[1], [0], [0], [1], [0, 0, 1, 1], [], []>} : vector<256x256xbf16>, vector<256x64xbf16>, vector<256x64xf32> -> vector<256x64xf32>
    %41 = arith.addf %29, %40 : vector<256x64xf32>
    %c1_28 = arith.constant 1 : index
    %c0_29 = arith.constant 0 : index
    %c0_30 = arith.constant 0 : index
    %42 = vector.load %arg3[%c1_28, %c0_29, %c0_30] : memref<3x256x64xbf16, #tpu.memory_space<vmem>>, vector<1x256x64xbf16>
    %43 = vector.shape_cast %42 : vector<1x256x64xbf16> to vector<256x64xbf16>
    %cst_31 = arith.constant dense<0.000000e+00> : vector<256x64xf32>
    %44 = tpu.matmul %37, %43, %cst_31 {dimension_numbers = #tpu.dot_dimension_numbers<[1], [0], [0], [1], [0, 0, 1, 1], [], []>} : vector<256x256xbf16>, vector<256x64xbf16>, vector<256x64xf32> -> vector<256x64xf32>
    %45 = arith.addf %33, %44 : vector<256x64xf32>
    %46 = vector.extract_strided_slice %15 {offsets = [0, 3, 0, 0], sizes = [2, 16, 8, 256], strides = [1, 1, 1, 1]} : vector<2x20x8x256xbf16> to vector<2x16x8x256xbf16>
    %47 = vector.shape_cast %46 : vector<2x16x8x256xbf16> to vector<256x256xbf16>
    %48 = vector.extract_strided_slice %19 {offsets = [0, 3, 0, 0], sizes = [2, 16, 8, 256], strides = [1, 1, 1, 1]} : vector<2x20x8x256xbf16> to vector<2x16x8x256xbf16>
    %49 = vector.shape_cast %48 : vector<2x16x8x256xbf16> to vector<256x256xbf16>
    %c2 = arith.constant 2 : index
    %c0_32 = arith.constant 0 : index
    %c0_33 = arith.constant 0 : index
    %50 = vector.load %arg2[%c2, %c0_32, %c0_33] : memref<3x256x64xbf16, #tpu.memory_space<vmem>>, vector<1x256x64xbf16>
    %51 = vector.shape_cast %50 : vector<1x256x64xbf16> to vector<256x64xbf16>
    %cst_34 = arith.constant dense<0.000000e+00> : vector<256x64xf32>
    %52 = tpu.matmul %47, %51, %cst_34 {dimension_numbers = #tpu.dot_dimension_numbers<[1], [0], [0], [1], [0, 0, 1, 1], [], []>} : vector<256x256xbf16>, vector<256x64xbf16>, vector<256x64xf32> -> vector<256x64xf32>
    %53 = arith.addf %41, %52 : vector<256x64xf32>
    %c2_35 = arith.constant 2 : index
    %c0_36 = arith.constant 0 : index
    %c0_37 = arith.constant 0 : index
    %54 = vector.load %arg3[%c2_35, %c0_36, %c0_37] : memref<3x256x64xbf16, #tpu.memory_space<vmem>>, vector<1x256x64xbf16>
    %55 = vector.shape_cast %54 : vector<1x256x64xbf16> to vector<256x64xbf16>
    %cst_38 = arith.constant dense<0.000000e+00> : vector<256x64xf32>
    %56 = tpu.matmul %49, %55, %cst_38 {dimension_numbers = #tpu.dot_dimension_numbers<[1], [0], [0], [1], [0, 0, 1, 1], [], []>} : vector<256x256xbf16>, vector<256x64xbf16>, vector<256x64xf32> -> vector<256x64xf32>
    %57 = arith.addf %45, %56 : vector<256x64xf32>
    %c0_39 = arith.constant 0 : index
    %c0_40 = arith.constant 0 : index
    %58 = vector.load %arg4[%c0_39, %c0_40] : memref<1x64xf32, #tpu.memory_space<vmem>>, vector<1x64xf32>
    %59 = vector.broadcast %58 : vector<1x64xf32> to vector<256x64xf32>
    %60 = arith.addf %53, %59 : vector<256x64xf32>
    %c0_41 = arith.constant 0 : index
    %c0_42 = arith.constant 0 : index
    %61 = vector.load %arg4[%c0_41, %c0_42] : memref<1x64xf32, #tpu.memory_space<vmem>>, vector<1x64xf32>
    %62 = vector.broadcast %61 : vector<1x64xf32> to vector<256x64xf32>
    %63 = arith.addf %57, %62 : vector<256x64xf32>
    %cst_43 = arith.constant dense<0.000000e+00> : vector<64xf32>
    %64 = vector.multi_reduction <add>, %60, %cst_43 [0] : vector<256x64xf32> to vector<64xf32>
    %65 = vector.shape_cast %64 : vector<64xf32> to vector<1x64xf32>
    %cst_44 = arith.constant dense<0.000000e+00> : vector<64xf32>
    %66 = vector.multi_reduction <add>, %63, %cst_44 [0] : vector<256x64xf32> to vector<64xf32>
    %67 = vector.shape_cast %66 : vector<64xf32> to vector<1x64xf32>
    %68 = arith.addf %65, %67 : vector<1x64xf32>
    %cst_45 = arith.constant 5.120000e+02 : f32
    %69 = vector.broadcast %cst_45 : f32 to vector<1x64xf32>
    %70 = arith.divf %68, %69 : vector<1x64xf32>
    %71 = vector.broadcast %70 : vector<1x64xf32> to vector<256x64xf32>
    %72 = arith.subf %60, %71 : vector<256x64xf32>
    %73 = vector.broadcast %70 : vector<1x64xf32> to vector<256x64xf32>
    %74 = arith.subf %63, %73 : vector<256x64xf32>
    %75 = arith.mulf %72, %72 : vector<256x64xf32>
    %cst_46 = arith.constant dense<0.000000e+00> : vector<64xf32>
    %76 = vector.multi_reduction <add>, %75, %cst_46 [0] : vector<256x64xf32> to vector<64xf32>
    %77 = vector.shape_cast %76 : vector<64xf32> to vector<1x64xf32>
    %78 = arith.mulf %74, %74 : vector<256x64xf32>
    %cst_47 = arith.constant dense<0.000000e+00> : vector<64xf32>
    %79 = vector.multi_reduction <add>, %78, %cst_47 [0] : vector<256x64xf32> to vector<64xf32>
    %80 = vector.shape_cast %79 : vector<64xf32> to vector<1x64xf32>
    %81 = arith.addf %77, %80 : vector<1x64xf32>
    %cst_48 = arith.constant 5.120000e+02 : f32
    %82 = vector.broadcast %cst_48 : f32 to vector<1x64xf32>
    %83 = arith.divf %81, %82 : vector<1x64xf32>
    %c0_49 = arith.constant 0 : index
    %c0_50 = arith.constant 0 : index
    %84 = vector.load %arg5[%c0_49, %c0_50] : memref<1x64xf32, #tpu.memory_space<vmem>>, vector<1x64xf32>
    %cst_51 = arith.constant 8.000000e-01 : f32
    %85 = vector.broadcast %cst_51 : f32 to vector<1x64xf32>
    %86 = arith.addf %83, %85 : vector<1x64xf32>
    %87 = math.rsqrt %86 : vector<1x64xf32>
    %88 = arith.mulf %84, %87 : vector<1x64xf32>
    %89 = vector.broadcast %88 : vector<1x64xf32> to vector<256x64xf32>
    %90 = arith.mulf %72, %89 : vector<256x64xf32>
    %c0_52 = arith.constant 0 : index
    %c0_53 = arith.constant 0 : index
    %91 = vector.load %arg6[%c0_52, %c0_53] : memref<1x64xf32, #tpu.memory_space<vmem>>, vector<1x64xf32>
    %92 = vector.broadcast %91 : vector<1x64xf32> to vector<256x64xf32>
    %93 = arith.addf %90, %92 : vector<256x64xf32>
    %94 = vector.broadcast %88 : vector<1x64xf32> to vector<256x64xf32>
    %95 = arith.mulf %74, %94 : vector<256x64xf32>
    %c0_54 = arith.constant 0 : index
    %c0_55 = arith.constant 0 : index
    %96 = vector.load %arg6[%c0_54, %c0_55] : memref<1x64xf32, #tpu.memory_space<vmem>>, vector<1x64xf32>
    %97 = vector.broadcast %96 : vector<1x64xf32> to vector<256x64xf32>
    %98 = arith.addf %95, %97 : vector<256x64xf32>
    %cst_56 = arith.constant 0.000000e+00 : f32
    %99 = vector.broadcast %cst_56 : f32 to vector<256x64xf32>
    %100 = arith.cmpf ogt, %93, %99 : vector<256x64xf32>
    %cst_57 = arith.constant 2.000000e-01 : f32
    %101 = vector.broadcast %cst_57 : f32 to vector<256x64xf32>
    %102 = arith.mulf %101, %93 : vector<256x64xf32>
    %103 = arith.select %100, %93, %102 : vector<256x64xi1>, vector<256x64xf32>
    %cst_58 = arith.constant 0.000000e+00 : f32
    %104 = vector.broadcast %cst_58 : f32 to vector<256x64xf32>
    %105 = arith.cmpf ogt, %98, %104 : vector<256x64xf32>
    %cst_59 = arith.constant 2.000000e-01 : f32
    %106 = vector.broadcast %cst_59 : f32 to vector<256x64xf32>
    %107 = arith.mulf %106, %98 : vector<256x64xf32>
    %108 = arith.select %105, %98, %107 : vector<256x64xi1>, vector<256x64xf32>
    %109 = tpu.concatenate %103, %108 in 1 : vector<256x64xf32>, vector<256x64xf32> -> vector<256x128xf32>
    %110 = vector.shape_cast %109 : vector<256x128xf32> to vector<2x16x8x128xf32>
    %c0_60 = arith.constant 0 : index
    %c0_61 = arith.constant 0 : index
    %c0_62 = arith.constant 0 : index
    %c0_63 = arith.constant 0 : index
    %111 = vector.load %arg7[%c0_60, %c0_61, %c0_62, %c0_63] : memref<2x16x8x128xf32, #tpu.memory_space<vmem>>, vector<2x16x8x128xf32>
    tpu.vector_store %arg7[%c0_60, %c0_61, %c0_62, %c0_63], %110 {strides = array<i32>} : memref<2x16x8x128xf32, #tpu.memory_space<vmem>>, vector<2x16x8x128xf32>,
    return
  }
  func.func @transform_0(%arg0: i32) -> (i32, i32, i32, i32) {
    %c0_i32 = arith.constant 0 : i32
    %c0_i32_0 = arith.constant 0 : i32
    %c0_i32_1 = arith.constant 0 : i32
    %c0_i32_2 = arith.constant 0 : i32
    %c0_i32_3 = arith.constant 0 : i32
    return %c0_i32, %c0_i32_0, %c0_i32_1, %c0_i32_2 : i32, i32, i32, i32
  }
  func.func @transform_1(%arg0: i32) -> (i32, i32, i32) {
    %c0_i32 = arith.constant 0 : i32
    %c0_i32_0 = arith.constant 0 : i32
    %c0_i32_1 = arith.constant 0 : i32
    %c0_i32_2 = arith.constant 0 : i32
    return %c0_i32, %c0_i32_0, %c0_i32_1 : i32, i32, i32
  }
  func.func @transform_2(%arg0: i32) -> (i32, i32, i32) {
    %c0_i32 = arith.constant 0 : i32
    %c0_i32_0 = arith.constant 0 : i32
    %c0_i32_1 = arith.constant 0 : i32
    %c0_i32_2 = arith.constant 0 : i32
    return %c0_i32, %c0_i32_0, %c0_i32_1 : i32, i32, i32
  }
  func.func @transform_3(%arg0: i32) -> (i32, i32) {
    %c0_i32 = arith.constant 0 : i32
    %c0_i32_0 = arith.constant 0 : i32
    %c0_i32_1 = arith.constant 0 : i32
    return %c0_i32, %c0_i32_0 : i32, i32
  }
  func.func @transform_4(%arg0: i32) -> (i32, i32) {
    %c0_i32 = arith.constant 0 : i32
    %c0_i32_0 = arith.constant 0 : i32
    %c0_i32_1 = arith.constant 0 : i32
    return %c0_i32, %c0_i32_0 : i32, i32
  }
  func.func @transform_5(%arg0: i32) -> (i32, i32) {
    %c0_i32 = arith.constant 0 : i32
    %c0_i32_0 = arith.constant 0 : i32
    %c0_i32_1 = arith.constant 0 : i32
    return %c0_i32, %c0_i32_0 : i32, i32
  }
  func.func @transform_6(%arg0: i32) -> (i32, i32, i32, i32) {
    %c0_i32 = arith.constant 0 : i32
    %c0_i32_0 = arith.constant 0 : i32
    %c0_i32_1 = arith.constant 0 : i32
    %c0_i32_2 = arith.constant 0 : i32
    %c0_i32_3 = arith.constant 0 : i32
    return %c0_i32, %c0_i32_0, %c0_i32_1, %c0_i32_2 : i32, i32, i32, i32
  }
}

module attributes {stable_mosaic.version = 11 : i64} {
  func.func @_conv_tanh_kernel(%arg0: i32, %arg1: memref<1x16x16x64xf32, #tpu.memory_space<vmem>>, %arg2: memref<3x192x128xbf16, #tpu.memory_space<vmem>>, %arg3: memref<1x128xf32, #tpu.memory_space<vmem>>, %arg4: memref<1x16x16x128xf32, #tpu.memory_space<vmem>>, %arg5: memref<1x18x18x64xf32, #tpu.memory_space<vmem>>) attributes {dimension_semantics = [#tpu.dimension_semantics<parallel>], iteration_bounds = array<i64: 2>, scalar_prefetch = 0 : i64, scratch_operands = 1 : i64, tpu.core_type = #tpu.core_type<tc>, window_params = [{transform_indices = @transform_0, window_bounds = array<i64: 1, 16, 16, 64>}, {pipeline_mode = #tpu.pipeline_mode<synchronous>, transform_indices = @transform_1, window_bounds = array<i64: 3, 192, 128>}, {pipeline_mode = #tpu.pipeline_mode<synchronous>, transform_indices = @transform_2, window_bounds = array<i64: 1, 128>}, {transform_indices = @transform_3, window_bounds = array<i64: 1, 16, 16, 128>}]} {
    %cst = arith.constant 0.000000e+00 : f32
    %0 = vector.broadcast %cst : f32 to vector<1x18x18x64xf32>
    %c0 = arith.constant 0 : index
    %c0_0 = arith.constant 0 : index
    %c0_1 = arith.constant 0 : index
    %c0_2 = arith.constant 0 : index
    %1 = vector.load %arg5[%c0, %c0_0, %c0_1, %c0_2] : memref<1x18x18x64xf32, #tpu.memory_space<vmem>>, vector<1x18x18x64xf32>
    tpu.vector_store %arg5[%c0, %c0_0, %c0_1, %c0_2], %0 {strides = array<i32>} : memref<1x18x18x64xf32, #tpu.memory_space<vmem>>, vector<1x18x18x64xf32>,
    %c0_3 = arith.constant 0 : index
    %c0_4 = arith.constant 0 : index
    %c0_5 = arith.constant 0 : index
    %c0_6 = arith.constant 0 : index
    %2 = vector.load %arg1[%c0_3, %c0_4, %c0_5, %c0_6] : memref<1x16x16x64xf32, #tpu.memory_space<vmem>>, vector<1x16x16x64xf32>
    %c0_7 = arith.constant 0 : index
    %c1 = arith.constant 1 : index
    %c1_8 = arith.constant 1 : index
    %c0_9 = arith.constant 0 : index
    %3 = vector.load %arg5[%c0_7, %c1, %c1_8, %c0_9] : memref<1x18x18x64xf32, #tpu.memory_space<vmem>>, vector<1x16x16x64xf32>
    tpu.vector_store %arg5[%c0_7, %c1, %c1_8, %c0_9], %2 {strides = array<i32>} : memref<1x18x18x64xf32, #tpu.memory_space<vmem>>, vector<1x16x16x64xf32>,
    %c0_10 = arith.constant 0 : index
    %c0_11 = arith.constant 0 : index
    %c0_12 = arith.constant 0 : index
    %c0_13 = arith.constant 0 : index
    %4 = vector.load %arg5[%c0_10, %c0_11, %c0_12, %c0_13] : memref<1x18x18x64xf32, #tpu.memory_space<vmem>>, vector<1x18x18x64xf32>
    %5 = vector.extract_strided_slice %4 {offsets = [0, 0, 0, 0], sizes = [1, 18, 16, 64], strides = [1, 1, 1, 1]} : vector<1x18x18x64xf32> to vector<1x18x16x64xf32>
    %6 = vector.extract_strided_slice %4 {offsets = [0, 0, 1, 0], sizes = [1, 18, 16, 64], strides = [1, 1, 1, 1]} : vector<1x18x18x64xf32> to vector<1x18x16x64xf32>
    %7 = vector.extract_strided_slice %4 {offsets = [0, 0, 2, 0], sizes = [1, 18, 16, 64], strides = [1, 1, 1, 1]} : vector<1x18x18x64xf32> to vector<1x18x16x64xf32>
    %8 = tpu.concatenate %5, %6, %7 in 3 : vector<1x18x16x64xf32>, vector<1x18x16x64xf32>, vector<1x18x16x64xf32> -> vector<1x18x16x192xf32>
    %9 = arith.truncf %8 : vector<1x18x16x192xf32> to vector<1x18x16x192xbf16>
    %cst_14 = arith.constant 0.000000e+00 : f32
    %10 = vector.broadcast %cst_14 : f32 to vector<256x128xf32>
    %11 = vector.extract_strided_slice %9 {offsets = [0, 0, 0, 0], sizes = [1, 16, 16, 192], strides = [1, 1, 1, 1]} : vector<1x18x16x192xbf16> to vector<1x16x16x192xbf16>
    %12 = vector.shape_cast %11 : vector<1x16x16x192xbf16> to vector<256x192xbf16>
    %c0_15 = arith.constant 0 : index
    %c0_16 = arith.constant 0 : index
    %c0_17 = arith.constant 0 : index
    %13 = vector.load %arg2[%c0_15, %c0_16, %c0_17] : memref<3x192x128xbf16, #tpu.memory_space<vmem>>, vector<1x192x128xbf16>
    %14 = vector.shape_cast %13 : vector<1x192x128xbf16> to vector<192x128xbf16>
    %cst_18 = arith.constant dense<0.000000e+00> : vector<256x128xf32>
    %15 = tpu.matmul %12, %14, %cst_18 {dimension_numbers = #tpu.dot_dimension_numbers<[1], [0], [0], [1], [0, 0, 1, 1], [], []>} : vector<256x192xbf16>, vector<192x128xbf16>, vector<256x128xf32> -> vector<256x128xf32>
    %16 = arith.addf %10, %15 : vector<256x128xf32>
    %17 = vector.extract_strided_slice %9 {offsets = [0, 1, 0, 0], sizes = [1, 16, 16, 192], strides = [1, 1, 1, 1]} : vector<1x18x16x192xbf16> to vector<1x16x16x192xbf16>
    %18 = vector.shape_cast %17 : vector<1x16x16x192xbf16> to vector<256x192xbf16>
    %c1_19 = arith.constant 1 : index
    %c0_20 = arith.constant 0 : index
    %c0_21 = arith.constant 0 : index
    %19 = vector.load %arg2[%c1_19, %c0_20, %c0_21] : memref<3x192x128xbf16, #tpu.memory_space<vmem>>, vector<1x192x128xbf16>
    %20 = vector.shape_cast %19 : vector<1x192x128xbf16> to vector<192x128xbf16>
    %cst_22 = arith.constant dense<0.000000e+00> : vector<256x128xf32>
    %21 = tpu.matmul %18, %20, %cst_22 {dimension_numbers = #tpu.dot_dimension_numbers<[1], [0], [0], [1], [0, 0, 1, 1], [], []>} : vector<256x192xbf16>, vector<192x128xbf16>, vector<256x128xf32> -> vector<256x128xf32>
    %22 = arith.addf %16, %21 : vector<256x128xf32>
    %23 = vector.extract_strided_slice %9 {offsets = [0, 2, 0, 0], sizes = [1, 16, 16, 192], strides = [1, 1, 1, 1]} : vector<1x18x16x192xbf16> to vector<1x16x16x192xbf16>
    %24 = vector.shape_cast %23 : vector<1x16x16x192xbf16> to vector<256x192xbf16>
    %c2 = arith.constant 2 : index
    %c0_23 = arith.constant 0 : index
    %c0_24 = arith.constant 0 : index
    %25 = vector.load %arg2[%c2, %c0_23, %c0_24] : memref<3x192x128xbf16, #tpu.memory_space<vmem>>, vector<1x192x128xbf16>
    %26 = vector.shape_cast %25 : vector<1x192x128xbf16> to vector<192x128xbf16>
    %cst_25 = arith.constant dense<0.000000e+00> : vector<256x128xf32>
    %27 = tpu.matmul %24, %26, %cst_25 {dimension_numbers = #tpu.dot_dimension_numbers<[1], [0], [0], [1], [0, 0, 1, 1], [], []>} : vector<256x192xbf16>, vector<192x128xbf16>, vector<256x128xf32> -> vector<256x128xf32>
    %28 = arith.addf %22, %27 : vector<256x128xf32>
    %c0_26 = arith.constant 0 : index
    %c0_27 = arith.constant 0 : index
    %29 = vector.load %arg3[%c0_26, %c0_27] : memref<1x128xf32, #tpu.memory_space<vmem>>, vector<1x128xf32>
    %30 = vector.broadcast %29 : vector<1x128xf32> to vector<256x128xf32>
    %31 = arith.addf %28, %30 : vector<256x128xf32>
    %32 = math.tanh %31 : vector<256x128xf32>
    %33 = vector.shape_cast %32 : vector<256x128xf32> to vector<1x16x16x128xf32>
    %c0_28 = arith.constant 0 : index
    %c0_29 = arith.constant 0 : index
    %c0_30 = arith.constant 0 : index
    %c0_31 = arith.constant 0 : index
    %34 = vector.load %arg4[%c0_28, %c0_29, %c0_30, %c0_31] : memref<1x16x16x128xf32, #tpu.memory_space<vmem>>, vector<1x16x16x128xf32>
    tpu.vector_store %arg4[%c0_28, %c0_29, %c0_30, %c0_31], %33 {strides = array<i32>} : memref<1x16x16x128xf32, #tpu.memory_space<vmem>>, vector<1x16x16x128xf32>,
    return
  }
  func.func @transform_0(%arg0: i32) -> (i32, i32, i32, i32) {
    %c0_i32 = arith.constant 0 : i32
    %c0_i32_0 = arith.constant 0 : i32
    %c0_i32_1 = arith.constant 0 : i32
    %c0_i32_2 = arith.constant 0 : i32
    return %arg0, %c0_i32, %c0_i32_0, %c0_i32_1 : i32, i32, i32, i32
  }
  func.func @transform_1(%arg0: i32) -> (i32, i32, i32) {
    %c0_i32 = arith.constant 0 : i32
    %c0_i32_0 = arith.constant 0 : i32
    %c0_i32_1 = arith.constant 0 : i32
    %c0_i32_2 = arith.constant 0 : i32
    return %c0_i32, %c0_i32_0, %c0_i32_1 : i32, i32, i32
  }
  func.func @transform_2(%arg0: i32) -> (i32, i32) {
    %c0_i32 = arith.constant 0 : i32
    %c0_i32_0 = arith.constant 0 : i32
    %c0_i32_1 = arith.constant 0 : i32
    return %c0_i32, %c0_i32_0 : i32, i32
  }
  func.func @transform_3(%arg0: i32) -> (i32, i32, i32, i32) {
    %c0_i32 = arith.constant 0 : i32
    %c0_i32_0 = arith.constant 0 : i32
    %c0_i32_1 = arith.constant 0 : i32
    %c0_i32_2 = arith.constant 0 : i32
    return %arg0, %c0_i32, %c0_i32_0, %c0_i32_1 : i32, i32, i32, i32
  }
}

</mosaic_0001>

<bundles_post_ra>
// kernel: generator_forward.4
= control target key start
LH: loop header
LB: loop body
LE: loop exit
PB: predicated region body
PF: predicated region fallthrough
CT: control target
= control target key end

     0   :  { %8 = vsyncpa [#allocation3], 0  ;;  %s1160_s0 = inlined_call_operand.hbm [shape: f32[2,64], index: 0, kind: input, shape index: {}]   ;;  %s1161_s1 = inlined_call_operand.hbm [shape: bf16[64,2048], index: 1, kind: input, shape index: {}]   ;;  %s1162_s2 = inlined_call_operand.vmem [shape: f32[1,2048], index: 2, kind: input, shape index: {}]   ;;  %s1163_s3 = inlined_call_operand.vmem [shape: f32[2,2048], index: 3, kind: output, shape index: {}]  }
   0x1   :  { %9 = vsyncpa [#allocation5], 0  ;;  %s1063_s12 = smov [#allocation2]   ;;  %s1064_s14 = smov [#allocation4]  }
   0x2   :  { %s16_s13 = sshll.u32 %s1063_s12, 4  ;;  %s25_s15 = sshll.u32 %s1064_s14, 4  ;;  %s17_s13 = int_to_ptr.vmem [resolvable:$true] %s16_s13  ;;  %s26_s15 = int_to_ptr.vmem [resolvable:$true] %s25_s15 }
   0x3   :  { %s1027_s16 = scalar_lea.vmem %s17_s13, 32  ;;  %p1032_p1 = scmp.lt.s32.totalorder %s17_s13, %s17_s13 }
   0x4   :  { %p1028_p0 = scmp.ne.s32.totalorder %s17_s13, %s1027_s16  ;;  %p1033_p2 = scmp.lt.s32.totalorder %s1027_s16, %s1027_s16 }
   0x6   :  { %p1034_p3 = por %p1033_p2, %p1032_p1 }
   0x8   :  { %p1035_p4 = pnand %p1034_p3, %p1028_p0 }
   0xa   :  { %1038 = shalt.err (!%p1035_p4)
}
   0xb   :  { %19 = dma.hbm_to_vmem [thread:$0]  %s1160_s0, 32, %s17_s13, [#allocation3]  }
   0xc   :  { %s1047_s19 = scalar_lea.vmem %s26_s15, 8192  ;;  %p1052_p6 = scmp.lt.s32.totalorder %s26_s15, %s26_s15 }
   0xd   :  { %p1048_p5 = scmp.ne.s32.totalorder %s26_s15, %s1047_s19  ;;  %p1053_p7 = scmp.lt.s32.totalorder %s1047_s19, %s1047_s19 }
   0xf   :  { %p1054_p8 = por %p1053_p7, %p1052_p6 }
  0x11   :  { %p1055_p9 = pnand %p1054_p8, %p1048_p5 }
  0x13   :  { %1058 = shalt.err (!%p1055_p9)
}
  0x14   :  { %s1065_s20 = smov 1024   ;;  %s1066_s21 = smov 64  }
  0x15   :  { %31 = dma.hbm_to_vmem [thread:$0]  %s1161_s1, 8192, %s26_s15, [#allocation5], %s1065_s20, %s1065_s20, %s1066_s21  }
  0x16   :  { %1059 = dma.done.wait [#allocation3], 32  }
  0x17   :  { %1060 = vsyncadd [#allocation3], 4294967264 }
  0x18   :  { %1061 = dma.done.wait [#allocation5], 8192  }
  0x19   :  { %1062 = vsyncadd [#allocation5], 4294959104  ;;  %v1067_v0 = vmov 0   ;;  %v91_v1 = vld [vmem:[#allocation4 + $0x180] sm:$0xff]  ;;  %v92_v3 = vld [vmem:[#allocation4 + $0x188] sm:$0xff]  ;;  %vm511_vm0 = vcmask 523264  }
  0x1a   :  { %547 = vmatprep.mubr.bf16.mxu0 %v1067_v0  ;;  %588 = vmatprep.mubr.bf16.mxu1 %v1067_v0  ;;  %v99_v2 = vld [vmem:[#allocation4 + $0x1c0] sm:$0xff]  ;;  %v100_v5 = vld [vmem:[#allocation4 + $0x1c8] sm:$0xff]  ;;  %v93_v31 = vld [vmem:[#allocation4 + $0x190] sm:$0xff] }
  0x1b   :  { %v990_v4 = vcombine.high %v91_v1, %v99_v2  ;;  %v989_v6 = vcombine.low %v91_v1, %v99_v2  ;;  %v75_v7 = vld [vmem:[#allocation4 + $0x100] sm:$0xff]  ;;  %v992_v9 = vcombine.high %v92_v3, %v100_v5  ;;  %v991_v10 = vcombine.low %v92_v3, %v100_v5  ;;  %v76_v12 = vld [vmem:[#allocation4 + $0x108] sm:$0xff]  ;;  %v101_v32 = vld [vmem:[#allocation4 + $0x1d0] sm:$0xff] }
  0x1c   :  { %v83_v8 = vld [vmem:[#allocation4 + $0x140] sm:$0xff]  ;;  %v84_v13 = vld [vmem:[#allocation4 + $0x148] sm:$0xff]  ;;  %v94_v33 = vld [vmem:[#allocation4 + $0x198] sm:$0xff]  ;;  %v994_v38 = vcombine.high %v93_v31, %v101_v32  ;;  %v993_v45 = vcombine.low %v93_v31, %v101_v32 }
  0x1d   :  { %v974_v11 = vcombine.high %v75_v7, %v83_v8  ;;  %v59_v14 = vld [vmem:[#allocation4 + $0x80] sm:$0xff]  ;;  %523 = vmatprep.subr.bf16.mxu0 %v990_v4  ;;  %v976_v15 = vcombine.high %v76_v12, %v84_v13  ;;  %v60_v17 = vld [vmem:[#allocation4 + $0x88] sm:$0xff]  ;;  %564 = vmatprep.subr.bf16.mxu1 %v992_v9  ;;  %v973_v19 = vcombine.low %v75_v7, %v83_v8  ;;  %v102_v34 = vld [vmem:[#allocation4 + $0x1d8] sm:$0xff] }
  0x1e   :  { %v67_v16 = vld [vmem:[#allocation4 + $0xc0] sm:$0xff]  ;;  %v68_v18 = vld [vmem:[#allocation4 + $0xc8] sm:$0xff]  ;;  %524 = vmatpush1.bf16.msra.mxu0 %v989_v6  ;;  %565 = vmatpush1.bf16.msra.mxu1 %v991_v10  ;;  %v975_v20 = vcombine.low %v76_v12, %v84_v13  ;;  %v41_v36 = vld [vmem:[#allocation2] sm:$0x3]  ;;  %v996_v39 = vcombine.high %v94_v33, %v102_v34  ;;  %v995_v46 = vcombine.low %v94_v33, %v102_v34 }
  0x1f   :  { %525 = vmatprep.subr.bf16.mxu0 %v974_v11  ;;  %v958_v21 = vcombine.high %v59_v14, %v67_v16  ;;  %566 = vmatprep.subr.bf16.mxu1 %v976_v15  ;;  %v960_v22 = vcombine.high %v60_v17, %v68_v18  ;;  %v43_v23 = vld [vmem:[#allocation4] sm:$0xff]  ;;  %v44_v25 = vld [vmem:[#allocation4 + $0x8] sm:$0xff]  ;;  %v957_v27 = vcombine.low %v59_v14, %v67_v16  ;;  %v77_v40 = vld [vmem:[#allocation4 + $0x110] sm:$0xff] }
  0x20   :  { %v51_v24 = vld [vmem:[#allocation4 + $0x40] sm:$0xff]  ;;  %v52_v26 = vld [vmem:[#allocation4 + $0x48] sm:$0xff]  ;;  %v959_v28 = vcombine.low %v60_v17, %v68_v18  ;;  %v85_v41 = vld [vmem:[#allocation4 + $0x150] sm:$0xff]  ;;  %v1097_v42 = vpack.c.bf16 %v41_v36, %v41_v36 }
  0x21   :  { %v942_v29 = vcombine.high %v43_v23, %v51_v24  ;;  %v944_v30 = vcombine.high %v44_v25, %v52_v26  ;;  %v941_v35 = vcombine.low %v43_v23, %v51_v24  ;;  %v943_v37 = vcombine.low %v44_v25, %v52_v26  ;;  %v78_v43 = vld [vmem:[#allocation4 + $0x118] sm:$0xff]  ;;  %v61_v49 = vld [vmem:[#allocation4 + $0x90] sm:$0xff]  ;;  %v95_v2 = vld [vmem:[#allocation4 + $0x1a0] sm:$0xff] }
  0x22   :  { %526 = vmatpush1.bf16.msra.mxu0 %v973_v19  ;;  %567 = vmatpush1.bf16.msra.mxu1 %v975_v20  ;;  %v86_v44 = vld [vmem:[#allocation4 + $0x158] sm:$0xff]  ;;  %v978_v47 = vcombine.high %v77_v40, %v85_v41  ;;  %v69_v50 = vld [vmem:[#allocation4 + $0xd0] sm:$0xff]  ;;  %v977_v53 = vcombine.low %v77_v40, %v85_v41  ;;  %v103_v3 = vld [vmem:[#allocation4 + $0x1e0] sm:$0xff] }
  0x23   :  { %527 = vmatprep.subr.bf16.mxu0 %v958_v21  ;;  %568 = vmatprep.subr.bf16.mxu1 %v960_v22  ;;  %v980_v48 = vcombine.high %v78_v43, %v86_v44  ;;  %v62_v51 = vld [vmem:[#allocation4 + $0x98] sm:$0xff]  ;;  %v979_v54 = vcombine.low %v78_v43, %v86_v44  ;;  %v962_v55 = vcombine.high %v61_v49, %v69_v50  ;;  %v45_v57 = vld [vmem:[#allocation4 + $0x10] sm:$0xff]  ;;  %v96_v4 = vld [vmem:[#allocation4 + $0x1a8] sm:$0xff] }
  0x24   :  { %v70_v52 = vld [vmem:[#allocation4 + $0xd8] sm:$0xff]  ;;  %v53_v58 = vld [vmem:[#allocation4 + $0x50] sm:$0xff]  ;;  %v961_v61 = vcombine.low %v61_v49, %v69_v50  ;;  %v104_v5 = vld [vmem:[#allocation4 + $0x1e8] sm:$0xff]  ;;  %v998_v8 = vcombine.high %v95_v2, %v103_v3  ;;  %v997_v14 = vcombine.low %v95_v2, %v103_v3 }
  0x25   :  { %v964_v56 = vcombine.high %v62_v51, %v70_v52  ;;  %v46_v59 = vld [vmem:[#allocation4 + $0x18] sm:$0xff]  ;;  %v963_v62 = vcombine.low %v62_v51, %v70_v52  ;;  %v946_v63 = vcombine.high %v45_v57, %v53_v58  ;;  %v945_v6 = vcombine.low %v45_v57, %v53_v58  ;;  %v79_v10 = vld [vmem:[#allocation4 + $0x120] sm:$0xff]  ;;  %v80_v12 = vld [vmem:[#allocation4 + $0x128] sm:$0xff] }
  0x26   :  { %528 = vmatpush1.bf16.msra.mxu0 %v957_v27  ;;  %569 = vmatpush1.bf16.msra.mxu1 %v959_v28  ;;  %v54_v60 = vld [vmem:[#allocation4 + $0x58] sm:$0xff]  ;;  %v1000_v9 = vcombine.high %v96_v4, %v104_v5  ;;  %v87_v11 = vld [vmem:[#allocation4 + $0x160] sm:$0xff]  ;;  %v88_v13 = vld [vmem:[#allocation4 + $0x168] sm:$0xff]  ;;  %v999_v15 = vcombine.low %v96_v4, %v104_v5 }
  0x27   :  { %529 = vmatprep.subr.bf16.mxu0 %v942_v29  ;;  %570 = vmatprep.subr.bf16.mxu1 %v944_v30  ;;  %v948_v1 = vcombine.high %v46_v59, %v54_v60  ;;  %v947_v7 = vcombine.low %v46_v59, %v54_v60  ;;  %v982_v16 = vcombine.high %v79_v10, %v87_v11  ;;  %v63_v18 = vld [vmem:[#allocation4 + $0xa0] sm:$0xff]  ;;  %v64_v20 = vld [vmem:[#allocation4 + $0xa8] sm:$0xff]  ;;  %v97_v34 = vld [vmem:[#allocation4 + $0x1b0] sm:$0xff] }
  0x28   :  { %v984_v17 = vcombine.high %v80_v12, %v88_v13  ;;  %v71_v19 = vld [vmem:[#allocation4 + $0xe0] sm:$0xff]  ;;  %v72_v21 = vld [vmem:[#allocation4 + $0xe8] sm:$0xff]  ;;  %v981_v22 = vcombine.low %v79_v10, %v87_v11  ;;  %v983_v23 = vcombine.low %v80_v12, %v88_v13  ;;  %v98_v36 = vld [vmem:[#allocation4 + $0x1b8] sm:$0xff]  ;;  %v1068_v11 = vmov 1983009808  }
  0x29   :  { %v966_v24 = vcombine.high %v63_v18, %v71_v19  ;;  %v968_v25 = vcombine.high %v64_v20, %v72_v21  ;;  %v47_v26 = vld [vmem:[#allocation4 + $0x20] sm:$0xff]  ;;  %v48_v28 = vld [vmem:[#allocation4 + $0x28] sm:$0xff]  ;;  %v965_v30 = vcombine.low %v63_v18, %v71_v19  ;;  %v967_v31 = vcombine.low %v64_v20, %v72_v21  ;;  %v81_v43 = vld [vmem:[#allocation4 + $0x130] sm:$0xff] }
  0x2a   :  { %530 = vmatpush1.bf16.msra.mxu0 %v941_v35  ;;  %571 = vmatpush1.bf16.msra.mxu1 %v943_v37  ;;  %v55_v27 = vld [vmem:[#allocation4 + $0x60] sm:$0xff]  ;;  %v56_v29 = vld [vmem:[#allocation4 + $0x68] sm:$0xff]  ;;  %v105_v35 = vld [vmem:[#allocation4 + $0x1f0] sm:$0xff]  ;;  %v862_v12 = vunpack.c.l.s4 %v1068_v11 }
  0x2b   :  { %605 = vmatprep.subr.bf16.mxu0 %v994_v38  ;;  %646 = vmatprep.subr.bf16.mxu1 %v996_v39  ;;  %v950_v32 = vcombine.high %v47_v26, %v55_v27  ;;  %v952_v33 = vcombine.high %v48_v28, %v56_v29  ;;  %v106_v37 = vld [vmem:[#allocation4 + $0x1f8] sm:$0xff]  ;;  %v949_v38 = vcombine.low %v47_v26, %v55_v27  ;;  %v89_v44 = vld [vmem:[#allocation4 + $0x170] sm:$0xff] }
  0x2c   :  { %v951_v39 = vcombine.low %v48_v28, %v56_v29  ;;  %v1002_v40 = vcombine.high %v97_v34, %v105_v35  ;;  %v1004_v41 = vcombine.high %v98_v36, %v106_v37  ;;  %v986_v49 = vcombine.high %v81_v43, %v89_v44  ;;  %v65_v51 = vld [vmem:[#allocation4 + $0xb0] sm:$0xff] }
  0x2d   :  { %1005 = vmatmul.mubr.msk.bf16.vlgmr.msra.gmra.mxu0 %vm511_vm0, %v1097_v42  ;;  %1006 = vmatmul.mubr.msk.bf16.vlgmr.msra.gmra.mxu1 %vm511_vm0, %v1097_v42  ;;  %v73_v52 = vld [vmem:[#allocation4 + $0xf0] sm:$0xff] }
  0x2e   :  { %606 = vmatpush1.bf16.msra.mxu0 %v993_v45  ;;  %647 = vmatpush1.bf16.msra.mxu1 %v995_v46  ;;  %v82_v45 = vld [vmem:[#allocation4 + $0x138] sm:$0xff]  ;;  %v970_v57 = vcombine.high %v65_v51, %v73_v52  ;;  %v49_v59 = vld [vmem:[#allocation4 + $0x30] sm:$0xff] }
  0x2f   :  { %607 = vmatprep.subr.bf16.mxu0 %v978_v47  ;;  %648 = vmatprep.subr.bf16.mxu1 %v980_v48  ;;  %v90_v46 = vld [vmem:[#allocation4 + $0x178] sm:$0xff]  ;;  %v1001_v47 = vcombine.low %v97_v34, %v105_v35  ;;  %v1003_v48 = vcombine.low %v98_v36, %v106_v37  ;;  %v57_v60 = vld [vmem:[#allocation4 + $0x70] sm:$0xff] }
  0x30   :  { %629 = vmatprep.mubr.bf16.mxu0 %v1067_v0  ;;  %670 = vmatprep.mubr.bf16.mxu1 %v1067_v0  ;;  %v988_v50 = vcombine.high %v82_v45, %v90_v46  ;;  %v954_v2 = vcombine.high %v49_v59, %v57_v60  ;;  %v953_v4 = vcombine.low %v49_v59, %v57_v60 }
  0x32   :  { %608 = vmatpush1.bf16.msra.mxu0 %v977_v53  ;;  %649 = vmatpush1.bf16.msra.mxu1 %v979_v54  ;;  %v66_v53 = vld [vmem:[#allocation4 + $0xb8] sm:$0xff] }
  0x33   :  { %609 = vmatprep.subr.bf16.mxu0 %v962_v55  ;;  %650 = vmatprep.subr.bf16.mxu1 %v964_v56  ;;  %v74_v54 = vld [vmem:[#allocation4 + $0xf8] sm:$0xff]  ;;  %v985_v55 = vcombine.low %v81_v43, %v89_v44  ;;  %v987_v56 = vcombine.low %v82_v45, %v90_v46 }
  0x34   :  { %v972_v58 = vcombine.high %v66_v53, %v74_v54 }
  0x36   :  { %610 = vmatpush1.bf16.msra.mxu0 %v961_v61  ;;  %651 = vmatpush1.bf16.msra.mxu1 %v963_v62  ;;  %v50_v61 = vld [vmem:[#allocation4 + $0x38] sm:$0xff] }
  0x37   :  { %611 = vmatprep.subr.bf16.mxu0 %v946_v63  ;;  %652 = vmatprep.subr.bf16.mxu1 %v948_v1  ;;  %v58_v62 = vld [vmem:[#allocation4 + $0x78] sm:$0xff]  ;;  %v969_v63 = vcombine.low %v65_v51, %v73_v52  ;;  %v971_v1 = vcombine.low %v66_v53, %v74_v54 }
  0x38   :  { %v956_v3 = vcombine.high %v50_v61, %v58_v62  ;;  %v955_v5 = vcombine.low %v50_v61, %v58_v62  ;;  %v108_v62 = vld [vmem:[%s1162_s2 + $0x8] sm:$0xff] }
  0x3a   :  { %612 = vmatpush1.bf16.msra.mxu0 %v945_v6  ;;  %653 = vmatpush1.bf16.msra.mxu1 %v947_v7 }
  0x3b   :  { %687 = vmatprep.subr.bf16.mxu0 %v998_v8  ;;  %728 = vmatprep.subr.bf16.mxu1 %v1000_v9  ;;  %v107_v8 = vld [vmem:[%s1162_s2] sm:$0xff] }
  0x3d   :  { %1007 = vmatmul.mubr.msk.bf16.vlgmr.msra.gmra.mxu0 %vm511_vm0, %v1097_v42  ;;  %1008 = vmatmul.mubr.msk.bf16.vlgmr.msra.gmra.mxu1 %vm511_vm0, %v1097_v42 }
  0x3e   :  { %688 = vmatpush1.bf16.msra.mxu0 %v997_v14  ;;  %729 = vmatpush1.bf16.msra.mxu1 %v999_v15 }
  0x3f   :  { %689 = vmatprep.subr.bf16.mxu0 %v982_v16  ;;  %730 = vmatprep.subr.bf16.mxu1 %v984_v17  ;;  %v863_v16 = vunpack.c.0.s8 %v862_v12 }
  0x40   :  { %711 = vmatprep.mubr.bf16.mxu0 %v1067_v0  ;;  %752 = vmatprep.mubr.bf16.mxu1 %v1067_v0 }
  0x42   :  { %690 = vmatpush1.bf16.msra.mxu0 %v981_v22  ;;  %731 = vmatpush1.bf16.msra.mxu1 %v983_v23 }
  0x43   :  { %691 = vmatprep.subr.bf16.mxu0 %v966_v24  ;;  %732 = vmatprep.subr.bf16.mxu1 %v968_v25 }
  0x46   :  { %692 = vmatpush1.bf16.msra.mxu0 %v965_v30  ;;  %733 = vmatpush1.bf16.msra.mxu1 %v967_v31 }
  0x47   :  { %693 = vmatprep.subr.bf16.mxu0 %v950_v32  ;;  %734 = vmatprep.subr.bf16.mxu1 %v952_v33 }
  0x4a   :  { %694 = vmatpush1.bf16.msra.mxu0 %v949_v38  ;;  %735 = vmatpush1.bf16.msra.mxu1 %v951_v39 }
  0x4b   :  { %769 = vmatprep.subr.bf16.mxu0 %v1002_v40  ;;  %810 = vmatprep.subr.bf16.mxu1 %v1004_v41 }
  0x4d   :  { %1009 = vmatmul.mubr.msk.bf16.vlgmr.msra.gmra.mxu0 %vm511_vm0, %v1097_v42  ;;  %1010 = vmatmul.mubr.msk.bf16.vlgmr.msra.gmra.mxu1 %vm511_vm0, %v1097_v42 }
  0x4e   :  { %770 = vmatpush1.bf16.msra.mxu0 %v1001_v47  ;;  %811 = vmatpush1.bf16.msra.mxu1 %v1003_v48 }
  0x4f   :  { %771 = vmatprep.subr.bf16.mxu0 %v986_v49  ;;  %812 = vmatprep.subr.bf16.mxu1 %v988_v50 }
  0x50   :  { %793 = vmatprep.mubr.bf16.mxu0 %v1067_v0  ;;  %834 = vmatprep.mubr.bf16.mxu1 %v1067_v0  ;;  %v111_v0 = vlaneseq }
  0x52   :  { %772 = vmatpush1.bf16.msra.mxu0 %v985_v55  ;;  %813 = vmatpush1.bf16.msra.mxu1 %v987_v56  ;;  %v1121_v6 = vshrl.u32 %v111_v0, 7 }
  0x53   :  { %773 = vmatprep.subr.bf16.mxu0 %v970_v57  ;;  %814 = vmatprep.subr.bf16.mxu1 %v972_v58 }
  0x54   :  { %v113_v7 = vsub.s32 0, %v1121_v6  ;;  %v121_v9 = vsub.s32 2, %v1121_v6  ;;  %v117_v10 = vsub.s32 1, %v1121_v6  ;;  %v125_v13 = vsub.s32 3, %v1121_v6 }
  0x55   :  { %v1131_v24 = vsub.s32 %v863_v16, %v1121_v6  ;;  %v129_v35 = vsub.s32 4, %v1121_v6  ;;  %v137_v37 = vsub.s32 6, %v1121_v6  ;;  %v133_v38 = vsub.s32 5, %v1121_v6 }
  0x56   :  { %774 = vmatpush1.bf16.msra.mxu0 %v969_v63  ;;  %815 = vmatpush1.bf16.msra.mxu1 %v971_v1  ;;  %v114_v14 = vrot.slane %v107_v8, %v113_v7  ;;  %v122_v15 = vrot.slane %v107_v8, %v121_v9  ;;  %v126_v18 = vrot.slane %v107_v8, %v125_v13  ;;  %v141_v39 = vsub.s32 7, %v1121_v6 }
  0x57   :  { %775 = vmatprep.subr.bf16.mxu0 %v954_v2  ;;  %816 = vmatprep.subr.bf16.mxu1 %v956_v3  ;;  %v130_v40 = vrot.slane %v107_v8, %v129_v35  ;;  %v138_v41 = vrot.slane %v107_v8, %v137_v37  ;;  %v134_v43 = vrot.slane %v107_v8, %v133_v38 }
  0x58   :  { %v142_v45 = vrot.slane %v107_v8, %v141_v39  ;;  %v146_v63 = vrot.slane %v108_v62, %v113_v7  ;;  %v154_v1 = vrot.slane %v108_v62, %v121_v9  ;;  %v150_v2 = vrot.slane %v108_v62, %v117_v10 }
  0x5a   :  { %776 = vmatpush1.bf16.msra.mxu0 %v953_v4  ;;  %817 = vmatpush1.bf16.msra.mxu1 %v955_v5  ;;  %v158_v4 = vrot.slane %v108_v62, %v125_v13  ;;  %v166_v13 = vrot.slane %v108_v62, %v133_v38 }
  0x5d   :  { %1011 = vmatmul.mubr.msk.bf16.vlgmr.msra.gmra.mxu0 %vm511_vm0, %v1097_v42  ;;  %1012 = vmatmul.mubr.msk.bf16.vlgmr.msra.gmra.mxu1 %vm511_vm0, %v1097_v42  ;;  %v118_v42 = vrot.slane %v107_v8, %v117_v10  ;;  %v162_v10 = vrot.slane %v108_v62, %v129_v35 }
  0xed   :  { %v549_v17 = vpop.f32.mrf.mxu0  ;;  %v590_v20 = vpop.f32.mrf.mxu1 }
  0xee   :  { %v550_v19 = vadd.f32 %v549_v17, %v114_v14  ;;  %v591_v21 = vadd.f32 %v590_v20, %v122_v15 }
  0xef   :  { %v551_v22 = vpop.f32.mrf.mxu0  ;;  %v592_v25 = vpop.f32.mrf.mxu1 }
  0xf0   :  { %v552_v23 = vadd.f32 %v551_v22, %v118_v42  ;;  %v593_v26 = vadd.f32 %v592_v25, %v126_v18  ;;  %v170_v22 = vrot.slane %v108_v62, %v137_v37 }
  0xf1   :  { %v553_v27 = vpop.f32.mrf.mxu0  ;;  %v594_v29 = vpop.f32.mrf.mxu1 }
  0xf2   :  { %v859_v28 = vcombine.low %v550_v19, %v552_v23  ;;  %v860_v30 = vcombine.low %v591_v21, %v593_v26  ;;  %v174_v23 = vrot.slane %v108_v62, %v141_v39 }
  0xf3   :  { %v554_v31 = vpop.f32.mrf.mxu0  ;;  %v595_v33 = vpop.f32.mrf.mxu1 }
  0xf4   :  { %v867_v32 = vrot.slane %v859_v28, %v1131_v24  ;;  %v874_v34 = vrot.slane %v860_v30, %v1131_v24 }
  0xf6   :  { %v875_v36 = vcombine.low %v867_v32, %v874_v34 }
  0xf8   :  { %931 = vst [vmem:[%s1163_s3] sm:$0xff] %v875_v36 }
  0xfd   :  { %v631_v44 = vpop.f32.mrf.mxu0  ;;  %v672_v47 = vpop.f32.mrf.mxu1 }
  0xfe   :  { %v632_v46 = vadd.f32 %v631_v44, %v130_v40  ;;  %v673_v48 = vadd.f32 %v672_v47, %v138_v41 }
  0xff   :  { %v633_v49 = vpop.f32.mrf.mxu0  ;;  %v674_v51 = vpop.f32.mrf.mxu1 }
 0x100   :  { %v634_v50 = vadd.f32 %v633_v49, %v134_v43  ;;  %v675_v52 = vadd.f32 %v674_v51, %v142_v45 }
 0x101   :  { %v635_v53 = vpop.f32.mrf.mxu0  ;;  %v676_v55 = vpop.f32.mrf.mxu1 }
 0x102   :  { %v876_v54 = vcombine.low %v632_v46, %v634_v50  ;;  %v877_v56 = vcombine.low %v673_v48, %v675_v52 }
 0x103   :  { %v636_v57 = vpop.f32.mrf.mxu0  ;;  %v677_v59 = vpop.f32.mrf.mxu1 }
 0x104   :  { %v884_v58 = vrot.slane %v876_v54, %v1131_v24  ;;  %v891_v60 = vrot.slane %v877_v56, %v1131_v24 }
 0x106   :  { %v892_v61 = vcombine.low %v884_v58, %v891_v60 }
 0x108   :  { %932 = vst [vmem:[%s1163_s3 + $0x8] sm:$0xff] %v892_v61 }
 0x10d   :  { %v713_v3 = vpop.f32.mrf.mxu0  ;;  %v754_v0 = vpop.f32.mrf.mxu1 }
 0x10e   :  { %v714_v5 = vadd.f32 %v713_v3, %v146_v63  ;;  %v755_v6 = vadd.f32 %v754_v0, %v154_v1 }
 0x10f   :  { %v715_v8 = vpop.f32.mrf.mxu0  ;;  %v756_v12 = vpop.f32.mrf.mxu1 }
 0x110   :  { %v716_v11 = vadd.f32 %v715_v8, %v150_v2  ;;  %v757_v14 = vadd.f32 %v756_v12, %v158_v4 }
 0x111   :  { %v717_v15 = vpop.f32.mrf.mxu0  ;;  %v758_v16 = vpop.f32.mrf.mxu1 }
 0x112   :  { %v893_v42 = vcombine.low %v714_v5, %v716_v11  ;;  %v894_v17 = vcombine.low %v755_v6, %v757_v14 }
 0x113   :  { %v718_v18 = vpop.f32.mrf.mxu0  ;;  %v759_v20 = vpop.f32.mrf.mxu1 }
 0x114   :  { %v901_v19 = vrot.slane %v893_v42, %v1131_v24  ;;  %v908_v7 = vrot.slane %v894_v17, %v1131_v24 }
 0x116   :  { %v909_v9 = vcombine.low %v901_v19, %v908_v7 }
 0x118   :  { %933 = vst [vmem:[%s1163_s3 + $0x10] sm:$0xff] %v909_v9 }
 0x11d   :  { %v795_v21 = vpop.f32.mrf.mxu0  ;;  %v836_v25 = vpop.f32.mrf.mxu1 }
 0x11e   :  { %v796_v27 = vadd.f32 %v795_v21, %v162_v10  ;;  %v837_v30 = vadd.f32 %v836_v25, %v170_v22 }
 0x11f   :  { %v797_v26 = vpop.f32.mrf.mxu0  ;;  %v838_v29 = vpop.f32.mrf.mxu1 }
 0x120   :  { %v798_v28 = vadd.f32 %v797_v26, %v166_v13  ;;  %v839_v31 = vadd.f32 %v838_v29, %v174_v23 }
 0x121   :  { %v799_v32 = vpop.f32.mrf.mxu0  ;;  %v840_v34 = vpop.f32.mrf.mxu1 }
 0x122   :  { %v910_v33 = vcombine.low %v796_v27, %v798_v28  ;;  %v911_v36 = vcombine.low %v837_v30, %v839_v31 }
 0x123   :  { %v800_v40 = vpop.f32.mrf.mxu0  ;;  %v841_v43 = vpop.f32.mrf.mxu1 }
 0x124   :  { %v918_v41 = vrot.slane %v910_v33, %v1131_v24  ;;  %v925_v35 = vrot.slane %v911_v36, %v1131_v24 }
 0x126   :  { %v926_v38 = vcombine.low %v918_v41, %v925_v35 }
 0x128   :  { %934 = vst [vmem:[%s1163_s3 + $0x18] sm:$0xff] %v926_v38 }
 0x129   :  { %939 = vsyncpa [#allocation3], 1 }
 0x12a   :  { %940 = vsyncpa [#allocation5], 1 }

// kernel: generator_forward.7
= control target key start
LH: loop header
LB: loop body
LE: loop exit
PB: predicated region body
PF: predicated region fallthrough
CT: control target
= control target key end

     0   :  { %s2218_s12 = smov 0   ;;  %s3262_s0 = inlined_call_operand.vmem [shape: f32[2,16,16,64], index: 0, kind: input, shape index: {}]   ;;  %s3263_s1 = inlined_call_operand.vmem [shape: bf16[3,192,128], index: 1, kind: input, shape index: {}]   ;;  %s3264_s2 = inlined_call_operand.vmem [shape: f32[1,128], index: 2, kind: input, shape index: {}]   ;;  %s3265_s3 = inlined_call_operand.vmem [shape: f32[2,16,16,128], index: 3, kind: output, shape index: {}]  }
   0x1 LB: > { %s1816_s13 = sadd.s32 4294967295, %s2193_s12   ;;  %p1820_p0 = scmp.ge.s32.totalorder %s2193_s12, 1  ;;  %s2193_s12 = sphi %s2218_s12, %s13_s12  }
   0x2   : > { %p137_p1 = scmp.lt.s32.totalorder %s2193_s12, 3 }
   0x4   : > { %p138_p2 = pnand %p1820_p0, %p137_p1 }
   0x6   : > { %141 = sbr.rel (%p138_p2) target bundleno = 578 (0x242), region = 32 }
   0xb   : > { %p2228_p3 = scmp.lt.s32.totalorder %s1816_s13, 1  ;;  %vm172_vm0 = vcmask 523264   ;;  %vm175_vm1 = vcmask 517120   ;;  %v2195_v0 = vmov 0.0   ;;  %v2087_v1 = vld [vmem:[%s3263_s1 + $0x98] sm:$0xff]   ;;  %v3266_v2 = vmov 0  }
   0xc   : > { %201 = vst.msk [vmem:[#allocation2 + $0xd8] sm:$0xff] %vm172_vm0, %v2195_v0  ;;  %202 = vst.msk [vmem:[#allocation2 + $0xe0] sm:$0xff] %vm172_vm0, %v2195_v0  ;;  %1962 = vmatprep.subr.bf16.mxu1 %v3266_v2  ;;  %968 = vmatprep.subr.bf16.mxu0 %v3266_v2  ;;  %v2088_v3 = vld [vmem:[%s3263_s1 + $0x90] sm:$0xff]   ;;  %v2089_v4 = vld [vmem:[%s3263_s1 + $0x88] sm:$0xff]   ;;  %vm401_vm2 = vcmask 1046528   ;;  %s2197_s29 = smov 64  }
   0xd   : > { %203 = vst.msk [vmem:[#allocation2 + $0xe8] sm:$0x3] %vm175_vm1, %v2195_v0  ;;  %176 = vst.msk [vmem:[#allocation2 + $0x10] sm:$0x3] %vm175_vm1, %v2195_v0  ;;  %s3298_s13 = smov (!%p2228_p3, %s1816_s13), 1  ;;  %1974 = vmatpush1.bf16.msra.mxu1 %v2087_v1  ;;  %969 = vmatpush1.bf16.msra.mxu0 %v2087_v1  ;;  %v2090_v17 = vld [vmem:[%s3263_s1 + $0x80] sm:$0xff]  }
   0xe   : > { %173 = vst.msk [vmem:[#allocation2] sm:$0xff] %vm172_vm0, %v2195_v0  ;;  %174 = vst.msk [vmem:[#allocation2 + $0x8] sm:$0xff] %vm172_vm0, %v2195_v0  ;;  %s1960_s19 = sshll.u32 %s3298_s13, 8  ;;  %1963 = vmatprep.subr.bf16.mxu1 %v3266_v2  ;;  %970 = vmatprep.subr.bf16.mxu0 %v3266_v2  ;;  %v2091_v38 = vld [vmem:[%s3263_s1 + $0x78] sm:$0xff]   ;;  %vm600_vm3 = vcmask 1045504  }
   0xf   : > { %177 = vst.msk [vmem:[#allocation2 + $0x18] sm:$0xff] %vm172_vm0, %v2195_v0  ;;  %178 = vst.msk [vmem:[#allocation2 + $0x20] sm:$0xff] %vm172_vm0, %v2195_v0  ;;  %s2308_s22 = scalar_lea.vmem %s3262_s0, %s1960_s19  ;;  %s3170_s24 = scalar_lea.vmem %s3265_s3, %s1960_s19 }
  0x10   : > { %179 = vst.msk [vmem:[#allocation2 + $0x28] sm:$0x3] %vm175_vm1, %v2195_v0  ;;  %182 = vst.msk [vmem:[#allocation2 + $0x40] sm:$0x3] %vm175_vm1, %v2195_v0  ;;  %v244_v5 = vld [vmem:[%s2308_s22 + $0x80] sm:$0xff]  ;;  %v245_v6 = vld [vmem:[%s2308_s22 + $0x88] sm:$0xff] }
  0x11   : > { %180 = vst.msk [vmem:[#allocation2 + $0x30] sm:$0xff] %vm172_vm0, %v2195_v0  ;;  %181 = vst.msk [vmem:[#allocation2 + $0x38] sm:$0xff] %vm172_vm0, %v2195_v0  ;;  %v228_v7 = vld [vmem:[%s2308_s22] sm:$0xff]  ;;  %v229_v8 = vld [vmem:[%s2308_s22 + $0x8] sm:$0xff]  ;;  %1975 = vmatpush1.bf16.msra.mxu1 %v2088_v3  ;;  %971 = vmatpush1.bf16.msra.mxu0 %v2088_v3 }
  0x12   : > { %183 = vst.msk [vmem:[#allocation2 + $0x48] sm:$0xff] %vm172_vm0, %v2195_v0  ;;  %184 = vst.msk [vmem:[#allocation2 + $0x50] sm:$0xff] %vm172_vm0, %v2195_v0  ;;  %v246_v9 = vld [vmem:[%s2308_s22 + $0x90] sm:$0xff]  ;;  %v247_v10 = vld [vmem:[%s2308_s22 + $0x98] sm:$0xff]  ;;  %1964 = vmatprep.subr.bf16.mxu1 %v3266_v2  ;;  %972 = vmatprep.subr.bf16.mxu0 %v3266_v2 }
  0x13   : > { %185 = vst.msk [vmem:[#allocation2 + $0x58] sm:$0x3] %vm175_vm1, %v2195_v0  ;;  %188 = vst.msk [vmem:[#allocation2 + $0x70] sm:$0x3] %vm175_vm1, %v2195_v0  ;;  %v230_v11 = vld [vmem:[%s2308_s22 + $0x10] sm:$0xff]  ;;  %v231_v12 = vld [vmem:[%s2308_s22 + $0x18] sm:$0xff] }
  0x14   : > { %186 = vst.msk [vmem:[#allocation2 + $0x60] sm:$0xff] %vm172_vm0, %v2195_v0  ;;  %187 = vst.msk [vmem:[#allocation2 + $0x68] sm:$0xff] %vm172_vm0, %v2195_v0  ;;  %v248_v13 = vld [vmem:[%s2308_s22 + $0xa0] sm:$0xff]  ;;  %v249_v14 = vld [vmem:[%s2308_s22 + $0xa8] sm:$0xff] }
  0x15   : > { %189 = vst.msk [vmem:[#allocation2 + $0x78] sm:$0xff] %vm172_vm0, %v2195_v0  ;;  %190 = vst.msk [vmem:[#allocation2 + $0x80] sm:$0xff] %vm172_vm0, %v2195_v0  ;;  %v232_v15 = vld [vmem:[%s2308_s22 + $0x20] sm:$0xff]  ;;  %v233_v16 = vld [vmem:[%s2308_s22 + $0x28] sm:$0xff]  ;;  %1976 = vmatpush1.bf16.msra.mxu1 %v2089_v4  ;;  %973 = vmatpush1.bf16.msra.mxu0 %v2089_v4 }
  0x16   : > { %191 = vst.msk [vmem:[#allocation2 + $0x88] sm:$0x3] %vm175_vm1, %v2195_v0  ;;  %194 = vst.msk [vmem:[#allocation2 + $0xa0] sm:$0x3] %vm175_vm1, %v2195_v0  ;;  %v250_v18 = vld [vmem:[%s2308_s22 + $0xb0] sm:$0xff]  ;;  %v251_v19 = vld [vmem:[%s2308_s22 + $0xb8] sm:$0xff]  ;;  %1965 = vmatprep.subr.bf16.mxu1 %v3266_v2  ;;  %974 = vmatprep.subr.bf16.mxu0 %v3266_v2 }
  0x17   : > { %192 = vst.msk [vmem:[#allocation2 + $0x90] sm:$0xff] %vm172_vm0, %v2195_v0  ;;  %193 = vst.msk [vmem:[#allocation2 + $0x98] sm:$0xff] %vm172_vm0, %v2195_v0  ;;  %v234_v20 = vld [vmem:[%s2308_s22 + $0x30] sm:$0xff]  ;;  %v235_v21 = vld [vmem:[%s2308_s22 + $0x38] sm:$0xff] }
  0x18   : > { %195 = vst.msk [vmem:[#allocation2 + $0xa8] sm:$0xff] %vm172_vm0, %v2195_v0  ;;  %196 = vst.msk [vmem:[#allocation2 + $0xb0] sm:$0xff] %vm172_vm0, %v2195_v0  ;;  %v252_v22 = vld [vmem:[%s2308_s22 + $0xc0] sm:$0xff]  ;;  %v253_v23 = vld [vmem:[%s2308_s22 + $0xc8] sm:$0xff] }
  0x19   : > { %197 = vst.msk [vmem:[#allocation2 + $0xb8] sm:$0x3] %vm175_vm1, %v2195_v0  ;;  %200 = vst.msk [vmem:[#allocation2 + $0xd0] sm:$0x3] %vm175_vm1, %v2195_v0  ;;  %v236_v24 = vld [vmem:[%s2308_s22 + $0x40] sm:$0xff]  ;;  %v237_v25 = vld [vmem:[%s2308_s22 + $0x48] sm:$0xff]  ;;  %1977 = vmatpush1.bf16.msra.mxu1 %v2090_v17  ;;  %975 = vmatpush1.bf16.msra.mxu0 %v2090_v17 }
  0x1a   : > { %198 = vst.msk [vmem:[#allocation2 + $0xc0] sm:$0xff] %vm172_vm0, %v2195_v0  ;;  %199 = vst.msk [vmem:[#allocation2 + $0xc8] sm:$0xff] %vm172_vm0, %v2195_v0  ;;  %v254_v26 = vld [vmem:[%s2308_s22 + $0xd0] sm:$0xff]  ;;  %v255_v27 = vld [vmem:[%s2308_s22 + $0xd8] sm:$0xff]  ;;  %1966 = vmatprep.subr.bf16.mxu1 %v3266_v2  ;;  %976 = vmatprep.subr.bf16.mxu0 %v3266_v2 }
  0x1b   : > { %204 = vst.msk [vmem:[#allocation2 + $0xf0] sm:$0xff] %vm172_vm0, %v2195_v0  ;;  %205 = vst.msk [vmem:[#allocation2 + $0xf8] sm:$0xff] %vm172_vm0, %v2195_v0  ;;  %v238_v28 = vld [vmem:[%s2308_s22 + $0x50] sm:$0xff]  ;;  %v239_v29 = vld [vmem:[%s2308_s22 + $0x58] sm:$0xff] }
  0x1c   : > { %206 = vst.msk [vmem:[#allocation2 + $0x100] sm:$0x3] %vm175_vm1, %v2195_v0  ;;  %209 = vst.msk [vmem:[#allocation2 + $0x118] sm:$0x3] %vm175_vm1, %v2195_v0 }
  0x1d   : > { %207 = vst.msk [vmem:[#allocation2 + $0x108] sm:$0xff] %vm172_vm0, %v2195_v0  ;;  %208 = vst.msk [vmem:[#allocation2 + $0x110] sm:$0xff] %vm172_vm0, %v2195_v0  ;;  %1978 = vmatpush1.bf16.msra.mxu1 %v2091_v38  ;;  %977 = vmatpush1.bf16.msra.mxu0 %v2091_v38 }
  0x1e   : > { %210 = vst.msk [vmem:[#allocation2 + $0x120] sm:$0xff] %vm172_vm0, %v2195_v0  ;;  %211 = vst.msk [vmem:[#allocation2 + $0x128] sm:$0xff] %vm172_vm0, %v2195_v0  ;;  %1967 = vmatprep.subr.bf16.mxu1 %v3266_v2  ;;  %978 = vmatprep.subr.bf16.mxu0 %v3266_v2 }
  0x1f   : > { %212 = vst.msk [vmem:[#allocation2 + $0x130] sm:$0x3] %vm175_vm1, %v2195_v0  ;;  %215 = vst.msk [vmem:[#allocation2 + $0x148] sm:$0x3] %vm175_vm1, %v2195_v0 }
  0x20   : > { %213 = vst.msk [vmem:[#allocation2 + $0x138] sm:$0xff] %vm172_vm0, %v2195_v0  ;;  %214 = vst.msk [vmem:[#allocation2 + $0x140] sm:$0xff] %vm172_vm0, %v2195_v0 }
  0x21   : > { %216 = vst.msk [vmem:[#allocation2 + $0x150] sm:$0xff] %vm172_vm0, %v2195_v0  ;;  %217 = vst.msk [vmem:[#allocation2 + $0x158] sm:$0xff] %vm172_vm0, %v2195_v0 }
  0x22   : > { %218 = vst.msk [vmem:[#allocation2 + $0x160] sm:$0x3] %vm175_vm1, %v2195_v0  ;;  %221 = vst.msk [vmem:[#allocation2 + $0x178] sm:$0x3] %vm175_vm1, %v2195_v0 }
  0x23   : > { %219 = vst.msk [vmem:[#allocation2 + $0x168] sm:$0xff] %vm172_vm0, %v2195_v0  ;;  %220 = vst.msk [vmem:[#allocation2 + $0x170] sm:$0xff] %vm172_vm0, %v2195_v0 }
  0x24   : > { %222 = vst.msk [vmem:[#allocation2 + $0x180] sm:$0xff] %vm172_vm0, %v2195_v0  ;;  %223 = vst.msk [vmem:[#allocation2 + $0x188] sm:$0xff] %vm172_vm0, %v2195_v0 }
  0x25   : > { %224 = vst.msk [vmem:[#allocation2 + $0x190] sm:$0x3] %vm175_vm1, %v2195_v0  ;;  %227 = vst.msk [vmem:[#allocation2 + $0x1a8] sm:$0x3] %vm175_vm1, %v2195_v0 }
  0x26   : > { %225 = vst.msk [vmem:[#allocation2 + $0x198] sm:$0xff] %vm172_vm0, %v2195_v0  ;;  %226 = vst.msk [vmem:[#allocation2 + $0x1a0] sm:$0xff] %vm172_vm0, %v2195_v0 }
  0x27   : > { %277 = vst.msk [vmem:[#allocation2 + $0xd9] sm:$0xff] %vm172_vm0, %v244_v5  ;;  %278 = vst.msk [vmem:[#allocation2 + $0xe1] sm:$0xff] %vm172_vm0, %v245_v6 }
  0x28   : > { %261 = vst.msk [vmem:[#allocation2 + $0x19] sm:$0xff] %vm172_vm0, %v228_v7  ;;  %262 = vst.msk [vmem:[#allocation2 + $0x21] sm:$0xff] %vm172_vm0, %v229_v8 }
  0x29   : > { %279 = vst.msk [vmem:[#allocation2 + $0xf1] sm:$0xff] %vm172_vm0, %v246_v9  ;;  %280 = vst.msk [vmem:[#allocation2 + $0xf9] sm:$0xff] %vm172_vm0, %v247_v10 }
  0x2a   : > { %263 = vst.msk [vmem:[#allocation2 + $0x31] sm:$0xff] %vm172_vm0, %v230_v11  ;;  %264 = vst.msk [vmem:[#allocation2 + $0x39] sm:$0xff] %vm172_vm0, %v231_v12 }
  0x2b   : > { %281 = vst.msk [vmem:[#allocation2 + $0x109] sm:$0xff] %vm172_vm0, %v248_v13  ;;  %282 = vst.msk [vmem:[#allocation2 + $0x111] sm:$0xff] %vm172_vm0, %v249_v14 }
  0x2c   : > { %265 = vst.msk [vmem:[#allocation2 + $0x49] sm:$0xff] %vm172_vm0, %v232_v15  ;;  %266 = vst.msk [vmem:[#allocation2 + $0x51] sm:$0xff] %vm172_vm0, %v233_v16 }
  0x2d   : > { %283 = vst.msk [vmem:[#allocation2 + $0x121] sm:$0xff] %vm172_vm0, %v250_v18  ;;  %284 = vst.msk [vmem:[#allocation2 + $0x129] sm:$0xff] %vm172_vm0, %v251_v19 }
  0x2e   : > { %267 = vst.msk [vmem:[#allocation2 + $0x61] sm:$0xff] %vm172_vm0, %v234_v20  ;;  %268 = vst.msk [vmem:[#allocation2 + $0x69] sm:$0xff] %vm172_vm0, %v235_v21  ;;  %v2365_v30 = vld [vmem:[#allocation2 + $0xd8] sm:$0xff]  ;;  %v2367_v31 = vld [vmem:[#allocation2 + $0xe0] sm:$0xff] }
  0x2f   : > { %285 = vst.msk [vmem:[#allocation2 + $0x139] sm:$0xff] %vm172_vm0, %v252_v22  ;;  %286 = vst.msk [vmem:[#allocation2 + $0x141] sm:$0xff] %vm172_vm0, %v253_v23  ;;  %v2369_v32 = vld [vmem:[#allocation2 + $0xe8] sm:$0x3]  ;;  %v447_v33 = vrot.slane %v2365_v30, 1  ;;  %v448_v34 = vrot.slane %v2367_v31, 1 }
  0x30   : > { %269 = vst.msk [vmem:[#allocation2 + $0x79] sm:$0xff] %vm172_vm0, %v236_v24  ;;  %270 = vst.msk [vmem:[#allocation2 + $0x81] sm:$0xff] %vm172_vm0, %v237_v25  ;;  %v450_v35 = vrot.slane %v2369_v32, 1  ;;  %v2377_v36 = vld [vmem:[#allocation2 + $0x18] sm:$0xff]  ;;  %v2379_v37 = vld [vmem:[#allocation2 + $0x20] sm:$0xff] }
  0x31   : > { %287 = vst.msk [vmem:[#allocation2 + $0x151] sm:$0xff] %vm172_vm0, %v254_v26  ;;  %288 = vst.msk [vmem:[#allocation2 + $0x159] sm:$0xff] %vm172_vm0, %v255_v27  ;;  %v2384_v39 = vld [vmem:[#allocation2 + $0x28] sm:$0x3]  ;;  %v407_v40 = vrot.slane %v2377_v36, 1  ;;  %v408_v41 = vrot.slane %v2379_v37, 1  ;;  %v449_v44 = vsel %vm401_vm2, %v447_v33, %v448_v34 }
  0x32   : > { %271 = vst.msk [vmem:[#allocation2 + $0x91] sm:$0xff] %vm172_vm0, %v238_v28  ;;  %272 = vst.msk [vmem:[#allocation2 + $0x99] sm:$0xff] %vm172_vm0, %v239_v29  ;;  %v2388_v42 = vld [vmem:[#allocation2 + $0xf0] sm:$0xff]  ;;  %v2390_v43 = vld [vmem:[#allocation2 + $0xf8] sm:$0xff]  ;;  %v451_v45 = vsel %vm401_vm2, %v448_v34, %v450_v35  ;;  %v410_v46 = vrot.slane %v2384_v39, 1 }
  0x33   : > { %v2397_v47 = vld [vmem:[#allocation2 + $0x100] sm:$0x3]  ;;  %v452_v48 = vrot.slane %v2388_v42, 1  ;;  %v2400_v49 = vld [vmem:[#allocation2 + $0x30] sm:$0xff]  ;;  %v1997_v50 = vpack.i.bf16 %v451_v45, %v449_v44  ;;  %v409_v51 = vsel %vm401_vm2, %v407_v40, %v408_v41  ;;  %v453_v52 = vrot.slane %v2390_v43, 1  ;;  %v2405_v54 = vld [vmem:[#allocation2 + $0x38] sm:$0xff] }
  0x34   : > { %v455_v53 = vrot.slane %v2397_v47, 1  ;;  %v2407_v55 = vld [vmem:[#allocation2 + $0x40] sm:$0x3]  ;;  %v411_v56 = vsel %vm401_vm2, %v408_v41, %v410_v46  ;;  %v2410_v57 = vld [vmem:[#allocation2 + $0x108] sm:$0xff]  ;;  %v2412_v58 = vld [vmem:[#allocation2 + $0x110] sm:$0xff]  ;;  %v412_v63 = vrot.slane %v2400_v49, 1 }
  0x35   : > { %v2414_v59 = vld [vmem:[#allocation2 + $0x118] sm:$0x3]  ;;  %1998 = vrot.lane.b32.xlu0 %v1997_v50, %s2197_s29  ;;  %v2002_v60 = vpack.i.bf16 %v411_v56, %v409_v51  ;;  %v454_v61 = vsel %vm401_vm2, %v452_v48, %v453_v52  ;;  %v2420_v0 = vld [vmem:[#allocation2 + $0x48] sm:$0xff]  ;;  %v2422_v1 = vld [vmem:[#allocation2 + $0x50] sm:$0xff]  ;;  %v413_v4 = vrot.slane %v2405_v54, 1  ;;  %v415_v5 = vrot.slane %v2407_v55, 1 }
  0x36   : > { %v456_v62 = vsel %vm401_vm2, %v453_v52, %v455_v53  ;;  %v2427_v6 = vld [vmem:[#allocation2 + $0x58] sm:$0x3]  ;;  %v457_v7 = vrot.slane %v2410_v57, 1  ;;  %v458_v8 = vrot.slane %v2412_v58, 1  ;;  %v460_v9 = vrot.slane %v2414_v59, 1  ;;  %v2433_v10 = vld [vmem:[#allocation2 + $0x120] sm:$0xff] }
  0x37   : > { %v2007_v3 = vpack.i.bf16 %v456_v62, %v454_v61  ;;  %v414_v11 = vsel %vm401_vm2, %v412_v63, %v413_v4  ;;  %v416_v12 = vsel %vm401_vm2, %v413_v4, %v415_v5  ;;  %v417_v13 = vrot.slane %v2420_v0, 1  ;;  %v2440_v15 = vld [vmem:[#allocation2 + $0x128] sm:$0xff]  ;;  %v2442_v16 = vld [vmem:[#allocation2 + $0x130] sm:$0x3]  ;;  %v2448_v21 = vld [vmem:[#allocation2 + $0x60] sm:$0xff] }
  0x38   : > { %v418_v14 = vrot.slane %v2422_v1, 1  ;;  %v2012_v17 = vpack.i.bf16 %v416_v12, %v414_v11  ;;  %v459_v18 = vsel %vm401_vm2, %v457_v7, %v458_v8  ;;  %v461_v19 = vsel %vm401_vm2, %v458_v8, %v460_v9  ;;  %v2450_v22 = vld [vmem:[#allocation2 + $0x68] sm:$0xff]  ;;  %v2452_v23 = vld [vmem:[#allocation2 + $0x70] sm:$0x3]  ;;  %v2456_v27 = vld [vmem:[#allocation2 + $0x138] sm:$0xff] }
  0x39   : > { %2008 = vrot.lane.b32.xlu1 %v2007_v3, %s2197_s29  ;;  %2003 = vrot.lane.b32.xlu0 %v2002_v60, %s2197_s29  ;;  %v420_v20 = vrot.slane %v2427_v6, 1  ;;  %v2017_v24 = vpack.i.bf16 %v461_v19, %v459_v18  ;;  %v462_v26 = vrot.slane %v2433_v10, 1  ;;  %v2458_v28 = vld [vmem:[#allocation2 + $0x140] sm:$0xff]  ;;  %v2460_v29 = vld [vmem:[#allocation2 + $0x148] sm:$0x3]  ;;  %v463_v34 = vrot.slane %v2440_v15, 1 }
  0x3a   : > { %v419_v25 = vsel %vm401_vm2, %v417_v13, %v418_v14  ;;  %v465_v35 = vrot.slane %v2442_v16, 1  ;;  %v2465_v38 = vld [vmem:[#allocation2 + $0x78] sm:$0xff]  ;;  %v2467_v40 = vld [vmem:[#allocation2 + $0x80] sm:$0xff]  ;;  %v2469_v41 = vld [vmem:[#allocation2 + $0x88] sm:$0x3]  ;;  %v422_v45 = vrot.slane %v2448_v21, 1 }
  0x3b   : > { %v421_v33 = vsel %vm401_vm2, %v418_v14, %v420_v20  ;;  %v423_v46 = vrot.slane %v2450_v22, 1  ;;  %v425_v48 = vrot.slane %v2452_v23, 1  ;;  %v2475_v50 = vld [vmem:[#allocation2 + $0x150] sm:$0xff]  ;;  %v2477_v51 = vld [vmem:[#allocation2 + $0x158] sm:$0xff]  ;;  %v2479_v52 = vld [vmem:[#allocation2 + $0x160] sm:$0x3]  ;;  %v464_v53 = vsel %vm401_vm2, %v462_v26, %v463_v34 }
  0x3c   : > { %v2022_v44 = vpack.i.bf16 %v421_v33, %v419_v25  ;;  %v466_v56 = vsel %vm401_vm2, %v463_v34, %v465_v35  ;;  %v467_v60 = vrot.slane %v2456_v27, 1  ;;  %v256_v61 = vld [vmem:[%s2308_s22 + $0xe0] sm:$0xff]  ;;  %v257_v62 = vld [vmem:[%s2308_s22 + $0xe8] sm:$0xff]  ;;  %v468_v7 = vrot.slane %v2458_v28, 1  ;;  %v258_v9 = vld [vmem:[%s2308_s22 + $0xf0] sm:$0xff] }
  0x3d   : > { %2013 = vrot.lane.b32.xlu1 %v2012_v17, %s2197_s29  ;;  %2018 = vrot.lane.b32.xlu0 %v2017_v24, %s2197_s29  ;;  %v240_v63 = vld [vmem:[%s2308_s22 + $0x60] sm:$0xff]  ;;  %v2027_v3 = vpack.i.bf16 %v466_v56, %v464_v53  ;;  %v424_v4 = vsel %vm401_vm2, %v422_v45, %v423_v46  ;;  %v426_v5 = vsel %vm401_vm2, %v423_v46, %v425_v48  ;;  %v241_v8 = vld [vmem:[%s2308_s22 + $0x68] sm:$0xff]  ;;  %v470_v12 = vrot.slane %v2460_v29, 1  ;;  %v2508_v25 = vld [vmem:[#allocation2 + $0x90] sm:$0xff] }
  0x3e   : > { %289 = vst.msk [vmem:[#allocation2 + $0x169] sm:$0xff] %vm172_vm0, %v256_v61  ;;  %290 = vst.msk [vmem:[#allocation2 + $0x171] sm:$0xff] %vm172_vm0, %v257_v62  ;;  %v259_v11 = vld [vmem:[%s2308_s22 + $0xf8] sm:$0xff]  ;;  %v427_v13 = vrot.slane %v2465_v38, 1  ;;  %v242_v14 = vld [vmem:[%s2308_s22 + $0x70] sm:$0xff]  ;;  %v2032_v18 = vpack.i.bf16 %v426_v5, %v424_v4  ;;  %v469_v19 = vsel %vm401_vm2, %v467_v60, %v468_v7  ;;  %v428_v20 = vrot.slane %v2467_v40, 1 }
  0x3f   : > { %273 = vst.msk [vmem:[#allocation2 + $0xa9] sm:$0xff] %vm172_vm0, %v240_v63  ;;  %274 = vst.msk [vmem:[#allocation2 + $0xb1] sm:$0xff] %vm172_vm0, %v241_v8  ;;  %v243_v17 = vld [vmem:[%s2308_s22 + $0x78] sm:$0xff]  ;;  %v430_v24 = vrot.slane %v2469_v41, 1  ;;  %v2512_v33 = vld [vmem:[#allocation2 + $0xa0] sm:$0x3]  ;;  %v471_v34 = vsel %vm401_vm2, %v468_v7, %v470_v12 }
  0x40   : > { %291 = vst.msk [vmem:[#allocation2 + $0x181] sm:$0xff] %vm172_vm0, %v258_v9  ;;  %292 = vst.msk [vmem:[#allocation2 + $0x189] sm:$0xff] %vm172_vm0, %v259_v11  ;;  %v2510_v26 = vld [vmem:[#allocation2 + $0x98] sm:$0xff]  ;;  %v472_v35 = vrot.slane %v2475_v50, 1  ;;  %v475_v45 = vrot.slane %v2479_v52, 1  ;;  %v2092_v46 = vld [vmem:[%s3263_s1 + $0x70] sm:$0xff]   ;;  %v2037_v48 = vpack.i.bf16 %v471_v34, %v469_v19  ;;  %v429_v53 = vsel %vm401_vm2, %v427_v13, %v428_v20 }
  0x41   : > { %2023 = vrot.lane.b32.xlu1 %v2022_v44, %s2197_s29  ;;  %275 = vst.msk [vmem:[#allocation2 + $0xc1] sm:$0xff] %vm172_vm0, %v242_v14  ;;  %276 = vst.msk [vmem:[#allocation2 + $0xc9] sm:$0xff] %vm172_vm0, %v243_v17  ;;  %2028 = vrot.lane.b32.xlu0 %v2027_v3, %s2197_s29  ;;  %v473_v44 = vrot.slane %v2477_v51, 1  ;;  %v431_v56 = vsel %vm401_vm2, %v428_v20, %v430_v24  ;;  %v432_v62 = vrot.slane %v2508_v25, 1  ;;  %v2093_v63 = vld [vmem:[%s3263_s1 + $0x68] sm:$0xff]   ;;  %v433_v4 = vrot.slane %v2510_v26, 1 }
  0x42   : > { %1979 = vmatpush1.bf16.msra.mxu1 %v2092_v46  ;;  %979 = vmatpush1.bf16.msra.mxu0 %v2092_v46  ;;  %v2042_v3 = vpack.i.bf16 %v431_v56, %v429_v53  ;;  %v435_v5 = vrot.slane %v2512_v33, 1  ;;  %v2535_v7 = vld [vmem:[#allocation2] sm:$0xff]  ;;  %v2537_v8 = vld [vmem:[#allocation2 + $0x8] sm:$0xff] }
  0x43   : > { %v474_v60 = vsel %vm401_vm2, %v472_v35, %v473_v44  ;;  %v476_v61 = vsel %vm401_vm2, %v473_v44, %v475_v45  ;;  %3282 = vst [vmem:[#allocation3_spill] sm:$0xff] %v2535_v7  ;;  %3283 = vst [vmem:[#allocation4_spill] sm:$0xff] %v2537_v8  ;;  %1968 = vmatprep.subr.bf16.mxu1 %v3266_v2  ;;  %980 = vmatprep.subr.bf16.mxu0 %v3266_v2  ;;  %v2094_v14 = vld [vmem:[%s3263_s1 + $0x60] sm:$0xff]   ;;  %v402_v53 = vrot.slane %v2535_v7, 1 }
  0x44   : > { %v2047_v9 = vpack.i.bf16 %v476_v61, %v474_v60  ;;  %v434_v17 = vsel %vm401_vm2, %v432_v62, %v433_v4  ;;  %v403_v56 = vrot.slane %v2537_v8, 1 }
  0x45   : > { %2033 = vrot.lane.b32.xlu1 %v2032_v18, %s2197_s29  ;;  %2038 = vrot.lane.b32.xlu0 %v2037_v48, %s2197_s29  ;;  %v2541_v11 = vld [vmem:[#allocation2 + $0x168] sm:$0xff]  ;;  %v2543_v12 = vld [vmem:[#allocation2 + $0x170] sm:$0xff]  ;;  %v2545_v13 = vld [vmem:[#allocation2 + $0x178] sm:$0x3]  ;;  %v436_v18 = vsel %vm401_vm2, %v433_v4, %v435_v5 }
  0x46   : > { %v477_v19 = vrot.slane %v2541_v11, 1  ;;  %v478_v20 = vrot.slane %v2543_v12, 1  ;;  %v2555_v24 = vld [vmem:[#allocation2 + $0xa8] sm:$0xff]  ;;  %v2557_v34 = vld [vmem:[#allocation2 + $0xb0] sm:$0xff]  ;;  %v2559_v35 = vld [vmem:[#allocation2 + $0xb8] sm:$0x3]  ;;  %1980 = vmatpush1.bf16.msra.mxu1 %v2093_v63  ;;  %981 = vmatpush1.bf16.msra.mxu0 %v2093_v63  ;;  %v2052_v60 = vpack.i.bf16 %v436_v18, %v434_v17 }
  0x47   : > { %3284 = vst [vmem:[#allocation5_spill] sm:$0xff] %v2555_v24  ;;  %3285 = vst [vmem:[#allocation6_spill] sm:$0xff] %v2557_v34  ;;  %v480_v44 = vrot.slane %v2545_v13, 1  ;;  %v437_v45 = vrot.slane %v2555_v24, 1  ;;  %v2563_v46 = vld [vmem:[#allocation2 + $0x180] sm:$0xff]  ;;  %v2565_v48 = vld [vmem:[#allocation2 + $0x188] sm:$0xff] }
  0x48   : > { %3286 = vst [vmem:[#allocation7_spill] sm:$0xff] %v2559_v35  ;;  %3287 = vst [vmem:[#allocation8_spill] sm:$0xff] %v2563_v46  ;;  %v479_v61 = vsel %vm401_vm2, %v477_v19, %v478_v20  ;;  %v438_v62 = vrot.slane %v2557_v34, 1  ;;  %v440_v4 = vrot.slane %v2559_v35, 1  ;;  %v2573_v5 = vld [vmem:[#allocation2 + $0x190] sm:$0x3] }
  0x49   : > { %3288 = vst [vmem:[#allocation9_spill] sm:$0xff] %v2565_v48  ;;  %2043 = vrot.lane.b32.xlu1 %v2042_v3, %s2197_s29  ;;  %v2575_v2 = vld [vmem:[#allocation2 + $0xc0] sm:$0xff]  ;;  %v3289_v24 = vmov 0   ;;  %2048 = vrot.lane.b32.xlu0 %v2047_v9, %s2197_s29  ;;  %v481_v8 = vsel %vm401_vm2, %v478_v20, %v480_v44  ;;  %v482_v63 = vrot.slane %v2563_v46, 1  ;;  %v483_v3 = vrot.slane %v2565_v48, 1  ;;  %v2583_v18 = vld [vmem:[#allocation2 + $0xc8] sm:$0xff] }
  0x4a   : > { %1969 = vmatprep.subr.bf16.mxu1 %v3289_v24  ;;  %v485_v17 = vrot.slane %v2573_v5, 1  ;;  %v2585_v19 = vld [vmem:[#allocation2 + $0xd0] sm:$0x3]  ;;  %982 = vmatprep.subr.bf16.mxu0 %v3289_v24  ;;  %v2057_v7 = vpack.i.bf16 %v481_v8, %v479_v61  ;;  %v439_v34 = vsel %vm401_vm2, %v437_v45, %v438_v62  ;;  %v441_v35 = vsel %vm401_vm2, %v438_v62, %v440_v4  ;;  %v2095_v46 = vld [vmem:[%s3263_s1 + $0xb8] sm:$0xff]  }
  0x4b   : > { %v2590_v9 = vld [vmem:[#allocation2 + $0x10] sm:$0x3]  ;;  %v484_v20 = vsel %vm401_vm2, %v482_v63, %v483_v3  ;;  %v442_v48 = vrot.slane %v2575_v2, 1  ;;  %1981 = vmatpush1.bf16.msra.mxu1 %v2094_v14  ;;  %983 = vmatpush1.bf16.msra.mxu0 %v2094_v14  ;;  %v649_v8 = vrot.slane %v2369_v32, 2  ;;  %v2062_v45 = vpack.i.bf16 %v441_v35, %v439_v34 }
  0x4c   : > { %v486_v44 = vsel %vm401_vm2, %v483_v3, %v485_v17  ;;  %v443_v61 = vrot.slane %v2583_v18, 1  ;;  %v445_v62 = vrot.slane %v2585_v19, 1  ;;  %1970 = vmatprep.subr.bf16.mxu1 %v3289_v24  ;;  %v404_v14 = vsel %vm401_vm2, %v402_v53, %v403_v56  ;;  %992 = vmatprep.subr.bf16.mxu0 %v3289_v24  ;;  %v2096_v32 = vld [vmem:[%s3263_s1 + $0xb0] sm:$0xff]  }
  0x4d   : > { %2053 = vrot.lane.b32.xlu1 %v2052_v60, %s2197_s29  ;;  %2058 = vrot.lane.b32.xlu0 %v2057_v7, %s2197_s29  ;;  %v2067_v4 = vpack.i.bf16 %v486_v44, %v484_v20  ;;  %v405_v63 = vrot.slane %v2590_v9, 1  ;;  %v646_v60 = vrot.slane %v2365_v30, 2  ;;  %v647_v3 = vrot.slane %v2367_v31, 2 }
  0x4e   : > { %v444_v34 = vsel %vm401_vm2, %v442_v48, %v443_v61  ;;  %v446_v35 = vsel %vm401_vm2, %v443_v61, %v445_v62  ;;  %v606_v53 = vrot.slane %v2377_v36, 2  ;;  %v607_v17 = vrot.slane %v2379_v37, 2 }
  0x4f   : > { %v406_v7 = vsel %vm401_vm2, %v403_v56, %v405_v63  ;;  %1982 = vmatpush2.bf16.msra.mxu1 %v2095_v46  ;;  %993 = vmatpush2.bf16.msra.mxu0 %v2095_v46  ;;  %v2072_v20 = vpack.i.bf16 %v446_v35, %v444_v34  ;;  %v648_v48 = vsel %vm600_vm3, %v646_v60, %v647_v3  ;;  %v609_v61 = vrot.slane %v2384_v39, 2  ;;  %v2097_v63 = vld [vmem:[%s3263_s1 + $0xa8] sm:$0xff]   ;;  %v2098_v39 = vld [vmem:[%s3263_s1 + $0xa0] sm:$0xff]  }
  0x50   : > { %1971 = vmatprep.subr.bf16.mxu1 %v3289_v24  ;;  %v650_v44 = vsel %vm600_vm3, %v647_v3, %v649_v8  ;;  %v2077_v56 = vpack.i.bf16 %v406_v7, %v404_v14  ;;  %994 = vmatprep.subr.bf16.mxu0 %v3289_v24  ;;  %v608_v46 = vsel %vm600_vm3, %v606_v53, %v607_v17  ;;  %v2650_v14 = vld [vmem:[#allocation2 + $0x1a0] sm:$0xff] }
  0x51   : > { %2063 = vrot.lane.b32.xlu1 %v2062_v45, %s2197_s29  ;;  %2068 = vrot.lane.b32.xlu0 %v2067_v4, %s2197_s29  ;;  %v2625_v62 = vpack.c.bf16 %v650_v44, %v648_v48  ;;  %v610_v45 = vsel %vm600_vm3, %v607_v17, %v609_v61  ;;  %v2648_v4 = vld [vmem:[#allocation2 + $0x198] sm:$0xff]  ;;  %v488_v35 = vrot.slane %v2650_v14, 1  ;;  %v651_v17 = vrot.slane %v2388_v42, 2 }
  0x52   : > { %v2631_v8 = vpack.c.bf16 %v610_v45, %v608_v46  ;;  %v487_v34 = vrot.slane %v2648_v4, 1  ;;  %v654_v48 = vrot.slane %v2397_v47, 2  ;;  %v614_v44 = vrot.slane %v2407_v55, 2 }
  0x53   : > { %1983 = vmatpush2.bf16.msra.mxu1 %v2096_v32  ;;  %995 = vmatpush2.bf16.msra.mxu0 %v2096_v32  ;;  %v2652_v32 = vld [vmem:[#allocation2 + $0x1a8] sm:$0x3] }
  0x54   : > { %1972 = vmatprep.subr.bf16.mxu1 %v3289_v24  ;;  %996 = vmatprep.subr.bf16.mxu0 %v3289_v24  ;;  %v490_v60 = vrot.slane %v2652_v32, 1  ;;  %v489_v3 = vsel %vm401_vm2, %v487_v34, %v488_v35  ;;  %v612_v34 = vrot.slane %v2405_v54, 2 }
  0x55   : > { %2073 = vrot.lane.b32.xlu1 %v2072_v20, %s2197_s29  ;;  %2078 = vrot.lane.b32.xlu0 %v2077_v56, %s2197_s29  ;;  %v652_v20 = vrot.slane %v2390_v43, 2 }
  0x56   : > { %1869 = vmatprep.mubr.msk.bf16.mxu1 %vm172_vm0, %v2625_v62  ;;  %1861 = vmatprep.mubr.msk.bf16.mxu0 %vm172_vm0, %v2631_v8  ;;  %v491_v7 = vsel %vm401_vm2, %v488_v35, %v490_v60  ;;  %v659_v35 = vrot.slane %v2414_v59, 2 }
  0x57   : > { %1984 = vmatpush2.bf16.msra.mxu1 %v2097_v63  ;;  %997 = vmatpush2.bf16.msra.mxu0 %v2097_v63  ;;  %v2082_v53 = vpack.i.bf16 %v491_v7, %v489_v3  ;;  %v653_v56 = vsel %vm600_vm3, %v651_v17, %v652_v20  ;;  %v655_v46 = vsel %vm600_vm3, %v652_v20, %v654_v48  ;;  %v2099_v3 = vld [vmem:[%s3263_s1 + $0x38] sm:$0xff]  }
  0x58   : > { %1973 = vmatprep.subr.bf16.mxu1 %v3289_v24  ;;  %998 = vmatprep.subr.bf16.mxu0 %v3289_v24  ;;  %v2676_v7 = vpack.c.bf16 %v655_v46, %v653_v56  ;;  %v619_v46 = vrot.slane %v2427_v6, 2  ;;  %v2101_v6 = vld [vmem:[%s3263_s1 + $0x30] sm:$0xff]  }
  0x59   : > { %2083 = vrot.lane.b32.xlu1 %v2082_v53, %s2197_s29  ;;  %v656_v53 = vrot.slane %v2410_v57, 2 }
  0x5b   : > { %1985 = vmatpush2.bf16.msra.mxu1 %v2098_v39  ;;  %999 = vmatpush2.bf16.msra.mxu0 %v2098_v39  ;;  %v611_v39 = vrot.slane %v2400_v49, 2 }
  0x5c   : > { %1204 = vmatprep.subr.bf16.mxu1 %v3289_v24  ;;  %1465 = vmatprep.subr.bf16.mxu0 %v3289_v24 }
  0xa7   : > { %v1999_v61 = vpop.permute.xlu0 %1998 }
  0xa8   : > { %v2001_v45 = vunpack.i.h.bf16 %v1999_v61  ;;  %v2000_v63 = vunpack.i.l.bf16 %v1999_v61  ;;  %v657_v61 = vrot.slane %v2412_v58, 2 }
  0xaa   : > { %v745_v60 = vsel %vm172_vm0, %v2365_v30, %v2000_v63  ;;  %v746_v47 = vsel %vm172_vm0, %v2367_v31, %v2001_v45  ;;  %v613_v31 = vsel %vm600_vm3, %v611_v39, %v612_v34  ;;  %v615_v45 = vsel %vm600_vm3, %v612_v34, %v614_v44  ;;  %v2100_v39 = vld [vmem:[%s3263_s1 + $0xf8] sm:$0xff]  }
  0xab   : > { %v2009_v55 = vpop.permute.xlu1 %2008  ;;  %v2004_v17 = vpop.permute.xlu0 %2003  ;;  %v2679_v20 = vpack.c.bf16 %v746_v47, %v745_v60 }
  0xac   : > { %v2011_v48 = vunpack.i.h.bf16 %v2009_v55  ;;  %v2010_v59 = vunpack.i.l.bf16 %v2009_v55  ;;  %v2006_v30 = vunpack.i.h.bf16 %v2004_v17  ;;  %v2005_v63 = vunpack.i.l.bf16 %v2004_v17 }
  0xad   : > { %1065 = vmatmul.mubr.bf16.vlgmr.msra.gmra.mxu1 %v2679_v20  ;;  %v658_v17 = vsel %vm600_vm3, %v656_v53, %v657_v61 }
  0xae   : > { %v747_v56 = vsel %vm172_vm0, %v2388_v42, %v2010_v59  ;;  %1205 = vmatpush1.bf16.msra.mxu1 %v2099_v3  ;;  %v729_v60 = vsel %vm172_vm0, %v2377_v36, %v2005_v63  ;;  %v730_v47 = vsel %vm172_vm0, %v2379_v37, %v2006_v30  ;;  %1870 = vmatprep.mubr.msk.bf16.mxu1 %vm172_vm0, %v2676_v7  ;;  %v616_v30 = vrot.slane %v2420_v0, 2 }
  0xaf   : > { %v2014_v55 = vpop.permute.xlu1 %2013  ;;  %v748_v42 = vsel %vm172_vm0, %v2390_v43, %v2011_v48  ;;  %v2702_v44 = vpack.c.bf16 %v730_v47, %v729_v60  ;;  %1206 = vmatprep.subr.bf16.mxu1 %v3289_v24  ;;  %v2019_v37 = vpop.permute.xlu0 %2018  ;;  %v2705_v3 = vpack.c.bf16 %v615_v45, %v613_v31  ;;  %v660_v59 = vsel %vm600_vm3, %v657_v61, %v659_v35  ;;  %v2102_v35 = vld [vmem:[%s3263_s1 + $0xf0] sm:$0xff]   ;;  %v2103_v45 = vld [vmem:[%s3263_s1 + $0x28] sm:$0xff]  }
  0xb0   : > { %v2016_v36 = vunpack.i.h.bf16 %v2014_v55  ;;  %v2015_v34 = vunpack.i.l.bf16 %v2014_v55  ;;  %v617_v43 = vrot.slane %v2422_v1, 2  ;;  %v664_v48 = vrot.slane %v2442_v16, 2 }
  0xb1   : > { %1001 = vmatmul.mubr.bf16.vlgmr.msra.gmra.mxu0 %v2702_v44  ;;  %v2713_v63 = vpack.c.bf16 %v748_v42, %v747_v56  ;;  %v661_v60 = vrot.slane %v2433_v10, 2  ;;  %v662_v47 = vrot.slane %v2440_v15, 2  ;;  %v2021_v31 = vunpack.i.h.bf16 %v2019_v37 }
  0xb2   : > { %1466 = vmatpush1.bf16.msra.mxu0 %v2100_v39  ;;  %1207 = vmatpush1.bf16.msra.mxu1 %v2101_v6  ;;  %v2020_v53 = vunpack.i.l.bf16 %v2019_v37  ;;  %v731_v61 = vsel %vm172_vm0, %v2400_v49, %v2015_v34  ;;  %v732_v16 = vsel %vm172_vm0, %v2405_v54, %v2016_v36  ;;  %v2730_v39 = vpack.c.bf16 %v660_v59, %v658_v17 }
  0xb3   : > { %1467 = vmatprep.subr.bf16.mxu0 %v3289_v24  ;;  %1862 = vmatprep.mubr.msk.bf16.mxu0 %vm172_vm0, %v2705_v3  ;;  %v2024_v56 = vpop.permute.xlu1 %2023  ;;  %v624_v55 = vrot.slane %v2452_v23, 2  ;;  %v618_v49 = vsel %vm600_vm3, %v616_v30, %v617_v43  ;;  %v620_v54 = vsel %vm600_vm3, %v617_v43, %v619_v46  ;;  %v621_v42 = vrot.slane %v2448_v21, 2  ;;  %v2104_v46 = vld [vmem:[%s3263_s1 + $0xe8] sm:$0xff]   ;;  %v2105_v43 = vld [vmem:[%s3263_s1 + $0x20] sm:$0xff]  }
  0xb4   : > { %1208 = vmatprep.subr.bf16.mxu1 %v3289_v24  ;;  %v2738_v6 = vpack.c.bf16 %v732_v16, %v731_v61  ;;  %v663_v36 = vsel %vm600_vm3, %v661_v60, %v662_v47  ;;  %v665_v34 = vsel %vm600_vm3, %v662_v47, %v664_v48  ;;  %v622_v37 = vrot.slane %v2450_v22, 2  ;;  %v2029_v48 = vpop.permute.xlu0 %2028 }
  0xb5   : > { %1073 = vmatmul.mubr.bf16.gmra.mxu1 %v2713_v63  ;;  %v2026_v23 = vunpack.i.h.bf16 %v2024_v56  ;;  %v2025_v17 = vunpack.i.l.bf16 %v2024_v56  ;;  %v749_v59 = vsel %vm172_vm0, %v2410_v57, %v2020_v53  ;;  %v750_v30 = vsel %vm172_vm0, %v2412_v58, %v2021_v31 }
  0xb6   : > { %1468 = vmatpush1.bf16.msra.mxu0 %v2102_v35  ;;  %1209 = vmatpush1.bf16.msra.mxu1 %v2103_v45  ;;  %v2756_v60 = vpack.c.bf16 %v620_v54, %v618_v49  ;;  %v669_v47 = vrot.slane %v2460_v29, 2  ;;  %v2760_v57 = vpack.c.bf16 %v665_v34, %v663_v36  ;;  %v666_v58 = vrot.slane %v2456_v27, 2  ;;  %v2106_v49 = vld [vmem:[%s3263_s1 + $0xe0] sm:$0xff]   ;;  %v2107_v54 = vld [vmem:[%s3263_s1 + $0x18] sm:$0xff]  }
  0xb7   : > { %1469 = vmatprep.subr.bf16.mxu0 %v3289_v24  ;;  %1871 = vmatprep.mubr.msk.bf16.mxu1 %vm172_vm0, %v2730_v39  ;;  %v2764_v31 = vpack.c.bf16 %v750_v30, %v749_v59  ;;  %v623_v53 = vsel %vm600_vm3, %v621_v42, %v622_v37  ;;  %v625_v35 = vsel %vm600_vm3, %v622_v37, %v624_v55  ;;  %v667_v61 = vrot.slane %v2458_v28, 2  ;;  %v2034_v55 = vpop.permute.xlu1 %2033  ;;  %v2108_v30 = vld [vmem:[%s3263_s1 + $0xd8] sm:$0xff]  }
  0xb8   : > { %1210 = vmatprep.subr.bf16.mxu1 %v3289_v24  ;;  %v2031_v16 = vunpack.i.h.bf16 %v2029_v48  ;;  %v2030_v29 = vunpack.i.l.bf16 %v2029_v48  ;;  %v733_v45 = vsel %vm172_vm0, %v2420_v0, %v2025_v17  ;;  %v734_v56 = vsel %vm172_vm0, %v2422_v1, %v2026_v23  ;;  %v2109_v48 = vld [vmem:[%s3263_s1 + $0x10] sm:$0xff]  }
  0xb9   : > { %1009 = vmatmul.mubr.bf16.gmra.mxu0 %v2738_v6  ;;  %v629_v42 = vrot.slane %v2469_v41, 2  ;;  %v2784_v0 = vpack.c.bf16 %v625_v35, %v623_v53  ;;  %v626_v1 = vrot.slane %v2465_v38, 2  ;;  %v2788_v36 = vpack.c.bf16 %v734_v56, %v733_v45  ;;  %v2110_v56 = vld [vmem:[%s3263_s1 + $0xd0] sm:$0xff]  }
  0xba   : > { %1470 = vmatpush1.bf16.msra.mxu0 %v2104_v46  ;;  %1211 = vmatpush1.bf16.msra.mxu1 %v2105_v43  ;;  %v668_v34 = vsel %vm600_vm3, %v666_v58, %v667_v61  ;;  %v670_v37 = vsel %vm600_vm3, %v667_v61, %v669_v47  ;;  %v627_v23 = vrot.slane %v2467_v40, 2  ;;  %v2036_v17 = vunpack.i.h.bf16 %v2034_v55  ;;  %v2039_v43 = vpop.permute.xlu0 %2038 }
  0xbb   : > { %1863 = vmatprep.mubr.msk.bf16.mxu0 %vm172_vm0, %v2756_v60  ;;  %1471 = vmatprep.subr.bf16.mxu0 %v3289_v24  ;;  %v2035_v46 = vunpack.i.l.bf16 %v2034_v55  ;;  %v751_v41 = vsel %vm172_vm0, %v2433_v10, %v2030_v29  ;;  %v752_v59 = vsel %vm172_vm0, %v2440_v15, %v2031_v16  ;;  %v674_v47 = vrot.slane %v2479_v52, 2  ;;  %v2111_v55 = vld [vmem:[%s3263_s1 + $0x8] sm:$0xff]  }
  0xbc   : > { %1212 = vmatprep.subr.bf16.mxu1 %v3289_v24  ;;  %v2808_v10 = vpack.c.bf16 %v670_v37, %v668_v34  ;;  %v671_v15 = vrot.slane %v2475_v50, 2  ;;  %v2812_v58 = vpack.c.bf16 %v752_v59, %v751_v41  ;;  %v628_v53 = vsel %vm600_vm3, %v626_v1, %v627_v23  ;;  %v2112_v41 = vld [vmem:[%s3263_s1 + $0xc8] sm:$0xff]  }
  0xbd   : > { %1081 = vmatmul.mubr.bf16.gmra.mxu1 %v2764_v31  ;;  %v630_v35 = vsel %vm600_vm3, %v627_v23, %v629_v42  ;;  %v672_v61 = vrot.slane %v2477_v51, 2  ;;  %v2041_v16 = vunpack.i.h.bf16 %v2039_v43  ;;  %v2040_v29 = vunpack.i.l.bf16 %v2039_v43 }
  0xbe   : > { %1472 = vmatpush1.bf16.msra.mxu0 %v2106_v49  ;;  %1872 = vmatprep.mubr.msk.bf16.mxu1 %vm172_vm0, %v2760_v57  ;;  %v735_v52 = vsel %vm172_vm0, %v2448_v21, %v2035_v46  ;;  %v736_v45 = vsel %vm172_vm0, %v2450_v22, %v2036_v17  ;;  %v2044_v49 = vpop.permute.xlu1 %2043  ;;  %v2832_v21 = vpack.c.bf16 %v630_v35, %v628_v53  ;;  %v631_v22 = vrot.slane %v2508_v25, 2  ;;  %v2049_v59 = vpop.permute.xlu0 %2048 }
  0xbf   : > { %1213 = vmatpush1.bf16.msra.mxu1 %v2107_v54  ;;  %1473 = vmatprep.subr.bf16.mxu0 %v3289_v24  ;;  %v634_v54 = vrot.slane %v2512_v33, 2  ;;  %v2836_v42 = vpack.c.bf16 %v736_v45, %v735_v52  ;;  %v673_v1 = vsel %vm600_vm3, %v671_v15, %v672_v61  ;;  %v675_v34 = vsel %vm600_vm3, %v672_v61, %v674_v47  ;;  %v2115_v45 = vld [vmem:[%s3263_s1 + $0x58] sm:$0xff]  }
  0xc0   : > { %1214 = vmatprep.subr.bf16.mxu1 %v3289_v24  ;;  %v632_v37 = vrot.slane %v2510_v26, 2  ;;  %v2046_v23 = vunpack.i.h.bf16 %v2044_v49  ;;  %v2045_v17 = vunpack.i.l.bf16 %v2044_v49  ;;  %v753_v33 = vsel %vm172_vm0, %v2456_v27, %v2040_v29  ;;  %v2114_v29 = vld [vmem:[%s3263_s1 + $0xc0] sm:$0xff]  }
  0xc1   : > { %1017 = vmatmul.mubr.bf16.gmra.mxu0 %v2788_v36  ;;  %v754_v46 = vsel %vm172_vm0, %v2458_v28, %v2041_v16  ;;  %v679_v43 = vrot.slane %v2545_v13, 2  ;;  %v676_v27 = vrot.slane %v2541_v11, 2  ;;  %v677_v28 = vrot.slane %v2543_v12, 2 }
  0xc2   : > { %1474 = vmatpush1.bf16.msra.mxu0 %v2108_v30  ;;  %1864 = vmatprep.mubr.msk.bf16.mxu0 %vm172_vm0, %v2784_v0  ;;  %v2113_v30 = vld [vmem:[%s3263_s1] sm:$0xff]   ;;  %v2861_v47 = vpack.c.bf16 %v675_v34, %v673_v1  ;;  %v633_v15 = vsel %vm600_vm3, %v631_v22, %v632_v37  ;;  %v635_v53 = vsel %vm600_vm3, %v632_v37, %v634_v54  ;;  %v2051_v35 = vunpack.i.h.bf16 %v2049_v59  ;;  %v2054_v52 = vpop.permute.xlu1 %2053  ;;  %v3292_v34 = vld [vmem:[#allocation6_spill] sm:$0xff] }
  0xc3   : > { %1215 = vmatpush1.bf16.msra.mxu1 %v2109_v48  ;;  %1475 = vmatprep.subr.bf16.mxu0 %v3289_v24  ;;  %v2859_v48 = vpack.c.bf16 %v754_v46, %v753_v33  ;;  %v2050_v61 = vunpack.i.l.bf16 %v2049_v59  ;;  %v737_v13 = vsel %vm172_vm0, %v2465_v38, %v2045_v17  ;;  %v738_v16 = vsel %vm172_vm0, %v2467_v40, %v2046_v23  ;;  %v3291_v22 = vld [vmem:[#allocation5_spill] sm:$0xff]  ;;  %v2059_v59 = vpop.permute.xlu0 %2058 }
  0xc4   : > { %1216 = vmatprep.subr.bf16.mxu1 %v3289_v24  ;;  %v678_v38 = vsel %vm600_vm3, %v676_v27, %v677_v28  ;;  %v2884_v40 = vpack.c.bf16 %v738_v16, %v737_v13  ;;  %v680_v54 = vsel %vm600_vm3, %v677_v28, %v679_v43  ;;  %v636_v1 = vrot.slane %v3291_v22, 2 }
  0xc5   : > { %1089 = vmatmul.mubr.bf16.gmra.mxu1 %v2812_v58  ;;  %v637_v37 = vrot.slane %v3292_v34, 2  ;;  %v2056_v23 = vunpack.i.h.bf16 %v2054_v52  ;;  %v2055_v17 = vunpack.i.l.bf16 %v2054_v52  ;;  %v755_v33 = vsel %vm172_vm0, %v2475_v50, %v2050_v61  ;;  %v3293_v50 = vld [vmem:[#allocation8_spill] sm:$0xff]  ;;  %v2118_v52 = vld [vmem:[%s3263_s1 + $0x110] sm:$0xff]  }
  0xc6   : > { %1873 = vmatprep.mubr.msk.bf16.mxu1 %vm172_vm0, %v2808_v10  ;;  %1476 = vmatpush1.bf16.msra.mxu0 %v2110_v56  ;;  %v3290_v56 = vld [vmem:[#allocation7_spill] sm:$0xff]  ;;  %v756_v46 = vsel %vm172_vm0, %v2477_v51, %v2051_v35  ;;  %v684_v43 = vrot.slane %v2573_v5, 2  ;;  %v681_v27 = vrot.slane %v3293_v50, 2  ;;  %v3294_v51 = vld [vmem:[#allocation9_spill] sm:$0xff]  ;;  %v2061_v13 = vunpack.i.h.bf16 %v2059_v59 }
  0xc7   : > { %1217 = vmatpush1.bf16.msra.mxu1 %v2111_v55  ;;  %1477 = vmatprep.subr.bf16.mxu0 %v3289_v24  ;;  %v639_v49 = vrot.slane %v3290_v56, 2  ;;  %v2879_v55 = vpack.c.bf16 %v635_v53, %v633_v15  ;;  %v682_v28 = vrot.slane %v3294_v51, 2  ;;  %v2907_v15 = vpack.c.bf16 %v756_v46, %v755_v33  ;;  %v2119_v56 = vld [vmem:[%s3263_s1 + $0x48] sm:$0xff]  }
  0xc8   : > { %1218 = vmatprep.subr.bf16.mxu1 %v3289_v24  ;;  %v2909_v53 = vpack.c.bf16 %v680_v54, %v678_v38  ;;  %v638_v35 = vsel %vm600_vm3, %v636_v1, %v637_v37  ;;  %v2060_v16 = vunpack.i.l.bf16 %v2059_v59  ;;  %v739_v5 = vsel %vm172_vm0, %v2508_v25, %v2055_v17  ;;  %v2120_v46 = vld [vmem:[%s3263_s1 + $0x108] sm:$0xff]   ;;  %v2121_v59 = vld [vmem:[%s3263_s1 + $0x40] sm:$0xff]  }
  0xc9   : > { %1025 = vmatmul.mubr.bf16.gmra.mxu0 %v2836_v42  ;;  %v640_v61 = vsel %vm600_vm3, %v637_v37, %v639_v49  ;;  %v644_v49 = vrot.slane %v2585_v19, 2  ;;  %v683_v25 = vsel %vm600_vm3, %v681_v27, %v682_v28  ;;  %v685_v1 = vsel %vm600_vm3, %v682_v28, %v684_v43 }
  0xca   : > { %1865 = vmatprep.mubr.msk.bf16.mxu0 %vm172_vm0, %v2832_v21  ;;  %1478 = vmatpush1.bf16.msra.mxu0 %v2112_v41  ;;  %v2116_v41 = vld [vmem:[%s3263_s1 + $0x118] sm:$0xff]   ;;  %v2933_v54 = vpack.c.bf16 %v640_v61, %v638_v35  ;;  %v642_v37 = vrot.slane %v2583_v18, 2  ;;  %v757_v19 = vsel %vm172_vm0, %v2541_v11, %v2060_v16  ;;  %v758_v33 = vsel %vm172_vm0, %v2543_v12, %v2061_v13  ;;  %v3295_v11 = vld [vmem:[#allocation3_spill] sm:$0xff] }
  0xcb   : > { %1219 = vmatpush1.bf16.msra.mxu1 %v2113_v30  ;;  %1479 = vmatprep.subr.bf16.mxu0 %v3289_v24  ;;  %v2117_v30 = vld [vmem:[%s3263_s1 + $0x50] sm:$0xff]   ;;  %v2951_v43 = vpack.c.bf16 %v685_v1, %v683_v25  ;;  %v601_v12 = vrot.slane %v3295_v11, 2  ;;  %v2956_v27 = vpack.c.bf16 %v758_v33, %v757_v19  ;;  %v3296_v61 = vld [vmem:[#allocation4_spill] sm:$0xff] }
  0xcc   : > { %1228 = vmatprep.subr.bf16.mxu1 %v3289_v24  ;;  %v645_v35 = vsel %vm600_vm3, %v642_v37, %v644_v49  ;;  %v602_v13 = vrot.slane %v3296_v61, 2 }
  0xcd   : > { %1097 = vmatmul.mubr.bf16.gmra.mxu1 %v2859_v48 }
  0xce   : > { %1874 = vmatprep.mubr.msk.bf16.mxu1 %vm172_vm0, %v2861_v47  ;;  %1480 = vmatpush1.bf16.msra.mxu0 %v2114_v29  ;;  %v740_v29 = vsel %vm172_vm0, %v2510_v26, %v2056_v23  ;;  %v641_v26 = vrot.slane %v2575_v2, 2  ;;  %v603_v25 = vsel %vm600_vm3, %v601_v12, %v602_v13 }
  0xcf   : > { %1229 = vmatpush2.bf16.msra.mxu1 %v2115_v45  ;;  %1489 = vmatprep.subr.bf16.mxu0 %v3289_v24  ;;  %v2064_v45 = vpop.permute.xlu1 %2063  ;;  %v2931_v38 = vpack.c.bf16 %v740_v29, %v739_v5 }
  0xd0   : > { %1230 = vmatprep.subr.bf16.mxu1 %v3289_v24  ;;  %v2066_v23 = vunpack.i.h.bf16 %v2064_v45  ;;  %v2065_v17 = vunpack.i.l.bf16 %v2064_v45  ;;  %v643_v28 = vsel %vm600_vm3, %v641_v26, %v642_v37 }
  0xd1   : > { %1033 = vmatmul.mubr.bf16.gmra.mxu0 %v2884_v40  ;;  %v780_v49 = vpack.c.bf16 %v645_v35, %v643_v28 }
  0xd2   : > { %1866 = vmatprep.mubr.msk.bf16.mxu0 %vm172_vm0, %v2879_v55  ;;  %1490 = vmatpush2.bf16.msra.mxu0 %v2116_v41  ;;  %v2069_v41 = vpop.permute.xlu0 %2068  ;;  %v742_v29 = vsel %vm172_vm0, %v3292_v34, %v2066_v23 }
  0xd3   : > { %1231 = vmatpush2.bf16.msra.mxu1 %v2117_v30  ;;  %1491 = vmatprep.subr.bf16.mxu0 %v3289_v24  ;;  %v604_v30 = vrot.slane %v2590_v9, 2  ;;  %v2071_v16 = vunpack.i.h.bf16 %v2069_v41  ;;  %v2070_v5 = vunpack.i.l.bf16 %v2069_v41  ;;  %v741_v9 = vsel %vm172_vm0, %v3291_v22, %v2065_v17  ;;  %v2074_v45 = vpop.permute.xlu1 %2073 }
  0xd4   : > { %1232 = vmatprep.subr.bf16.mxu1 %v3289_v24  ;;  %v2076_v26 = vunpack.i.h.bf16 %v2074_v45  ;;  %v2075_v1 = vunpack.i.l.bf16 %v2074_v45 }
  0xd5   : > { %1105 = vmatmul.mubr.bf16.gmra.mxu1 %v2907_v15  ;;  %v605_v22 = vsel %vm600_vm3, %v602_v13, %v604_v30  ;;  %v759_v34 = vsel %vm172_vm0, %v3293_v50, %v2070_v5  ;;  %v760_v37 = vsel %vm172_vm0, %v3294_v51, %v2071_v16 }
  0xd6   : > { %1875 = vmatprep.mubr.msk.bf16.mxu1 %vm172_vm0, %v2909_v53  ;;  %1492 = vmatpush2.bf16.msra.mxu0 %v2118_v52  ;;  %v2122_v52 = vld [vmem:[%s3263_s1 + $0x100] sm:$0xff]   ;;  %v2980_v23 = vpack.c.bf16 %v760_v37, %v759_v34  ;;  %v764_v17 = vpack.c.bf16 %v605_v22, %v603_v25  ;;  %v744_v41 = vsel %vm172_vm0, %v2583_v18, %v2076_v26  ;;  %v686_v18 = vrot.slane %v2648_v4, 2 }
  0xd7   : > { %1233 = vmatpush2.bf16.msra.mxu1 %v2119_v56  ;;  %1493 = vmatprep.subr.bf16.mxu0 %v3289_v24  ;;  %v777_v56 = vpack.c.bf16 %v742_v29, %v741_v9 }
  0xd8   : > { %1234 = vmatprep.subr.bf16.mxu1 %v3289_v24 }
  0xd9   : > { %1041 = vmatmul.mubr.bf16.gmra.mxu0 %v2931_v38 }
  0xda   : > { %1867 = vmatprep.mubr.msk.bf16.mxu0 %vm172_vm0, %v2933_v54  ;;  %1494 = vmatpush2.bf16.msra.mxu0 %v2120_v46  ;;  %v743_v46 = vsel %vm172_vm0, %v2575_v2, %v2075_v1  ;;  %v689_v2 = vrot.slane %v2652_v32, 2 }
  0xdb   : > { %1235 = vmatpush2.bf16.msra.mxu1 %v2121_v59  ;;  %1495 = vmatprep.subr.bf16.mxu0 %v3289_v24  ;;  %v2079_v24 = vpop.permute.xlu0 %2078  ;;  %v779_v50 = vpack.c.bf16 %v744_v41, %v743_v46 }
  0xdc   : > { %v2081_v19 = vunpack.i.h.bf16 %v2079_v24  ;;  %v2080_v33 = vunpack.i.l.bf16 %v2079_v24 }
  0xdd   : > { %1113 = vmatmul.mubr.bf16.gmra.mxu1 %v2956_v27 }
  0xde   : > { %1876 = vmatprep.mubr.msk.bf16.mxu1 %vm172_vm0, %v2951_v43  ;;  %1496 = vmatpush2.bf16.msra.mxu0 %v2122_v52  ;;  %v728_v51 = vsel %vm172_vm0, %v3296_v61, %v2081_v19  ;;  %v727_v59 = vsel %vm172_vm0, %v3295_v11, %v2080_v33 }
  0xdf   : > { %v763_v30 = vpack.c.bf16 %v728_v51, %v727_v59 }
  0xe1   : > { %1049 = vmatmul.mubr.bf16.gmra.mxu0 %v777_v56 }
  0xe2   : > { %1868 = vmatprep.mubr.msk.bf16.mxu0 %vm172_vm0, %v780_v49 }
  0xe5   : > { %1121 = vmatmul.mubr.bf16.gmra.mxu1 %v2980_v23 }
  0xe6   : > { %1889 = vmatprep.mubr.msk.bf16.mxu1 %vm172_vm0, %v764_v17 }
  0xe9   : > { %1057 = vmatmul.mubr.bf16.gmra.mxu0 %v779_v50 }
  0xea   : > { %1941 = vmatprep.mubr.msk.bf16.mxu0 %vm172_vm0, %v2705_v3 }
  0xed   : > { %1237 = vmatmul.mubr.bf16.vlgmr.msra.gmra.mxu1 %v763_v30 }
  0xee   : > { %1890 = vmatprep.mubr.msk.bf16.mxu1 %vm172_vm0, %v2631_v8  ;;  %v2084_v8 = vpop.permute.xlu1 %2083 }
  0xf1   : > { %1498 = vmatmul.mubr.bf16.vlgmr.msra.gmra.mxu0 %v2738_v6 }
  0xf2   : > { %1942 = vmatprep.mubr.msk.bf16.mxu0 %vm172_vm0, %v2756_v60 }
  0xf5   : > { %1245 = vmatmul.mubr.bf16.gmra.mxu1 %v2702_v44  ;;  %v2086_v44 = vunpack.i.h.bf16 %v2084_v8 }
  0xf6   : > { %1891 = vmatprep.mubr.msk.bf16.mxu1 %vm172_vm0, %v2705_v3  ;;  %v2085_v3 = vunpack.i.l.bf16 %v2084_v8 }
  0xf9   : > { %1506 = vmatmul.mubr.bf16.gmra.mxu0 %v2788_v36 }
  0xfa   : > { %1943 = vmatprep.mubr.msk.bf16.mxu0 %vm172_vm0, %v2784_v0 }
  0xfd   : > { %1253 = vmatmul.mubr.bf16.gmra.mxu1 %v2738_v6 }
  0xfe   : > { %1892 = vmatprep.mubr.msk.bf16.mxu1 %vm172_vm0, %v2756_v60 }
 0x101   : > { %1514 = vmatmul.mubr.bf16.gmra.mxu0 %v2836_v42 }
 0x102   : > { %1944 = vmatprep.mubr.msk.bf16.mxu0 %vm172_vm0, %v2832_v21 }
 0x105   : > { %1261 = vmatmul.mubr.bf16.gmra.mxu1 %v2788_v36 }
 0x106   : > { %1893 = vmatprep.mubr.msk.bf16.mxu1 %vm172_vm0, %v2784_v0 }
 0x109   : > { %1522 = vmatmul.mubr.bf16.gmra.mxu0 %v2884_v40 }
 0x10a   : > { %1945 = vmatprep.mubr.msk.bf16.mxu0 %vm172_vm0, %v2879_v55 }
 0x10d   : > { %1269 = vmatmul.mubr.bf16.gmra.mxu1 %v2836_v42 }
 0x10e   : > { %1894 = vmatprep.mubr.msk.bf16.mxu1 %vm172_vm0, %v2832_v21 }
 0x111   : > { %1530 = vmatmul.mubr.bf16.gmra.mxu0 %v2931_v38 }
 0x112   : > { %1946 = vmatprep.mubr.msk.bf16.mxu0 %vm172_vm0, %v2933_v54 }
 0x115   : > { %1277 = vmatmul.mubr.bf16.gmra.mxu1 %v2884_v40 }
 0x116   : > { %1895 = vmatprep.mubr.msk.bf16.mxu1 %vm172_vm0, %v2879_v55 }
 0x119   : > { %1538 = vmatmul.mubr.bf16.gmra.mxu0 %v777_v56 }
 0x11a   : > { %1947 = vmatprep.mubr.msk.bf16.mxu0 %vm172_vm0, %v780_v49 }
 0x11d   : > { %1285 = vmatmul.mubr.bf16.gmra.mxu1 %v2931_v38 }
 0x11e   : > { %1896 = vmatprep.mubr.msk.bf16.mxu1 %vm172_vm0, %v2933_v54 }
 0x121   : > { %1546 = vmatmul.mubr.bf16.gmra.mxu0 %v779_v50 }
 0x122   : > { %1948 = vmatprep.mubr.msk.bf16.mxu0 %vm172_vm0, %v2625_v62 }
 0x125   : > { %1293 = vmatmul.mubr.bf16.gmra.mxu1 %v777_v56 }
 0x126   : > { %1897 = vmatprep.mubr.msk.bf16.mxu1 %vm172_vm0, %v780_v49 }
 0x129   : > { %1554 = vmatmul.mubr.bf16.gmra.mxu0 %v2679_v20 }
 0x12a   : > { %1949 = vmatprep.mubr.msk.bf16.mxu0 %vm172_vm0, %v2676_v7 }
 0x12d   : > { %1301 = vmatmul.mubr.bf16.gmra.mxu1 %v779_v50 }
 0x12e   : > { %1898 = vmatprep.mubr.msk.bf16.mxu1 %vm172_vm0, %v2625_v62  ;;  %v687_v62 = vrot.slane %v2650_v14, 2 }
 0x131   : > { %1562 = vmatmul.mubr.bf16.gmra.mxu0 %v2713_v63 }
 0x132   : > { %1950 = vmatprep.mubr.msk.bf16.mxu0 %vm172_vm0, %v2730_v39 }
 0x135   : > { %1309 = vmatmul.mubr.bf16.gmra.mxu1 %v2679_v20  ;;  %v690_v20 = vsel %vm600_vm3, %v687_v62, %v689_v2 }
 0x136   : > { %1899 = vmatprep.mubr.msk.bf16.mxu1 %vm172_vm0, %v2676_v7  ;;  %v688_v7 = vsel %vm600_vm3, %v686_v18, %v687_v62 }
 0x137   : > { %v798_v32 = vpack.c.bf16 %v690_v20, %v688_v7 }
 0x139   : > { %1570 = vmatmul.mubr.bf16.gmra.mxu0 %v2764_v31 }
 0x13a   : > { %1951 = vmatprep.mubr.msk.bf16.mxu0 %vm172_vm0, %v2760_v57 }
 0x13d   : > { %1317 = vmatmul.mubr.bf16.gmra.mxu1 %v2713_v63  ;;  %v761_v63 = vsel %vm172_vm0, %v2648_v4, %v2085_v3 }
 0x13e   : > { %1900 = vmatprep.mubr.msk.bf16.mxu1 %vm172_vm0, %v2730_v39  ;;  %v762_v39 = vsel %vm172_vm0, %v2650_v14, %v2086_v44 }
 0x13f   : > { %v797_v6 = vpack.c.bf16 %v762_v39, %v761_v63 }
 0x141   : > { %1578 = vmatmul.mubr.bf16.gmra.mxu0 %v2812_v58 }
 0x142   : > { %1952 = vmatprep.mubr.msk.bf16.mxu0 %vm172_vm0, %v2808_v10 }
 0x145   : > { %1325 = vmatmul.mubr.bf16.gmra.mxu1 %v2764_v31 }
 0x146   : > { %1901 = vmatprep.mubr.msk.bf16.mxu1 %vm172_vm0, %v2760_v57 }
 0x149   : > { %1586 = vmatmul.mubr.bf16.gmra.mxu0 %v2859_v48 }
 0x14a   : > { %1953 = vmatprep.mubr.msk.bf16.mxu0 %vm172_vm0, %v2861_v47 }
 0x14d   : > { %1333 = vmatmul.mubr.bf16.gmra.mxu1 %v2812_v58 }
 0x14e   : > { %1902 = vmatprep.mubr.msk.bf16.mxu1 %vm172_vm0, %v2808_v10 }
 0x151   : > { %1594 = vmatmul.mubr.bf16.gmra.mxu0 %v2907_v15 }
 0x152   : > { %1954 = vmatprep.mubr.msk.bf16.mxu0 %vm172_vm0, %v2909_v53 }
 0x155   : > { %1341 = vmatmul.mubr.bf16.gmra.mxu1 %v2859_v48 }
 0x156   : > { %1903 = vmatprep.mubr.msk.bf16.mxu1 %vm172_vm0, %v2861_v47 }
 0x159   : > { %1602 = vmatmul.mubr.bf16.gmra.mxu0 %v2956_v27 }
 0x15a   : > { %1955 = vmatprep.mubr.msk.bf16.mxu0 %vm172_vm0, %v2951_v43 }
 0x15d   : > { %1349 = vmatmul.mubr.bf16.gmra.mxu1 %v2907_v15 }
 0x15e   : > { %1904 = vmatprep.mubr.msk.bf16.mxu1 %vm172_vm0, %v2909_v53 }
 0x161   : > { %1610 = vmatmul.mubr.bf16.gmra.mxu0 %v2980_v23 }
 0x162   : > { %1956 = vmatprep.mubr.msk.bf16.mxu0 %vm172_vm0, %v798_v32 }
 0x165   : > { %1357 = vmatmul.mubr.bf16.gmra.mxu1 %v2956_v27 }
 0x169   : > { %1618 = vmatmul.mubr.bf16.gmra.mxu0 %v797_v6 }
 0x16d   : > { %v3087_v60 = vpop.f32.mrf.mxu1 }
 0x16f   : > { %v1068_v57 = vpop.f32.mrf.mxu1 }
 0x171   : > { %v3089_v31 = vpop.f32.mrf.mxu0  ;;  %v3091_v0 = vpop.f32.mrf.mxu1 }
 0x173   : > { %v1004_v36 = vpop.f32.mrf.mxu0  ;;  %v1071_v10 = vpop.f32.mrf.mxu1 }
 0x175   : > { %v3093_v58 = vpop.f32.mrf.mxu0  ;;  %v3095_v21 = vpop.f32.mrf.mxu1 }
 0x177   : > { %v1007_v4 = vpop.f32.mrf.mxu0  ;;  %v1076_v42 = vpop.f32.mrf.mxu1 }
 0x179   : > { %v3097_v14 = vpop.f32.mrf.mxu0  ;;  %v3099_v48 = vpop.f32.mrf.mxu1 }
 0x17b   : > { %v1012_v47 = vpop.f32.mrf.mxu0  ;;  %v1079_v55 = vpop.f32.mrf.mxu1 }
 0x17c   : > { %v3155_v47 = vld [vmem:[%s3264_s2] ss:$0 sm:$0xff] }
 0x17d   : > { %v3101_v40 = vpop.f32.mrf.mxu0  ;;  %v3103_v15 = vpop.f32.mrf.mxu1 }
 0x17f   : > { %v1015_v53 = vpop.f32.mrf.mxu0  ;;  %v1084_v38 = vpop.f32.mrf.mxu1 }
 0x181   : > { %v3105_v54 = vpop.f32.mrf.mxu0  ;;  %v3107_v43 = vpop.f32.mrf.mxu1 }
 0x183   : > { %v1020_v11 = vpop.f32.mrf.mxu0  ;;  %v1087_v12 = vpop.f32.mrf.mxu1 }
 0x185   : > { %v3109_v27 = vpop.f32.mrf.mxu0  ;;  %v3111_v28 = vpop.f32.mrf.mxu1 }
 0x187   : > { %v1023_v35 = vpop.f32.mrf.mxu0  ;;  %v1092_v61 = vpop.f32.mrf.mxu1 }
 0x189   : > { %v3113_v13 = vpop.f32.mrf.mxu0  ;;  %v3115_v16 = vpop.f32.mrf.mxu1 }
 0x18b   : > { %v1028_v5 = vpop.f32.mrf.mxu0  ;;  %v1095_v9 = vpop.f32.mrf.mxu1 }
 0x18d   : > { %v3117_v29 = vpop.f32.mrf.mxu0  ;;  %v3119_v52 = vpop.f32.mrf.mxu1 }
 0x18f   : > { %v1031_v45 = vpop.f32.mrf.mxu0  ;;  %v1100_v56 = vpop.f32.mrf.mxu1 }
 0x191   : > { %v3121_v49 = vpop.f32.mrf.mxu0  ;;  %v3123_v25 = vpop.f32.mrf.mxu1 }
 0x193   : > { %v1036_v22 = vpop.f32.mrf.mxu0  ;;  %v1103_v26 = vpop.f32.mrf.mxu1 }
 0x195   : > { %v3125_v1 = vpop.f32.mrf.mxu0  ;;  %v3127_v34 = vpop.f32.mrf.mxu1 }
 0x197   : > { %v1039_v37 = vpop.f32.mrf.mxu0  ;;  %v1108_v24 = vpop.f32.mrf.mxu1 }
 0x199   : > { %v3129_v23 = vpop.f32.mrf.mxu0  ;;  %v3131_v17 = vpop.f32.mrf.mxu1 }
 0x19b   : > { %v1044_v19 = vpop.f32.mrf.mxu0  ;;  %v1111_v33 = vpop.f32.mrf.mxu1 }
 0x19d   : > { %v3133_v46 = vpop.f32.mrf.mxu0  ;;  %v3135_v41 = vpop.f32.mrf.mxu1 }
 0x19f   : > { %v1047_v50 = vpop.f32.mrf.mxu0  ;;  %v1116_v51 = vpop.f32.mrf.mxu1 }
 0x1a1   : > { %v3137_v59 = vpop.f32.mrf.mxu0  ;;  %v3139_v30 = vpop.f32.mrf.mxu1 }
 0x1a3   : > { %v1052_v2 = vpop.f32.mrf.mxu0  ;;  %v1119_v18 = vpop.f32.mrf.mxu1 }
 0x1a5   : > { %v3141_v62 = vpop.f32.mrf.mxu0  ;;  %v3143_v8 = vpop.f32.mrf.mxu1 }
 0x1a7   : > { %v1055_v7 = vpop.f32.mrf.mxu0  ;;  %v1124_v20 = vpop.f32.mrf.mxu1 }
 0x1a9   : > { %v3145_v44 = vpop.f32.mrf.mxu0  ;;  %v3147_v3 = vpop.f32.mrf.mxu1 }
 0x1ab   : > { %v1060_v32 = vpop.f32.mrf.mxu0  ;;  %v1127_v63 = vpop.f32.mrf.mxu1 }
 0x1ad   : > { %v3149_v39 = vpop.f32.mrf.mxu0  ;;  %v1238_v6 = vpop.f32.mrf.mxu1 }
 0x1ae   : > { %v1239_v10 = vadd.f32 %v1238_v6, %v3089_v31 }
 0x1af   : > { %v1063_v57 = vpop.f32.mrf.mxu0  ;;  %v1240_v36 = vpop.f32.mrf.mxu1 }
 0x1b1   : > { %v1241_v4 = vpop.f32.mrf.mxu1  ;;  %v1499_v42 = vpop.f32.mrf.mxu0 }
 0x1b2   : > { %v1626_v55 = vadd.f32 %v1499_v42, %v1239_v10  ;;  %v1242_v11 = vadd.f32 %v1241_v4, %v3093_v58 }
 0x1b3   : > { %v1243_v53 = vpop.f32.mrf.mxu1  ;;  %v1501_v38 = vpop.f32.mrf.mxu0 }
 0x1b4   : > { %v1665_v12 = vadd.f32 %v3155_v47, %v1626_v55 }
 0x1b5   : > { %v1246_v35 = vpop.f32.mrf.mxu1  ;;  %v1502_v61 = vpop.f32.mrf.mxu0 }
 0x1b6   : > { %2123 = vtanh.f32 %v1665_v12  ;;  %v1627_v5 = vadd.f32 %v1502_v61, %v1242_v11  ;;  %v1247_v45 = vadd.f32 %v1246_v35, %v3097_v14 }
 0x1b7   : > { %v1248_v9 = vpop.f32.mrf.mxu1  ;;  %v1504_v31 = vpop.f32.mrf.mxu0 }
 0x1b8   : > { %v1666_v56 = vadd.f32 %v3155_v47, %v1627_v5 }
 0x1b9   : > { %v1249_v22 = vpop.f32.mrf.mxu1  ;;  %v1507_v26 = vpop.f32.mrf.mxu0 }
 0x1ba   : > { %2125 = vtanh.f32 %v1666_v56  ;;  %v1628_v37 = vadd.f32 %v1507_v26, %v1247_v45  ;;  %v1250_v58 = vadd.f32 %v1249_v22, %v3101_v40 }
 0x1bb   : > { %v1251_v24 = vpop.f32.mrf.mxu1  ;;  %v1509_v19 = vpop.f32.mrf.mxu0 }
 0x1bc   : > { %v1667_v33 = vadd.f32 %v3155_v47, %v1628_v37 }
 0x1bd   : > { %v1254_v50 = vpop.f32.mrf.mxu1  ;;  %v1510_v51 = vpop.f32.mrf.mxu0 }
 0x1be   : > { %2127 = vtanh.f32 %v1667_v33  ;;  %v1629_v2 = vadd.f32 %v1510_v51, %v1250_v58  ;;  %v1255_v14 = vadd.f32 %v1254_v50, %v3105_v54 }
 0x1bf   : > { %v1256_v18 = vpop.f32.mrf.mxu1  ;;  %v1512_v7 = vpop.f32.mrf.mxu0 }
 0x1c0   : > { %v1668_v20 = vadd.f32 %v3155_v47, %v1629_v2 }
 0x1c1   : > { %v1257_v40 = vpop.f32.mrf.mxu1  ;;  %v1515_v32 = vpop.f32.mrf.mxu0 }
 0x1c2   : > { %2129 = vtanh.f32 %v1668_v20  ;;  %v1630_v63 = vadd.f32 %v1515_v32, %v1255_v14  ;;  %v1258_v54 = vadd.f32 %v1257_v40, %v3109_v27 }
 0x1c3   : > { %v2124_v6 = vpop.eup %2123  ;;  %v1259_v57 = vpop.f32.mrf.mxu1 }
 0x1c4   : > { %v1517_v36 = vpop.f32.mrf.mxu0  ;;  %1729 = vst [vmem:[%s3170_s24] sm:$0xff] %v2124_v6  ;;  %v1669_v10 = vadd.f32 %v3155_v47, %v1630_v63 }
 0x1c5   : > { %v1262_v4 = vpop.f32.mrf.mxu1 }
 0x1c6   : > { %v1518_v42 = vpop.f32.mrf.mxu0  ;;  %2131 = vtanh.f32 %v1669_v10  ;;  %v1263_v12 = vadd.f32 %v1262_v4, %v3113_v13 }
 0x1c7   : > { %v1631_v55 = vadd.f32 %v1518_v42, %v1258_v54  ;;  %v2126_v53 = vpop.eup %2125  ;;  %v1264_v38 = vpop.f32.mrf.mxu1 }
 0x1c8   : > { %v1520_v11 = vpop.f32.mrf.mxu0  ;;  %1730 = vst [vmem:[%s3170_s24 + $0x8] sm:$0xff] %v2126_v53 }
 0x1c9   : > { %v1670_v35 = vadd.f32 %v3155_v47, %v1631_v55  ;;  %v1265_v61 = vpop.f32.mrf.mxu1 }
 0x1ca   : > { %v1523_v5 = vpop.f32.mrf.mxu0  ;;  %v1266_v56 = vadd.f32 %v1265_v61, %v3117_v29 }
 0x1cb   : > { %2133 = vtanh.f32 %v1670_v35  ;;  %v1632_v27 = vadd.f32 %v1523_v5, %v1263_v12  ;;  %v2128_v9 = vpop.eup %2127  ;;  %v1267_v31 = vpop.f32.mrf.mxu1 }
 0x1cc   : > { %v1525_v45 = vpop.f32.mrf.mxu0  ;;  %1731 = vst [vmem:[%s3170_s24 + $0x10] sm:$0xff] %v2128_v9 }
 0x1cd   : > { %v1671_v22 = vadd.f32 %v3155_v47, %v1632_v27  ;;  %v1270_v26 = vpop.f32.mrf.mxu1 }
 0x1ce   : > { %v1526_v37 = vpop.f32.mrf.mxu0  ;;  %v1271_v33 = vadd.f32 %v1270_v26, %v3121_v49 }
 0x1cf   : > { %2135 = vtanh.f32 %v1671_v22  ;;  %v1633_v13 = vadd.f32 %v1526_v37, %v1266_v56  ;;  %v2130_v24 = vpop.eup %2129  ;;  %v1272_v19 = vpop.f32.mrf.mxu1 }
 0x1d0   : > { %v1528_v58 = vpop.f32.mrf.mxu0  ;;  %1732 = vst [vmem:[%s3170_s24 + $0x18] sm:$0xff] %v2130_v24 }
 0x1d1   : > { %v1672_v50 = vadd.f32 %v3155_v47, %v1633_v13  ;;  %v1273_v51 = vpop.f32.mrf.mxu1 }
 0x1d2   : > { %v1531_v2 = vpop.f32.mrf.mxu0  ;;  %v1274_v20 = vadd.f32 %v1273_v51, %v3125_v1 }
 0x1d3   : > { %2137 = vtanh.f32 %v1672_v50  ;;  %v1634_v29 = vadd.f32 %v1531_v2, %v1271_v33  ;;  %v2132_v18 = vpop.eup %2131  ;;  %v1275_v7 = vpop.f32.mrf.mxu1 }
 0x1d4   : > { %v1533_v14 = vpop.f32.mrf.mxu0  ;;  %1733 = vst [vmem:[%s3170_s24 + $0x20] sm:$0xff] %v2132_v18 }
 0x1d5   : > { %v1673_v40 = vadd.f32 %v3155_v47, %v1634_v29  ;;  %v1278_v32 = vpop.f32.mrf.mxu1 }
 0x1d6   : > { %v1534_v63 = vpop.f32.mrf.mxu0  ;;  %v1279_v54 = vadd.f32 %v1278_v32, %v3129_v23 }
 0x1d7   : > { %2139 = vtanh.f32 %v1673_v40  ;;  %v1635_v49 = vadd.f32 %v1534_v63, %v1274_v20  ;;  %v1280_v57 = vpop.f32.mrf.mxu1 }
 0x1d8   : > { %v2134_v6 = vpop.eup %2133  ;;  %v1536_v36 = vpop.f32.mrf.mxu0 }
 0x1d9   : > { %1734 = vst [vmem:[%s3170_s24 + $0x28] sm:$0xff] %v2134_v6  ;;  %v1674_v10 = vadd.f32 %v3155_v47, %v1635_v49  ;;  %v1281_v4 = vpop.f32.mrf.mxu1 }
 0x1da   : > { %v1539_v42 = vpop.f32.mrf.mxu0  ;;  %v1282_v11 = vadd.f32 %v1281_v4, %v3133_v46 }
 0x1db   : > { %2141 = vtanh.f32 %v1674_v10  ;;  %v1636_v1 = vadd.f32 %v1539_v42, %v1279_v54  ;;  %v1283_v53 = vpop.f32.mrf.mxu1 }
 0x1dc   : > { %v2136_v55 = vpop.eup %2135  ;;  %v1541_v38 = vpop.f32.mrf.mxu0 }
 0x1dd   : > { %1735 = vst [vmem:[%s3170_s24 + $0x30] sm:$0xff] %v2136_v55  ;;  %v1675_v12 = vadd.f32 %v3155_v47, %v1636_v1  ;;  %v1286_v35 = vpop.f32.mrf.mxu1 }
 0x1de   : > { %v1542_v61 = vpop.f32.mrf.mxu0  ;;  %v1287_v31 = vadd.f32 %v1286_v35, %v3137_v59 }
 0x1df   : > { %2143 = vtanh.f32 %v1675_v12  ;;  %v1637_v23 = vadd.f32 %v1542_v61, %v1282_v11  ;;  %v1288_v27 = vpop.f32.mrf.mxu1 }
 0x1e0   : > { %v2138_v5 = vpop.eup %2137  ;;  %v1544_v9 = vpop.f32.mrf.mxu0 }
 0x1e1   : > { %1736 = vst [vmem:[%s3170_s24 + $0x38] sm:$0xff] %v2138_v5  ;;  %v1676_v45 = vadd.f32 %v3155_v47, %v1637_v23  ;;  %v1289_v56 = vpop.f32.mrf.mxu1 }
 0x1e2   : > { %v1547_v22 = vpop.f32.mrf.mxu0  ;;  %v1290_v24 = vadd.f32 %v1289_v56, %v3141_v62 }
 0x1e3   : > { %2145 = vtanh.f32 %v1676_v45  ;;  %v1638_v46 = vadd.f32 %v1547_v22, %v1287_v31  ;;  %v1291_v37 = vpop.f32.mrf.mxu1 }
 0x1e4   : > { %v2140_v26 = vpop.eup %2139  ;;  %v1549_v13 = vpop.f32.mrf.mxu0 }
 0x1e5   : > { %1737 = vst [vmem:[%s3170_s24 + $0x40] sm:$0xff] %v2140_v26  ;;  %v1677_v19 = vadd.f32 %v3155_v47, %v1638_v46  ;;  %v1294_v58 = vpop.f32.mrf.mxu1 }
 0x1e6   : > { %v1550_v33 = vpop.f32.mrf.mxu0  ;;  %v1295_v29 = vadd.f32 %v1294_v58, %v3145_v44 }
 0x1e7   : > { %2147 = vtanh.f32 %v1677_v19  ;;  %v1639_v59 = vadd.f32 %v1550_v33, %v1290_v24  ;;  %v1296_v51 = vpop.f32.mrf.mxu1 }
 0x1e8   : > { %v2142_v50 = vpop.eup %2141  ;;  %v1552_v2 = vpop.f32.mrf.mxu0 }
 0x1e9   : > { %1738 = vst [vmem:[%s3170_s24 + $0x48] sm:$0xff] %v2142_v50  ;;  %v1678_v18 = vadd.f32 %v3155_v47, %v1639_v59  ;;  %v1297_v7 = vpop.f32.mrf.mxu1 }
 0x1ea   : > { %v1555_v14 = vpop.f32.mrf.mxu0  ;;  %v1298_v63 = vadd.f32 %v1297_v7, %v3149_v39 }
 0x1eb   : > { %2149 = vtanh.f32 %v1678_v18  ;;  %v1640_v62 = vadd.f32 %v1555_v14, %v1295_v29  ;;  %v1299_v40 = vpop.f32.mrf.mxu1 }
 0x1ec   : > { %v2144_v20 = vpop.eup %2143  ;;  %v1557_v32 = vpop.f32.mrf.mxu0 }
 0x1ed   : > { %1739 = vst [vmem:[%s3170_s24 + $0x50] sm:$0xff] %v2144_v20  ;;  %v1679_v49 = vadd.f32 %v3155_v47, %v1640_v62  ;;  %v1302_v6 = vpop.f32.mrf.mxu1 }
 0x1ee   : > { %v1558_v57 = vpop.f32.mrf.mxu0  ;;  %v1303_v4 = vadd.f32 %v1302_v6, %v3087_v60 }
 0x1ef   : > { %2151 = vtanh.f32 %v1679_v49  ;;  %v1641_v44 = vadd.f32 %v1558_v57, %v1298_v63  ;;  %v1304_v54 = vpop.f32.mrf.mxu1 }
 0x1f0   : > { %v2146_v36 = vpop.eup %2145  ;;  %v1560_v10 = vpop.f32.mrf.mxu0 }
 0x1f1   : > { %1740 = vst [vmem:[%s3170_s24 + $0x58] sm:$0xff] %v2146_v36  ;;  %v1680_v42 = vadd.f32 %v3155_v47, %v1641_v44  ;;  %v1305_v1 = vpop.f32.mrf.mxu1 }
 0x1f2   : > { %v1563_v55 = vpop.f32.mrf.mxu0  ;;  %v1306_v12 = vadd.f32 %v1305_v1, %v3091_v0 }
 0x1f3   : > { %2153 = vtanh.f32 %v1680_v42  ;;  %v1642_v39 = vadd.f32 %v1563_v55, %v1303_v4  ;;  %v1307_v38 = vpop.f32.mrf.mxu1 }
 0x1f4   : > { %v2148_v53 = vpop.eup %2147  ;;  %v1565_v11 = vpop.f32.mrf.mxu0 }
 0x1f5   : > { %1741 = vst [vmem:[%s3170_s24 + $0x60] sm:$0xff] %v2148_v53  ;;  %v1681_v35 = vadd.f32 %v3155_v47, %v1642_v39  ;;  %v1310_v61 = vpop.f32.mrf.mxu1 }
 0x1f6   : > { %v1566_v23 = vpop.f32.mrf.mxu0  ;;  %v1311_v31 = vadd.f32 %v1310_v61, %v3095_v21 }
 0x1f7   : > { %2155 = vtanh.f32 %v1681_v35  ;;  %v1643_v60 = vadd.f32 %v1566_v23, %v1306_v12  ;;  %v1312_v27 = vpop.f32.mrf.mxu1 }
 0x1f8   : > { %v2150_v5 = vpop.eup %2149  ;;  %v1568_v9 = vpop.f32.mrf.mxu0 }
 0x1f9   : > { %1742 = vst [vmem:[%s3170_s24 + $0x68] sm:$0xff] %v2150_v5  ;;  %v1682_v45 = vadd.f32 %v3155_v47, %v1643_v60  ;;  %v1313_v56 = vpop.f32.mrf.mxu1 }
 0x1fa   : > { %v1571_v22 = vpop.f32.mrf.mxu0  ;;  %v1314_v13 = vadd.f32 %v1313_v56, %v3099_v48 }
 0x1fb   : > { %2157 = vtanh.f32 %v1682_v45  ;;  %v1644_v0 = vadd.f32 %v1571_v22, %v1311_v31  ;;  %v1315_v26 = vpop.f32.mrf.mxu1 }
 0x1fc   : > { %v2152_v46 = vpop.eup %2151  ;;  %v1573_v37 = vpop.f32.mrf.mxu0 }
 0x1fd   : > { %1743 = vst [vmem:[%s3170_s24 + $0x70] sm:$0xff] %v2152_v46  ;;  %v1683_v24 = vadd.f32 %v3155_v47, %v1644_v0  ;;  %v1318_v19 = vpop.f32.mrf.mxu1 }
 0x1fe   : > { %v1574_v58 = vpop.f32.mrf.mxu0  ;;  %v1319_v51 = vadd.f32 %v1318_v19, %v3103_v15 }
 0x1ff   : > { %2159 = vtanh.f32 %v1683_v24  ;;  %v1645_v21 = vadd.f32 %v1574_v58, %v1314_v13  ;;  %v1320_v59 = vpop.f32.mrf.mxu1 }
 0x200   : > { %v2154_v33 = vpop.eup %2153  ;;  %v1576_v50 = vpop.f32.mrf.mxu0 }
 0x201   : > { %1744 = vst [vmem:[%s3170_s24 + $0x78] sm:$0xff] %v2154_v33  ;;  %v1684_v2 = vadd.f32 %v3155_v47, %v1645_v21  ;;  %v1321_v29 = vpop.f32.mrf.mxu1 }
 0x202   : > { %v1579_v18 = vpop.f32.mrf.mxu0  ;;  %v1322_v20 = vadd.f32 %v1321_v29, %v3107_v43 }
 0x203   : > { %2161 = vtanh.f32 %v1684_v2  ;;  %v1646_v48 = vadd.f32 %v1579_v18, %v1319_v51  ;;  %v1323_v14 = vpop.f32.mrf.mxu1 }
 0x204   : > { %v2156_v7 = vpop.eup %2155  ;;  %v1581_v62 = vpop.f32.mrf.mxu0 }
 0x205   : > { %1745 = vst [vmem:[%s3170_s24 + $0x80] sm:$0xff] %v2156_v7  ;;  %v1685_v40 = vadd.f32 %v3155_v47, %v1646_v48  ;;  %v1326_v32 = vpop.f32.mrf.mxu1 }
 0x206   : > { %v1582_v63 = vpop.f32.mrf.mxu0  ;;  %v1327_v44 = vadd.f32 %v1326_v32, %v3111_v28 }
 0x207   : > { %2163 = vtanh.f32 %v1685_v40  ;;  %v1647_v15 = vadd.f32 %v1582_v63, %v1322_v20  ;;  %v1328_v6 = vpop.f32.mrf.mxu1 }
 0x208   : > { %v2158_v49 = vpop.eup %2157  ;;  %v1584_v57 = vpop.f32.mrf.mxu0 }
 0x209   : > { %1746 = vst [vmem:[%s3170_s24 + $0x88] sm:$0xff] %v2158_v49  ;;  %v1686_v36 = vadd.f32 %v3155_v47, %v1647_v15  ;;  %v1329_v54 = vpop.f32.mrf.mxu1 }
 0x20a   : > { %v1587_v10 = vpop.f32.mrf.mxu0  ;;  %v1330_v55 = vadd.f32 %v1329_v54, %v3115_v16 }
 0x20b   : > { %2165 = vtanh.f32 %v1686_v36  ;;  %v1648_v43 = vadd.f32 %v1587_v10, %v1327_v44  ;;  %v1331_v42 = vpop.f32.mrf.mxu1 }
 0x20c   : > { %v2160_v4 = vpop.eup %2159  ;;  %v1589_v1 = vpop.f32.mrf.mxu0 }
 0x20d   : > { %1747 = vst [vmem:[%s3170_s24 + $0x90] sm:$0xff] %v2160_v4  ;;  %v1687_v39 = vadd.f32 %v3155_v47, %v1648_v43  ;;  %v1334_v53 = vpop.f32.mrf.mxu1 }
 0x20e   : > { %v1590_v38 = vpop.f32.mrf.mxu0  ;;  %v1335_v61 = vadd.f32 %v1334_v53, %v3119_v52 }
 0x20f   : > { %2167 = vtanh.f32 %v1687_v39  ;;  %v1649_v28 = vadd.f32 %v1590_v38, %v1330_v55  ;;  %v1336_v12 = vpop.f32.mrf.mxu1 }
 0x210   : > { %v2162_v11 = vpop.eup %2161  ;;  %v1592_v35 = vpop.f32.mrf.mxu0 }
 0x211   : > { %1748 = vst [vmem:[%s3170_s24 + $0x98] sm:$0xff] %v2162_v11  ;;  %v1688_v23 = vadd.f32 %v3155_v47, %v1649_v28  ;;  %v1337_v60 = vpop.f32.mrf.mxu1 }
 0x212   : > { %v1595_v5 = vpop.f32.mrf.mxu0  ;;  %v1338_v45 = vadd.f32 %v1337_v60, %v3123_v25 }
 0x213   : > { %2169 = vtanh.f32 %v1688_v23  ;;  %v1650_v16 = vadd.f32 %v1595_v5, %v1335_v61  ;;  %v1339_v9 = vpop.f32.mrf.mxu1 }
 0x214   : > { %v2164_v27 = vpop.eup %2163  ;;  %v1597_v31 = vpop.f32.mrf.mxu0 }
 0x215   : > { %1749 = vst [vmem:[%s3170_s24 + $0xa0] sm:$0xff] %v2164_v27  ;;  %v1689_v56 = vadd.f32 %v3155_v47, %v1650_v16  ;;  %v1342_v22 = vpop.f32.mrf.mxu1 }
 0x216   : > { %v1598_v0 = vpop.f32.mrf.mxu0  ;;  %v1343_v13 = vadd.f32 %v1342_v22, %v3127_v34 }
 0x217   : > { %2171 = vtanh.f32 %v1689_v56  ;;  %v1651_v52 = vadd.f32 %v1598_v0, %v1338_v45  ;;  %v1344_v26 = vpop.f32.mrf.mxu1 }
 0x218   : > { %v2166_v46 = vpop.eup %2165  ;;  %v1600_v37 = vpop.f32.mrf.mxu0 }
 0x219   : > { %1750 = vst [vmem:[%s3170_s24 + $0xa8] sm:$0xff] %v2166_v46  ;;  %v1690_v24 = vadd.f32 %v3155_v47, %v1651_v52  ;;  %v1345_v19 = vpop.f32.mrf.mxu1 }
 0x21a   : > { %v1603_v58 = vpop.f32.mrf.mxu0  ;;  %v1346_v50 = vadd.f32 %v1345_v19, %v3131_v17 }
 0x21b   : > { %2173 = vtanh.f32 %v1690_v24  ;;  %v1652_v25 = vadd.f32 %v1603_v58, %v1343_v13  ;;  %v1347_v33 = vpop.f32.mrf.mxu1 }
 0x21c   : > { %v2168_v21 = vpop.eup %2167  ;;  %v1605_v59 = vpop.f32.mrf.mxu0 }
 0x21d   : > { %1751 = vst [vmem:[%s3170_s24 + $0xb0] sm:$0xff] %v2168_v21  ;;  %v1691_v51 = vadd.f32 %v3155_v47, %v1652_v25  ;;  %v1350_v2 = vpop.f32.mrf.mxu1 }
 0x21e   : > { %v1606_v29 = vpop.f32.mrf.mxu0  ;;  %v1351_v14 = vadd.f32 %v1350_v2, %v3135_v41 }
 0x21f   : > { %2175 = vtanh.f32 %v1691_v51  ;;  %v1653_v34 = vadd.f32 %v1606_v29, %v1346_v50  ;;  %v1352_v48 = vpop.f32.mrf.mxu1 }
 0x220   : > { %v2170_v18 = vpop.eup %2169  ;;  %v1608_v7 = vpop.f32.mrf.mxu0 }
 0x221   : > { %1752 = vst [vmem:[%s3170_s24 + $0xb8] sm:$0xff] %v2170_v18  ;;  %v1692_v62 = vadd.f32 %v3155_v47, %v1653_v34  ;;  %v1353_v20 = vpop.f32.mrf.mxu1 }
 0x222   : > { %v1611_v40 = vpop.f32.mrf.mxu0  ;;  %v1354_v49 = vadd.f32 %v1353_v20, %v3139_v30 }
 0x223   : > { %2177 = vtanh.f32 %v1692_v62  ;;  %v1654_v17 = vadd.f32 %v1611_v40, %v1351_v14  ;;  %v1355_v63 = vpop.f32.mrf.mxu1 }
 0x224   : > { %v2172_v32 = vpop.eup %2171  ;;  %v1613_v15 = vpop.f32.mrf.mxu0 }
 0x225   : > { %1753 = vst [vmem:[%s3170_s24 + $0xc0] sm:$0xff] %v2172_v32  ;;  %v1693_v6 = vadd.f32 %v3155_v47, %v1654_v17  ;;  %v1358_v57 = vpop.f32.mrf.mxu1 }
 0x226   : > { %v1614_v44 = vpop.f32.mrf.mxu0  ;;  %v1359_v43 = vadd.f32 %v1358_v57, %v3143_v8 }
 0x227   : > { %2179 = vtanh.f32 %v1693_v6  ;;  %v1655_v41 = vadd.f32 %v1614_v44, %v1354_v49  ;;  %v1360_v54 = vpop.f32.mrf.mxu1 }
 0x228   : > { %v2174_v36 = vpop.eup %2173  ;;  %v1616_v10 = vpop.f32.mrf.mxu0 }
 0x229   : > { %1754 = vst [vmem:[%s3170_s24 + $0xc8] sm:$0xff] %v2174_v36  ;;  %v1694_v4 = vadd.f32 %v3155_v47, %v1655_v41  ;;  %v1361_v42 = vpop.f32.mrf.mxu1 }
 0x22a   : > { %v1619_v1 = vpop.f32.mrf.mxu0  ;;  %v1362_v38 = vadd.f32 %v1361_v42, %v3147_v3 }
 0x22b   : > { %2181 = vtanh.f32 %v1694_v4  ;;  %v1656_v30 = vadd.f32 %v1619_v1, %v1359_v43  ;;  %v1363_v39 = vpop.f32.mrf.mxu1 }
 0x22c   : > { %v2176_v55 = vpop.eup %2175  ;;  %v1621_v53 = vpop.f32.mrf.mxu0 }
 0x22d   : > { %1755 = vst [vmem:[%s3170_s24 + $0xd0] sm:$0xff] %v2176_v55  ;;  %v1695_v28 = vadd.f32 %v3155_v47, %v1656_v30 }
 0x22e   : > { %v1622_v8 = vpop.f32.mrf.mxu0 }
 0x22f   : > { %2183 = vtanh.f32 %v1695_v28  ;;  %v1657_v11 = vadd.f32 %v1622_v8, %v1362_v38 }
 0x230   : > { %v2178_v12 = vpop.eup %2177  ;;  %v1624_v35 = vpop.f32.mrf.mxu0 }
 0x231   : > { %1756 = vst [vmem:[%s3170_s24 + $0xd8] sm:$0xff] %v2178_v12  ;;  %v1696_v61 = vadd.f32 %v3155_v47, %v1657_v11 }
 0x233   : > { %2185 = vtanh.f32 %v1696_v61 }
 0x234   : > { %v2180_v23 = vpop.eup %2179 }
 0x235   : > { %1757 = vst [vmem:[%s3170_s24 + $0xe0] sm:$0xff] %v2180_v23 }
 0x238   : > { %v2182_v60 = vpop.eup %2181 }
 0x239   : > { %1758 = vst [vmem:[%s3170_s24 + $0xe8] sm:$0xff] %v2182_v60 }
 0x23c   : > { %v2184_v5 = vpop.eup %2183 }
 0x23d   : > { %1759 = vst [vmem:[%s3170_s24 + $0xf0] sm:$0xff] %v2184_v5 }
 0x240   : > { %v2186_v16 = vpop.eup %2185 }
 0x241   : > { %1760 = vst [vmem:[%s3170_s24 + $0xf8] sm:$0xff] %v2186_v16 }
 0x242 PF: > { %s13_s12 = sadd.s32 1, %s2193_s12  }
 0x243   : > { %p10_p4 = scmp.ge.s32.totalorder %s13_s12, 4  }
 0x245   :  { %12 = sbr.rel (!%p10_p4) target bundleno = 1 (0x1), region = 65 }

// kernel: generator_forward.5
= control target key start
LH: loop header
LB: loop body
LE: loop exit
PB: predicated region body
PF: predicated region fallthrough
CT: control target
= control target key end

     0   :  { %13 = vsyncpa [#allocation4], 0  ;;  %s2947_s27 = smov [#allocation3]   ;;  %s3913_s0 = inlined_call_operand.vmem [shape: f32[2,4,4,128], index: 0, kind: input, shape index: {}]   ;;  %s3914_s1 = inlined_call_operand.vmem [shape: f32[1,128], index: 1, kind: input, shape index: {}]   ;;  %s3915_s2 = inlined_call_operand.vmem [shape: f32[1,128], index: 2, kind: input, shape index: {}]   ;;  %s3916_s3 = inlined_call_operand.vmem [shape: bf16[3,256,128], index: 3, kind: input, shape index: {}]   ;;  %s3917_s4 = inlined_call_operand.hbm [shape: bf16[3,256,128], index: 4, kind: input, shape index: {}]   ;;  %s3918_s5 = inlined_call_operand.vmem [shape: f32[1,128], index: 5, kind: input, shape index: {}]   ;;  %s3919_s6 = inlined_call_operand.vmem [shape: f32[1,128], index: 6, kind: input, shape index: {}]   ;;  %s3920_s7 = inlined_call_operand.vmem [shape: f32[1,128], index: 7, kind: input, shape index: {}]   ;;  %s3921_s8 = inlined_call_operand.vmem [shape: f32[2,8,4,256], index: 8, kind: output, shape index: {}]  }
   0x1   :  { %s27_s28 = sshll.u32 %s2947_s27, 4  ;;  %s28_s28 = int_to_ptr.vmem [resolvable:$true] %s27_s28 }
   0x2   :  { %s2933_s29 = scalar_lea.vmem %s28_s28, 6144  ;;  %p2938_p1 = scmp.lt.s32.totalorder %s28_s28, %s28_s28 }
   0x3   :  { %p2934_p0 = scmp.ne.s32.totalorder %s28_s28, %s2933_s29  ;;  %p2939_p2 = scmp.lt.s32.totalorder %s2933_s29, %s2933_s29 }
   0x5   :  { %p2940_p3 = por %p2939_p2, %p2938_p1 }
   0x7   :  { %p2941_p4 = pnand %p2940_p3, %p2934_p0 }
   0x9   :  { %2944 = shalt.err (!%p2941_p4)
}
   0xa   :  { %s2948_s30 = smov 64   ;;  %s2949_s9 = smov 4  }
   0xb   :  { %33 = dma.hbm_to_vmem [thread:$0]  %s3917_s4, 6144, %s28_s28, [#allocation4], %s2948_s30, %s2948_s30, %s2949_s9  }
   0xc   :  { %2945 = dma.done.wait [#allocation4], 6144  }
   0xd   :  { %2946 = vsyncadd [#allocation4], 4294961152  ;;  %v2950_v0 = vmov 0.0   ;;  %v2825_v1 = vld [vmem:[%s3916_s3 + $0xf8] sm:$0xff]   ;;  %v2829_v5 = vld [vmem:[%s3916_s3 + $0xf0] sm:$0xff]   ;;  %vm52_vm0 = vcmask 1043456  }
   0xe   :  { %150 = vst [vmem:[#allocation2 + $0x8] sm:$0x3f] %v2950_v0  ;;  %151 = vst [vmem:[#allocation2 + $0x10] sm:$0x3f] %v2950_v0  ;;  %v2826_v2 = vld [vmem:[%s3916_s3 + $0x78] sm:$0xff]   ;;  %2580 = vmatprep.subr.bf16.mxu0 %v2825_v1  ;;  %v2830_v6 = vld [vmem:[%s3916_s3 + $0x70] sm:$0xff]  }
   0xf   :  { %149 = vst [vmem:[#allocation2] sm:$0x3f] %v2950_v0  ;;  %152 = vst [vmem:[#allocation2 + $0x18] sm:$0x3f] %v2950_v0  ;;  %v2827_v3 = vld [vmem:[%s3916_s3 + $0xb8] sm:$0xff]   ;;  %2620 = vmatprep.subr.bf16.mxu1 %v2826_v2  ;;  %v2831_v7 = vld [vmem:[%s3916_s3 + $0xb0] sm:$0xff]  }
  0x10   :  { %153 = vst [vmem:[#allocation2 + $0x20] sm:$0x3f] %v2950_v0  ;;  %154 = vst [vmem:[#allocation2 + $0x28] sm:$0x3f] %v2950_v0  ;;  %v2828_v4 = vld [vmem:[%s3916_s3 + $0x38] sm:$0xff]   ;;  %2581 = vmatpush3.bf16.msra.mxu0 %v2827_v3  ;;  %v2832_v8 = vld [vmem:[%s3916_s3 + $0x30] sm:$0xff]  }
  0x11   :  { %155 = vst [vmem:[#allocation2 + $0x30] sm:$0x3f] %v2950_v0  ;;  %156 = vst [vmem:[#allocation2 + $0x38] sm:$0x3f] %v2950_v0  ;;  %2621 = vmatpush3.bf16.msra.mxu1 %v2828_v4  ;;  %2582 = vmatprep.subr.bf16.mxu0 %v2829_v5  ;;  %v2833_v9 = vld [vmem:[%s3916_s3 + $0xe8] sm:$0xff]   ;;  %v2837_v13 = vld [vmem:[%s3916_s3 + $0xe0] sm:$0xff]  }
  0x12   :  { %157 = vst [vmem:[#allocation2 + $0x40] sm:$0x3f] %v2950_v0  ;;  %158 = vst [vmem:[#allocation2 + $0x48] sm:$0x3f] %v2950_v0  ;;  %2622 = vmatprep.subr.bf16.mxu1 %v2830_v6  ;;  %v2834_v10 = vld [vmem:[%s3916_s3 + $0x68] sm:$0xff]   ;;  %v2838_v14 = vld [vmem:[%s3916_s3 + $0x60] sm:$0xff]  }
  0x13   :  { %159 = vst [vmem:[#allocation2 + $0x50] sm:$0x3f] %v2950_v0  ;;  %160 = vst [vmem:[#allocation2 + $0x58] sm:$0x3f] %v2950_v0  ;;  %v2835_v11 = vld [vmem:[%s3916_s3 + $0xa8] sm:$0xff]   ;;  %v2839_v15 = vld [vmem:[%s3916_s3 + $0xa0] sm:$0xff]  }
  0x14   :  { %2583 = vmatpush3.bf16.msra.mxu0 %v2831_v7  ;;  %v2836_v12 = vld [vmem:[%s3916_s3 + $0x28] sm:$0xff]   ;;  %v2840_v16 = vld [vmem:[%s3916_s3 + $0x20] sm:$0xff]   ;;  %v2841_v17 = vld [vmem:[%s3916_s3 + $0xd8] sm:$0xff]   ;;  %vm352_vm1 = vsmask.f32 1280 }
  0x15   :  { %2623 = vmatpush3.bf16.msra.mxu1 %v2832_v8  ;;  %2584 = vmatprep.subr.bf16.mxu0 %v2833_v9  ;;  %v2842_v18 = vld [vmem:[%s3916_s3 + $0x58] sm:$0xff]   ;;  %v2845_v21 = vld [vmem:[%s3916_s3 + $0xd0] sm:$0xff]   ;;  %v2849_v25 = vld [vmem:[%s3916_s3 + $0xc8] sm:$0xff]   ;;  %vm353_vm2 = vsmask.f32 3336 }
  0x16   :  { %2624 = vmatprep.subr.bf16.mxu1 %v2834_v10  ;;  %v2843_v19 = vld [vmem:[%s3916_s3 + $0x98] sm:$0xff]   ;;  %v2846_v22 = vld [vmem:[%s3916_s3 + $0x50] sm:$0xff]   ;;  %v2850_v26 = vld [vmem:[%s3916_s3 + $0x48] sm:$0xff]   ;;  %vm355_vm4 = vsmask.f32 5392 }
  0x17   :  { %v2844_v20 = vld [vmem:[%s3916_s3 + $0x18] sm:$0xff]   ;;  %v2847_v23 = vld [vmem:[%s3916_s3 + $0x90] sm:$0xff]   ;;  %v2851_v27 = vld [vmem:[%s3916_s3 + $0x88] sm:$0xff]   ;;  %vm357_vm6 = vsmask.f32 7448 }
  0x18   :  { %2585 = vmatpush3.bf16.msra.mxu0 %v2835_v11  ;;  %v2848_v24 = vld [vmem:[%s3916_s3 + $0x10] sm:$0xff]   ;;  %v2852_v28 = vld [vmem:[%s3916_s3 + $0x8] sm:$0xff]   ;;  %v2853_v29 = vld [vmem:[%s3916_s3 + $0xc0] sm:$0xff]  }
  0x19   :  { %2625 = vmatpush3.bf16.msra.mxu1 %v2836_v12  ;;  %2586 = vmatprep.subr.bf16.mxu0 %v2837_v13  ;;  %v2854_v30 = vld [vmem:[%s3916_s3 + $0x40] sm:$0xff]   ;;  %v46_v35 = vld [vmem:[%s3913_s0 + $0x8] sm:$0xf]  ;;  %v47_v36 = vld [vmem:[%s3913_s0 + $0xc] sm:$0xf] }
  0x1a   :  { %2626 = vmatprep.subr.bf16.mxu1 %v2838_v14  ;;  %v2855_v31 = vld [vmem:[%s3916_s3 + $0x80] sm:$0xff]   ;;  %v48_v39 = vld [vmem:[%s3913_s0 + $0x10] sm:$0xf]  ;;  %v56_v41 = vsel %vm52_vm0, %v46_v35, 0.0  ;;  %v2857_v42 = vld [vmem:[#allocation3 + $0xf8] sm:$0xff]   ;;  %v58_v44 = vsel %vm52_vm0, %v47_v36, 0.0 }
  0x1b   :  { %v2856_v32 = vld [vmem:[%s3916_s3] sm:$0xff]   ;;  %v49_v43 = vld [vmem:[%s3913_s0 + $0x14] sm:$0xf]  ;;  %v2858_v45 = vld [vmem:[#allocation3 + $0x78] sm:$0xff]   ;;  %v60_v48 = vsel %vm52_vm0, %v48_v39, 0.0 }
  0x1c   :  { %2587 = vmatpush3.bf16.msra.mxu0 %v2839_v15  ;;  %v44_v33 = vld [vmem:[%s3913_s0] sm:$0xf]  ;;  %v45_v34 = vld [vmem:[%s3913_s0 + $0x4] sm:$0xf]  ;;  %v50_v46 = vld [vmem:[%s3913_s0 + $0x18] sm:$0xf] }
  0x1d   :  { %2627 = vmatpush3.bf16.msra.mxu1 %v2840_v16  ;;  %2588 = vmatprep.subr.bf16.mxu0 %v2841_v17  ;;  %v53_v37 = vsel %vm52_vm0, %v44_v33, 0.0  ;;  %v54_v38 = vsel %vm52_vm0, %v45_v34, 0.0  ;;  %v62_v50 = vsel %vm52_vm0, %v49_v43, 0.0  ;;  %v51_v51 = vld [vmem:[%s3913_s0 + $0x1c] sm:$0xf]  ;;  %v64_v53 = vsel %vm52_vm0, %v50_v46, 0.0  ;;  %vm354_vm3 = vmor %vm352_vm1, %vm353_vm2 }
  0x1e   :  { %2628 = vmatprep.subr.bf16.mxu1 %v2842_v18  ;;  %v55_v40 = vadd.f32 %v54_v38, %v53_v37  ;;  %v66_v55 = vsel %vm52_vm0, %v51_v51, 0.0  ;;  %vm356_vm5 = vmor %vm354_vm3, %vm355_vm4 }
  0x1f   :  { %vm3207_vm7 = vmor %vm356_vm5, %vm357_vm6 }
  0x20   :  { %2589 = vmatpush3.bf16.msra.mxu0 %v2843_v19  ;;  %v57_v47 = vadd.f32 %v56_v41, %v55_v40 }
  0x21   :  { %2629 = vmatpush3.bf16.msra.mxu1 %v2844_v20  ;;  %2590 = vmatprep.subr.bf16.mxu0 %v2845_v21 }
  0x22   :  { %2630 = vmatprep.subr.bf16.mxu1 %v2846_v22  ;;  %v59_v49 = vadd.f32 %v58_v44, %v57_v47  ;;  %v170_v44 = vld [vmem:[#allocation2] sm:$0x3f] }
  0x23   :  { %v194_v47 = vrot.slane %v170_v44, 1 }
  0x24   :  { %2591 = vmatpush3.bf16.msra.mxu0 %v2847_v23  ;;  %v61_v52 = vadd.f32 %v60_v48, %v59_v49 }
  0x25   :  { %2631 = vmatpush3.bf16.msra.mxu1 %v2848_v24  ;;  %2592 = vmatprep.subr.bf16.mxu0 %v2849_v25 }
  0x26   :  { %2632 = vmatprep.subr.bf16.mxu1 %v2850_v26  ;;  %v63_v54 = vadd.f32 %v62_v50, %v61_v52  ;;  %v2406_v50 = vpack.c.bf16 %v194_v47, %v170_v44 }
  0x28   :  { %2593 = vmatpush3.bf16.msra.mxu0 %v2851_v27  ;;  %v65_v56 = vadd.f32 %v64_v53, %v63_v54  ;;  %v116_v54 = vld [vmem:[%s3914_s1] sm:$0x1] }
  0x29   :  { %2633 = vmatpush3.bf16.msra.mxu1 %v2852_v28  ;;  %2594 = vmatprep.subr.bf16.mxu0 %v2853_v29 }
  0x2a   :  { %2634 = vmatprep.subr.bf16.mxu1 %v2854_v30  ;;  %v67_v57 = vadd.f32 %v66_v55, %v65_v56 }
  0x2c   :  { %2595 = vmatpush3.bf16.msra.mxu0 %v2855_v31  ;;  %v68_v58 = vsel %vm52_vm0, %v67_v57, 0.0 }
  0x2d   :  { %2635 = vmatpush3.bf16.msra.mxu1 %v2856_v32  ;;  %2660 = vmatprep.subr.bf16.mxu0 %v2857_v42  ;;  %v69_v59 = vrot.slane %v68_v58, 4  ;;  %v2951_v42 = vmov 1983009808  }
  0x2e   :  { %2700 = vmatprep.subr.bf16.mxu1 %v2858_v45  ;;  %v121_v45 = vlaneseq }
  0x2f   :  { %v70_v60 = vadd.f32 %v69_v59, %v68_v58 }
  0x30   :  { %v3166_v48 = vshrl.u32 %v121_v45, 7 }
  0x31   :  { %v71_v61 = vrot.slane %v70_v60, 2 }
  0x32   :  { %v3922_v55 = vsub.s32 0, %v3166_v48 }
  0x33   :  { %v72_v62 = vadd.f32 %v71_v61, %v70_v60 }
  0x35   :  { %v73_v63 = vrot.slane %v72_v62, 1 }
  0x37   :  { %v74_v0 = vadd.f32 %v73_v63, %v72_v62  ;;  %v2405_v62 = vld [vmem:[%s3915_s2] ss:$0 sm:$0xff] }
  0x39   :  { %v76_v1 = vmul.f32 0.03125, %v74_v0 }
  0x3b   :  { %v3129_v2 = vsub.f32 %v44_v33, %v76_v1  ;;  %v3131_v3 = vsub.f32 %v45_v34, %v76_v1  ;;  %v3133_v4 = vsub.f32 %v46_v35, %v76_v1  ;;  %v3135_v5 = vsub.f32 %v47_v36, %v76_v1 }
  0x3c   :  { %v3137_v6 = vsub.f32 %v48_v39, %v76_v1  ;;  %v3139_v7 = vsub.f32 %v49_v43, %v76_v1  ;;  %v3149_v12 = vsub.f32 %v50_v46, %v76_v1  ;;  %v84_v18 = vsub.f32 %v51_v51, %v76_v1  ;;  %v176_v51 = vld [vmem:[#allocation2 + $0x30] sm:$0x3f] }
  0x3d   :  { %v85_v8 = vmul.f32 %v3129_v2, %v3129_v2  ;;  %v86_v9 = vmul.f32 %v3131_v3, %v3131_v3  ;;  %v87_v10 = vmul.f32 %v3133_v4, %v3133_v4  ;;  %v88_v11 = vmul.f32 %v3135_v5, %v3135_v5 }
  0x3e   :  { %v89_v13 = vmul.f32 %v3137_v6, %v3137_v6  ;;  %v90_v19 = vmul.f32 %v3139_v7, %v3139_v7  ;;  %v91_v22 = vmul.f32 %v3149_v12, %v3149_v12  ;;  %v92_v25 = vmul.f32 %v84_v18, %v84_v18 }
  0x3f   :  { %v93_v14 = vsel %vm52_vm0, %v85_v8, 0.0  ;;  %v94_v15 = vsel %vm52_vm0, %v86_v9, 0.0  ;;  %v96_v16 = vsel %vm52_vm0, %v87_v10, 0.0  ;;  %v98_v20 = vsel %vm52_vm0, %v88_v11, 0.0 }
  0x40   :  { %v95_v17 = vadd.f32 %v94_v15, %v93_v14  ;;  %v100_v23 = vsel %vm52_vm0, %v89_v13, 0.0  ;;  %v102_v26 = vsel %vm52_vm0, %v90_v19, 0.0  ;;  %v104_v28 = vsel %vm52_vm0, %v91_v22, 0.0 }
  0x41   :  { %v106_v30 = vsel %vm52_vm0, %v92_v25, 0.0  ;;  %v264_v43 = vunpack.c.l.s4 %v2951_v42  ;;  %v200_v52 = vrot.slane %v176_v51, 1 }
  0x42   :  { %v97_v21 = vadd.f32 %v96_v16, %v95_v17 }
  0x43   :  { %v265_v46 = vunpack.c.0.s8 %v264_v43  ;;  %v2411_v58 = vpack.c.bf16 %v200_v52, %v176_v51 }
  0x44   :  { %v99_v24 = vadd.f32 %v98_v20, %v97_v21 }
  0x45   :  { %v3169_v49 = vsub.s32 %v265_v46, %v3166_v48 }
  0x46   :  { %v101_v27 = vadd.f32 %v100_v23, %v99_v24 }
  0x47   :  { %v3172_v53 = vrot.slane %v2406_v50, %v3169_v49  ;;  %v3188_v1 = vrot.slane %v2411_v58, %v3169_v49 }
  0x48   :  { %v103_v29 = vadd.f32 %v102_v26, %v101_v27 }
  0x49   :  { %v360_v56 = vshrl.u32 %v3172_v53, 16  ;;  %v363_v59 = vshll.u32 %v3172_v53, 16  ;;  %v342_v63 = vcombine.high %v3172_v53, %v3172_v53 }
  0x4a   :  { %v105_v31 = vadd.f32 %v104_v28, %v103_v29 }
  0x4b   :  { %v362_v0 = vrot.slane %v360_v56, 6  ;;  %v365_v8 = vrot.slane %v363_v59, 7 }
  0x4c   :  { %v107_v32 = vadd.f32 %v106_v30, %v105_v31 }
  0x4e   :  { %v108_v33 = vsel %vm52_vm0, %v107_v32, 0.0 }
  0x4f   :  { %v109_v34 = vrot.slane %v108_v33, 4 }
  0x51   :  { %v110_v35 = vadd.f32 %v109_v34, %v108_v33 }
  0x53   :  { %v111_v36 = vrot.slane %v110_v35, 2 }
  0x55   :  { %v112_v37 = vadd.f32 %v111_v36, %v110_v35 }
  0x57   :  { %v113_v38 = vrot.slane %v112_v37, 1 }
  0x59   :  { %v114_v39 = vadd.f32 %v113_v38, %v112_v37 }
  0x5b   :  { %v115_v40 = vmul.f32 0.03125, %v114_v39 }
  0x5d   :  { %v117_v41 = vadd.f32 1e-05, %v115_v40 }
  0x5f   :  { %2921 = vrsqrt.f32 %v117_v41 }
  0x6c   :  { %v2922_v57 = vpop.eup %2921 }
  0x6d   :  { %v119_v60 = vmul.f32 %v2922_v57, %v116_v54 }
  0x6f   :  { %v124_v61 = vrot.slane %v119_v60, %v3922_v55 }
  0x71   :  { %v126_v9 = vmul.f32 %v124_v61, %v3129_v2  ;;  %v127_v10 = vmul.f32 %v124_v61, %v3131_v3  ;;  %v128_v11 = vmul.f32 %v124_v61, %v3133_v4  ;;  %v129_v13 = vmul.f32 %v124_v61, %v3135_v5 }
  0x72   :  { %v130_v14 = vmul.f32 %v124_v61, %v3137_v6  ;;  %v131_v15 = vmul.f32 %v124_v61, %v3139_v7  ;;  %v132_v16 = vmul.f32 %v124_v61, %v3149_v12  ;;  %v133_v17 = vmul.f32 %v124_v61, %v84_v18 }
  0x73   :  { %v141_v19 = vadd.f32 %v2405_v62, %v126_v9  ;;  %v142_v20 = vadd.f32 %v2405_v62, %v127_v10  ;;  %v143_v21 = vadd.f32 %v2405_v62, %v128_v11  ;;  %v144_v22 = vadd.f32 %v2405_v62, %v129_v13 }
  0x74   :  { %v145_v23 = vadd.f32 %v2405_v62, %v130_v14  ;;  %v146_v24 = vadd.f32 %v2405_v62, %v131_v15  ;;  %v147_v2 = vadd.f32 %v2405_v62, %v132_v16  ;;  %v148_v25 = vadd.f32 %v2405_v62, %v133_v17 }
  0x75   :  { %162 = vst [vmem:[#allocation2 + $0x9] sm:$0xf] %v141_v19  ;;  %163 = vst [vmem:[#allocation2 + $0x11] sm:$0xf] %v142_v20  ;;  %v366_v3 = vor.u32 %v365_v8, %v362_v0  ;;  %v369_v4 = vshll.u32 %v342_v63, 16  ;;  %v430_v5 = vshrl.u32 %v3188_v1, 16  ;;  %v347_v18 = vcombine.high %v3188_v1, %v3188_v1 }
  0x76   :  { %164 = vst [vmem:[#allocation2 + $0x19] sm:$0xf] %v143_v21  ;;  %165 = vst [vmem:[#allocation2 + $0x21] sm:$0xf] %v144_v22  ;;  %v433_v6 = vshll.u32 %v3188_v1, 16 }
  0x77   :  { %166 = vst [vmem:[#allocation2 + $0x39] sm:$0xf] %v145_v23  ;;  %167 = vst [vmem:[#allocation2 + $0x41] sm:$0xf] %v146_v24  ;;  %v367_v7 = vrot.slane %v366_v3, 2  ;;  %v371_v12 = vrot.slane %v369_v4, 7 }
  0x78   :  { %168 = vst [vmem:[#allocation2 + $0x49] sm:$0xf] %v147_v2  ;;  %169 = vst [vmem:[#allocation2 + $0x51] sm:$0xf] %v148_v25  ;;  %v3203_v26 = vrot.slane %v430_v5, 6  ;;  %v3205_v27 = vrot.slane %v433_v6, 7 }
  0x79   :  { %v3213_v39 = vsel %vm3207_vm7, %v367_v7, %v371_v12  ;;  %v3217_v41 = vshll.u32 %v347_v18, 16  ;;  %v2859_v4 = vld [vmem:[#allocation3 + $0xb8] sm:$0xff]   ;;  %v2861_v6 = vld [vmem:[#allocation3 + $0xf0] sm:$0xff]  }
  0x7a   :  { %v436_v40 = vor.u32 %v3205_v27, %v3203_v26  ;;  %v2860_v5 = vld [vmem:[#allocation3 + $0x38] sm:$0xff]   ;;  %v2862_v7 = vld [vmem:[#allocation3 + $0x70] sm:$0xff]  }
  0x7c   :  { %v171_v29 = vld [vmem:[#allocation2 + $0x8] sm:$0x3f]  ;;  %v172_v30 = vld [vmem:[#allocation2 + $0x10] sm:$0x3f] }
  0x7d   :  { %v173_v31 = vld [vmem:[#allocation2 + $0x18] sm:$0x3f]  ;;  %v195_v32 = vrot.slane %v171_v29, 1  ;;  %v196_v33 = vrot.slane %v172_v30, 1  ;;  %v174_v34 = vld [vmem:[#allocation2 + $0x20] sm:$0x3f] }
  0x7e   :  { %v197_v35 = vrot.slane %v173_v31, 1  ;;  %v198_v36 = vrot.slane %v174_v34, 1  ;;  %v177_v37 = vld [vmem:[#allocation2 + $0x38] sm:$0x3f]  ;;  %v178_v38 = vld [vmem:[#allocation2 + $0x40] sm:$0x3f] }
  0x7f   :  { %v2407_v42 = vpack.c.bf16 %v195_v32, %v171_v29  ;;  %v2408_v43 = vpack.c.bf16 %v196_v33, %v172_v30  ;;  %v201_v45 = vrot.slane %v177_v37, 1  ;;  %v179_v46 = vld [vmem:[#allocation2 + $0x48] sm:$0x3f]  ;;  %v180_v47 = vld [vmem:[#allocation2 + $0x50] sm:$0x3f]  ;;  %v202_v51 = vrot.slane %v178_v38, 1 }
  0x80   :  { %v2409_v44 = vpack.c.bf16 %v197_v35, %v173_v31  ;;  %v2410_v50 = vpack.c.bf16 %v198_v36, %v174_v34  ;;  %v203_v52 = vrot.slane %v179_v46, 1  ;;  %v204_v54 = vrot.slane %v180_v47, 1 }
  0x81   :  { %v3220_v56 = vrot.slane %v2407_v42, %v3169_v49  ;;  %v3223_v57 = vrot.slane %v2408_v43, %v3169_v49  ;;  %v2412_v59 = vpack.c.bf16 %v201_v45, %v177_v37  ;;  %v2413_v61 = vpack.c.bf16 %v202_v51, %v178_v38  ;;  %v2863_v42 = vld [vmem:[#allocation3 + $0xb0] sm:$0xff]   ;;  %v2866_v51 = vld [vmem:[#allocation3 + $0x68] sm:$0xff]  }
  0x82   :  { %v3226_v58 = vrot.slane %v2409_v44, %v3169_v49  ;;  %v3229_v60 = vrot.slane %v2410_v50, %v3169_v49  ;;  %v2414_v62 = vpack.c.bf16 %v203_v52, %v179_v46  ;;  %v2415_v63 = vpack.c.bf16 %v204_v54, %v180_v47  ;;  %v2864_v43 = vld [vmem:[#allocation3 + $0x30] sm:$0xff]   ;;  %v2865_v50 = vld [vmem:[#allocation3 + $0xe8] sm:$0xff]  }
  0x83   :  { %v596_v0 = vcombine.low %v3220_v56, %v3220_v56  ;;  %v597_v8 = vcombine.low %v3223_v57, %v3223_v57  ;;  %v837_v9 = vcombine.low %v3172_v53, %v3220_v56  ;;  %v838_v10 = vcombine.low %v3220_v56, %v3223_v57 }
  0x84   :  { %v614_v11 = vcombine.low %v3226_v58, %v3226_v58  ;;  %v615_v13 = vcombine.low %v3229_v60, %v3229_v60  ;;  %v855_v14 = vcombine.low %v3223_v57, %v3226_v58  ;;  %v856_v15 = vcombine.low %v3226_v58, %v3229_v60 }
  0x85   :  { %v604_v16 = vrot.slane %v596_v0, %v3169_v49  ;;  %v611_v17 = vrot.slane %v597_v8, %v3169_v49  ;;  %v845_v53 = vrot.slane %v837_v9, %v3169_v49  ;;  %v3251_v19 = vrot.slane %v838_v10, %v3169_v49 }
  0x86   :  { %v3254_v20 = vrot.slane %v614_v11, %v3169_v49  ;;  %v3257_v21 = vrot.slane %v615_v13, %v3169_v49  ;;  %v3260_v22 = vrot.slane %v855_v14, %v3169_v49  ;;  %v3263_v23 = vrot.slane %v856_v15, %v3169_v49  ;;  %v2867_v13 = vld [vmem:[#allocation3 + $0xa8] sm:$0xff]  }
  0x87   :  { %v613_v24 = vcombine.high %v604_v16, %v611_v17  ;;  %v854_v2 = vcombine.high %v845_v53, %v3251_v19  ;;  %v612_v25 = vcombine.low %v604_v16, %v611_v17  ;;  %v853_v3 = vcombine.low %v845_v53, %v3251_v19  ;;  %v2868_v14 = vld [vmem:[#allocation3 + $0x28] sm:$0xff]  }
  0x88   :  { %v631_v12 = vcombine.high %v3254_v20, %v3257_v21  ;;  %v872_v18 = vcombine.high %v3260_v22, %v3263_v23  ;;  %v630_v29 = vcombine.low %v3254_v20, %v3257_v21  ;;  %v871_v30 = vcombine.low %v3260_v22, %v3263_v23  ;;  %v2869_v20 = vld [vmem:[#allocation3 + $0xe0] sm:$0xff]  }
  0x89   :  { %804 = vmatprep.mubr.bf16.mxu0 %v613_v24  ;;  %1045 = vmatprep.mubr.bf16.mxu1 %v854_v2  ;;  %v3276_v31 = vrot.slane %v2412_v59, %v3169_v49  ;;  %v3279_v32 = vrot.slane %v2413_v61, %v3169_v49  ;;  %v3282_v33 = vrot.slane %v2414_v62, %v3169_v49  ;;  %v374_v34 = vshrl.u32 %v3220_v56, 16  ;;  %v3305_v61 = vld [vmem:[#allocation2 + $0x28] sm:$0x3f]  ;;  %v2870_v21 = vld [vmem:[#allocation3 + $0x60] sm:$0xff]  }
  0x8a   :  { %805 = vmatmul.mubr.bf16.vlgmr.msra.gmra.mxu0 %v612_v25  ;;  %1046 = vmatmul.mubr.bf16.vlgmr.msra.gmra.mxu1 %v853_v3  ;;  %v3286_v35 = vrot.slane %v2415_v63, %v3169_v49  ;;  %v343_v36 = vcombine.high %v3220_v56, %v3220_v56  ;;  %v344_v37 = vcombine.high %v3223_v57, %v3223_v57  ;;  %v377_v38 = vshll.u32 %v3220_v56, 16 }
  0x8b   :  { %2661 = vmatpush3.bf16.msra.mxu0 %v2859_v4  ;;  %2701 = vmatpush3.bf16.msra.mxu1 %v2860_v5  ;;  %v632_v44 = vcombine.low %v3276_v31, %v3276_v31  ;;  %v633_v45 = vcombine.low %v3279_v32, %v3279_v32  ;;  %v873_v46 = vcombine.low %v3188_v1, %v3276_v31  ;;  %v376_v47 = vrot.slane %v374_v34, 6 }
  0x8c   :  { %2662 = vmatprep.subr.bf16.mxu0 %v2861_v6  ;;  %2702 = vmatprep.subr.bf16.mxu1 %v2862_v7  ;;  %v874_v52 = vcombine.low %v3276_v31, %v3279_v32  ;;  %v650_v54 = vcombine.low %v3282_v33, %v3282_v33  ;;  %v651_v56 = vcombine.low %v3286_v35, %v3286_v35  ;;  %v379_v59 = vrot.slane %v377_v38, 7  ;;  %v2871_v38 = vld [vmem:[#allocation3 + $0xa0] sm:$0xff]  }
  0x8d   :  { %812 = vmatprep.mubr.bf16.mxu0 %v631_v12  ;;  %1053 = vmatprep.mubr.bf16.mxu1 %v872_v18  ;;  %v3308_v1 = vrot.slane %v632_v44, %v3169_v49  ;;  %v3311_v62 = vrot.slane %v633_v45, %v3169_v49  ;;  %v3314_v63 = vrot.slane %v873_v46, %v3169_v49  ;;  %v383_v0 = vshll.u32 %v343_v36, 16 }
  0x8e   :  { %v3317_v8 = vrot.slane %v874_v52, %v3169_v49  ;;  %v3320_v9 = vrot.slane %v650_v54, %v3169_v49  ;;  %v3323_v10 = vrot.slane %v651_v56, %v3169_v49  ;;  %v891_v11 = vcombine.low %v3279_v32, %v3282_v33 }
  0x8f   :  { %2663 = vmatpush3.bf16.msra.mxu0 %v2863_v42  ;;  %2703 = vmatpush3.bf16.msra.mxu1 %v2864_v43  ;;  %v649_v15 = vcombine.high %v3308_v1, %v3311_v62  ;;  %v648_v16 = vcombine.low %v3308_v1, %v3311_v62  ;;  %v892_v17 = vcombine.low %v3282_v33, %v3286_v35  ;;  %v199_v53 = vrot.slane %v3305_v61, 1  ;;  %v2872_v42 = vld [vmem:[#allocation3 + $0x20] sm:$0xff]  }
  0x90   :  { %2664 = vmatprep.subr.bf16.mxu0 %v2865_v50  ;;  %2704 = vmatprep.subr.bf16.mxu1 %v2866_v51  ;;  %v890_v24 = vcombine.high %v3314_v63, %v3317_v8  ;;  %v889_v2 = vcombine.low %v3314_v63, %v3317_v8  ;;  %v385_v25 = vrot.slane %v383_v0, 7  ;;  %v388_v3 = vshrl.u32 %v3223_v57, 16 }
  0x91   :  { %v667_v4 = vcombine.high %v3320_v9, %v3323_v10  ;;  %v3342_v5 = vrot.slane %v891_v11, %v3169_v49  ;;  %v3345_v6 = vrot.slane %v892_v17, %v3169_v49  ;;  %v380_v7 = vor.u32 %v379_v59, %v376_v47 }
  0x92   :  { %813 = vmatmul.mubr.bf16.gmra.mxu0 %v630_v29  ;;  %1054 = vmatmul.mubr.bf16.gmra.mxu1 %v871_v30  ;;  %v390_v12 = vrot.slane %v388_v3, 6  ;;  %v391_v18 = vshll.u32 %v3223_v57, 16  ;;  %v397_v34 = vshll.u32 %v344_v37, 16  ;;  %v345_v36 = vcombine.high %v3226_v58, %v3226_v58  ;;  %v2873_v57 = vld [vmem:[#allocation3 + $0xd8] sm:$0xff]  }
  0x93   :  { %2665 = vmatpush3.bf16.msra.mxu0 %v2867_v13  ;;  %2705 = vmatpush3.bf16.msra.mxu1 %v2868_v14  ;;  %v908_v43 = vcombine.high %v3342_v5, %v3345_v6  ;;  %v666_v44 = vcombine.low %v3320_v9, %v3323_v10  ;;  %v381_v45 = vrot.slane %v380_v7, 2  ;;  %v346_v29 = vcombine.high %v3229_v60, %v3229_v60  ;;  %v2874_v30 = vld [vmem:[#allocation3 + $0x58] sm:$0xff]   ;;  %v2888_v9 = vld [vmem:[#allocation3] sm:$0xff]  }
  0x94   :  { %2666 = vmatprep.subr.bf16.mxu0 %v2869_v20  ;;  %2706 = vmatprep.subr.bf16.mxu1 %v2870_v21  ;;  %v393_v37 = vrot.slane %v391_v18, 7  ;;  %v399_v46 = vrot.slane %v397_v34, 7  ;;  %v402_v47 = vshrl.u32 %v3226_v58, 16  ;;  %v405_v50 = vshll.u32 %v3226_v58, 16  ;;  %v2875_v13 = vld [vmem:[#allocation3 + $0x98] sm:$0xff]   ;;  %v2877_v21 = vld [vmem:[#allocation3 + $0xd0] sm:$0xff]  }
  0x95   :  { %820 = vmatprep.mubr.bf16.mxu0 %v649_v15  ;;  %1061 = vmatprep.mubr.bf16.mxu1 %v890_v24  ;;  %v386_v51 = vsel %vm3207_vm7, %v381_v45, %v385_v25  ;;  %v411_v52 = vshll.u32 %v345_v36, 16  ;;  %v416_v54 = vshrl.u32 %v3229_v60, 16  ;;  %v419_v56 = vshll.u32 %v3229_v60, 16  ;;  %v2876_v14 = vld [vmem:[#allocation3 + $0x18] sm:$0xff]   ;;  %v2878_v24 = vld [vmem:[#allocation3 + $0x50] sm:$0xff]  }
  0x96   :  { %v394_v59 = vor.u32 %v393_v37, %v390_v12  ;;  %v1111_v63 = vcombine.low %v386_v51, %v386_v51  ;;  %v1352_v0 = vcombine.low %v3213_v39, %v386_v51  ;;  %v404_v11 = vrot.slane %v402_v47, 6 }
  0x97   :  { %2667 = vmatpush3.bf16.msra.mxu0 %v2871_v38  ;;  %2707 = vmatpush3.bf16.msra.mxu1 %v2872_v42  ;;  %v907_v58 = vcombine.low %v3342_v5, %v3345_v6  ;;  %v407_v15 = vrot.slane %v405_v50, 7  ;;  %v418_v17 = vrot.slane %v416_v54, 6  ;;  %v421_v20 = vrot.slane %v419_v56, 7 }
  0x98   :  { %2668 = vmatprep.subr.bf16.mxu0 %v2873_v57  ;;  %2708 = vmatprep.subr.bf16.mxu1 %v2874_v30  ;;  %v395_v25 = vrot.slane %v394_v59, 2  ;;  %v3366_v3 = vrot.slane %v1111_v63, %v3169_v49  ;;  %v413_v39 = vrot.slane %v411_v52, 7  ;;  %v425_v7 = vshll.u32 %v346_v29, 16  ;;  %v2879_v57 = vld [vmem:[#allocation3 + $0x90] sm:$0xff]  }
  0x99   :  { %v3369_v12 = vrot.slane %v1352_v0, %v3169_v49  ;;  %v408_v18 = vor.u32 %v407_v15, %v404_v11  ;;  %v422_v34 = vor.u32 %v421_v20, %v418_v17  ;;  %v348_v36 = vcombine.high %v3276_v31, %v3276_v31  ;;  %v2880_v30 = vld [vmem:[#allocation3 + $0x10] sm:$0xff]   ;;  %v2883_v11 = vld [vmem:[#allocation3 + $0x88] sm:$0xff]  }
  0x9a   :  { %821 = vmatmul.mubr.bf16.gmra.mxu0 %v648_v16  ;;  %1062 = vmatmul.mubr.bf16.gmra.mxu1 %v889_v2  ;;  %v3378_v38 = vsel %vm3207_vm7, %v395_v25, %v399_v46  ;;  %v427_v42 = vrot.slane %v425_v7, 7  ;;  %v444_v45 = vshrl.u32 %v3276_v31, 16  ;;  %v447_v29 = vshll.u32 %v3276_v31, 16  ;;  %v2881_v2 = vld [vmem:[#allocation3 + $0xc8] sm:$0xff]  }
  0x9b   :  { %2669 = vmatpush3.bf16.msra.mxu0 %v2875_v13  ;;  %2709 = vmatpush3.bf16.msra.mxu1 %v2876_v14  ;;  %v1112_v37 = vcombine.low %v3378_v38, %v3378_v38  ;;  %v1353_v1 = vcombine.low %v386_v51, %v3378_v38  ;;  %v409_v62 = vrot.slane %v408_v18, 2  ;;  %v423_v16 = vrot.slane %v422_v34, 2  ;;  %v2882_v46 = vld [vmem:[#allocation3 + $0x48] sm:$0xff]  }
  0x9c   :  { %2670 = vmatprep.subr.bf16.mxu0 %v2877_v21  ;;  %2710 = vmatprep.subr.bf16.mxu1 %v2878_v24  ;;  %v446_v47 = vrot.slane %v444_v45, 6  ;;  %v449_v50 = vrot.slane %v447_v29, 7  ;;  %v453_v52 = vshll.u32 %v348_v36, 16  ;;  %v458_v31 = vshrl.u32 %v3279_v32, 16  ;;  %v2884_v13 = vld [vmem:[#allocation3 + $0x8] sm:$0xff]   ;;  %v2885_v21 = vld [vmem:[#allocation3 + $0xc0] sm:$0xff]  }
  0x9d   :  { %828 = vmatprep.mubr.bf16.mxu0 %v667_v4  ;;  %1069 = vmatprep.mubr.bf16.mxu1 %v908_v43  ;;  %v3393_v51 = vrot.slane %v1112_v37, %v3169_v49  ;;  %v3396_v54 = vrot.slane %v1353_v1, %v3169_v49  ;;  %v414_v56 = vsel %vm3207_vm7, %v409_v62, %v413_v39  ;;  %v461_v59 = vshll.u32 %v3279_v32, 16  ;;  %v2887_v36 = vld [vmem:[#allocation3 + $0x80] sm:$0xff]   ;;  %v2889_v29 = vld [vmem:[%s3916_s3 + $0x178] sm:$0xff]  }
  0x9e   :  { %v3403_v63 = vsel %vm3207_vm7, %v423_v16, %v427_v42  ;;  %v1129_v4 = vcombine.low %v414_v56, %v414_v56  ;;  %v349_v0 = vcombine.high %v3279_v32, %v3279_v32  ;;  %v450_v43 = vor.u32 %v449_v50, %v446_v47  ;;  %v2886_v32 = vld [vmem:[#allocation3 + $0x40] sm:$0xff]   ;;  %v2891_v50 = vld [vmem:[%s3916_s3 + $0x138] sm:$0xff]  }
  0x9f   :  { %2671 = vmatpush3.bf16.msra.mxu0 %v2879_v57  ;;  %2711 = vmatpush3.bf16.msra.mxu1 %v2880_v30  ;;  %v455_v14 = vrot.slane %v453_v52, 7  ;;  %v437_v15 = vrot.slane %v436_v40, 2  ;;  %v441_v17 = vrot.slane %v3217_v41, 7  ;;  %v2512_v20 = vpack.c.bf16 %v199_v53, %v3305_v61  ;;  %v2890_v57 = vld [vmem:[#allocation3 + $0x178] sm:$0xff]  }
  0xa0   :  { %2672 = vmatprep.subr.bf16.mxu0 %v2881_v2  ;;  %2712 = vmatprep.subr.bf16.mxu1 %v2882_v46  ;;  %v1128_v24 = vcombine.high %v3366_v3, %v3393_v51  ;;  %v1130_v25 = vcombine.low %v3403_v63, %v3403_v63  ;;  %v1370_v39 = vcombine.low %v3378_v38, %v414_v56  ;;  %v451_v26 = vrot.slane %v450_v43, 2  ;;  %v2892_v52 = vld [vmem:[#allocation3 + $0x138] sm:$0xff]  }
  0xa1   :  { %v1369_v27 = vcombine.high %v3369_v12, %v3396_v54  ;;  %v1371_v40 = vcombine.low %v414_v56, %v3403_v63  ;;  %v460_v41 = vrot.slane %v458_v31, 6  ;;  %v463_v61 = vrot.slane %v461_v59, 7 }
  0xa2   :  { %829 = vmatmul.mubr.bf16.gmra.mxu0 %v666_v44  ;;  %1070 = vmatmul.mubr.bf16.gmra.mxu1 %v907_v58  ;;  %v3429_v53 = vrot.slane %v1129_v4, %v3169_v49  ;;  %v3432_v7 = vrot.slane %v1130_v25, %v3169_v49  ;;  %v3436_v18 = vsel %vm3207_vm7, %v451_v26, %v455_v14  ;;  %v467_v34 = vshll.u32 %v349_v0, 16  ;;  %v2894_v4 = vld [vmem:[#allocation3 + $0x170] sm:$0xff]  }
  0xa3   :  { %2673 = vmatpush3.bf16.msra.mxu0 %v2883_v11  ;;  %2713 = vmatpush3.bf16.msra.mxu1 %v2884_v13  ;;  %v464_v10 = vor.u32 %v463_v61, %v460_v41  ;;  %v3440_v44 = vsel %vm3207_vm7, %v437_v15, %v441_v17  ;;  %v350_v58 = vcombine.high %v3282_v33, %v3282_v33  ;;  %v472_v38 = vshrl.u32 %v3282_v33, 16  ;;  %v2896_v25 = vld [vmem:[#allocation3 + $0x130] sm:$0xff]   ;;  %v2898_v41 = vld [vmem:[#allocation3 + $0x168] sm:$0xff]  }
  0xa4   :  { %2674 = vmatprep.subr.bf16.mxu0 %v2885_v21  ;;  %2714 = vmatprep.subr.bf16.mxu1 %v2886_v32  ;;  %v1127_v42 = vcombine.low %v3366_v3, %v3393_v51  ;;  %v1368_v45 = vcombine.low %v3369_v12, %v3396_v54  ;;  %v469_v30 = vrot.slane %v467_v34, 7  ;;  %v3453_v37 = vrot.slane %v2512_v20, %v3169_v49 }
  0xa5   :  { %1319 = vmatprep.mubr.bf16.mxu0 %v1128_v24  ;;  %1560 = vmatprep.mubr.bf16.mxu1 %v1369_v27  ;;  %v3456_v1 = vrot.slane %v1370_v39, %v3169_v49  ;;  %v3459_v62 = vrot.slane %v1371_v40, %v3169_v49  ;;  %v465_v3 = vrot.slane %v464_v10, 2  ;;  %v1147_v12 = vcombine.low %v3436_v18, %v3436_v18  ;;  %v2895_v24 = vld [vmem:[%s3916_s3 + $0x130] sm:$0xff]   ;;  %v2897_v40 = vld [vmem:[%s3916_s3 + $0x168] sm:$0xff]  }
  0xa6   :  { %v1146_v16 = vcombine.high %v3429_v53, %v3432_v7  ;;  %v351_v2 = vcombine.high %v3286_v35, %v3286_v35  ;;  %v474_v46 = vrot.slane %v472_v38, 6  ;;  %v475_v47 = vshll.u32 %v3282_v33, 16  ;;  %v2893_v33 = vld [vmem:[%s3916_s3 + $0x170] sm:$0xff]  }
  0xa7   :  { %2675 = vmatpush3.bf16.msra.mxu0 %v2887_v36  ;;  %2715 = vmatpush3.bf16.msra.mxu1 %v2888_v9  ;;  %v3473_v31 = vsel %vm3207_vm7, %v465_v3, %v469_v30  ;;  %v481_v51 = vshll.u32 %v350_v58, 16  ;;  %v486_v56 = vshrl.u32 %v3286_v35, 16  ;;  %v489_v59 = vshll.u32 %v3286_v35, 16  ;;  %v181_v9 = vld [vmem:[#allocation2 + $0x58] sm:$0x3f]  ;;  %v2901_v3 = vld [vmem:[%s3916_s3 + $0x160] sm:$0xff]  }
  0xa8   :  { %2740 = vmatprep.subr.bf16.mxu0 %v2889_v29  ;;  %2780 = vmatprep.subr.bf16.mxu1 %v2890_v57  ;;  %v1148_v0 = vcombine.low %v3473_v31, %v3473_v31  ;;  %v1388_v43 = vcombine.low %v3440_v44, %v3436_v18  ;;  %v477_v11 = vrot.slane %v475_v47, 7  ;;  %v495_v13 = vshll.u32 %v351_v2, 16  ;;  %v2899_v29 = vld [vmem:[%s3916_s3 + $0x128] sm:$0xff]  }
  0xa9   :  { %v1387_v14 = vcombine.high %v3456_v1, %v3459_v62  ;;  %v1389_v15 = vcombine.low %v3436_v18, %v3473_v31  ;;  %v488_v17 = vrot.slane %v486_v56, 6  ;;  %v491_v20 = vrot.slane %v489_v59, 7  ;;  %v2900_v57 = vld [vmem:[#allocation3 + $0x128] sm:$0xff]   ;;  %v2903_v59 = vld [vmem:[%s3916_s3 + $0x120] sm:$0xff]  }
  0xaa   :  { %1320 = vmatmul.mubr.bf16.vlgmr.msra.gmra.mxu0 %v1127_v42  ;;  %1561 = vmatmul.mubr.bf16.vlgmr.msra.gmra.mxu1 %v1368_v45  ;;  %v478_v21 = vor.u32 %v477_v11, %v474_v46  ;;  %v483_v32 = vrot.slane %v481_v51, 7  ;;  %v497_v26 = vrot.slane %v495_v13, 7  ;;  %v1616_v27 = vshrl.u32 %v3453_v37, 16 }
  0xab   :  { %2741 = vmatpush3.bf16.msra.mxu0 %v2891_v50  ;;  %2781 = vmatpush3.bf16.msra.mxu1 %v2892_v52  ;;  %v492_v39 = vor.u32 %v491_v20, %v488_v17  ;;  %v3496_v61 = vrot.slane %v1147_v12, %v3169_v49  ;;  %v3499_v18 = vrot.slane %v1148_v0, %v3169_v49  ;;  %v1619_v36 = vshll.u32 %v3453_v37, 16  ;;  %v2902_v12 = vld [vmem:[#allocation3 + $0x160] sm:$0xff]   ;;  %v2906_v0 = vld [vmem:[#allocation3 + $0x158] sm:$0xff]  }
  0xac   :  { %2742 = vmatprep.subr.bf16.mxu0 %v2893_v33  ;;  %2782 = vmatprep.subr.bf16.mxu1 %v2894_v4  ;;  %v479_v34 = vrot.slane %v478_v21, 2  ;;  %v1396_v10 = vrot.slane %v1388_v43, %v3169_v49  ;;  %v3504_v44 = vrot.slane %v1389_v15, %v3169_v49  ;;  %v1145_v38 = vcombine.low %v3429_v53, %v3432_v7  ;;  %v2904_v33 = vld [vmem:[#allocation3 + $0x120] sm:$0xff]   ;;  %v2905_v4 = vld [vmem:[%s3916_s3 + $0x158] sm:$0xff]  }
  0xad   :  { %1327 = vmatprep.mubr.bf16.mxu0 %v1146_v16  ;;  %1568 = vmatprep.mubr.bf16.mxu1 %v1387_v14  ;;  %v493_v58 = vrot.slane %v492_v39, 2  ;;  %v1386_v42 = vcombine.low %v3456_v1, %v3459_v62  ;;  %v1613_v53 = vcombine.high %v3453_v37, %v3453_v37  ;;  %v205_v7 = vrot.slane %v181_v9, 1  ;;  %v2910_v39 = vld [vmem:[#allocation3 + $0x150] sm:$0xff]  }
  0xae   :  { %v484_v45 = vsel %vm3207_vm7, %v479_v34, %v483_v32  ;;  %v1164_v16 = vcombine.high %v3496_v61, %v3499_v18  ;;  %v1618_v46 = vrot.slane %v1616_v27, 6  ;;  %v1621_v47 = vrot.slane %v1619_v36, 7  ;;  %v2907_v32 = vld [vmem:[%s3916_s3 + $0x118] sm:$0xff]   ;;  %v2912_v34 = vld [vmem:[#allocation3 + $0x110] sm:$0xff]   ;;  %v2913_v36 = vld [vmem:[%s3916_s3 + $0x148] sm:$0xff]  }
  0xaf   :  { %2743 = vmatpush3.bf16.msra.mxu0 %v2895_v24  ;;  %2783 = vmatpush3.bf16.msra.mxu1 %v2896_v25  ;;  %v3517_v30 = vsel %vm3207_vm7, %v493_v58, %v497_v26  ;;  %v1165_v2 = vcombine.low %v484_v45, %v484_v45  ;;  %v1405_v50 = vcombine.high %v1396_v10, %v3504_v44  ;;  %v1625_v11 = vshll.u32 %v1613_v53, 16  ;;  %v2908_v24 = vld [vmem:[#allocation3 + $0x118] sm:$0xff]   ;;  %v2909_v25 = vld [vmem:[%s3916_s3 + $0x150] sm:$0xff]  }
  0xb0   :  { %2744 = vmatprep.subr.bf16.mxu0 %v2897_v40  ;;  %2784 = vmatprep.subr.bf16.mxu1 %v2898_v41  ;;  %v1166_v52 = vcombine.low %v3517_v30, %v3517_v30  ;;  %v1406_v51 = vcombine.low %v3473_v31, %v484_v45  ;;  %v1407_v56 = vcombine.low %v484_v45, %v3517_v30 }
  0xb1   :  { %v1173_v31 = vrot.slane %v1165_v2, %v3169_v49  ;;  %v1622_v43 = vor.u32 %v1621_v47, %v1618_v46  ;;  %v2513_v13 = vpack.c.bf16 %v205_v7, %v181_v9  ;;  %v1163_v20 = vcombine.low %v3496_v61, %v3499_v18  ;;  %v2911_v18 = vld [vmem:[%s3916_s3 + $0x110] sm:$0xff]   ;;  %v2914_v9 = vld [vmem:[#allocation3 + $0x148] sm:$0xff]  }
  0xb2   :  { %1328 = vmatmul.mubr.bf16.gmra.mxu0 %v1145_v38  ;;  %1569 = vmatmul.mubr.bf16.gmra.mxu1 %v1386_v42  ;;  %v1180_v14 = vrot.slane %v1166_v52, %v3169_v49  ;;  %v3540_v15 = vrot.slane %v1406_v51, %v3169_v49  ;;  %v3543_v17 = vrot.slane %v1407_v56, %v3169_v49  ;;  %v1627_v27 = vrot.slane %v1625_v11, 7 }
  0xb3   :  { %2745 = vmatpush3.bf16.msra.mxu0 %v2899_v29  ;;  %2785 = vmatpush3.bf16.msra.mxu1 %v2900_v57  ;;  %v1404_v21 = vcombine.low %v1396_v10, %v3504_v44  ;;  %v1623_v26 = vrot.slane %v1622_v43, 2  ;;  %v3555_v40 = vrot.slane %v2513_v13, %v3169_v49  ;;  %v2915_v29 = vld [vmem:[%s3916_s3 + $0x108] sm:$0xff]   ;;  %v1678_v53 = vcombine.low %v3229_v60, %v3453_v37  ;;  %v2920_v37 = vld [vmem:[#allocation3 + $0x100] sm:$0xff]  }
  0xb4   :  { %2746 = vmatprep.subr.bf16.mxu0 %v2901_v3  ;;  %2786 = vmatprep.subr.bf16.mxu1 %v2902_v12  ;;  %v1182_v41 = vcombine.high %v1173_v31, %v1180_v14  ;;  %v1423_v61 = vcombine.high %v3540_v15, %v3543_v17  ;;  %v1181_v42 = vcombine.low %v1173_v31, %v1180_v14  ;;  %v2916_v57 = vld [vmem:[#allocation3 + $0x108] sm:$0xff]   ;;  %v2917_v3 = vld [vmem:[%s3916_s3 + $0x140] sm:$0xff]  }
  0xb5   :  { %1335 = vmatprep.mubr.bf16.mxu0 %v1164_v16  ;;  %1576 = vmatprep.mubr.bf16.mxu1 %v1405_v50  ;;  %v1628_v10 = vsel %vm3207_vm7, %v1623_v26, %v1627_v27  ;;  %v1630_v58 = vshrl.u32 %v3555_v40, 16  ;;  %v1633_v38 = vshll.u32 %v3555_v40, 16  ;;  %v1422_v45 = vcombine.low %v3540_v15, %v3543_v17  ;;  %v2918_v12 = vld [vmem:[#allocation3 + $0x140] sm:$0xff]  }
  0xb6   :  { %v1912_v7 = vcombine.low %v3403_v63, %v1628_v10  ;;  %v1614_v16 = vcombine.high %v3555_v40, %v3555_v40  ;;  %v1677_v47 = vcombine.high %v3251_v19, %v3260_v22  ;;  %v1911_v60 = vcombine.high %v3396_v54, %v3456_v1  ;;  %v2919_v63 = vld [vmem:[%s3916_s3 + $0x100] sm:$0xff]  }
  0xb7   :  { %2747 = vmatpush3.bf16.msra.mxu0 %v2903_v59  ;;  %2787 = vmatpush3.bf16.msra.mxu1 %v2904_v33  ;;  %v1632_v2 = vrot.slane %v1630_v58, 6  ;;  %v1635_v46 = vrot.slane %v1633_v38, 7  ;;  %v1685_v50 = vrot.slane %v1678_v53, %v3169_v49  ;;  %v1676_v59 = vcombine.low %v3251_v19, %v3260_v22 }
  0xb8   :  { %2748 = vmatprep.subr.bf16.mxu0 %v2905_v4  ;;  %2788 = vmatprep.subr.bf16.mxu1 %v2906_v0  ;;  %v1919_v52 = vrot.slane %v1912_v7, %v3169_v49  ;;  %v1639_v56 = vshll.u32 %v1614_v16, 16  ;;  %v1910_v33 = vcombine.low %v3396_v54, %v3456_v1  ;;  %v1689_v54 = vcombine.high %v3317_v8, %v3342_v5 }
  0xb9   :  { %v1636_v51 = vor.u32 %v1635_v46, %v1632_v2  ;;  %v1687_v4 = vcombine.high %v3263_v23, %v1685_v50  ;;  %v1686_v19 = vcombine.low %v3263_v23, %v1685_v50  ;;  %v1923_v1 = vcombine.high %v3504_v44, %v3540_v15 }
  0xba   :  { %1336 = vmatmul.mubr.bf16.gmra.mxu0 %v1163_v20  ;;  %1577 = vmatmul.mubr.bf16.gmra.mxu1 %v1404_v21  ;;  %v1921_v0 = vcombine.high %v3459_v62, %v1919_v52  ;;  %v1641_v43 = vrot.slane %v1639_v56, 7  ;;  %v1920_v22 = vcombine.low %v3459_v62, %v1919_v52  ;;  %v1690_v13 = vcombine.low %v3286_v35, %v3555_v40 }
  0xbb   :  { %2749 = vmatpush3.bf16.msra.mxu0 %v2907_v32  ;;  %2789 = vmatpush3.bf16.msra.mxu1 %v2908_v24  ;;  %v1637_v31 = vrot.slane %v1636_v51, 2  ;;  %v1688_v62 = vcombine.low %v3317_v8, %v3342_v5  ;;  %v1922_v20 = vcombine.low %v3504_v44, %v3540_v15 }
  0xbc   :  { %2750 = vmatprep.subr.bf16.mxu0 %v2909_v25  ;;  %2790 = vmatprep.subr.bf16.mxu1 %v2910_v39  ;;  %v1697_v28 = vrot.slane %v1690_v13, %v3169_v49 }
  0xbd   :  { %1343 = vmatprep.mubr.bf16.mxu0 %v1182_v41  ;;  %1584 = vmatprep.mubr.bf16.mxu1 %v1423_v61  ;;  %v1642_v11 = vsel %vm3207_vm7, %v1637_v31, %v1641_v43 }
  0xbe   :  { %v1924_v14 = vcombine.low %v3517_v30, %v1642_v11  ;;  %v1699_v21 = vcombine.high %v3345_v6, %v1697_v28  ;;  %v1698_v30 = vcombine.low %v3345_v6, %v1697_v28 }
  0xbf   :  { %2751 = vmatpush3.bf16.msra.mxu0 %v2911_v18  ;;  %2791 = vmatpush3.bf16.msra.mxu1 %v2912_v34 }
  0xc0   :  { %2752 = vmatprep.subr.bf16.mxu0 %v2913_v36  ;;  %2792 = vmatprep.subr.bf16.mxu1 %v2914_v9  ;;  %v1931_v23 = vrot.slane %v1924_v14, %v3169_v49 }
  0xc2   :  { %1344 = vmatmul.mubr.bf16.gmra.mxu0 %v1181_v42  ;;  %1585 = vmatmul.mubr.bf16.gmra.mxu1 %v1422_v45  ;;  %v1933_v35 = vcombine.high %v3543_v17, %v1931_v23  ;;  %v1932_v32 = vcombine.low %v3543_v17, %v1931_v23 }
  0xc3   :  { %2753 = vmatpush3.bf16.msra.mxu0 %v2915_v29  ;;  %2793 = vmatpush3.bf16.msra.mxu1 %v2916_v57 }
  0xc4   :  { %2754 = vmatprep.subr.bf16.mxu0 %v2917_v3  ;;  %2794 = vmatprep.subr.bf16.mxu1 %v2918_v12 }
  0xc5   :  { %1836 = vmatprep.mubr.bf16.mxu0 %v1677_v47  ;;  %2070 = vmatprep.mubr.bf16.mxu1 %v1911_v60 }
  0xc7   :  { %2755 = vmatpush3.bf16.msra.mxu0 %v2919_v63  ;;  %2795 = vmatpush3.bf16.msra.mxu1 %v2920_v37 }
  0xca   :  { %1837 = vmatmul.mubr.bf16.vlgmr.msra.gmra.mxu0 %v1676_v59  ;;  %2071 = vmatmul.mubr.bf16.vlgmr.msra.gmra.mxu1 %v1910_v33 }
  0xcb   :  { %1844 = vmatprep.mubr.bf16.mxu0 %v1687_v4  ;;  %2078 = vmatprep.mubr.bf16.mxu1 %v1921_v0 }
  0xd2   :  { %1845 = vmatmul.mubr.bf16.gmra.mxu0 %v1686_v19  ;;  %2079 = vmatmul.mubr.bf16.gmra.mxu1 %v1920_v22 }
  0xd3   :  { %1852 = vmatprep.mubr.bf16.mxu0 %v1689_v54  ;;  %2086 = vmatprep.mubr.bf16.mxu1 %v1923_v1 }
  0xda   :  { %1853 = vmatmul.mubr.bf16.gmra.mxu0 %v1688_v62  ;;  %2087 = vmatmul.mubr.bf16.gmra.mxu1 %v1922_v20 }
  0xdb   :  { %1860 = vmatprep.mubr.bf16.mxu0 %v1699_v21  ;;  %2094 = vmatprep.mubr.bf16.mxu1 %v1933_v35 }
  0xe2   :  { %1861 = vmatmul.mubr.bf16.gmra.mxu0 %v1698_v30  ;;  %2095 = vmatmul.mubr.bf16.gmra.mxu1 %v1932_v32 }
 0x14a   :  { %v2596_v49 = vpop.f32.mrf.mxu0  ;;  %v2636_v24 = vpop.f32.mrf.mxu1 }
 0x14c   :  { %v2597_v8 = vpop.f32.mrf.mxu0  ;;  %v2637_v5 = vpop.f32.mrf.mxu1 }
 0x14d   :  { %v2598_v25 = vadd.f32 %v2597_v8, %v2596_v49  ;;  %v2638_v44 = vadd.f32 %v2637_v5, %v2636_v24 }
 0x14e   :  { %v2599_v15 = vpop.f32.mrf.mxu0  ;;  %v2639_v39 = vpop.f32.mrf.mxu1 }
 0x14f   :  { %v3618_v26 = vadd.f32 %v2638_v44, %v2598_v25 }
 0x150   :  { %v2600_v27 = vpop.f32.mrf.mxu0  ;;  %v2640_v40 = vpop.f32.mrf.mxu1 }
 0x151   :  { %v2601_v41 = vadd.f32 %v2600_v27, %v2599_v15  ;;  %v2641_v61 = vadd.f32 %v2640_v40, %v2639_v39 }
 0x152   :  { %v2602_v18 = vpop.f32.mrf.mxu0  ;;  %v2642_v6 = vpop.f32.mrf.mxu1 }
 0x153   :  { %v3620_v34 = vadd.f32 %v2641_v61, %v2601_v41 }
 0x154   :  { %v2603_v17 = vpop.f32.mrf.mxu0  ;;  %v2643_v36 = vpop.f32.mrf.mxu1 }
 0x155   :  { %v2604_v9 = vadd.f32 %v2603_v17, %v2602_v18  ;;  %v2644_v10 = vadd.f32 %v2643_v36, %v2642_v6 }
 0x156   :  { %v2605_v58 = vpop.f32.mrf.mxu0  ;;  %v2645_v38 = vpop.f32.mrf.mxu1 }
 0x157   :  { %v3622_v42 = vadd.f32 %v2644_v10, %v2604_v9 }
 0x158   :  { %v2606_v45 = vpop.f32.mrf.mxu0  ;;  %v2646_v29 = vpop.f32.mrf.mxu1 }
 0x159   :  { %v2607_v57 = vadd.f32 %v2606_v45, %v2605_v58  ;;  %v2647_v53 = vadd.f32 %v2646_v29, %v2645_v38 }
 0x15a   :  { %v2608_v7 = vpop.f32.mrf.mxu0  ;;  %v2648_v3 = vpop.f32.mrf.mxu1 }
 0x15b   :  { %v3624_v12 = vadd.f32 %v2647_v53, %v2607_v57 }
 0x15c   :  { %v2609_v16 = vpop.f32.mrf.mxu0  ;;  %v2649_v2 = vpop.f32.mrf.mxu1 }
 0x15d   :  { %v2610_v46 = vadd.f32 %v2609_v16, %v2608_v7  ;;  %v2650_v47 = vadd.f32 %v2649_v2, %v2648_v3 }
 0x15e   :  { %v2611_v60 = vpop.f32.mrf.mxu0  ;;  %v2651_v63 = vpop.f32.mrf.mxu1 }
 0x15f   :  { %v3626_v37 = vadd.f32 %v2650_v47, %v2610_v46 }
 0x160   :  { %v2612_v50 = vpop.f32.mrf.mxu0  ;;  %v2652_v52 = vpop.f32.mrf.mxu1 }
 0x161   :  { %v2613_v51 = vadd.f32 %v2612_v50, %v2611_v60  ;;  %v2653_v56 = vadd.f32 %v2652_v52, %v2651_v63 }
 0x162   :  { %v2614_v59 = vpop.f32.mrf.mxu0  ;;  %v2654_v33 = vpop.f32.mrf.mxu1 }
 0x163   :  { %v3628_v4 = vadd.f32 %v2653_v56, %v2613_v51 }
 0x164   :  { %v2615_v0 = vpop.f32.mrf.mxu0  ;;  %v2655_v31 = vpop.f32.mrf.mxu1 }
 0x165   :  { %v2616_v43 = vadd.f32 %v2615_v0, %v2614_v59  ;;  %v2656_v11 = vadd.f32 %v2655_v31, %v2654_v33  ;;  %v3654_v33 = vld [vmem:[%s3918_s5] ss:$0 sm:$0xff] }
 0x166   :  { %v2617_v19 = vpop.f32.mrf.mxu0  ;;  %v2657_v22 = vpop.f32.mrf.mxu1 }
 0x167   :  { %v3630_v54 = vadd.f32 %v2656_v11, %v2616_v43 }
 0x168   :  { %v2618_v1 = vpop.f32.mrf.mxu0  ;;  %v2658_v13 = vpop.f32.mrf.mxu1 }
 0x169   :  { %v2619_v14 = vadd.f32 %v2618_v1, %v2617_v19  ;;  %v2659_v28 = vadd.f32 %v2658_v13, %v2657_v22 }
 0x16a   :  { %v2676_v23 = vpop.f32.mrf.mxu0  ;;  %v2716_v62 = vpop.f32.mrf.mxu1 }
 0x16b   :  { %v3632_v20 = vadd.f32 %v2659_v28, %v2619_v14 }
 0x16c   :  { %v2677_v21 = vpop.f32.mrf.mxu0  ;;  %v2717_v35 = vpop.f32.mrf.mxu1 }
 0x16d   :  { %v2678_v22 = vadd.f32 %v2677_v21, %v2676_v23  ;;  %v2718_v1 = vadd.f32 %v2717_v35, %v2716_v62 }
 0x16e   :  { %v2679_v30 = vpop.f32.mrf.mxu0  ;;  %v2719_v32 = vpop.f32.mrf.mxu1 }
 0x170   :  { %v2680_v49 = vpop.f32.mrf.mxu0  ;;  %v2720_v24 = vpop.f32.mrf.mxu1 }
 0x171   :  { %v2681_v43 = vadd.f32 %v2680_v49, %v2679_v30  ;;  %v2721_v11 = vadd.f32 %v2720_v24, %v2719_v32 }
 0x172   :  { %v2682_v8 = vpop.f32.mrf.mxu0  ;;  %v2722_v5 = vpop.f32.mrf.mxu1 }
 0x173   :  { %v1566_v30 = vadd.f32 %v2721_v11, %v2681_v43 }
 0x174   :  { %v2683_v25 = vpop.f32.mrf.mxu0  ;;  %v2723_v44 = vpop.f32.mrf.mxu1 }
 0x175   :  { %v2684_v13 = vadd.f32 %v2683_v25, %v2682_v8  ;;  %v1563_v8 = vadd.f32 %v2718_v1, %v2678_v22 }
 0x176   :  { %v2685_v15 = vpop.f32.mrf.mxu0  ;;  %v2725_v39 = vpop.f32.mrf.mxu1 }
 0x178   :  { %v2686_v27 = vpop.f32.mrf.mxu0  ;;  %v2726_v40 = vpop.f32.mrf.mxu1 }
 0x179   :  { %v2687_v62 = vadd.f32 %v2686_v27, %v2685_v15  ;;  %v2727_v21 = vadd.f32 %v2726_v40, %v2725_v39 }
 0x17a   :  { %v2688_v41 = vpop.f32.mrf.mxu0  ;;  %v2728_v61 = vpop.f32.mrf.mxu1 }
 0x17b   :  { %v1574_v27 = vadd.f32 %v2727_v21, %v2687_v62 }
 0x17c   :  { %v2689_v18 = vpop.f32.mrf.mxu0  ;;  %v2729_v6 = vpop.f32.mrf.mxu1 }
 0x17e   :  { %v2691_v17 = vpop.f32.mrf.mxu0  ;;  %v2731_v36 = vpop.f32.mrf.mxu1 }
 0x180   :  { %v2692_v9 = vpop.f32.mrf.mxu0  ;;  %v2732_v10 = vpop.f32.mrf.mxu1 }
 0x181   :  { %v2693_v11 = vadd.f32 %v2692_v9, %v2691_v17 }
 0x182   :  { %v3634_v58 = vpop.f32.mrf.mxu0  ;;  %v3636_v38 = vpop.f32.mrf.mxu1 }
 0x184   :  { %v3638_v45 = vpop.f32.mrf.mxu0  ;;  %v3640_v29 = vpop.f32.mrf.mxu1 }
 0x185   :  { %v2696_v22 = vadd.f32 %v3638_v45, %v3634_v58 }
 0x186   :  { %v3642_v57 = vpop.f32.mrf.mxu0  ;;  %v3644_v53 = vpop.f32.mrf.mxu1 }
 0x188   :  { %v3646_v7 = vpop.f32.mrf.mxu0  ;;  %v3648_v3 = vpop.f32.mrf.mxu1 }
 0x18a   :  { %v2756_v16 = vpop.f32.mrf.mxu0  ;;  %v2796_v2 = vpop.f32.mrf.mxu1 }
 0x18c   :  { %v2757_v46 = vpop.f32.mrf.mxu0  ;;  %v2797_v47 = vpop.f32.mrf.mxu1 }
 0x18d   :  { %v2758_v60 = vadd.f32 %v2757_v46, %v2756_v16  ;;  %v2724_v16 = vadd.f32 %v2723_v44, %v2722_v5  ;;  %v2798_v35 = vadd.f32 %v2797_v47, %v2796_v2 }
 0x18e   :  { %v2759_v63 = vpop.f32.mrf.mxu0  ;;  %v2799_v50 = vpop.f32.mrf.mxu1 }
 0x18f   :  { %v1869_v56 = vadd.f32 %v2758_v60, %v3618_v26  ;;  %v1571_v5 = vadd.f32 %v2724_v16, %v2684_v13  ;;  %v2103_v40 = vadd.f32 %v2798_v35, %v1563_v8  ;;  %v2699_v35 = vadd.f32 %v3646_v7, %v3642_v57 }
 0x190   :  { %v2760_v52 = vpop.f32.mrf.mxu0  ;;  %v2800_v51 = vpop.f32.mrf.mxu1 }
 0x191   :  { %v2761_v59 = vadd.f32 %v2760_v52, %v2759_v63  ;;  %v3658_v26 = vadd.f32 %v3654_v33, %v1869_v56  ;;  %v2801_v63 = vadd.f32 %v2800_v51, %v2799_v50  ;;  %v2690_v50 = vadd.f32 %v2689_v18, %v2688_v41 }
 0x192   :  { %v2762_v0 = vpop.f32.mrf.mxu0  ;;  %v2802_v31 = vpop.f32.mrf.mxu1  ;;  %v2730_v51 = vadd.f32 %v2729_v6, %v2728_v61  ;;  %v3682_v1 = vadd.f32 %v3654_v33, %v2103_v40 }
 0x193   :  { %v1870_v19 = vadd.f32 %v2761_v59, %v3620_v34  ;;  %v2104_v56 = vadd.f32 %v2801_v63, %v1566_v30 }
 0x194   :  { %v2763_v14 = vpop.f32.mrf.mxu0  ;;  %v2803_v28 = vpop.f32.mrf.mxu1  ;;  %v1579_v18 = vadd.f32 %v2730_v51, %v2690_v50 }
 0x195   :  { %v3661_v46 = vadd.f32 %v3654_v33, %v1870_v19  ;;  %v2764_v60 = vadd.f32 %v2763_v14, %v2762_v0  ;;  %v2804_v32 = vadd.f32 %v2803_v28, %v2802_v31 }
 0x196   :  { %v2765_v52 = vpop.f32.mrf.mxu0  ;;  %v2805_v55 = vpop.f32.mrf.mxu1 }
 0x197   :  { %v2134_v34 = vadd.f32 %v3661_v46, %v3658_v26  ;;  %v1871_v23 = vadd.f32 %v2764_v60, %v3622_v42  ;;  %v2733_v42 = vadd.f32 %v2732_v10, %v2731_v36  ;;  %v2105_v2 = vadd.f32 %v2804_v32, %v1571_v5 }
 0x198   :  { %v2766_v49 = vpop.f32.mrf.mxu0  ;;  %v2806_v24 = vpop.f32.mrf.mxu1  ;;  %v2736_v60 = vadd.f32 %v3640_v29, %v3636_v38  ;;  %v2739_v38 = vadd.f32 %v3648_v3, %v3644_v53 }
 0x199   :  { %v3667_v25 = vadd.f32 %v3654_v33, %v1871_v23  ;;  %v2767_v44 = vadd.f32 %v2766_v49, %v2765_v52  ;;  %v2807_v59 = vadd.f32 %v2806_v24, %v2805_v55  ;;  %v3675_v55 = vadd.f32 %v3654_v33, %v2104_v56 }
 0x19a   :  { %v2768_v0 = vpop.f32.mrf.mxu0  ;;  %v2808_v43 = vpop.f32.mrf.mxu1  ;;  %v1582_v9 = vadd.f32 %v2733_v42, %v2693_v11  ;;  %v3685_v13 = vadd.f32 %v3654_v33, %v2105_v2  ;;  %v1587_v8 = vadd.f32 %v2736_v60, %v2696_v22 }
 0x19b   :  { %v2135_v15 = vadd.f32 %v2134_v34, %v3667_v25  ;;  %v1872_v39 = vadd.f32 %v2767_v44, %v3624_v12  ;;  %v2106_v6 = vadd.f32 %v2807_v59, %v1574_v27  ;;  %v1590_v59 = vadd.f32 %v2739_v38, %v2699_v35 }
 0x19c   :  { %v2769_v47 = vpop.f32.mrf.mxu0  ;;  %v2809_v31 = vpop.f32.mrf.mxu1 }
 0x19d   :  { %v3672_v19 = vadd.f32 %v3654_v33, %v1872_v39  ;;  %v2770_v41 = vadd.f32 %v2769_v47, %v2768_v0  ;;  %v2810_v61 = vadd.f32 %v2809_v31, %v2808_v43  ;;  %v3693_v58 = vadd.f32 %v3654_v33, %v2106_v6 }
 0x19e   :  { %v2771_v17 = vpop.f32.mrf.mxu0  ;;  %v2811_v36 = vpop.f32.mrf.mxu1 }
 0x19f   :  { %v2136_v12 = vadd.f32 %v2135_v15, %v3672_v19  ;;  %v1873_v10 = vadd.f32 %v2770_v41, %v3626_v37  ;;  %v2107_v14 = vadd.f32 %v2810_v61, %v1579_v18  ;;  %v2147_v37 = vadd.f32 %v3675_v55, %v3682_v1 }
 0x1a0   :  { %v2772_v28 = vpop.f32.mrf.mxu0  ;;  %v2812_v16 = vpop.f32.mrf.mxu1 }
 0x1a1   :  { %v2122_v63 = vadd.f32 %v3654_v33, %v1873_v10  ;;  %v2773_v52 = vadd.f32 %v2772_v28, %v2771_v17  ;;  %v2813_v30 = vadd.f32 %v2812_v16, %v2811_v36  ;;  %v2148_v29 = vadd.f32 %v2147_v37, %v3685_v13 }
 0x1a2   :  { %v2774_v45 = vpop.f32.mrf.mxu0  ;;  %v2814_v34 = vpop.f32.mrf.mxu1  ;;  %v3702_v32 = vadd.f32 %v3654_v33, %v2107_v14 }
 0x1a3   :  { %v2137_v23 = vadd.f32 %v2136_v12, %v2122_v63  ;;  %v1874_v62 = vadd.f32 %v2773_v52, %v3628_v4  ;;  %v2108_v21 = vadd.f32 %v2813_v30, %v1582_v9  ;;  %v2149_v4 = vadd.f32 %v2148_v29, %v3693_v58 }
 0x1a4   :  { %v2775_v49 = vpop.f32.mrf.mxu0  ;;  %v2815_v24 = vpop.f32.mrf.mxu1 }
 0x1a5   :  { %v2123_v5 = vadd.f32 %v3654_v33, %v1874_v62  ;;  %v2776_v44 = vadd.f32 %v2775_v49, %v2774_v45  ;;  %v2816_v50 = vadd.f32 %v2815_v24, %v2814_v34  ;;  %v2131_v7 = vadd.f32 %v3654_v33, %v2108_v21 }
 0x1a6   :  { %v2777_v51 = vpop.f32.mrf.mxu0  ;;  %v2817_v56 = vpop.f32.mrf.mxu1  ;;  %v2150_v0 = vadd.f32 %v2149_v4, %v3702_v32 }
 0x1a7   :  { %v2138_v57 = vadd.f32 %v2137_v23, %v2123_v5  ;;  %v1875_v53 = vadd.f32 %v2776_v44, %v3630_v54  ;;  %v2109_v3 = vadd.f32 %v2816_v50, %v1587_v8 }
 0x1a8   :  { %v2778_v43 = vpop.f32.mrf.mxu0  ;;  %v2818_v11 = vpop.f32.mrf.mxu1  ;;  %v2151_v40 = vadd.f32 %v2150_v0, %v2131_v7 }
 0x1a9   :  { %v2124_v42 = vadd.f32 %v3654_v33, %v1875_v53  ;;  %v2132_v15 = vadd.f32 %v3654_v33, %v2109_v3  ;;  %v2779_v39 = vadd.f32 %v2778_v43, %v2777_v51  ;;  %v2819_v27 = vadd.f32 %v2818_v11, %v2817_v56 }
 0x1ab   :  { %v2139_v2 = vadd.f32 %v2138_v57, %v2124_v42  ;;  %v1876_v47 = vadd.f32 %v2779_v39, %v3632_v20  ;;  %v2110_v31 = vadd.f32 %v2819_v27, %v1590_v59  ;;  %v2152_v41 = vadd.f32 %v2151_v40, %v2132_v15 }
 0x1ad   :  { %v2125_v54 = vadd.f32 %v3654_v33, %v1876_v47  ;;  %v2133_v61 = vadd.f32 %v3654_v33, %v2110_v31 }
 0x1af   :  { %v2140_v18 = vadd.f32 %v2139_v2, %v2125_v54  ;;  %v2153_v6 = vadd.f32 %v2152_v41, %v2133_v61 }
 0x1b1   :  { %v2141_v17 = vrot.slane %v2140_v18, 4  ;;  %v2154_v36 = vrot.slane %v2153_v6, 4 }
 0x1b3   :  { %v2142_v9 = vadd.f32 %v2141_v17, %v2140_v18  ;;  %v2155_v12 = vadd.f32 %v2154_v36, %v2153_v6 }
 0x1b5   :  { %v2143_v10 = vrot.slane %v2142_v9, 2  ;;  %v2156_v22 = vrot.slane %v2155_v12, 2 }
 0x1b7   :  { %v2144_v14 = vadd.f32 %v2143_v10, %v2142_v9  ;;  %v2157_v28 = vadd.f32 %v2156_v22, %v2155_v12 }
 0x1b9   :  { %v2145_v16 = vrot.slane %v2144_v14, 1  ;;  %v2158_v60 = vrot.slane %v2157_v28, 1 }
 0x1bb   :  { %v2146_v52 = vadd.f32 %v2145_v16, %v2144_v14  ;;  %v2159_v20 = vadd.f32 %v2158_v60, %v2157_v28 }
 0x1bd   :  { %v2160_v30 = vadd.f32 %v2159_v20, %v2146_v52 }
 0x1bf   :  { %v2162_v37 = vmul.f32 0.0078125, %v2160_v30  ;;  %v2223_v30 = vld [vmem:[%s3919_s6] sm:$0x1] }
 0x1c1   :  { %v3715_v45 = vsub.f32 %v3658_v26, %v2162_v37  ;;  %v3718_v33 = vsub.f32 %v3661_v46, %v2162_v37  ;;  %v3721_v34 = vsub.f32 %v3667_v25, %v2162_v37  ;;  %v3724_v23 = vsub.f32 %v3672_v19, %v2162_v37 }
 0x1c2   :  { %v3726_v62 = vsub.f32 %v2122_v63, %v2162_v37  ;;  %v3728_v21 = vsub.f32 %v2123_v5, %v2162_v37  ;;  %v3730_v35 = vsub.f32 %v2124_v42, %v2162_v37  ;;  %v3732_v38 = vsub.f32 %v2125_v54, %v2162_v37 }
 0x1c3   :  { %v3735_v26 = vsub.f32 %v3682_v1, %v2162_v37  ;;  %v3738_v46 = vsub.f32 %v3675_v55, %v2162_v37  ;;  %v3741_v25 = vsub.f32 %v3685_v13, %v2162_v37  ;;  %v2179_v19 = vmul.f32 %v3715_v45, %v3715_v45 }
 0x1c4   :  { %v2180_v63 = vmul.f32 %v3718_v33, %v3718_v33  ;;  %v3748_v29 = vsub.f32 %v3693_v58, %v2162_v37  ;;  %v2181_v49 = vmul.f32 %v3721_v34, %v3721_v34  ;;  %v3757_v24 = vsub.f32 %v3702_v32, %v2162_v37 }
 0x1c5   :  { %v2200_v55 = vmul.f32 %v3735_v26, %v3735_v26  ;;  %v2201_v13 = vmul.f32 %v3738_v46, %v3738_v46  ;;  %v2182_v8 = vmul.f32 %v3724_v23, %v3724_v23  ;;  %v2202_v58 = vmul.f32 %v3741_v25, %v3741_v25 }
 0x1c6   :  { %v2187_v1 = vadd.f32 %v2180_v63, %v2179_v19  ;;  %v3763_v50 = vsub.f32 %v2131_v7, %v2162_v37  ;;  %v2183_v4 = vmul.f32 %v3726_v62, %v3726_v62  ;;  %v2203_v56 = vmul.f32 %v3748_v29, %v3748_v29 }
 0x1c7   :  { %v2208_v44 = vadd.f32 %v2201_v13, %v2200_v55  ;;  %v2177_v32 = vsub.f32 %v2132_v15, %v2162_v37  ;;  %v2184_v53 = vmul.f32 %v3728_v21, %v3728_v21  ;;  %v2204_v59 = vmul.f32 %v3757_v24, %v3757_v24 }
 0x1c8   :  { %v2188_v5 = vadd.f32 %v2187_v1, %v2181_v49  ;;  %v2178_v43 = vsub.f32 %v2133_v61, %v2162_v37  ;;  %v2185_v7 = vmul.f32 %v3730_v35, %v3730_v35  ;;  %v2205_v42 = vmul.f32 %v3763_v50, %v3763_v50  ;;  %v2579_v1 = vld [vmem:[%s3920_s7] ss:$0 sm:$0xff] }
 0x1c9   :  { %v2209_v57 = vadd.f32 %v2208_v44, %v2202_v58  ;;  %v2186_v15 = vmul.f32 %v3732_v38, %v3732_v38  ;;  %v2206_v40 = vmul.f32 %v2177_v32, %v2177_v32  ;;  %v3925_v63 = vsub.s32 0, %v3166_v48 }
 0x1ca   :  { %v2189_v51 = vadd.f32 %v2188_v5, %v2182_v8  ;;  %v2207_v31 = vmul.f32 %v2178_v43, %v2178_v43 }
 0x1cb   :  { %v2210_v0 = vadd.f32 %v2209_v57, %v2203_v56 }
 0x1cc   :  { %v2190_v3 = vadd.f32 %v2189_v51, %v2183_v4 }
 0x1cd   :  { %v2211_v39 = vadd.f32 %v2210_v0, %v2204_v59 }
 0x1ce   :  { %v2191_v11 = vadd.f32 %v2190_v3, %v2184_v53 }
 0x1cf   :  { %v2212_v2 = vadd.f32 %v2211_v39, %v2205_v42 }
 0x1d0   :  { %v2192_v27 = vadd.f32 %v2191_v11, %v2185_v7 }
 0x1d1   :  { %v2213_v41 = vadd.f32 %v2212_v2, %v2206_v40 }
 0x1d2   :  { %v2193_v47 = vadd.f32 %v2192_v27, %v2186_v15 }
 0x1d3   :  { %v2214_v18 = vadd.f32 %v2213_v41, %v2207_v31 }
 0x1d4   :  { %v2194_v54 = vrot.slane %v2193_v47, 4 }
 0x1d5   :  { %v2215_v6 = vrot.slane %v2214_v18, 4 }
 0x1d6   :  { %v2195_v61 = vadd.f32 %v2194_v54, %v2193_v47 }
 0x1d7   :  { %v2216_v36 = vadd.f32 %v2215_v6, %v2214_v18 }
 0x1d8   :  { %v2196_v17 = vrot.slane %v2195_v61, 2 }
 0x1d9   :  { %v2217_v12 = vrot.slane %v2216_v36, 2 }
 0x1da   :  { %v2197_v9 = vadd.f32 %v2196_v17, %v2195_v61 }
 0x1db   :  { %v2218_v22 = vadd.f32 %v2217_v12, %v2216_v36 }
 0x1dc   :  { %v2198_v10 = vrot.slane %v2197_v9, 1 }
 0x1dd   :  { %v2219_v28 = vrot.slane %v2218_v22, 1 }
 0x1de   :  { %v2199_v14 = vadd.f32 %v2198_v10, %v2197_v9 }
 0x1df   :  { %v2220_v16 = vadd.f32 %v2219_v28, %v2218_v22 }
 0x1e1   :  { %v2221_v60 = vadd.f32 %v2220_v16, %v2199_v14 }
 0x1e3   :  { %v2222_v52 = vmul.f32 0.0078125, %v2221_v60 }
 0x1e5   :  { %v2224_v20 = vadd.f32 0.8, %v2222_v52 }
 0x1e7   :  { %2923 = vrsqrt.f32 %v2224_v20 }
 0x1f4   :  { %v2924_v37 = vpop.eup %2923 }
 0x1f5   :  { %v2226_v19 = vmul.f32 %v2924_v37, %v2223_v30 }
 0x1f7   :  { %v2231_v49 = vrot.slane %v2226_v19, %v3925_v63 }
 0x1f9   :  { %v2233_v55 = vmul.f32 %v2231_v49, %v3715_v45  ;;  %v2234_v13 = vmul.f32 %v2231_v49, %v3718_v33  ;;  %v2235_v8 = vmul.f32 %v2231_v49, %v3721_v34  ;;  %v2236_v5 = vmul.f32 %v2231_v49, %v3724_v23 }
 0x1fa   :  { %v2237_v58 = vmul.f32 %v2231_v49, %v3726_v62  ;;  %v2238_v44 = vmul.f32 %v2231_v49, %v3728_v21  ;;  %v2239_v4 = vmul.f32 %v2231_v49, %v3730_v35  ;;  %v2240_v48 = vmul.f32 %v2231_v49, %v3732_v38 }
 0x1fb   :  { %v2248_v51 = vadd.f32 %v2579_v1, %v2233_v55  ;;  %v2249_v56 = vadd.f32 %v2579_v1, %v2234_v13  ;;  %v2250_v57 = vadd.f32 %v2579_v1, %v2235_v8  ;;  %v2251_v53 = vadd.f32 %v2579_v1, %v2236_v5 }
 0x1fc   :  { %v2252_v3 = vadd.f32 %v2579_v1, %v2237_v58  ;;  %v2253_v45 = vadd.f32 %v2579_v1, %v2238_v44  ;;  %v2254_v59 = vadd.f32 %v2579_v1, %v2239_v4  ;;  %v2255_v33 = vadd.f32 %v2579_v1, %v2240_v48 }
 0x1fd   :  { %v2256_v34 = vmul.f32 %v2231_v49, %v3735_v26  ;;  %v2257_v23 = vmul.f32 %v2231_v49, %v3738_v46  ;;  %v2258_v62 = vmul.f32 %v2231_v49, %v3741_v25  ;;  %v2259_v21 = vmul.f32 %v2231_v49, %v3748_v29 }
 0x1fe   :  { %v2260_v35 = vmul.f32 %v2231_v49, %v3757_v24  ;;  %v2261_v38 = vmul.f32 %v2231_v49, %v3763_v50  ;;  %v2262_v0 = vmul.f32 %v2231_v49, %v2177_v32  ;;  %v2263_v7 = vmul.f32 %v2231_v49, %v2178_v43 }
 0x1ff   :  { %v2264_v11 = vadd.f32 %v2579_v1, %v2256_v34  ;;  %v2265_v42 = vadd.f32 %v2579_v1, %v2257_v23  ;;  %v2266_v39 = vadd.f32 %v2579_v1, %v2258_v62  ;;  %v2267_v15 = vadd.f32 %v2579_v1, %v2259_v21 }
 0x200   :  { %v2268_v27 = vadd.f32 %v2579_v1, %v2260_v35  ;;  %v2269_v40 = vadd.f32 %v2579_v1, %v2261_v38  ;;  %vm2272_vm8 = vcmp.gt.f32.partialorder %v2248_v51, 0.0  ;;  %vm2273_vm9 = vcmp.gt.f32.partialorder %v2249_v56, 0.0 }
 0x201   :  { %vm2274_vm10 = vcmp.gt.f32.partialorder %v2250_v57, 0.0  ;;  %vm2275_vm11 = vcmp.gt.f32.partialorder %v2251_v53, 0.0  ;;  %vm2276_vm12 = vcmp.gt.f32.partialorder %v2252_v3, 0.0  ;;  %vm2277_vm13 = vcmp.gt.f32.partialorder %v2253_v45, 0.0 }
 0x202   :  { %vm2278_vm14 = vcmp.gt.f32.partialorder %v2254_v59, 0.0  ;;  %vm2279_vm15 = vcmp.gt.f32.partialorder %v2255_v33, 0.0  ;;  %v2270_v26 = vadd.f32 %v2579_v1, %v2262_v0  ;;  %v2280_v46 = vmul.f32 0.2, %v2248_v51 }
 0x203   :  { %v2281_v25 = vmul.f32 0.2, %v2249_v56  ;;  %v2282_v29 = vmul.f32 0.2, %v2250_v57  ;;  %v2271_v24 = vadd.f32 %v2579_v1, %v2263_v7  ;;  %v2283_v50 = vmul.f32 0.2, %v2251_v53 }
 0x204   :  { %v2284_v32 = vmul.f32 0.2, %v2252_v3  ;;  %v2285_v43 = vmul.f32 0.2, %v2253_v45  ;;  %v2286_v2 = vmul.f32 0.2, %v2254_v59  ;;  %v2288_v31 = vsel %vm2272_vm8, %v2248_v51, %v2280_v46 }
 0x205   :  { %v2287_v47 = vmul.f32 0.2, %v2255_v33  ;;  %v2289_v41 = vsel %vm2273_vm9, %v2249_v56, %v2281_v25  ;;  %v2290_v54 = vsel %vm2274_vm10, %v2250_v57, %v2282_v29  ;;  %v2291_v18 = vsel %vm2275_vm11, %v2251_v53, %v2283_v50  ;;  %2344 = vst [vmem:[%s3921_s8] sm:$0xf] %v2288_v31 }
 0x206   :  { %v2292_v61 = vsel %vm2276_vm12, %v2252_v3, %v2284_v32  ;;  %v2293_v6 = vsel %vm2277_vm13, %v2253_v45, %v2285_v43  ;;  %2346 = vst [vmem:[%s3921_s8 + $0x10] sm:$0xf] %v2289_v41  ;;  %v2294_v17 = vsel %vm2278_vm14, %v2254_v59, %v2286_v2  ;;  %vm2296_vm0 = vcmp.gt.f32.partialorder %v2264_v11, 0.0  ;;  %2348 = vst [vmem:[%s3921_s8 + $0x20] sm:$0xf] %v2290_v54 }
 0x207   :  { %v2295_v36 = vsel %vm2279_vm15, %v2255_v33, %v2287_v47  ;;  %vm2297_vm1 = vcmp.gt.f32.partialorder %v2265_v42, 0.0  ;;  %2350 = vst [vmem:[%s3921_s8 + $0x30] sm:$0xf] %v2291_v18  ;;  %2352 = vst [vmem:[%s3921_s8 + $0x40] sm:$0xf] %v2292_v61  ;;  %vm2298_vm2 = vcmp.gt.f32.partialorder %v2266_v39, 0.0  ;;  %v2328_v28 = vcombine.high %v2288_v31, %v2288_v31 }
 0x208   :  { %2354 = vst [vmem:[%s3921_s8 + $0x50] sm:$0xf] %v2293_v6  ;;  %vm2299_vm3 = vcmp.gt.f32.partialorder %v2267_v15, 0.0  ;;  %vm2300_vm4 = vcmp.gt.f32.partialorder %v2268_v27, 0.0  ;;  %vm2301_vm5 = vcmp.gt.f32.partialorder %v2269_v40, 0.0  ;;  %vm2302_vm6 = vcmp.gt.f32.partialorder %v2270_v26, 0.0 }
 0x209   :  { %2356 = vst [vmem:[%s3921_s8 + $0x60] sm:$0xf] %v2294_v17  ;;  %2358 = vst [vmem:[%s3921_s8 + $0x70] sm:$0xf] %v2295_v36  ;;  %vm2303_vm7 = vcmp.gt.f32.partialorder %v2271_v24, 0.0  ;;  %v2329_v13 = vcombine.high %v2289_v41, %v2289_v41  ;;  %v2330_v8 = vcombine.high %v2290_v54, %v2290_v54  ;;  %v2331_v5 = vcombine.high %v2291_v18, %v2291_v18 }
 0x20a   :  { %v2304_v9 = vmul.f32 0.2, %v2264_v11  ;;  %v2305_v12 = vmul.f32 0.2, %v2265_v42  ;;  %v2306_v10 = vmul.f32 0.2, %v2266_v39  ;;  %v2332_v58 = vcombine.high %v2292_v61, %v2292_v61 }
 0x20b   :  { %v2307_v22 = vmul.f32 0.2, %v2267_v15  ;;  %v2308_v14 = vmul.f32 0.2, %v2268_v27  ;;  %v2309_v16 = vmul.f32 0.2, %v2269_v40  ;;  %v2333_v44 = vcombine.high %v2293_v6, %v2293_v6 }
 0x20c   :  { %v2310_v60 = vmul.f32 0.2, %v2270_v26  ;;  %v2311_v52 = vmul.f32 0.2, %v2271_v24  ;;  %v2312_v20 = vsel %vm2296_vm0, %v2264_v11, %v2304_v9  ;;  %v2313_v30 = vsel %vm2297_vm1, %v2265_v42, %v2305_v12  ;;  %2345 = vst [vmem:[%s3921_s8 + $0x8] sm:$0xf] %v2328_v28 }
 0x20d   :  { %v2314_v37 = vsel %vm2298_vm2, %v2266_v39, %v2306_v10  ;;  %v2315_v19 = vsel %vm2299_vm3, %v2267_v15, %v2307_v22  ;;  %v2316_v63 = vsel %vm2300_vm4, %v2268_v27, %v2308_v14  ;;  %2384 = vst [vmem:[%s3921_s8 + $0x4] sm:$0xf] %v2312_v20  ;;  %v2317_v49 = vsel %vm2301_vm5, %v2269_v40, %v2309_v16 }
 0x20e   :  { %v2318_v1 = vsel %vm2302_vm6, %v2270_v26, %v2310_v60  ;;  %v2319_v55 = vsel %vm2303_vm7, %v2271_v24, %v2311_v52  ;;  %2386 = vst [vmem:[%s3921_s8 + $0x14] sm:$0xf] %v2313_v30  ;;  %2388 = vst [vmem:[%s3921_s8 + $0x24] sm:$0xf] %v2314_v37  ;;  %v2334_v4 = vcombine.high %v2294_v17, %v2294_v17 }
 0x20f   :  { %2390 = vst [vmem:[%s3921_s8 + $0x34] sm:$0xf] %v2315_v19  ;;  %2392 = vst [vmem:[%s3921_s8 + $0x44] sm:$0xf] %v2316_v63  ;;  %v2335_v48 = vcombine.high %v2295_v36, %v2295_v36  ;;  %v2368_v51 = vcombine.high %v2312_v20, %v2312_v20  ;;  %v2369_v56 = vcombine.high %v2313_v30, %v2313_v30 }
 0x210   :  { %2394 = vst [vmem:[%s3921_s8 + $0x54] sm:$0xf] %v2317_v49  ;;  %2396 = vst [vmem:[%s3921_s8 + $0x64] sm:$0xf] %v2318_v1  ;;  %v2370_v57 = vcombine.high %v2314_v37, %v2314_v37  ;;  %v2371_v53 = vcombine.high %v2315_v19, %v2315_v19  ;;  %v2372_v3 = vcombine.high %v2316_v63, %v2316_v63 }
 0x211   :  { %2398 = vst [vmem:[%s3921_s8 + $0x74] sm:$0xf] %v2319_v55  ;;  %2347 = vst [vmem:[%s3921_s8 + $0x18] sm:$0xf] %v2329_v13  ;;  %v2373_v45 = vcombine.high %v2317_v49, %v2317_v49  ;;  %v2374_v59 = vcombine.high %v2318_v1, %v2318_v1  ;;  %v2375_v33 = vcombine.high %v2319_v55, %v2319_v55 }
 0x212   :  { %2349 = vst [vmem:[%s3921_s8 + $0x28] sm:$0xf] %v2330_v8  ;;  %2351 = vst [vmem:[%s3921_s8 + $0x38] sm:$0xf] %v2331_v5 }
 0x213   :  { %2353 = vst [vmem:[%s3921_s8 + $0x48] sm:$0xf] %v2332_v58  ;;  %2355 = vst [vmem:[%s3921_s8 + $0x58] sm:$0xf] %v2333_v44 }
 0x214   :  { %2357 = vst [vmem:[%s3921_s8 + $0x68] sm:$0xf] %v2334_v4  ;;  %2359 = vst [vmem:[%s3921_s8 + $0x78] sm:$0xf] %v2335_v48 }
 0x215   :  { %2385 = vst [vmem:[%s3921_s8 + $0xc] sm:$0xf] %v2368_v51  ;;  %2387 = vst [vmem:[%s3921_s8 + $0x1c] sm:$0xf] %v2369_v56 }
 0x216   :  { %2389 = vst [vmem:[%s3921_s8 + $0x2c] sm:$0xf] %v2370_v57  ;;  %2391 = vst [vmem:[%s3921_s8 + $0x3c] sm:$0xf] %v2371_v53 }
 0x217   :  { %2393 = vst [vmem:[%s3921_s8 + $0x4c] sm:$0xf] %v2372_v3  ;;  %2395 = vst [vmem:[%s3921_s8 + $0x5c] sm:$0xf] %v2373_v45 }
 0x218   :  { %2397 = vst [vmem:[%s3921_s8 + $0x6c] sm:$0xf] %v2374_v59  ;;  %2399 = vst [vmem:[%s3921_s8 + $0x7c] sm:$0xf] %v2375_v33 }
 0x219   :  { %2404 = vsyncpa [#allocation4], 1 }

// kernel: generator_forward.6
= control target key start
LH: loop header
LB: loop body
LE: loop exit
PB: predicated region body
PF: predicated region fallthrough
CT: control target
= control target key end

     0   :  { %v5295_v1 = vmov 0.0   ;;  %vm177_vm0 = vcmask 1046528   ;;  %vm574_vm1 = vsmask.f32 3328  ;;  %vm575_vm2 = vsmask.f32 7440  ;;  %s7969_s1 = inlined_call_operand.vmem [shape: bf16[3,256,64], index: 1, kind: input, shape index: {}]   ;;  %s7970_s0 = inlined_call_operand.vmem [shape: f32[2,8,8,128], index: 0, kind: input, shape index: {}]   ;;  %s7971_s2 = inlined_call_operand.vmem [shape: bf16[3,256,64], index: 2, kind: input, shape index: {}]   ;;  %s7972_s3 = inlined_call_operand.vmem [shape: f32[1,64], index: 3, kind: input, shape index: {}]   ;;  %s7973_s4 = inlined_call_operand.vmem [shape: f32[1,64], index: 4, kind: input, shape index: {}]   ;;  %s7974_s5 = inlined_call_operand.vmem [shape: f32[1,64], index: 5, kind: input, shape index: {}]   ;;  %s7975_s6 = inlined_call_operand.vmem [shape: f32[2,16,8,128], index: 6, kind: output, shape index: {}]  }
   0x1   :  { %v5193_v0 = vld [vmem:[%s7969_s1 + $0xf8] sm:$0xff]   ;;  %42 = vst [vmem:[#allocation2 + $0x10] sm:$0xff] %v5295_v1  ;;  %43 = vst [vmem:[#allocation2 + $0x18] sm:$0x3] %v5295_v1  ;;  %v5197_v5 = vld [vmem:[%s7969_s1 + $0xf0] sm:$0xff]   ;;  %v5480_v40 = vrot.slane %v5295_v1, 1 }
   0x2   :  { %40 = vst [vmem:[#allocation2] sm:$0xff] %v5295_v1  ;;  %41 = vst [vmem:[#allocation2 + $0x8] sm:$0x3] %v5295_v1  ;;  %v5194_v2 = vld [vmem:[%s7969_s1 + $0x78] sm:$0xff]   ;;  %4519 = vmatprep.subr.bf16.mxu0 %v5193_v0  ;;  %v5198_v6 = vld [vmem:[%s7969_s1 + $0x70] sm:$0xff]   ;;  %vm3066_vm4 = vcmask 523264  }
   0x3   :  { %44 = vst [vmem:[#allocation2 + $0x20] sm:$0xff] %v5295_v1  ;;  %45 = vst [vmem:[#allocation2 + $0x28] sm:$0x3] %v5295_v1  ;;  %v5195_v3 = vld [vmem:[%s7969_s1 + $0xb8] sm:$0xff]   ;;  %4631 = vmatprep.subr.bf16.mxu1 %v5194_v2  ;;  %v5199_v7 = vld [vmem:[%s7969_s1 + $0xb0] sm:$0xff]  }
   0x4   :  { %46 = vst [vmem:[#allocation2 + $0x30] sm:$0xff] %v5295_v1  ;;  %47 = vst [vmem:[#allocation2 + $0x38] sm:$0x3] %v5295_v1  ;;  %v5196_v4 = vld [vmem:[%s7969_s1 + $0x38] sm:$0xff]   ;;  %4520 = vmatpush3.bf16.msra.mxu0 %v5195_v3  ;;  %v5200_v8 = vld [vmem:[%s7969_s1 + $0x30] sm:$0xff]  }
   0x5   :  { %48 = vst [vmem:[#allocation2 + $0x40] sm:$0xff] %v5295_v1  ;;  %49 = vst [vmem:[#allocation2 + $0x48] sm:$0x3] %v5295_v1  ;;  %4632 = vmatpush3.bf16.msra.mxu1 %v5196_v4  ;;  %4521 = vmatprep.subr.bf16.mxu0 %v5197_v5  ;;  %v5201_v9 = vld [vmem:[%s7969_s1 + $0xe8] sm:$0xff]   ;;  %v5205_v13 = vld [vmem:[%s7969_s1 + $0xe0] sm:$0xff]  }
   0x6   :  { %50 = vst [vmem:[#allocation2 + $0x50] sm:$0xff] %v5295_v1  ;;  %51 = vst [vmem:[#allocation2 + $0x58] sm:$0x3] %v5295_v1  ;;  %4633 = vmatprep.subr.bf16.mxu1 %v5198_v6  ;;  %v5202_v10 = vld [vmem:[%s7969_s1 + $0x68] sm:$0xff]   ;;  %v5206_v14 = vld [vmem:[%s7969_s1 + $0x60] sm:$0xff]  }
   0x7   :  { %52 = vst [vmem:[#allocation2 + $0x60] sm:$0xff] %v5295_v1  ;;  %53 = vst [vmem:[#allocation2 + $0x68] sm:$0x3] %v5295_v1  ;;  %v5203_v11 = vld [vmem:[%s7969_s1 + $0xa8] sm:$0xff]   ;;  %v5207_v15 = vld [vmem:[%s7969_s1 + $0xa0] sm:$0xff]  }
   0x8   :  { %54 = vst [vmem:[#allocation2 + $0x70] sm:$0xff] %v5295_v1  ;;  %55 = vst [vmem:[#allocation2 + $0x78] sm:$0x3] %v5295_v1  ;;  %4522 = vmatpush3.bf16.msra.mxu0 %v5199_v7  ;;  %v5204_v12 = vld [vmem:[%s7969_s1 + $0x28] sm:$0xff]   ;;  %v5208_v16 = vld [vmem:[%s7969_s1 + $0x20] sm:$0xff]  }
   0x9   :  { %56 = vst [vmem:[#allocation2 + $0x80] sm:$0xff] %v5295_v1  ;;  %57 = vst [vmem:[#allocation2 + $0x88] sm:$0x3] %v5295_v1  ;;  %4634 = vmatpush3.bf16.msra.mxu1 %v5200_v8  ;;  %4523 = vmatprep.subr.bf16.mxu0 %v5201_v9  ;;  %v5209_v17 = vld [vmem:[%s7969_s1 + $0xd8] sm:$0xff]   ;;  %v5213_v21 = vld [vmem:[%s7969_s1 + $0xd0] sm:$0xff]  }
   0xa   :  { %59 = vst [vmem:[#allocation2 + $0x98] sm:$0x3] %v5295_v1  ;;  %61 = vst [vmem:[#allocation2 + $0xa8] sm:$0x3] %v5295_v1  ;;  %4635 = vmatprep.subr.bf16.mxu1 %v5202_v10  ;;  %v5210_v18 = vld [vmem:[%s7969_s1 + $0x58] sm:$0xff]   ;;  %v5214_v22 = vld [vmem:[%s7969_s1 + $0x50] sm:$0xff]  }
   0xb   :  { %62 = vst [vmem:[#allocation2 + $0xb0] sm:$0xff] %v5295_v1  ;;  %63 = vst [vmem:[#allocation2 + $0xb8] sm:$0x3] %v5295_v1  ;;  %v5211_v19 = vld [vmem:[%s7969_s1 + $0x98] sm:$0xff]   ;;  %v5215_v23 = vld [vmem:[%s7969_s1 + $0x90] sm:$0xff]  }
   0xc   :  { %64 = vst [vmem:[#allocation2 + $0xc0] sm:$0xff] %v5295_v1  ;;  %65 = vst [vmem:[#allocation2 + $0xc8] sm:$0x3] %v5295_v1  ;;  %4524 = vmatpush3.bf16.msra.mxu0 %v5203_v11  ;;  %v5212_v20 = vld [vmem:[%s7969_s1 + $0x18] sm:$0xff]   ;;  %v5216_v24 = vld [vmem:[%s7969_s1 + $0x10] sm:$0xff]  }
   0xd   :  { %66 = vst [vmem:[#allocation2 + $0xd0] sm:$0xff] %v5295_v1  ;;  %67 = vst [vmem:[#allocation2 + $0xd8] sm:$0x3] %v5295_v1  ;;  %4636 = vmatpush3.bf16.msra.mxu1 %v5204_v12  ;;  %4525 = vmatprep.subr.bf16.mxu0 %v5205_v13  ;;  %v5217_v25 = vld [vmem:[%s7969_s1 + $0xc8] sm:$0xff]   ;;  %v5221_v29 = vld [vmem:[%s7969_s1 + $0xc0] sm:$0xff]  }
   0xe   :  { %68 = vst [vmem:[#allocation2 + $0xe0] sm:$0xff] %v5295_v1  ;;  %69 = vst [vmem:[#allocation2 + $0xe8] sm:$0x3] %v5295_v1  ;;  %4637 = vmatprep.subr.bf16.mxu1 %v5206_v14  ;;  %v5218_v26 = vld [vmem:[%s7969_s1 + $0x48] sm:$0xff]   ;;  %v5222_v30 = vld [vmem:[%s7969_s1 + $0x40] sm:$0xff]  }
   0xf   :  { %70 = vst [vmem:[#allocation2 + $0xf0] sm:$0xff] %v5295_v1  ;;  %71 = vst [vmem:[#allocation2 + $0xf8] sm:$0x3] %v5295_v1  ;;  %v5219_v27 = vld [vmem:[%s7969_s1 + $0x88] sm:$0xff]   ;;  %v5223_v31 = vld [vmem:[%s7969_s1 + $0x80] sm:$0xff]  }
  0x10   :  { %72 = vst [vmem:[#allocation2 + $0x100] sm:$0xff] %v5295_v1  ;;  %73 = vst [vmem:[#allocation2 + $0x108] sm:$0x3] %v5295_v1  ;;  %4526 = vmatpush3.bf16.msra.mxu0 %v5207_v15  ;;  %v5220_v28 = vld [vmem:[%s7969_s1 + $0x8] sm:$0xff]   ;;  %v5224_v32 = vld [vmem:[%s7969_s1] sm:$0xff]  }
  0x11   :  { %74 = vst [vmem:[#allocation2 + $0x110] sm:$0xff] %v5295_v1  ;;  %75 = vst [vmem:[#allocation2 + $0x118] sm:$0x3] %v5295_v1  ;;  %4638 = vmatpush3.bf16.msra.mxu1 %v5208_v16  ;;  %4527 = vmatprep.subr.bf16.mxu0 %v5209_v17  ;;  %v24_v33 = vld [vmem:[%s7970_s0] sm:$0xff]  ;;  %v98_v34 = vld [vmem:[#allocation2 + $0x8] sm:$0x3] }
  0x12   :  { %76 = vst [vmem:[#allocation2 + $0x120] sm:$0xff] %v5295_v1  ;;  %77 = vst [vmem:[#allocation2 + $0x128] sm:$0x3] %v5295_v1  ;;  %4639 = vmatprep.subr.bf16.mxu1 %v5210_v18  ;;  %v179_v35 = vrot.slane %v98_v34, 1  ;;  %v5225_v36 = vld [vmem:[%s7971_s2 + $0xf8] sm:$0xff]   ;;  %v25_v39 = vld [vmem:[%s7970_s0 + $0x8] sm:$0xff] }
  0x13   :  { %79 = vst [vmem:[#allocation2 + $0x138] sm:$0x3] %v5295_v1  ;;  %81 = vst [vmem:[#allocation2 + $0x11] sm:$0xff] %v24_v33  ;;  %v5226_v37 = vld [vmem:[%s7971_s2 + $0x78] sm:$0xff]   ;;  %v26_v41 = vld [vmem:[%s7970_s0 + $0x10] sm:$0xff] }
  0x14   :  { %4528 = vmatpush3.bf16.msra.mxu0 %v5211_v19  ;;  %v5474_v38 = vpack.c.bf16 %v179_v35, %v98_v34  ;;  %82 = vst [vmem:[#allocation2 + $0x21] sm:$0xff] %v25_v39  ;;  %83 = vst [vmem:[#allocation2 + $0x31] sm:$0xff] %v26_v41  ;;  %v5487_v46 = vsel %vm177_vm0, %v5480_v40, %v179_v35  ;;  %v5227_v47 = vld [vmem:[%s7971_s2 + $0xb8] sm:$0xff]   ;;  %v28_v50 = vld [vmem:[%s7970_s0 + $0x20] sm:$0xff] }
  0x15   :  { %4640 = vmatpush3.bf16.msra.mxu1 %v5212_v20  ;;  %4529 = vmatprep.subr.bf16.mxu0 %v5213_v21  ;;  %v5228_v48 = vld [vmem:[%s7971_s2 + $0x38] sm:$0xff]   ;;  %v5229_v55 = vld [vmem:[%s7971_s2 + $0xf0] sm:$0xff]   ;;  %85 = vst [vmem:[#allocation2 + $0x51] sm:$0xff] %v28_v50  ;;  %v5233_v11 = vld [vmem:[%s7971_s2 + $0xe8] sm:$0xff]  }
  0x16   :  { %4641 = vmatprep.subr.bf16.mxu1 %v5214_v22  ;;  %v27_v49 = vld [vmem:[%s7970_s0 + $0x18] sm:$0xff]  ;;  %v5230_v2 = vld [vmem:[%s7971_s2 + $0x70] sm:$0xff]   ;;  %v5234_v12 = vld [vmem:[%s7971_s2 + $0x68] sm:$0xff]  }
  0x17   :  { %84 = vst [vmem:[#allocation2 + $0x41] sm:$0xff] %v27_v49  ;;  %v5231_v4 = vld [vmem:[%s7971_s2 + $0xb0] sm:$0xff]   ;;  %v29_v16 = vld [vmem:[%s7970_s0 + $0x28] sm:$0xff]  ;;  %v5238_v33 = vld [vmem:[%s7971_s2 + $0x60] sm:$0xff]  }
  0x18   :  { %4530 = vmatpush3.bf16.msra.mxu0 %v5215_v23  ;;  %v5232_v8 = vld [vmem:[%s7971_s2 + $0x30] sm:$0xff]   ;;  %86 = vst [vmem:[#allocation2 + $0x61] sm:$0xff] %v29_v16  ;;  %v5239_v41 = vld [vmem:[%s7971_s2 + $0xa0] sm:$0xff]   ;;  %vm5980_vm3 = vmor %vm574_vm1, %vm575_vm2 }
  0x19   :  { %4642 = vmatpush3.bf16.msra.mxu1 %v5216_v24  ;;  %4531 = vmatprep.subr.bf16.mxu0 %v5217_v25  ;;  %v30_v17 = vld [vmem:[%s7970_s0 + $0x30] sm:$0xff]  ;;  %v32_v50 = vld [vmem:[%s7970_s0 + $0x40] sm:$0xff] }
  0x1a   :  { %4643 = vmatprep.subr.bf16.mxu1 %v5218_v26  ;;  %v99_v42 = vld [vmem:[#allocation2 + $0x10] sm:$0xff]  ;;  %v100_v43 = vld [vmem:[#allocation2 + $0x18] sm:$0x3]  ;;  %87 = vst [vmem:[#allocation2 + $0x71] sm:$0xff] %v30_v17  ;;  %89 = vst [vmem:[#allocation2 + $0xb1] sm:$0xff] %v32_v50 }
  0x1b   :  { %v181_v44 = vrot.slane %v99_v42, 1  ;;  %v182_v45 = vrot.slane %v100_v43, 1  ;;  %v4447_v53 = vpack.c.bf16 %v99_v42, %v99_v42  ;;  %v4479_v54 = vpack.c.bf16 %v99_v42, %v5295_v1  ;;  %v5511_v59 = vld [vmem:[#allocation2 + $0x20] sm:$0xff]  ;;  %v102_v60 = vld [vmem:[#allocation2 + $0x28] sm:$0x3]  ;;  %v5514_v63 = vld [vmem:[#allocation2 + $0x30] sm:$0xff] }
  0x1c   :  { %4532 = vmatpush3.bf16.msra.mxu0 %v5219_v27  ;;  %v184_v61 = vrot.slane %v5511_v59, 1  ;;  %v185_v62 = vrot.slane %v102_v60, 1  ;;  %v104_v0 = vld [vmem:[#allocation2 + $0x38] sm:$0x3]  ;;  %v187_v3 = vrot.slane %v5514_v63, 1  ;;  %v4449_v19 = vpack.c.bf16 %v5511_v59, %v5511_v59  ;;  %v5562_v25 = vld [vmem:[#allocation2 + $0x50] sm:$0xff] }
  0x1d   :  { %4644 = vmatpush3.bf16.msra.mxu1 %v5220_v28  ;;  %4533 = vmatprep.subr.bf16.mxu0 %v5221_v29  ;;  %v183_v51 = vsel %vm177_vm0, %v181_v44, %v182_v45  ;;  %v5502_v52 = vpack.c.bf16 %v182_v45, %v100_v43  ;;  %v188_v7 = vrot.slane %v104_v0, 1  ;;  %v5556_v20 = vpack.c.bf16 %v5511_v59, %v99_v42  ;;  %v108_v26 = vld [vmem:[#allocation2 + $0x58] sm:$0x3]  ;;  %v5235_v27 = vld [vmem:[%s7971_s2 + $0xa8] sm:$0xff]  }
  0x1e   :  { %4645 = vmatprep.subr.bf16.mxu1 %v5222_v30  ;;  %v5508_v56 = vpack.c.bf16 %v183_v51, %v99_v42  ;;  %v4448_v57 = vpack.c.bf16 %v183_v51, %v183_v51  ;;  %v4480_v58 = vpack.c.bf16 %v183_v51, %v5487_v46  ;;  %v186_v5 = vsel %vm177_vm0, %v184_v61, %v185_v62  ;;  %v5558_v21 = vld [vmem:[#allocation2 + $0x40] sm:$0xff]  ;;  %v106_v22 = vld [vmem:[#allocation2 + $0x48] sm:$0x3]  ;;  %v31_v44 = vld [vmem:[%s7970_s0 + $0x38] sm:$0xff] }
  0x1f   :  { %v5524_v6 = vpack.c.bf16 %v185_v62, %v102_v60  ;;  %v5530_v9 = vpack.c.bf16 %v186_v5, %v5511_v59  ;;  %v4450_v10 = vpack.c.bf16 %v186_v5, %v186_v5  ;;  %v5538_v13 = vpack.c.bf16 %v186_v5, %v183_v51  ;;  %8046 = vst [vmem:[#allocation4_spill] sm:$0xff] %v5556_v20  ;;  %v5236_v30 = vld [vmem:[%s7971_s2 + $0x28] sm:$0xff]   ;;  %v5242_v60 = vld [vmem:[%s7971_s2 + $0x58] sm:$0xff]  }
  0x20   :  { %4534 = vmatpush3.bf16.msra.mxu0 %v5223_v31  ;;  %1118 = vmatprep.mubr.bf16.mxu0 %v4448_v57  ;;  %v189_v14 = vsel %vm177_vm0, %v187_v3, %v188_v7  ;;  %v5541_v15 = vpack.c.bf16 %v188_v7, %v104_v0  ;;  %v190_v28 = vrot.slane %v5558_v21, 1  ;;  %v191_v29 = vrot.slane %v106_v22, 1  ;;  %v5237_v31 = vld [vmem:[%s7971_s2 + $0xe0] sm:$0xff]   ;;  %v110_v49 = vld [vmem:[#allocation2 + $0x68] sm:$0x3]  ;;  %88 = vst [vmem:[#allocation2 + $0x81] sm:$0xff] %v31_v44 }
  0x21   :  { %4646 = vmatpush3.bf16.msra.mxu1 %v5224_v32  ;;  %4743 = vmatprep.subr.bf16.mxu0 %v5225_v36  ;;  %8045 = vst [vmem:[#allocation3_spill] sm:$0xff] %v5538_v13  ;;  %v5550_v18 = vpack.c.bf16 %v189_v14, %v5514_v63  ;;  %v4452_v23 = vpack.c.bf16 %v189_v14, %v189_v14  ;;  %v193_v32 = vrot.slane %v5562_v25, 1  ;;  %v194_v36 = vrot.slane %v108_v26, 1  ;;  %v112_v3 = vld [vmem:[#allocation2 + $0x78] sm:$0x3]  ;;  %v5247_v44 = vld [vmem:[%s7971_s2 + $0x90] sm:$0xff]  }
  0x22   :  { %4855 = vmatprep.subr.bf16.mxu1 %v5226_v37  ;;  %1439 = vmatprep.mubr.bf16.mxu1 %v4480_v58  ;;  %v5560_v24 = vpack.c.bf16 %v189_v14, %v186_v5  ;;  %v5581_v34 = vsel %vm177_vm0, %v190_v28, %v191_v29  ;;  %v5583_v35 = vpack.c.bf16 %v191_v29, %v106_v22  ;;  %v5626_v58 = vld [vmem:[#allocation2 + $0x70] sm:$0xff]  ;;  %v595_v61 = vshll.u32 %v5508_v56, 16  ;;  %v5244_v7 = vld [vmem:[%s7971_s2 + $0x18] sm:$0xff]  }
  0x23   :  { %1119 = vmatmul.mubr.bf16.vlgmr.msra.gmra.mxu0 %v4447_v53  ;;  %v4411_v37 = vpack.c.bf16 %v5487_v46, %v5295_v1  ;;  %v5589_v39 = vpack.c.bf16 %v5581_v34, %v5558_v21  ;;  %v5595_v42 = vsel %vm177_vm0, %v193_v32, %v194_v36  ;;  %v5597_v43 = vpack.c.bf16 %v194_v36, %v108_v26  ;;  %v5240_v1 = vld [vmem:[%s7971_s2 + $0x20] sm:$0xff]  }
  0x24   :  { %1440 = vmatmul.mubr.bf16.vlgmr.msra.gmra.mxu1 %v4479_v54  ;;  %4744 = vmatpush3.bf16.msra.mxu0 %v5227_v47  ;;  %8047 = vst [vmem:[#allocation5_spill] sm:$0xff] %v5560_v24  ;;  %v4451_v45 = vpack.c.bf16 %v5514_v63, %v5514_v63  ;;  %v5609_v46 = vpack.c.bf16 %v5514_v63, %v5511_v59  ;;  %v592_v54 = vshrl.u32 %v5508_v56, 16  ;;  %v5241_v59 = vld [vmem:[%s7971_s2 + $0xd8] sm:$0xff]   ;;  %v197_v0 = vrot.slane %v110_v49, 1 }
  0x25   :  { %4856 = vmatpush3.bf16.msra.mxu1 %v5228_v48  ;;  %4745 = vmatprep.subr.bf16.mxu0 %v5229_v55  ;;  %v5613_v47 = vpack.c.bf16 %v5595_v42, %v5562_v25  ;;  %v5615_v48 = vld [vmem:[#allocation2 + $0x60] sm:$0xff]  ;;  %v4454_v51 = vpack.c.bf16 %v5581_v34, %v5581_v34  ;;  %v5623_v53 = vpack.c.bf16 %v5581_v34, %v189_v14  ;;  %v578_v55 = vshrl.u32 %v4411_v37, 16  ;;  %v34_v14 = vld [vmem:[%s7970_s0 + $0x50] sm:$0xff] }
  0x26   :  { %4857 = vmatprep.subr.bf16.mxu1 %v5230_v2  ;;  %1126 = vmatprep.mubr.bf16.mxu0 %v4450_v10  ;;  %8048 = vst [vmem:[#allocation6_spill] sm:$0xff] %v5609_v46  ;;  %v581_v57 = vshll.u32 %v4411_v37, 16  ;;  %v196_v62 = vrot.slane %v5615_v48, 1  ;;  %v5243_v2 = vld [vmem:[%s7971_s2 + $0x98] sm:$0xff]   ;;  %v5644_v5 = vpack.c.bf16 %v197_v0, %v110_v49  ;;  %v199_v56 = vrot.slane %v5626_v58, 1  ;;  %91 = vst [vmem:[#allocation2 + $0xd1] sm:$0xff] %v34_v14 }
  0x27   :  { %1447 = vmatprep.mubr.bf16.mxu1 %v5538_v13  ;;  %8049 = vst [vmem:[#allocation7_spill] sm:$0xff] %v5623_v53  ;;  %v594_v16 = vrot.slane %v592_v54, 4  ;;  %v601_v17 = vshll.u32 %v5502_v52, 16  ;;  %v200_v22 = vrot.slane %v112_v3, 1  ;;  %v597_v26 = vrot.slane %v595_v61, 5  ;;  %v5690_v37 = vld [vmem:[#allocation2 + $0xb0] sm:$0xff] }
  0x28   :  { %4746 = vmatpush3.bf16.msra.mxu0 %v5231_v4  ;;  %v5642_v4 = vsel %vm177_vm0, %v196_v62, %v197_v0  ;;  %v583_v10 = vrot.slane %v581_v57, 5  ;;  %v4453_v28 = vpack.c.bf16 %v5558_v21, %v5558_v21  ;;  %v5670_v52 = vpack.c.bf16 %v5558_v21, %v5514_v63  ;;  %v35_v54 = vld [vmem:[%s7970_s0 + $0x58] sm:$0xff] }
  0x29   :  { %4858 = vmatpush3.bf16.msra.mxu1 %v5232_v8  ;;  %4747 = vmatprep.subr.bf16.mxu0 %v5233_v11  ;;  %v580_v8 = vrot.slane %v578_v55, 4  ;;  %v5652_v11 = vpack.c.bf16 %v5642_v4, %v5615_v48  ;;  %v4456_v29 = vpack.c.bf16 %v5595_v42, %v5595_v42  ;;  %v5683_v32 = vpack.c.bf16 %v200_v22, %v112_v3  ;;  %v36_v3 = vld [vmem:[%s7970_s0 + $0x60] sm:$0xff] }
  0x2a   :  { %4859 = vmatprep.subr.bf16.mxu1 %v5234_v12  ;;  %v33_v12 = vld [vmem:[%s7970_s0 + $0x48] sm:$0xff]  ;;  %8050 = vst [vmem:[#allocation8_spill] sm:$0xff] %v5670_v52  ;;  %v609_v36 = vshll.u32 %v5530_v9, 16  ;;  %v211_v50 = vrot.slane %v5690_v37, 1  ;;  %92 = vst [vmem:[#allocation2 + $0xe1] sm:$0xff] %v35_v54  ;;  %v5719_v61 = vrot.slane %v601_v17, 5  ;;  %v4458_v14 = vpack.c.bf16 %v5642_v4, %v5642_v4 }
  0x2b   :  { %1127 = vmatmul.mubr.bf16.gmra.mxu0 %v4449_v19  ;;  %v587_v19 = vshll.u32 %v5474_v38, 16  ;;  %90 = vst [vmem:[#allocation2 + $0xc1] sm:$0xff] %v33_v12  ;;  %v5672_v38 = vld [vmem:[#allocation2 + $0x88] sm:$0x3]  ;;  %v623_v0 = vshll.u32 %v5550_v18, 16  ;;  %93 = vst [vmem:[#allocation2 + $0xf1] sm:$0xff] %v36_v3 }
  0x2c   :  { %1448 = vmatmul.mubr.bf16.gmra.mxu1 %v5556_v20  ;;  %1134 = vmatprep.mubr.bf16.mxu0 %v4452_v23  ;;  %v5245_v23 = vld [vmem:[%s7971_s2 + $0xd0] sm:$0xff]  }
  0x2d   :  { %1455 = vmatprep.mubr.bf16.mxu1 %v5560_v24  ;;  %4748 = vmatpush3.bf16.msra.mxu0 %v5235_v27  ;;  %v606_v27 = vshrl.u32 %v5530_v9, 16  ;;  %v120_v9 = vld [vmem:[#allocation2 + $0xb8] sm:$0x3]  ;;  %v5701_v49 = vrot.slane %v587_v19, 5 }
  0x2e   :  { %4860 = vmatpush3.bf16.msra.mxu1 %v5236_v30  ;;  %4749 = vmatprep.subr.bf16.mxu0 %v5237_v31  ;;  %v5678_v30 = vpack.c.bf16 %v5595_v42, %v5581_v34  ;;  %v5681_v31 = vsel %vm177_vm0, %v199_v56, %v200_v22  ;;  %v7976_v34 = vrot.slane %v5672_v38, 1  ;;  %v124_v54 = vld [vmem:[#allocation2 + $0xd8] sm:$0x3] }
  0x2f   :  { %4861 = vmatprep.subr.bf16.mxu1 %v5238_v33  ;;  %v584_v33 = vor.u32 %v583_v10, %v580_v8  ;;  %v5688_v63 = vpack.c.bf16 %v5681_v31, %v5626_v58  ;;  %v608_v57 = vrot.slane %v606_v27, 4  ;;  %v4455_v8 = vpack.c.bf16 %v5562_v25, %v5562_v25 }
  0x30   :  { %8051 = vst [vmem:[#allocation9_spill] sm:$0xff] %v5678_v30  ;;  %v5734_v10 = vpack.c.bf16 %v5562_v25, %v5558_v21  ;;  %v5250_v21 = vld [vmem:[%s7971_s2 + $0x48] sm:$0xff]   ;;  %v625_v27 = vrot.slane %v623_v0, 5 }
  0x31   :  { %4750 = vmatpush3.bf16.msra.mxu0 %v5239_v41  ;;  %v615_v41 = vshll.u32 %v5524_v6, 16  ;;  %v5707_v6 = vpack.c.bf16 %v7976_v34, %v5672_v38  ;;  %v5716_v55 = vrot.slane %v584_v33, 4  ;;  %v634_v33 = vshrl.u32 %v5589_v39, 16  ;;  %v126_v3 = vld [vmem:[#allocation2 + $0xe8] sm:$0x3] }
  0x32   :  { %4862 = vmatpush3.bf16.msra.mxu1 %v5240_v1  ;;  %4751 = vmatprep.subr.bf16.mxu0 %v5241_v59  ;;  %v5246_v1 = vld [vmem:[%s7971_s2 + $0x50] sm:$0xff]   ;;  %v611_v59 = vrot.slane %v609_v36, 5  ;;  %8053 = vst [vmem:[#allocation11_spill] sm:$0xff] %v5734_v10  ;;  %v5736_v12 = vld [vmem:[#allocation2 + $0xc0] sm:$0xff]  ;;  %v637_v36 = vshll.u32 %v5589_v39, 16  ;;  %v37_v39 = vld [vmem:[%s7970_s0 + $0x68] sm:$0xff] }
  0x33   :  { %1135 = vmatmul.mubr.bf16.gmra.mxu0 %v4451_v45  ;;  %4863 = vmatprep.subr.bf16.mxu1 %v5242_v60  ;;  %v598_v45 = vor.u32 %v597_v26, %v594_v16  ;;  %8052 = vst [vmem:[#allocation10_spill] sm:$0xff] %v5707_v6  ;;  %v620_v60 = vshrl.u32 %v5550_v18, 16  ;;  %v5721_v62 = vrot.slane %v615_v41, 5  ;;  %v5249_v18 = vld [vmem:[%s7971_s2 + $0xc8] sm:$0xff]   ;;  %v648_v41 = vshrl.u32 %v5613_v47, 16  ;;  %94 = vst [vmem:[#allocation2 + $0x101] sm:$0xff] %v37_v39 }
  0x34   :  { %1456 = vmatmul.mubr.bf16.gmra.mxu1 %v5609_v46  ;;  %1142 = vmatprep.mubr.bf16.mxu0 %v4454_v51  ;;  %v5248_v51 = vld [vmem:[%s7971_s2 + $0x10] sm:$0xff]   ;;  %v612_v19 = vor.u32 %v611_v59, %v608_v57  ;;  %v122_v26 = vld [vmem:[#allocation2 + $0xc8] sm:$0x3]  ;;  %v221_v39 = vrot.slane %v126_v3, 1  ;;  %v657_v34 = vshll.u32 %v5597_v43, 16  ;;  %v8057_v43 = vrot.slane %v5672_v38, 1 }
  0x35   :  { %1463 = vmatprep.mubr.bf16.mxu1 %v5623_v53  ;;  %4752 = vmatpush3.bf16.msra.mxu0 %v5243_v2  ;;  %v212_v2 = vrot.slane %v120_v9, 1  ;;  %v5727_v56 = vrot.slane %v598_v45, 4  ;;  %v622_v22 = vrot.slane %v620_v60, 4  ;;  %v215_v45 = vrot.slane %v122_v26, 1  ;;  %v38_v57 = vld [vmem:[%s7970_s0 + $0x70] sm:$0xff]  ;;  %v5257_v38 = vld [vmem:[%s7969_s1 + $0x178] sm:$0xff]  }
  0x36   :  { %4864 = vmatpush3.bf16.msra.mxu1 %v5244_v7  ;;  %4753 = vmatprep.subr.bf16.mxu0 %v5245_v23  ;;  %v629_v7 = vshll.u32 %v5541_v15, 16  ;;  %v5745_v15 = vpack.c.bf16 %v5642_v4, %v5595_v42  ;;  %v5251_v42 = vld [vmem:[%s7971_s2 + $0x88] sm:$0xff]   ;;  %v643_v60 = vshll.u32 %v5583_v35, 16  ;;  %95 = vst [vmem:[#allocation2 + $0x111] sm:$0xff] %v38_v57 }
  0x37   :  { %4865 = vmatprep.subr.bf16.mxu1 %v5246_v1  ;;  %v5748_v16 = vsel %vm177_vm0, %v211_v50, %v212_v2  ;;  %v5750_v17 = vpack.c.bf16 %v212_v2, %v120_v9  ;;  %v5772_v1 = vld [vmem:[#allocation2 + $0x80] sm:$0xff]  ;;  %v5775_v9 = vld [vmem:[#allocation2 + $0xd0] sm:$0xff]  ;;  %v5777_v50 = vrot.slane %v612_v19, 4  ;;  %v626_v59 = vor.u32 %v625_v27, %v622_v22 }
  0x38   :  { %8054 = vst [vmem:[#allocation12_spill] sm:$0xff] %v5745_v15  ;;  %v5757_v23 = vpack.c.bf16 %v5748_v16, %v5690_v37  ;;  %v5790_v2 = vpack.c.bf16 %v215_v45, %v122_v26  ;;  %v650_v19 = vrot.slane %v648_v41, 4  ;;  %v4460_v22 = vpack.c.bf16 %v5681_v31, %v5681_v31 }
  0x39   :  { %4754 = vmatpush3.bf16.msra.mxu0 %v5247_v44  ;;  %v214_v44 = vrot.slane %v5736_v12, 1  ;;  %v5811_v26 = vpack.c.bf16 %v5681_v31, %v5642_v4  ;;  %v665_v41 = vshll.u32 %v5652_v11, 16  ;;  %v218_v4 = vrot.slane %v124_v54, 1 }
  0x3a   :  { %4866 = vmatpush3.bf16.msra.mxu1 %v5248_v51  ;;  %4755 = vmatprep.subr.bf16.mxu0 %v5249_v18  ;;  %v651_v51 = vshll.u32 %v5613_v47, 16  ;;  %v5792_v47 = vld [vmem:[#allocation2 + $0xe0] sm:$0xff]  ;;  %v5798_v18 = vpack.c.bf16 %v5615_v48, %v5562_v25 }
  0x3b   :  { %1143 = vmatmul.mubr.bf16.gmra.mxu0 %v4453_v28  ;;  %4867 = vmatprep.subr.bf16.mxu1 %v5250_v21  ;;  %v5252_v28 = vld [vmem:[%s7971_s2 + $0x8] sm:$0xff]   ;;  %v5788_v0 = vsel %vm177_vm0, %v214_v44, %v215_v45  ;;  %v639_v21 = vrot.slane %v637_v36, 5  ;;  %8056 = vst [vmem:[#allocation14_spill] sm:$0xff] %v5811_v26  ;;  %v5254_v25 = vld [vmem:[%s7971_s2 + $0x40] sm:$0xff]   ;;  %v217_v36 = vrot.slane %v5775_v9, 1  ;;  %v5823_v44 = vrot.slane %v626_v59, 4 }
  0x3c   :  { %1464 = vmatmul.mubr.bf16.gmra.mxu1 %v5670_v52  ;;  %1150 = vmatprep.mubr.bf16.mxu0 %v4456_v29  ;;  %v5765_v29 = vrot.slane %v629_v7, 5  ;;  %v636_v7 = vrot.slane %v634_v33, 4  ;;  %8055 = vst [vmem:[#allocation13_spill] sm:$0xff] %v5798_v18  ;;  %v5802_v35 = vpack.c.bf16 %v5788_v0, %v5736_v12  ;;  %v653_v27 = vrot.slane %v651_v51, 5  ;;  %v5256_v59 = vld [vmem:[%s7971_s2] sm:$0xff]  }
  0x3d   :  { %1471 = vmatprep.mubr.bf16.mxu1 %v5678_v30  ;;  %4756 = vmatpush3.bf16.msra.mxu0 %v5251_v42  ;;  %v5255_v42 = vld [vmem:[%s7971_s2 + $0x80] sm:$0xff]   ;;  %v202_v33 = vrot.slane %v5772_v1, 1  ;;  %v5825_v45 = vrot.slane %v643_v60, 5  ;;  %v220_v51 = vrot.slane %v5792_v47, 1  ;;  %v39_v60 = vld [vmem:[%s7970_s0 + $0x78] sm:$0xff] }
  0x3e   :  { %4868 = vmatpush3.bf16.msra.mxu1 %v5252_v28  ;;  %v662_v28 = vshrl.u32 %v5652_v11, 16  ;;  %v640_v57 = vor.u32 %v639_v21, %v636_v7  ;;  %v5832_v11 = vsel %vm177_vm0, %v217_v36, %v218_v4  ;;  %96 = vst [vmem:[#allocation2 + $0x121] sm:$0xff] %v39_v60  ;;  %v676_v36 = vshrl.u32 %v5688_v63, 16 }
  0x3f   :  { %4869 = vmatprep.subr.bf16.mxu1 %v5254_v25  ;;  %v5845_v21 = vsel %vm177_vm0, %v202_v33, %v8057_v43  ;;  %v5853_v25 = vld [vmem:[#allocation2 + $0xf0] sm:$0xff]  ;;  %v4459_v33 = vpack.c.bf16 %v5626_v58, %v5626_v58  ;;  %v5887_v60 = vrot.slane %v657_v34, 5 }
  0x40   :  { %v664_v7 = vrot.slane %v662_v28, 4  ;;  %8058 = vst [vmem:[#allocation15_spill] sm:$0xff] %v5845_v21  ;;  %v679_v28 = vshll.u32 %v5688_v63, 16  ;;  %v5882_v63 = vpack.c.bf16 %v5845_v21, %v5681_v31  ;;  %v678_v53 = vrot.slane %v676_v36, 4 }
  0x42   :  { %4870 = vmatpush3.bf16.msra.mxu1 %v5256_v59  ;;  %8060 = vst [vmem:[#allocation17_spill] sm:$0xff] %v5882_v63  ;;  %v223_v59 = vrot.slane %v5853_v25, 1 }
  0x43   :  { %1151 = vmatmul.mubr.bf16.gmra.mxu0 %v4455_v8  ;;  %v4457_v8 = vpack.c.bf16 %v5615_v48, %v5615_v48 }
  0x44   :  { %1472 = vmatmul.mubr.bf16.gmra.mxu1 %v5734_v10  ;;  %1158 = vmatprep.mubr.bf16.mxu0 %v4458_v14  ;;  %v5253_v14 = vld [vmem:[%s7971_s2 + $0xc0] sm:$0xff]   ;;  %v685_v10 = vshll.u32 %v5683_v32, 16 }
  0x45   :  { %1479 = vmatprep.mubr.bf16.mxu1 %v5745_v15  ;;  %4757 = vmatprep.subr.bf16.mxu0 %v5253_v14  ;;  %v5834_v14 = vpack.c.bf16 %v218_v4, %v124_v54  ;;  %v5851_v54 = vpack.c.bf16 %v5832_v11, %v5775_v9  ;;  %v671_v15 = vshll.u32 %v5644_v5, 16 }
  0x46   :  { %4758 = vmatpush3.bf16.msra.mxu0 %v5255_v42  ;;  %v667_v42 = vrot.slane %v665_v41, 5  ;;  %v5869_v41 = vpack.c.bf16 %v5626_v58, %v5615_v48  ;;  %v5885_v48 = vld [vmem:[#allocation2 + $0x100] sm:$0xff] }
  0x47   :  { %4967 = vmatprep.subr.bf16.mxu0 %v5257_v38  ;;  %v226_v34 = vrot.slane %v5885_v48, 1  ;;  %v681_v38 = vrot.slane %v679_v28, 5  ;;  %v5914_v28 = vrot.slane %v671_v15, 5  ;;  %v746_v46 = vshrl.u32 %v5851_v54, 16 }
  0x48   :  { %8059 = vst [vmem:[#allocation16_spill] sm:$0xff] %v5869_v41  ;;  %v668_v52 = vor.u32 %v667_v42, %v664_v7  ;;  %v721_v7 = vshll.u32 %v5757_v23, 16  ;;  %v749_v24 = vshll.u32 %v5851_v54, 16  ;;  %v4463_v54 = vpack.c.bf16 %v5690_v37, %v5690_v37 }
  0x4b   :  { %1159 = vmatmul.mubr.bf16.gmra.mxu0 %v4457_v8  ;;  %v654_v8 = vor.u32 %v653_v27, %v650_v19  ;;  %v5857_v19 = vsel %vm177_vm0, %v220_v51, %v221_v39  ;;  %v5859_v27 = vpack.c.bf16 %v221_v39, %v126_v3  ;;  %v128_v3 = vld [vmem:[#allocation2 + $0xf8] sm:$0x3]  ;;  %v4462_v39 = vpack.c.bf16 %v5845_v21, %v5845_v21 }
  0x4c   :  { %1480 = vmatmul.mubr.bf16.gmra.mxu1 %v5798_v18  ;;  %1166 = vmatprep.mubr.bf16.mxu0 %v4460_v22  ;;  %v5847_v22 = vld [vmem:[#allocation2 + $0xa8] sm:$0x3]  ;;  %v5873_v4 = vpack.c.bf16 %v5857_v19, %v5792_v47  ;;  %v5258_v51 = vld [vmem:[%s7971_s2 + $0x178] sm:$0xff]   ;;  %v5890_v18 = vrot.slane %v640_v57, 4  ;;  %v224_v30 = vrot.slane %v128_v3, 1  ;;  %v741_v21 = vshll.u32 %v5790_v2, 16 }
  0x4d   :  { %1487 = vmatprep.mubr.bf16.mxu1 %v5811_v26  ;;  %v7984_v43 = vrot.slane %v5847_v22, 1  ;;  %v130_v26 = vld [vmem:[#allocation2 + $0x108] sm:$0x3]  ;;  %5079 = vmatprep.subr.bf16.mxu1 %v5258_v51  ;;  %v5894_v31 = vrot.slane %v654_v8, 4  ;;  %v718_v8 = vshrl.u32 %v5757_v23, 16  ;;  %v5923_v23 = vrot.slane %v668_v52, 4 }
  0x4e   :  { %v5900_v57 = vsel %vm177_vm0, %v223_v59, %v224_v30  ;;  %v5902_v5 = vpack.c.bf16 %v224_v30, %v128_v3  ;;  %v227_v32 = vrot.slane %v130_v26, 1  ;;  %v4461_v51 = vpack.c.bf16 %v5772_v1, %v5772_v1  ;;  %v5291_v52 = vld [vmem:[#allocation2] sm:$0xff] }
  0x4f   :  { %v210_v42 = vsel %vm177_vm0, %v5480_v40, %v7984_v43  ;;  %v5912_v36 = vpack.c.bf16 %v5900_v57, %v5853_v25  ;;  %v5929_v40 = vpack.c.bf16 %v5772_v1, %v5626_v58  ;;  %v682_v59 = vor.u32 %v681_v38, %v678_v53  ;;  %v5946_v38 = vld [vmem:[#allocation2 + $0x128] sm:$0x3] }
  0x50   :  { %v5919_v30 = vsel %vm177_vm0, %v226_v34, %v227_v32  ;;  %v5921_v3 = vpack.c.bf16 %v227_v32, %v130_v26  ;;  %v4464_v26 = vpack.c.bf16 %v5748_v16, %v5748_v16  ;;  %v4429_v34 = vpack.c.bf16 %v210_v42, %v5291_v52 }
  0x51   :  { %8061 = vst [vmem:[#allocation18_spill] sm:$0xff] %v5929_v40  ;;  %v5933_v15 = vpack.c.bf16 %v5919_v30, %v5885_v48  ;;  %v4496_v32 = vpack.c.bf16 %v5748_v16, %v210_v42  ;;  %v720_v43 = vrot.slane %v718_v8, 4  ;;  %v732_v58 = vshrl.u32 %v5802_v35, 16 }
  0x52   :  { %v5948_v13 = vrot.slane %v682_v59, 4  ;;  %v727_v8 = vshll.u32 %v5750_v17, 16  ;;  %v704_v59 = vshrl.u32 %v4429_v34, 16  ;;  %v707_v6 = vshll.u32 %v4429_v34, 16 }
  0x53   :  { %1167 = vmatmul.mubr.bf16.gmra.mxu0 %v4459_v33  ;;  %v5916_v33 = vrot.slane %v685_v10, 5  ;;  %v5935_v10 = vld [vmem:[#allocation2 + $0x110] sm:$0xff]  ;;  %v734_v42 = vrot.slane %v732_v58, 4  ;;  %v4495_v17 = vpack.c.bf16 %v5690_v37, %v5291_v52  ;;  %v763_v2 = vshll.u32 %v5873_v4, 16 }
  0x54   :  { %1488 = vmatmul.mubr.bf16.gmra.mxu1 %v5869_v41  ;;  %1174 = vmatprep.mubr.bf16.mxu0 %v4462_v39  ;;  %v132_v39 = vld [vmem:[#allocation2 + $0x118] sm:$0x3]  ;;  %v735_v41 = vshll.u32 %v5802_v35, 16  ;;  %v229_v20 = vrot.slane %v5935_v10, 1  ;;  %v729_v52 = vrot.slane %v727_v8, 5  ;;  %v706_v8 = vrot.slane %v704_v59, 4 }
  0x55   :  { %1495 = vmatprep.mubr.bf16.mxu1 %v5882_v63  ;;  %v723_v63 = vrot.slane %v721_v7, 5  ;;  %v230_v53 = vrot.slane %v132_v39, 1 }
  0x57   :  { %v5952_v35 = vsel %vm177_vm0, %v229_v20, %v230_v53  ;;  %v5954_v7 = vpack.c.bf16 %v230_v53, %v132_v39  ;;  %v4466_v20 = vpack.c.bf16 %v5788_v0, %v5788_v0  ;;  %v748_v39 = vrot.slane %v746_v46, 4 }
  0x58   :  { %v751_v53 = vrot.slane %v749_v24, 5  ;;  %v755_v46 = vshll.u32 %v5834_v14, 16  ;;  %v5996_v14 = vsel %vm5980_vm3, %v5716_v55, %v5701_v49  ;;  %v6119_v49 = vpack.c.bf16 %v5857_v19, %v5832_v11 }
  0x5b   :  { %1175 = vmatmul.mubr.bf16.gmra.mxu0 %v4461_v51  ;;  %v737_v51 = vrot.slane %v735_v41, 5  ;;  %v5969_v41 = vpack.c.bf16 %v5788_v0, %v5748_v16  ;;  %v760_v16 = vshrl.u32 %v5873_v4, 16  ;;  %v752_v4 = vor.u32 %v751_v53, %v748_v39 }
  0x5c   :  { %1496 = vmatmul.mubr.bf16.gmra.mxu1 %v5929_v40  ;;  %1182 = vmatprep.mubr.bf16.mxu0 %v4464_v26  ;;  %v5960_v40 = vpack.c.bf16 %v5952_v35, %v5935_v10  ;;  %v7994_v26 = vrot.slane %v5946_v38, 1  ;;  %v6044_v39 = vpack.c.bf16 %v5832_v11, %v5788_v0 }
  0x5d   :  { %1503 = vmatprep.mubr.bf16.mxu1 %v4496_v32  ;;  %v724_v32 = vor.u32 %v723_v63, %v720_v43  ;;  %v738_v58 = vor.u32 %v737_v51, %v734_v42  ;;  %v4465_v63 = vpack.c.bf16 %v5736_v12, %v5736_v12  ;;  %v5990_v43 = vsel %vm5980_vm3, %v5727_v56, %v5719_v61 }
  0x5e   :  { %v5974_v34 = vpack.c.bf16 %v7994_v26, %v5946_v38  ;;  %v709_v42 = vrot.slane %v707_v6, 5  ;;  %v6000_v51 = vpack.c.bf16 %v5736_v12, %v5690_v37  ;;  %v757_v6 = vrot.slane %v755_v46, 5  ;;  %8065 = vst [vmem:[#allocation20_spill] sm:$0xff] %v6044_v39 }
  0x5f   :  { %v725_v26 = vrot.slane %v724_v32, 4  ;;  %v739_v55 = vrot.slane %v738_v58, 4  ;;  %v769_v56 = vshll.u32 %v5859_v27, 16  ;;  %v6012_v37 = vsel %vm5980_vm3, %v5777_v50, %v5721_v62 }
  0x60   :  { %8062 = vst [vmem:[#allocation19_spill] sm:$0xff] %v5974_v34  ;;  %v743_v34 = vrot.slane %v741_v21, 5  ;;  %v762_v21 = vrot.slane %v760_v16, 4  ;;  %v6016_v59 = vcombine.high %v5990_v43, %v6012_v37  ;;  %v753_v32 = vrot.slane %v752_v4, 4 }
  0x61   :  { %v6026_v27 = vsel %vm5980_vm3, %v5823_v44, %v5765_v29  ;;  %v6032_v62 = vsel %vm5980_vm3, %v5890_v18, %v5825_v45  ;;  %v6038_v50 = vsel %vm5980_vm3, %v5894_v31, %v5887_v60  ;;  %v774_v44 = vshrl.u32 %v5912_v36, 16 }
  0x62   :  { %v6048_v29 = vcombine.high %v6012_v37, %v6026_v27  ;;  %v6052_v18 = vcombine.low %v6012_v37, %v6026_v27  ;;  %v777_v45 = vshll.u32 %v5912_v36, 16  ;;  %v6058_v60 = vcombine.high %v6026_v27, %v6032_v62 }
  0x63   :  { %1183 = vmatmul.mubr.bf16.gmra.mxu0 %v4463_v54  ;;  %v765_v54 = vrot.slane %v763_v2, 5  ;;  %v6062_v0 = vcombine.low %v6026_v27, %v6032_v62  ;;  %v6066_v31 = vcombine.high %v6032_v62, %v6038_v50  ;;  %v6071_v53 = vcombine.low %v6032_v62, %v6038_v50 }
  0x64   :  { %1504 = vmatmul.mubr.bf16.gmra.mxu1 %v4495_v17  ;;  %1190 = vmatprep.mubr.bf16.mxu0 %v4466_v20  ;;  %v6020_v17 = vcombine.low %v5990_v43, %v6012_v37  ;;  %v4468_v20 = vpack.c.bf16 %v5832_v11, %v5832_v11  ;;  %v6077_v36 = vsel %vm5980_vm3, %v5923_v23, %v5914_v28 }
  0x65   :  { %1511 = vmatprep.mubr.bf16.mxu1 %v5969_v41  ;;  %v6083_v58 = vsel %vm5980_vm3, %v5948_v13, %v5916_v33  ;;  %v6092_v46 = vcombine.low %v6038_v50, %v6077_v36  ;;  %v6104_v13 = vsel %vm5980_vm3, %v725_v26, %v729_v52  ;;  %v8066_v33 = vrot.slane %v5847_v22, 1 }
  0x66   :  { %v6096_v28 = vcombine.high %v6077_v36, %v6083_v58  ;;  %v6100_v23 = vcombine.low %v6077_v36, %v6083_v58  ;;  %v4467_v2 = vpack.c.bf16 %v5775_v9, %v5775_v9  ;;  %v6113_v4 = vpack.c.bf16 %v5775_v9, %v5736_v12 }
  0x67   :  { %v4430_v16 = vpack.c.bf16 %v8066_v33, %v5847_v22  ;;  %v4470_v61 = vpack.c.bf16 %v5857_v19, %v5857_v19  ;;  %v710_v26 = vor.u32 %v709_v42, %v706_v8  ;;  %v6123_v22 = vsel %vm5980_vm3, %v739_v55, %v743_v34 }
  0x68   :  { %v6127_v33 = vsel %vm5980_vm3, %v753_v32, %v757_v6  ;;  %v771_v12 = vrot.slane %v769_v56, 5  ;;  %v776_v8 = vrot.slane %v774_v44, 4  ;;  %v779_v42 = vrot.slane %v777_v45, 5 }
  0x69   :  { %v713_v52 = vshll.u32 %v4430_v16, 16  ;;  %v6136_v34 = vcombine.low %v6104_v13, %v6123_v22  ;;  %v6145_v6 = vcombine.high %v6123_v22, %v6127_v33  ;;  %v6153_v44 = vcombine.low %v6123_v22, %v6127_v33 }
  0x6a   :  { %v783_v45 = vshll.u32 %v5902_v5, 16  ;;  %v780_v16 = vor.u32 %v779_v42, %v776_v8  ;;  %v6188_v42 = vpack.c.bf16 %v5853_v25, %v5792_v47  ;;  %v797_v32 = vshll.u32 %v5921_v3, 16 }
  0x6b   :  { %1191 = vmatmul.mubr.bf16.gmra.mxu0 %v4465_v63  ;;  %v6088_v63 = vcombine.high %v6038_v50, %v6077_v36 }
  0x6c   :  { %1512 = vmatmul.mubr.bf16.gmra.mxu1 %v6000_v51  ;;  %1198 = vmatprep.mubr.bf16.mxu0 %v4468_v20  ;;  %v766_v20 = vor.u32 %v765_v54, %v762_v21  ;;  %v715_v21 = vrot.slane %v713_v52, 5  ;;  %v6131_v54 = vcombine.high %v6104_v13, %v6123_v22  ;;  %v4472_v52 = vpack.c.bf16 %v5900_v57, %v5900_v57 }
  0x6d   :  { %1519 = vmatprep.mubr.bf16.mxu1 %v6044_v39  ;;  %v711_v39 = vrot.slane %v710_v26, 4 }
  0x6e   :  { %v767_v11 = vrot.slane %v766_v20, 4  ;;  %v791_v20 = vshll.u32 %v5933_v15, 16 }
  0x6f   :  { %v6141_v55 = vsel %vm5980_vm3, %v711_v39, %v715_v21  ;;  %v6159_v39 = vpack.c.bf16 %v5792_v47, %v5775_v9  ;;  %v6172_v21 = vpack.c.bf16 %v5900_v57, %v5857_v19  ;;  %v4471_v19 = vpack.c.bf16 %v5853_v25, %v5853_v25 }
  0x70   :  { %v6166_v26 = vsel %vm5980_vm3, %v767_v11, %v771_v12  ;;  %v785_v12 = vrot.slane %v783_v45, 5  ;;  %v793_v8 = vrot.slane %v791_v20, 5  ;;  %v6201_v20 = vpack.c.bf16 %v5919_v30, %v5900_v57 }
  0x71   :  { %8067 = vst [vmem:[#allocation21_spill] sm:$0xff] %v6172_v21  ;;  %v6176_v9 = vcombine.high %v6127_v33, %v6166_v26  ;;  %v6180_v5 = vcombine.low %v6127_v33, %v6166_v26  ;;  %v4473_v57 = vpack.c.bf16 %v5885_v48, %v5885_v48 }
  0x73   :  { %1199 = vmatmul.mubr.bf16.gmra.mxu0 %v4467_v2  ;;  %v788_v2 = vshrl.u32 %v5933_v15, 16  ;;  %v781_v15 = vrot.slane %v780_v16, 4  ;;  %v805_v16 = vshll.u32 %v5960_v40, 16 }
  0x74   :  { %1520 = vmatmul.mubr.bf16.gmra.mxu1 %v6113_v4  ;;  %1206 = vmatprep.mubr.bf16.mxu0 %v4470_v61  ;;  %v4469_v61 = vpack.c.bf16 %v5792_v47, %v5792_v47 }
  0x75   :  { %1527 = vmatprep.mubr.bf16.mxu1 %v6119_v49  ;;  %v790_v11 = vrot.slane %v788_v2, 4  ;;  %v6195_v45 = vsel %vm5980_vm3, %v781_v15, %v785_v12  ;;  %v4474_v2 = vpack.c.bf16 %v5919_v30, %v5919_v30  ;;  %v807_v12 = vrot.slane %v805_v16, 5 }
  0x76   :  { %v6205_v47 = vcombine.high %v6166_v26, %v6195_v45  ;;  %v6209_v3 = vcombine.low %v6166_v26, %v6195_v45 }
  0x77   :  { %v794_v56 = vor.u32 %v793_v8, %v790_v11  ;;  %v6215_v11 = vld [vmem:[#allocation2 + $0x120] sm:$0xff]  ;;  %v6219_v8 = vpack.c.bf16 %v5885_v48, %v5853_v25 }
  0x78   :  { %v232_v25 = vrot.slane %v6215_v11, 1 }
  0x7b   :  { %1207 = vmatmul.mubr.bf16.gmra.mxu0 %v4469_v61  ;;  %v802_v61 = vshrl.u32 %v5960_v40, 16  ;;  %v795_v40 = vrot.slane %v794_v56, 4 }
  0x7c   :  { %1528 = vmatmul.mubr.bf16.gmra.mxu1 %v6159_v39  ;;  %1214 = vmatprep.mubr.bf16.mxu0 %v4472_v52  ;;  %v799_v52 = vrot.slane %v797_v32, 5  ;;  %v4476_v32 = vpack.c.bf16 %v5952_v35, %v5952_v35 }
  0x7d   :  { %1535 = vmatprep.mubr.bf16.mxu1 %v6172_v21  ;;  %v804_v15 = vrot.slane %v802_v61, 4  ;;  %v6230_v61 = vpack.c.bf16 %v5952_v35, %v5919_v30  ;;  %v8068_v30 = vrot.slane %v5946_v38, 1 }
  0x7e   :  { %v6224_v56 = vsel %vm5980_vm3, %v795_v40, %v799_v52 }
  0x7f   :  { %v808_v21 = vor.u32 %v807_v12, %v804_v15  ;;  %v6234_v16 = vcombine.high %v6195_v45, %v6224_v56  ;;  %v6246_v52 = vsel %vm177_vm0, %v232_v25, %v8068_v30  ;;  %v4475_v15 = vpack.c.bf16 %v5935_v10, %v5935_v10  ;;  %v5259_v30 = vld [vmem:[%s7969_s1 + $0x138] sm:$0xff]  }
  0x80   :  { %v6252_v12 = vpack.c.bf16 %v5935_v10, %v5885_v48  ;;  %v6262_v38 = vpack.c.bf16 %v6246_v52, %v5952_v35  ;;  %v4477_v48 = vpack.c.bf16 %v6215_v11, %v6215_v11  ;;  %v6278_v35 = vpack.c.bf16 %v6215_v11, %v5935_v10  ;;  %v5260_v10 = vld [vmem:[%s7971_s2 + $0x138] sm:$0xff]  }
  0x81   :  { %v4206_v25 = vcombine.high %v5990_v43, %v5990_v43 }
  0x82   :  { %8069 = vst [vmem:[#allocation22_spill] sm:$0xff] %v6262_v38  ;;  %8070 = vst [vmem:[#allocation23_spill] sm:$0xff] %v6278_v35 }
  0x83   :  { %1215 = vmatmul.mubr.bf16.gmra.mxu0 %v4471_v19  ;;  %v811_v19 = vshll.u32 %v5954_v7, 16  ;;  %v6239_v7 = vcombine.low %v6195_v45, %v6224_v56 }
  0x84   :  { %1536 = vmatmul.mubr.bf16.gmra.mxu1 %v6188_v42  ;;  %1222 = vmatprep.mubr.bf16.mxu0 %v4474_v2  ;;  %v809_v2 = vrot.slane %v808_v21, 4  ;;  %v4478_v21 = vpack.c.bf16 %v6246_v52, %v6246_v52 }
  0x85   :  { %1543 = vmatprep.mubr.bf16.mxu1 %v6201_v20  ;;  %v813_v40 = vrot.slane %v811_v19, 5 }
  0x8b   :  { %1223 = vmatmul.mubr.bf16.gmra.mxu0 %v4473_v57  ;;  %v6256_v57 = vsel %vm5980_vm3, %v809_v2, %v813_v40  ;;  %v8071_v2 = vcombine.high %v5996_v14, %v5990_v43  ;;  %v4205_v40 = vcombine.low %v5990_v43, %v5990_v43 }
  0x8c   :  { %1544 = vmatmul.mubr.bf16.gmra.mxu1 %v6219_v8  ;;  %1230 = vmatprep.mubr.bf16.mxu0 %v4476_v32  ;;  %v6266_v19 = vcombine.high %v6224_v56, %v6256_v57  ;;  %v6270_v32 = vcombine.low %v6224_v56, %v6256_v57 }
  0x8d   :  { %1551 = vmatprep.mubr.bf16.mxu1 %v6230_v61 }
  0x93   :  { %1231 = vmatmul.mubr.bf16.gmra.mxu0 %v4475_v15  ;;  %v4208_v15 = vcombine.high %v6012_v37, %v6012_v37 }
  0x94   :  { %1552 = vmatmul.mubr.bf16.gmra.mxu1 %v6252_v12  ;;  %1238 = vmatprep.mubr.bf16.mxu0 %v4478_v21  ;;  %v5261_v21 = vld [vmem:[%s7969_s1 + $0x170] sm:$0xff]  }
  0x95   :  { %1559 = vmatprep.mubr.bf16.mxu1 %v6262_v38 }
  0x9b   :  { %1239 = vmatmul.mubr.bf16.gmra.mxu0 %v4477_v48  ;;  %v5262_v48 = vld [vmem:[%s7971_s2 + $0x170] sm:$0xff]  }
  0x9c   :  { %1560 = vmatmul.mubr.bf16.gmra.mxu1 %v6278_v35  ;;  %1825 = vmatprep.mubr.bf16.mxu0 %v4206_v25  ;;  %v8072_v25 = vcombine.low %v5996_v14, %v5990_v43  ;;  %v5264_v35 = vld [vmem:[%s7971_s2 + $0x130] sm:$0xff]   ;;  %v5266_v43 = vld [vmem:[%s7971_s2 + $0x168] sm:$0xff]   ;;  %v4207_v14 = vcombine.low %v6012_v37, %v6012_v37  ;;  %v5270_v37 = vld [vmem:[%s7971_s2 + $0x160] sm:$0xff]  }
  0x9d   :  { %2150 = vmatprep.mubr.bf16.mxu1 %v8071_v2  ;;  %v5263_v2 = vld [vmem:[%s7969_s1 + $0x130] sm:$0xff]  }
  0xa3   :  { %1826 = vmatmul.mubr.bf16.vlgmr.msra.gmra.mxu0 %v4205_v40  ;;  %v5265_v40 = vld [vmem:[%s7969_s1 + $0x168] sm:$0xff]  }
  0xa4   :  { %2151 = vmatmul.mubr.bf16.vlgmr.msra.gmra.mxu1 %v8072_v25  ;;  %4968 = vmatpush3.bf16.msra.mxu0 %v5259_v30  ;;  %v4210_v30 = vcombine.high %v6026_v27, %v6026_v27  ;;  %v5273_v25 = vld [vmem:[%s7969_s1 + $0x158] sm:$0xff]  }
  0xa5   :  { %5080 = vmatpush3.bf16.msra.mxu1 %v5260_v10  ;;  %1833 = vmatprep.mubr.bf16.mxu0 %v4208_v15  ;;  %v5267_v10 = vld [vmem:[%s7969_s1 + $0x128] sm:$0xff]  }
  0xa6   :  { %2158 = vmatprep.mubr.bf16.mxu1 %v6016_v59  ;;  %4969 = vmatprep.subr.bf16.mxu0 %v5261_v21  ;;  %v5268_v15 = vld [vmem:[%s7971_s2 + $0x128] sm:$0xff]   ;;  %v5269_v21 = vld [vmem:[%s7969_s1 + $0x160] sm:$0xff]  }
  0xa7   :  { %5081 = vmatprep.subr.bf16.mxu1 %v5262_v48  ;;  %v5272_v48 = vld [vmem:[%s7971_s2 + $0x120] sm:$0xff]  }
  0xa8   :  { %4970 = vmatpush3.bf16.msra.mxu0 %v5263_v2  ;;  %v5274_v2 = vld [vmem:[%s7971_s2 + $0x158] sm:$0xff]  }
  0xa9   :  { %5082 = vmatpush3.bf16.msra.mxu1 %v5264_v35  ;;  %4971 = vmatprep.subr.bf16.mxu0 %v5265_v40  ;;  %v5271_v35 = vld [vmem:[%s7969_s1 + $0x120] sm:$0xff]   ;;  %v4209_v40 = vcombine.low %v6026_v27, %v6026_v27  ;;  %v5278_v27 = vld [vmem:[%s7971_s2 + $0x150] sm:$0xff]  }
  0xaa   :  { %5083 = vmatprep.subr.bf16.mxu1 %v5266_v43  ;;  %v4212_v43 = vcombine.high %v6032_v62, %v6032_v62 }
  0xab   :  { %1834 = vmatmul.mubr.bf16.gmra.mxu0 %v4207_v14  ;;  %v5275_v14 = vld [vmem:[%s7969_s1 + $0x118] sm:$0xff]  }
  0xac   :  { %2159 = vmatmul.mubr.bf16.gmra.mxu1 %v6020_v17  ;;  %1841 = vmatprep.mubr.bf16.mxu0 %v4210_v30  ;;  %v5276_v30 = vld [vmem:[%s7971_s2 + $0x118] sm:$0xff]  }
  0xad   :  { %2166 = vmatprep.mubr.bf16.mxu1 %v6048_v29  ;;  %4972 = vmatpush3.bf16.msra.mxu0 %v5267_v10  ;;  %v5277_v10 = vld [vmem:[%s7969_s1 + $0x150] sm:$0xff]  }
  0xae   :  { %5084 = vmatpush3.bf16.msra.mxu1 %v5268_v15  ;;  %4973 = vmatprep.subr.bf16.mxu0 %v5269_v21  ;;  %v5279_v15 = vld [vmem:[%s7969_s1 + $0x110] sm:$0xff]  }
  0xaf   :  { %5085 = vmatprep.subr.bf16.mxu1 %v5270_v37  ;;  %v5280_v21 = vld [vmem:[%s7971_s2 + $0x110] sm:$0xff]   ;;  %v5281_v37 = vld [vmem:[%s7969_s1 + $0x148] sm:$0xff]  }
  0xb1   :  { %4974 = vmatpush3.bf16.msra.mxu0 %v5271_v35  ;;  %v5282_v35 = vld [vmem:[%s7971_s2 + $0x148] sm:$0xff]  }
  0xb2   :  { %5086 = vmatpush3.bf16.msra.mxu1 %v5272_v48  ;;  %4975 = vmatprep.subr.bf16.mxu0 %v5273_v25  ;;  %v4211_v48 = vcombine.low %v6032_v62, %v6032_v62  ;;  %v4214_v25 = vcombine.high %v6038_v50, %v6038_v50  ;;  %v5285_v62 = vld [vmem:[%s7969_s1 + $0x140] sm:$0xff]  }
  0xb3   :  { %5087 = vmatprep.subr.bf16.mxu1 %v5274_v2  ;;  %1842 = vmatmul.mubr.bf16.gmra.mxu0 %v4209_v40  ;;  %v8073_v2 = vld [vmem:[#allocation15_spill] sm:$0xff] }
  0xb4   :  { %2167 = vmatmul.mubr.bf16.gmra.mxu1 %v6052_v18  ;;  %1849 = vmatprep.mubr.bf16.mxu0 %v4212_v43  ;;  %v4427_v40 = vpack.c.bf16 %v8073_v2, %v5772_v1  ;;  %v5283_v43 = vld [vmem:[%s7969_s1 + $0x108] sm:$0xff]   ;;  %v5286_v1 = vld [vmem:[%s7971_s2 + $0x140] sm:$0xff]  }
  0xb5   :  { %2174 = vmatprep.mubr.bf16.mxu1 %v6058_v60  ;;  %4976 = vmatpush3.bf16.msra.mxu0 %v5275_v14  ;;  %v5284_v14 = vld [vmem:[%s7971_s2 + $0x108] sm:$0xff]  }
  0xb6   :  { %5088 = vmatpush3.bf16.msra.mxu1 %v5276_v30  ;;  %4977 = vmatprep.subr.bf16.mxu0 %v5277_v10  ;;  %v690_v30 = vshrl.u32 %v4427_v40, 16  ;;  %v693_v10 = vshll.u32 %v4427_v40, 16  ;;  %v8074_v40 = vld [vmem:[#allocation10_spill] sm:$0xff] }
  0xb7   :  { %5089 = vmatprep.subr.bf16.mxu1 %v5278_v27  ;;  %v5287_v27 = vld [vmem:[%s7969_s1 + $0x100] sm:$0xff]  }
  0xb9   :  { %4978 = vmatpush3.bf16.msra.mxu0 %v5279_v15  ;;  %v5288_v15 = vld [vmem:[%s7971_s2 + $0x100] sm:$0xff]  }
  0xba   :  { %5090 = vmatpush3.bf16.msra.mxu1 %v5280_v21  ;;  %4979 = vmatprep.subr.bf16.mxu0 %v5281_v37  ;;  %v4213_v21 = vcombine.low %v6038_v50, %v6038_v50  ;;  %v4216_v37 = vcombine.high %v6077_v36, %v6077_v36  ;;  %v4218_v50 = vcombine.high %v6083_v58, %v6083_v58 }
  0xbb   :  { %5091 = vmatprep.subr.bf16.mxu1 %v5282_v35  ;;  %1850 = vmatmul.mubr.bf16.gmra.mxu0 %v4211_v48  ;;  %v692_v35 = vrot.slane %v690_v30, 4  ;;  %v695_v48 = vrot.slane %v693_v10, 5  ;;  %v4217_v10 = vcombine.low %v6083_v58, %v6083_v58 }
  0xbc   :  { %2175 = vmatmul.mubr.bf16.gmra.mxu1 %v6062_v0  ;;  %1857 = vmatprep.mubr.bf16.mxu0 %v4214_v25 }
  0xbd   :  { %2182 = vmatprep.mubr.bf16.mxu1 %v6066_v31  ;;  %4980 = vmatpush3.bf16.msra.mxu0 %v5283_v43  ;;  %v696_v25 = vor.u32 %v695_v48, %v692_v35  ;;  %v699_v43 = vshll.u32 %v8074_v40, 16  ;;  %v8075_v35 = vcombine.high %v6141_v55, %v6104_v13  ;;  %v4221_v48 = vcombine.low %v6104_v13, %v6104_v13 }
  0xbe   :  { %5092 = vmatpush3.bf16.msra.mxu1 %v5284_v14  ;;  %4981 = vmatprep.subr.bf16.mxu0 %v5285_v62  ;;  %v4215_v14 = vcombine.low %v6077_v36, %v6077_v36 }
  0xbf   :  { %5093 = vmatprep.subr.bf16.mxu1 %v5286_v1  ;;  %v697_v62 = vrot.slane %v696_v25, 4  ;;  %v701_v1 = vrot.slane %v699_v43, 5  ;;  %v4224_v25 = vcombine.high %v6123_v22, %v6123_v22  ;;  %v8076_v43 = vcombine.low %v6141_v55, %v6104_v13 }
  0xc1   :  { %4982 = vmatpush3.bf16.msra.mxu0 %v5287_v27  ;;  %v6419_v30 = vsel %vm5980_vm3, %v697_v62, %v701_v1 }
  0xc2   :  { %5094 = vmatpush3.bf16.msra.mxu1 %v5288_v15  ;;  %v4220_v36 = vcombine.high %v6419_v30, %v6419_v30  ;;  %v6427_v27 = vcombine.high %v6083_v58, %v6419_v30  ;;  %v4219_v15 = vcombine.low %v6419_v30, %v6419_v30 }
  0xc3   :  { %1858 = vmatmul.mubr.bf16.gmra.mxu0 %v4213_v21  ;;  %v6435_v21 = vcombine.low %v6083_v58, %v6419_v30 }
  0xc4   :  { %2183 = vmatmul.mubr.bf16.gmra.mxu1 %v6071_v53  ;;  %1865 = vmatprep.mubr.bf16.mxu0 %v4216_v37  ;;  %v4222_v37 = vcombine.high %v6104_v13, %v6104_v13 }
  0xc5   :  { %2190 = vmatprep.mubr.bf16.mxu1 %v6088_v63 }
  0xcb   :  { %1866 = vmatmul.mubr.bf16.gmra.mxu0 %v4215_v14 }
  0xcc   :  { %2191 = vmatmul.mubr.bf16.gmra.mxu1 %v6092_v46  ;;  %1873 = vmatprep.mubr.bf16.mxu0 %v4218_v50 }
  0xcd   :  { %2198 = vmatprep.mubr.bf16.mxu1 %v6096_v28 }
  0xd3   :  { %1874 = vmatmul.mubr.bf16.gmra.mxu0 %v4217_v10 }
  0xd4   :  { %2199 = vmatmul.mubr.bf16.gmra.mxu1 %v6100_v23  ;;  %1881 = vmatprep.mubr.bf16.mxu0 %v4220_v36 }
  0xd5   :  { %2206 = vmatprep.mubr.bf16.mxu1 %v6427_v27 }
  0xdb   :  { %1882 = vmatmul.mubr.bf16.gmra.mxu0 %v4219_v15  ;;  %v4223_v15 = vcombine.low %v6123_v22, %v6123_v22 }
  0xdc   :  { %2207 = vmatmul.mubr.bf16.gmra.mxu1 %v6435_v21  ;;  %1889 = vmatprep.mubr.bf16.mxu0 %v4222_v37 }
  0xdd   :  { %2214 = vmatprep.mubr.bf16.mxu1 %v8075_v35  ;;  %v4226_v35 = vcombine.high %v6127_v33, %v6127_v33 }
  0xe3   :  { %v4535_v40 = vpop.f32.mrf.mxu0  ;;  %1890 = vmatmul.mubr.bf16.gmra.mxu0 %v4221_v48 }
  0xe4   :  { %v4647_v58 = vpop.f32.mrf.mxu1  ;;  %2215 = vmatmul.mubr.bf16.gmra.mxu1 %v8076_v43  ;;  %1897 = vmatprep.mubr.bf16.mxu0 %v4224_v25 }
  0xe5   :  { %2222 = vmatprep.mubr.bf16.mxu1 %v6131_v54  ;;  %v4536_v14 = vpop.f32.mrf.mxu0 }
  0xe6   :  { %v4648_v50 = vpop.f32.mrf.mxu1  ;;  %v4537_v62 = vadd.f32 %v4536_v14, %v4535_v40 }
  0xe7   :  { %v4649_v1 = vadd.f32 %v4648_v50, %v4647_v58  ;;  %v4538_v10 = vpop.f32.mrf.mxu0 }
  0xe8   :  { %v4650_v36 = vpop.f32.mrf.mxu1 }
  0xe9   :  { %v6453_v37 = vadd.f32 %v4649_v1, %v4537_v62  ;;  %v4539_v48 = vpop.f32.mrf.mxu0 }
  0xea   :  { %v4651_v13 = vpop.f32.mrf.mxu1  ;;  %v4540_v55 = vadd.f32 %v4539_v48, %v4538_v10  ;;  %v4225_v10 = vcombine.low %v6127_v33, %v6127_v33 }
  0xeb   :  { %8077 = vst [vmem:[#allocation15_spill] sm:$0xff] %v6453_v37  ;;  %v4652_v25 = vadd.f32 %v4651_v13, %v4650_v36  ;;  %v4541_v43 = vpop.f32.mrf.mxu0  ;;  %1898 = vmatmul.mubr.bf16.gmra.mxu0 %v4223_v15  ;;  %v4228_v15 = vcombine.high %v6166_v26, %v6166_v26 }
  0xec   :  { %v4653_v38 = vpop.f32.mrf.mxu1  ;;  %2223 = vmatmul.mubr.bf16.gmra.mxu1 %v6136_v34  ;;  %1905 = vmatprep.mubr.bf16.mxu0 %v4226_v35 }
  0xed   :  { %v6458_v40 = vadd.f32 %v4652_v25, %v4540_v55  ;;  %2230 = vmatprep.mubr.bf16.mxu1 %v6145_v6  ;;  %v4542_v22 = vpop.f32.mrf.mxu0 }
  0xee   :  { %v4654_v58 = vpop.f32.mrf.mxu1  ;;  %v4543_v14 = vadd.f32 %v4542_v22, %v4541_v43 }
  0xef   :  { %8078 = vst [vmem:[#allocation10_spill] sm:$0xff] %v6458_v40  ;;  %v4655_v50 = vadd.f32 %v4654_v58, %v4653_v38  ;;  %v4544_v62 = vpop.f32.mrf.mxu0 }
  0xf0   :  { %v4656_v1 = vpop.f32.mrf.mxu1 }
  0xf1   :  { %v6463_v36 = vadd.f32 %v4655_v50, %v4543_v14  ;;  %v4545_v48 = vpop.f32.mrf.mxu0 }
  0xf2   :  { %v4657_v13 = vpop.f32.mrf.mxu1  ;;  %v4546_v55 = vadd.f32 %v4545_v48, %v4544_v62  ;;  %v4227_v62 = vcombine.low %v6166_v26, %v6166_v26  ;;  %v4445_v48 = vpack.c.bf16 %v6246_v52, %v6215_v11 }
  0xf3   :  { %8079 = vst [vmem:[#allocation24_spill] sm:$0xff] %v6463_v36  ;;  %v4658_v35 = vadd.f32 %v4657_v13, %v4656_v1  ;;  %v4547_v25 = vpop.f32.mrf.mxu0  ;;  %1906 = vmatmul.mubr.bf16.gmra.mxu0 %v4225_v10  ;;  %v4230_v10 = vcombine.high %v6195_v45, %v6195_v45 }
  0xf4   :  { %v4659_v40 = vpop.f32.mrf.mxu1  ;;  %2231 = vmatmul.mubr.bf16.gmra.mxu1 %v6153_v44  ;;  %1913 = vmatprep.mubr.bf16.mxu0 %v4228_v15  ;;  %v816_v26 = vshrl.u32 %v4445_v48, 16 }
  0xf5   :  { %v6468_v38 = vadd.f32 %v4658_v35, %v4546_v55  ;;  %2238 = vmatprep.mubr.bf16.mxu1 %v6176_v9  ;;  %v4548_v33 = vpop.f32.mrf.mxu0 }
  0xf6   :  { %v4660_v43 = vpop.f32.mrf.mxu1  ;;  %v4549_v22 = vadd.f32 %v4548_v33, %v4547_v25  ;;  %v819_v33 = vshll.u32 %v4445_v48, 16 }
  0xf7   :  { %8080 = vst [vmem:[#allocation25_spill] sm:$0xff] %v6468_v38  ;;  %v4661_v58 = vadd.f32 %v4660_v43, %v4659_v40  ;;  %v4550_v14 = vpop.f32.mrf.mxu0 }
  0xf8   :  { %v4662_v50 = vpop.f32.mrf.mxu1 }
  0xf9   :  { %v6473_v1 = vadd.f32 %v4661_v58, %v4549_v22  ;;  %v4551_v15 = vpop.f32.mrf.mxu0 }
  0xfa   :  { %v4663_v13 = vpop.f32.mrf.mxu1  ;;  %v4552_v55 = vadd.f32 %v4551_v15, %v4550_v14  ;;  %v4229_v14 = vcombine.low %v6195_v45, %v6195_v45  ;;  %v818_v15 = vrot.slane %v816_v26, 4 }
  0xfb   :  { %8081 = vst [vmem:[#allocation26_spill] sm:$0xff] %v6473_v1  ;;  %v4664_v35 = vadd.f32 %v4663_v13, %v4662_v50  ;;  %v4553_v38 = vpop.f32.mrf.mxu0  ;;  %1914 = vmatmul.mubr.bf16.gmra.mxu0 %v4227_v62  ;;  %v4232_v62 = vcombine.high %v6224_v56, %v6224_v56 }
  0xfc   :  { %v4665_v25 = vpop.f32.mrf.mxu1  ;;  %2239 = vmatmul.mubr.bf16.gmra.mxu1 %v6180_v5  ;;  %1921 = vmatprep.mubr.bf16.mxu0 %v4230_v10  ;;  %v821_v10 = vrot.slane %v819_v33, 5 }
  0xfd   :  { %v6480_v40 = vadd.f32 %v4664_v35, %v4552_v55  ;;  %2246 = vmatprep.mubr.bf16.mxu1 %v6205_v47  ;;  %v4554_v43 = vpop.f32.mrf.mxu0 }
  0xfe   :  { %v4666_v22 = vpop.f32.mrf.mxu1  ;;  %v4555_v58 = vadd.f32 %v4554_v43, %v4553_v38  ;;  %v822_v45 = vor.u32 %v821_v10, %v818_v15 }
  0xff   :  { %8082 = vst [vmem:[#allocation27_spill] sm:$0xff] %v6480_v40  ;;  %v4667_v11 = vadd.f32 %v4666_v22, %v4665_v25  ;;  %v4556_v1 = vpop.f32.mrf.mxu0  ;;  %v8084_v25 = vld [vmem:[#allocation19_spill] sm:$0xff] }
 0x100   :  { %v4668_v36 = vpop.f32.mrf.mxu1  ;;  %v825_v43 = vshll.u32 %v8084_v25, 16 }
 0x101   :  { %v6485_v50 = vadd.f32 %v4667_v11, %v4555_v58  ;;  %v4557_v13 = vpop.f32.mrf.mxu0 }
 0x102   :  { %v4669_v55 = vpop.f32.mrf.mxu1  ;;  %v4558_v35 = vadd.f32 %v4557_v13, %v4556_v1  ;;  %v4234_v13 = vcombine.high %v6256_v57, %v6256_v57 }
 0x103   :  { %v4670_v48 = vadd.f32 %v4669_v55, %v4668_v36  ;;  %v4559_v40 = vpop.f32.mrf.mxu0  ;;  %1922 = vmatmul.mubr.bf16.gmra.mxu0 %v4229_v14  ;;  %v4231_v36 = vcombine.low %v6224_v56, %v6224_v56  ;;  %v827_v55 = vrot.slane %v825_v43, 5 }
 0x104   :  { %v4671_v37 = vpop.f32.mrf.mxu1  ;;  %2247 = vmatmul.mubr.bf16.gmra.mxu1 %v6209_v3  ;;  %1929 = vmatprep.mubr.bf16.mxu0 %v4232_v62  ;;  %v823_v62 = vrot.slane %v822_v45, 4 }
 0x105   :  { %v6490_v38 = vadd.f32 %v4670_v48, %v4558_v35  ;;  %2254 = vmatprep.mubr.bf16.mxu1 %v6234_v16  ;;  %v4560_v22 = vpop.f32.mrf.mxu0 }
 0x106   :  { %v4672_v26 = vpop.f32.mrf.mxu1  ;;  %v4561_v33 = vadd.f32 %v4560_v22, %v4559_v40  ;;  %v6506_v45 = vsel %vm5980_vm3, %v823_v62, %v827_v55 }
 0x107   :  { %8083 = vst [vmem:[#allocation28_spill] sm:$0xff] %v6490_v38  ;;  %v4673_v58 = vadd.f32 %v4672_v26, %v4671_v37  ;;  %v4562_v11 = vpop.f32.mrf.mxu0 }
 0x108   :  { %v4674_v1 = vpop.f32.mrf.mxu1 }
 0x109   :  { %v6496_v14 = vadd.f32 %v4673_v58, %v4561_v33  ;;  %v4563_v35 = vpop.f32.mrf.mxu0  ;;  %v4233_v58 = vcombine.low %v6256_v57, %v6256_v57 }
 0x10a   :  { %v4675_v15 = vpop.f32.mrf.mxu1  ;;  %v4564_v10 = vadd.f32 %v4563_v35, %v4562_v11 }
 0x10b   :  { %v4676_v48 = vadd.f32 %v4675_v15, %v4674_v1  ;;  %v4565_v25 = vpop.f32.mrf.mxu0  ;;  %1930 = vmatmul.mubr.bf16.gmra.mxu0 %v4231_v36  ;;  %v4236_v1 = vcombine.high %v6506_v45, %v6506_v45  ;;  %v6516_v36 = vcombine.high %v6256_v57, %v6506_v45 }
 0x10c   :  { %v4677_v38 = vpop.f32.mrf.mxu1  ;;  %2255 = vmatmul.mubr.bf16.gmra.mxu1 %v6239_v7  ;;  %1937 = vmatprep.mubr.bf16.mxu0 %v4234_v13 }
 0x10d   :  { %v6501_v37 = vadd.f32 %v4676_v48, %v4564_v10  ;;  %2262 = vmatprep.mubr.bf16.mxu1 %v6266_v19  ;;  %v4566_v56 = vpop.f32.mrf.mxu0 }
 0x10e   :  { %v4678_v40 = vpop.f32.mrf.mxu1  ;;  %v4567_v43 = vadd.f32 %v4566_v56, %v4565_v25 }
 0x10f   :  { %8085 = vst [vmem:[#allocation19_spill] sm:$0xff] %v6501_v37  ;;  %v4679_v22 = vadd.f32 %v4678_v40, %v4677_v38  ;;  %v4568_v26 = vpop.f32.mrf.mxu0 }
 0x110   :  { %v4680_v33 = vpop.f32.mrf.mxu1 }
 0x111   :  { %v6510_v11 = vadd.f32 %v4679_v22, %v4567_v43  ;;  %v4569_v13 = vpop.f32.mrf.mxu0 }
 0x112   :  { %v4681_v35 = vpop.f32.mrf.mxu1  ;;  %v4570_v62 = vadd.f32 %v4569_v13, %v4568_v26  ;;  %v4235_v26 = vcombine.low %v6506_v45, %v6506_v45 }
 0x113   :  { %8086 = vst [vmem:[#allocation29_spill] sm:$0xff] %v6510_v11  ;;  %v4682_v55 = vadd.f32 %v4681_v35, %v4680_v33  ;;  %v4571_v15 = vpop.f32.mrf.mxu0  ;;  %1938 = vmatmul.mubr.bf16.gmra.mxu0 %v4233_v58  ;;  %v6526_v33 = vcombine.low %v6256_v57, %v6506_v45 }
 0x114   :  { %v4683_v38 = vpop.f32.mrf.mxu1  ;;  %2263 = vmatmul.mubr.bf16.gmra.mxu1 %v6270_v32  ;;  %1945 = vmatprep.mubr.bf16.mxu0 %v4236_v1 }
 0x115   :  { %v6519_v10 = vadd.f32 %v4682_v55, %v4570_v62  ;;  %2270 = vmatprep.mubr.bf16.mxu1 %v6516_v36  ;;  %v4572_v48 = vpop.f32.mrf.mxu0 }
 0x116   :  { %v4684_v25 = vpop.f32.mrf.mxu1  ;;  %v4573_v56 = vadd.f32 %v4572_v48, %v4571_v15 }
 0x117   :  { %8087 = vst [vmem:[#allocation30_spill] sm:$0xff] %v6519_v10  ;;  %v4685_v40 = vadd.f32 %v4684_v25, %v4683_v38  ;;  %v4574_v43 = vpop.f32.mrf.mxu0  ;;  %v8089_v38 = vld [vmem:[#allocation3_spill] sm:$0xff] }
 0x118   :  { %v4686_v22 = vpop.f32.mrf.mxu1 }
 0x119   :  { %v6528_v58 = vadd.f32 %v4685_v40, %v4573_v56  ;;  %v4575_v13 = vpop.f32.mrf.mxu0 }
 0x11a   :  { %v4687_v35 = vpop.f32.mrf.mxu1  ;;  %v4576_v1 = vadd.f32 %v4575_v13, %v4574_v43 }
 0x11b   :  { %8088 = vst [vmem:[#allocation31_spill] sm:$0xff] %v6528_v58  ;;  %v4688_v62 = vadd.f32 %v4687_v35, %v4686_v22  ;;  %v4577_v55 = vpop.f32.mrf.mxu0  ;;  %1946 = vmatmul.mubr.bf16.gmra.mxu0 %v4235_v26 }
 0x11c   :  { %v4689_v10 = vpop.f32.mrf.mxu1  ;;  %2271 = vmatmul.mubr.bf16.gmra.mxu1 %v6526_v33  ;;  %2500 = vmatprep.mubr.bf16.mxu0 %v8089_v38 }
 0x11d   :  { %v6531_v15 = vadd.f32 %v4688_v62, %v4576_v1  ;;  %2834 = vmatprep.mubr.bf16.mxu1 %v6016_v59  ;;  %v4578_v48 = vpop.f32.mrf.mxu0  ;;  %v8090_v1 = vld [vmem:[#allocation4_spill] sm:$0xff]  ;;  %v8092_v59 = vld [vmem:[#allocation5_spill] sm:$0xff] }
 0x11e   :  { %v4690_v57 = vpop.f32.mrf.mxu1  ;;  %v4579_v25 = vadd.f32 %v4578_v48, %v4577_v55 }
 0x11f   :  { %v4691_v56 = vadd.f32 %v4690_v57, %v4689_v10  ;;  %v4580_v40 = vpop.f32.mrf.mxu0 }
 0x120   :  { %v4692_v58 = vpop.f32.mrf.mxu1 }
 0x121   :  { %v6535_v11 = vadd.f32 %v4691_v56, %v4579_v25  ;;  %v4581_v43 = vpop.f32.mrf.mxu0 }
 0x122   :  { %v4693_v22 = vpop.f32.mrf.mxu1  ;;  %v4582_v13 = vadd.f32 %v4581_v43, %v4580_v40 }
 0x123   :  { %v4694_v26 = vadd.f32 %v4693_v22, %v4692_v58  ;;  %v4583_v35 = vpop.f32.mrf.mxu0  ;;  %2501 = vmatmul.mubr.bf16.vlgmr.msra.gmra.mxu0 %v8090_v1 }
 0x124   :  { %v4695_v37 = vpop.f32.mrf.mxu1  ;;  %2835 = vmatmul.mubr.bf16.vlgmr.msra.gmra.mxu1 %v6020_v17  ;;  %2508 = vmatprep.mubr.bf16.mxu0 %v8092_v59 }
 0x125   :  { %v6539_v62 = vadd.f32 %v4694_v26, %v4582_v13  ;;  %2842 = vmatprep.mubr.bf16.mxu1 %v6048_v29  ;;  %v4584_v10 = vpop.f32.mrf.mxu0  ;;  %v8094_v13 = vld [vmem:[#allocation6_spill] sm:$0xff]  ;;  %v8096_v29 = vld [vmem:[#allocation7_spill] sm:$0xff] }
 0x126   :  { %v4696_v55 = vpop.f32.mrf.mxu1  ;;  %v4585_v38 = vadd.f32 %v4584_v10, %v4583_v35 }
 0x127   :  { %8091 = vst [vmem:[#allocation3_spill] sm:$0xff] %v6539_v62  ;;  %v4697_v48 = vadd.f32 %v4696_v55, %v4695_v37  ;;  %v4586_v57 = vpop.f32.mrf.mxu0 }
 0x128   :  { %v4698_v25 = vpop.f32.mrf.mxu1 }
 0x129   :  { %v6543_v56 = vadd.f32 %v4697_v48, %v4585_v38  ;;  %v4587_v58 = vpop.f32.mrf.mxu0  ;;  %v116_v48 = vld [vmem:[#allocation2 + $0x98] sm:$0x3] }
 0x12a   :  { %v4699_v40 = vpop.f32.mrf.mxu1  ;;  %v4588_v43 = vadd.f32 %v4587_v58, %v4586_v57 }
 0x12b   :  { %8093 = vst [vmem:[#allocation4_spill] sm:$0xff] %v6543_v56  ;;  %v4700_v22 = vadd.f32 %v4699_v40, %v4698_v25  ;;  %v4589_v1 = vpop.f32.mrf.mxu0  ;;  %2509 = vmatmul.mubr.bf16.gmra.mxu0 %v8094_v13 }
 0x12c   :  { %v4701_v17 = vpop.f32.mrf.mxu1  ;;  %2843 = vmatmul.mubr.bf16.gmra.mxu1 %v6052_v18  ;;  %2516 = vmatprep.mubr.bf16.mxu0 %v8096_v29  ;;  %v6553_v18 = vld [vmem:[#allocation2] sm:$0xff] }
 0x12d   :  { %v6547_v26 = vadd.f32 %v4700_v22, %v4588_v43  ;;  %2850 = vmatprep.mubr.bf16.mxu1 %v6058_v60  ;;  %v4590_v37 = vpop.f32.mrf.mxu0  ;;  %v7999_v43 = vrot.slane %v6553_v18, 1  ;;  %v206_v22 = vrot.slane %v116_v48, 1 }
 0x12e   :  { %v4702_v35 = vpop.f32.mrf.mxu1  ;;  %v4591_v59 = vadd.f32 %v4590_v37, %v4589_v1 }
 0x12f   :  { %8095 = vst [vmem:[#allocation5_spill] sm:$0xff] %v6547_v26  ;;  %v4703_v10 = vadd.f32 %v4702_v35, %v4701_v17  ;;  %v4592_v55 = vpop.f32.mrf.mxu0  ;;  %v8098_v26 = vld [vmem:[#allocation8_spill] sm:$0xff]  ;;  %v8100_v17 = vld [vmem:[#allocation9_spill] sm:$0xff] }
 0x130   :  { %v4704_v38 = vpop.f32.mrf.mxu1 }
 0x131   :  { %v6551_v57 = vadd.f32 %v4703_v10, %v4591_v59  ;;  %v4593_v25 = vpop.f32.mrf.mxu0 }
 0x132   :  { %v4705_v58 = vpop.f32.mrf.mxu1  ;;  %v4594_v40 = vadd.f32 %v4593_v25, %v4592_v55  ;;  %v6565_v55 = vsel %vm177_vm0, %v7999_v43, %v206_v22 }
 0x133   :  { %8097 = vst [vmem:[#allocation6_spill] sm:$0xff] %v6551_v57  ;;  %v4706_v13 = vadd.f32 %v4705_v58, %v4704_v38  ;;  %v4595_v29 = vpop.f32.mrf.mxu0  ;;  %2517 = vmatmul.mubr.bf16.gmra.mxu0 %v8098_v26 }
 0x134   :  { %v4707_v60 = vpop.f32.mrf.mxu1  ;;  %2851 = vmatmul.mubr.bf16.gmra.mxu1 %v6062_v0  ;;  %2524 = vmatprep.mubr.bf16.mxu0 %v8100_v17 }
 0x135   :  { %v6558_v1 = vadd.f32 %v4706_v13, %v4594_v40  ;;  %2858 = vmatprep.mubr.bf16.mxu1 %v6066_v31  ;;  %v4596_v37 = vpop.f32.mrf.mxu0  ;;  %v4511_v40 = vpack.c.bf16 %v6565_v55, %v6553_v18 }
 0x136   :  { %v4708_v35 = vpop.f32.mrf.mxu1  ;;  %v4597_v59 = vadd.f32 %v4596_v37, %v4595_v29  ;;  %v8102_v29 = vld [vmem:[#allocation11_spill] sm:$0xff]  ;;  %v8104_v37 = vld [vmem:[#allocation12_spill] sm:$0xff] }
 0x137   :  { %8099 = vst [vmem:[#allocation7_spill] sm:$0xff] %v6558_v1  ;;  %v4709_v10 = vadd.f32 %v4708_v35, %v4707_v60  ;;  %v4598_v38 = vpop.f32.mrf.mxu0  ;;  %v2307_v43 = vshll.u32 %v4511_v40, 16 }
 0x138   :  { %v4710_v25 = vpop.f32.mrf.mxu1 }
 0x139   :  { %v6567_v26 = vadd.f32 %v4709_v10, %v4597_v59  ;;  %v4599_v0 = vpop.f32.mrf.mxu0  ;;  %v2304_v10 = vshrl.u32 %v4511_v40, 16 }
 0x13a   :  { %v4711_v58 = vpop.f32.mrf.mxu1  ;;  %v4600_v13 = vadd.f32 %v4599_v0, %v4598_v38 }
 0x13b   :  { %8101 = vst [vmem:[#allocation8_spill] sm:$0xff] %v6567_v26  ;;  %v4712_v31 = vadd.f32 %v4711_v58, %v4710_v25  ;;  %v4601_v17 = vpop.f32.mrf.mxu0  ;;  %2525 = vmatmul.mubr.bf16.gmra.mxu0 %v8102_v29  ;;  %v2306_v56 = vrot.slane %v2304_v10, 4 }
 0x13c   :  { %v4713_v1 = vpop.f32.mrf.mxu1  ;;  %2859 = vmatmul.mubr.bf16.gmra.mxu1 %v6071_v53  ;;  %2532 = vmatprep.mubr.bf16.mxu0 %v8104_v37  ;;  %v2309_v53 = vrot.slane %v2307_v43, 5 }
 0x13d   :  { %v6573_v60 = vadd.f32 %v4712_v31, %v4600_v13  ;;  %2866 = vmatprep.mubr.bf16.mxu1 %v6088_v63  ;;  %v4602_v35 = vpop.f32.mrf.mxu0  ;;  %v4512_v13 = vpack.c.bf16 %v206_v22, %v116_v48  ;;  %v8106_v63 = vld [vmem:[#allocation13_spill] sm:$0xff] }
 0x13e   :  { %v4714_v59 = vpop.f32.mrf.mxu1  ;;  %v4603_v26 = vadd.f32 %v4602_v35, %v4601_v17  ;;  %v2310_v17 = vor.u32 %v2309_v53, %v2306_v56  ;;  %v8112_v56 = vld [vmem:[#allocation17_spill] sm:$0xff] }
 0x13f   :  { %8103 = vst [vmem:[#allocation9_spill] sm:$0xff] %v6573_v60  ;;  %v4715_v57 = vadd.f32 %v4714_v59, %v4713_v1  ;;  %v4604_v38 = vpop.f32.mrf.mxu0  ;;  %v8108_v1 = vld [vmem:[#allocation14_spill] sm:$0xff]  ;;  %v2313_v35 = vshll.u32 %v4512_v13, 16 }
 0x140   :  { %v4716_v25 = vpop.f32.mrf.mxu1 }
 0x141   :  { %v6577_v0 = vadd.f32 %v4715_v57, %v4603_v26  ;;  %v4605_v58 = vpop.f32.mrf.mxu0 }
 0x142   :  { %v4717_v29 = vpop.f32.mrf.mxu1  ;;  %v4606_v31 = vadd.f32 %v4605_v58, %v4604_v38  ;;  %v2311_v58 = vrot.slane %v2310_v17, 4 }
 0x143   :  { %8105 = vst [vmem:[#allocation11_spill] sm:$0xff] %v6577_v0  ;;  %v4718_v60 = vadd.f32 %v4717_v29, %v4716_v25  ;;  %v4607_v37 = vpop.f32.mrf.mxu0  ;;  %2533 = vmatmul.mubr.bf16.gmra.mxu0 %v8106_v63 }
 0x144   :  { %v4719_v62 = vpop.f32.mrf.mxu1  ;;  %2867 = vmatmul.mubr.bf16.gmra.mxu1 %v6092_v46  ;;  %2540 = vmatprep.mubr.bf16.mxu0 %v8108_v1  ;;  %v2315_v46 = vrot.slane %v2313_v35, 5  ;;  %v8110_v1 = vld [vmem:[#allocation16_spill] sm:$0xff] }
 0x145   :  { %v6581_v40 = vadd.f32 %v4718_v60, %v4606_v31  ;;  %2874 = vmatprep.mubr.bf16.mxu1 %v6096_v28  ;;  %v4608_v57 = vpop.f32.mrf.mxu0 }
 0x146   :  { %v4720_v26 = vpop.f32.mrf.mxu1  ;;  %v4609_v43 = vadd.f32 %v4608_v57, %v4607_v37  ;;  %v2316_v13 = vsel %vm5980_vm3, %v2311_v58, %v2315_v46 }
 0x147   :  { %8107 = vst [vmem:[#allocation12_spill] sm:$0xff] %v6581_v40  ;;  %v4721_v48 = vadd.f32 %v4720_v26, %v4719_v62  ;;  %v4610_v22 = vpop.f32.mrf.mxu0 }
 0x148   :  { %v4722_v59 = vpop.f32.mrf.mxu1 }
 0x149   :  { %v6585_v10 = vadd.f32 %v4721_v48, %v4609_v43  ;;  %v4611_v38 = vpop.f32.mrf.mxu0  ;;  %v4390_v43 = vcombine.high %v6419_v30, %v2316_v13 }
 0x14a   :  { %v4723_v25 = vpop.f32.mrf.mxu1  ;;  %v4612_v60 = vadd.f32 %v4611_v38, %v4610_v22 }
 0x14b   :  { %8109 = vst [vmem:[#allocation13_spill] sm:$0xff] %v6585_v10  ;;  %v4724_v29 = vadd.f32 %v4723_v25, %v4722_v59  ;;  %v4613_v31 = vpop.f32.mrf.mxu0  ;;  %2541 = vmatmul.mubr.bf16.gmra.mxu0 %v8110_v1  ;;  %v4389_v1 = vcombine.low %v6419_v30, %v2316_v13 }
 0x14c   :  { %v4725_v63 = vpop.f32.mrf.mxu1  ;;  %2875 = vmatmul.mubr.bf16.gmra.mxu1 %v6100_v23  ;;  %2548 = vmatprep.mubr.bf16.mxu0 %v8112_v56  ;;  %v4516_v23 = vpack.c.bf16 %v6565_v55, %v8073_v2  ;;  %v5293_v56 = vld [vmem:[#allocation2 + $0x80] sm:$0xff] }
 0x14d   :  { %v6589_v28 = vadd.f32 %v4724_v29, %v4612_v60  ;;  %2882 = vmatprep.mubr.bf16.mxu1 %v6427_v27  ;;  %v4614_v62 = vpop.f32.mrf.mxu0  ;;  %v8114_v60 = vld [vmem:[#allocation18_spill] sm:$0xff] }
 0x14e   :  { %v4726_v53 = vpop.f32.mrf.mxu1  ;;  %v4615_v37 = vadd.f32 %v4614_v62, %v4613_v31  ;;  %v4515_v62 = vpack.c.bf16 %v6553_v18, %v5293_v56 }
 0x14f   :  { %8111 = vst [vmem:[#allocation14_spill] sm:$0xff] %v6589_v28  ;;  %v4727_v57 = vadd.f32 %v4726_v53, %v4725_v63  ;;  %v4616_v26 = vpop.f32.mrf.mxu0 }
 0x150   :  { %v4728_v17 = vpop.f32.mrf.mxu1 }
 0x151   :  { %v6595_v35 = vadd.f32 %v4727_v57, %v4615_v37  ;;  %v4617_v48 = vpop.f32.mrf.mxu0 }
 0x152   :  { %v4729_v22 = vpop.f32.mrf.mxu1  ;;  %v4618_v59 = vadd.f32 %v4617_v48, %v4616_v26 }
 0x153   :  { %8113 = vst [vmem:[#allocation16_spill] sm:$0xff] %v6595_v35  ;;  %v4730_v27 = vadd.f32 %v4729_v22, %v4728_v17  ;;  %v4619_v38 = vpop.f32.mrf.mxu0  ;;  %2549 = vmatmul.mubr.bf16.gmra.mxu0 %v8114_v60 }
 0x154   :  { %v4731_v25 = vpop.f32.mrf.mxu1  ;;  %2883 = vmatmul.mubr.bf16.gmra.mxu1 %v6435_v21  ;;  %2556 = vmatprep.mubr.bf16.mxu0 %v4516_v23 }
 0x155   :  { %v6602_v58 = vadd.f32 %v4730_v27, %v4618_v59  ;;  %2890 = vmatprep.mubr.bf16.mxu1 %v4390_v43  ;;  %v4620_v46 = vpop.f32.mrf.mxu0 }
 0x156   :  { %v4732_v29 = vpop.f32.mrf.mxu1  ;;  %v4621_v31 = vadd.f32 %v4620_v46, %v4619_v38 }
 0x157   :  { %8115 = vst [vmem:[#allocation17_spill] sm:$0xff] %v6602_v58  ;;  %v4733_v2 = vadd.f32 %v4732_v29, %v4731_v25  ;;  %v4622_v55 = vpop.f32.mrf.mxu0 }
 0x158   :  { %v4734_v63 = vpop.f32.mrf.mxu1 }
 0x159   :  { %v6606_v53 = vadd.f32 %v4733_v2, %v4621_v31  ;;  %v4623_v37 = vpop.f32.mrf.mxu0 }
 0x15a   :  { %v4735_v57 = vpop.f32.mrf.mxu1  ;;  %v4624_v21 = vadd.f32 %v4623_v37, %v4622_v55 }
 0x15b   :  { %8116 = vst [vmem:[#allocation18_spill] sm:$0xff] %v6606_v53  ;;  %v4736_v26 = vadd.f32 %v4735_v57, %v4734_v63  ;;  %v4625_v17 = vpop.f32.mrf.mxu0  ;;  %2557 = vmatmul.mubr.bf16.gmra.mxu0 %v4515_v62 }
 0x15c   :  { %v4737_v23 = vpop.f32.mrf.mxu1  ;;  %2891 = vmatmul.mubr.bf16.gmra.mxu1 %v4389_v1  ;;  %2564 = vmatprep.mubr.bf16.mxu0 %v5969_v41 }
 0x15d   :  { %v6608_v43 = vadd.f32 %v4736_v26, %v4624_v21  ;;  %2898 = vmatprep.mubr.bf16.mxu1 %v6131_v54  ;;  %v4626_v30 = vpop.f32.mrf.mxu0  ;;  %v8120_v54 = vld [vmem:[#allocation20_spill] sm:$0xff] }
 0x15e   :  { %v4738_v13 = vpop.f32.mrf.mxu1  ;;  %v4627_v48 = vadd.f32 %v4626_v30, %v4625_v17 }
 0x15f   :  { %8117 = vst [vmem:[#allocation32_spill] sm:$0xff] %v6608_v43  ;;  %v4739_v22 = vadd.f32 %v4738_v13, %v4737_v23  ;;  %v4628_v59 = vpop.f32.mrf.mxu0 }
 0x160   :  { %v4740_v27 = vpop.f32.mrf.mxu1 }
 0x161   :  { %v6612_v38 = vadd.f32 %v4739_v22, %v4627_v48  ;;  %v4629_v25 = vpop.f32.mrf.mxu0 }
 0x162   :  { %v4741_v60 = vpop.f32.mrf.mxu1  ;;  %v4630_v46 = vadd.f32 %v4629_v25, %v4628_v59  ;;  %v136_v25 = vld [vmem:[#allocation2 + $0x138] sm:$0x3] }
 0x163   :  { %8118 = vst [vmem:[#allocation33_spill] sm:$0xff] %v6612_v38  ;;  %v4742_v29 = vadd.f32 %v4741_v60, %v4740_v27  ;;  %v4759_v31 = vpop.f32.mrf.mxu0  ;;  %2565 = vmatmul.mubr.bf16.gmra.mxu0 %v6000_v51 }
 0x164   :  { %v4871_v2 = vpop.f32.mrf.mxu1  ;;  %2899 = vmatmul.mubr.bf16.gmra.mxu1 %v6136_v34  ;;  %2572 = vmatprep.mubr.bf16.mxu0 %v8120_v54 }
 0x165   :  { %v6616_v41 = vadd.f32 %v4742_v29, %v4630_v46  ;;  %2906 = vmatprep.mubr.bf16.mxu1 %v6145_v6  ;;  %v4760_v55 = vpop.f32.mrf.mxu0 }
 0x166   :  { %v4872_v63 = vpop.f32.mrf.mxu1  ;;  %v4761_v1 = vadd.f32 %v4760_v55, %v4759_v31 }
 0x167   :  { %8119 = vst [vmem:[#allocation34_spill] sm:$0xff] %v6616_v41  ;;  %v4873_v56 = vadd.f32 %v4872_v63, %v4871_v2  ;;  %v4762_v62 = vpop.f32.mrf.mxu0 }
 0x168   :  { %v4874_v37 = vpop.f32.mrf.mxu1 }
 0x169   :  { %v6620_v57 = vadd.f32 %v4873_v56, %v4761_v1  ;;  %v4763_v21 = vpop.f32.mrf.mxu0 }
 0x16a   :  { %v4875_v26 = vpop.f32.mrf.mxu1  ;;  %v4764_v17 = vadd.f32 %v4763_v21, %v4762_v62  ;;  %v8122_v62 = vrot.slane %v6553_v18, 1 }
 0x16b   :  { %v4876_v51 = vadd.f32 %v4875_v26, %v4874_v37  ;;  %v4765_v23 = vpop.f32.mrf.mxu0  ;;  %2573 = vmatmul.mubr.bf16.gmra.mxu0 %v6113_v4 }
 0x16c   :  { %v4877_v34 = vpop.f32.mrf.mxu1  ;;  %2907 = vmatmul.mubr.bf16.gmra.mxu1 %v6153_v44  ;;  %2580 = vmatprep.mubr.bf16.mxu0 %v6119_v49  ;;  %v236_v44 = vrot.slane %v136_v25, 1 }
 0x16d   :  { %v6624_v30 = vadd.f32 %v4876_v51, %v4764_v17  ;;  %2914 = vmatprep.mubr.bf16.mxu1 %v6176_v9  ;;  %v4766_v6 = vpop.f32.mrf.mxu0  ;;  %v8121_v9 = vld [vmem:[#allocation21_spill] sm:$0xff] }
 0x16e   :  { %v4878_v13 = vpop.f32.mrf.mxu1  ;;  %v4767_v48 = vadd.f32 %v4766_v6, %v4765_v23  ;;  %v6639_v37 = vsel %vm177_vm0, %v8122_v62, %v236_v44 }
 0x16f   :  { %v4879_v22 = vadd.f32 %v4878_v13, %v4877_v34  ;;  %v4768_v59 = vpop.f32.mrf.mxu0  ;;  %v4513_v51 = vpack.c.bf16 %v6639_v37, %v6553_v18 }
 0x170   :  { %v4880_v27 = vpop.f32.mrf.mxu1 }
 0x171   :  { %v6628_v60 = vadd.f32 %v4879_v22, %v4767_v48  ;;  %v4769_v46 = vpop.f32.mrf.mxu0 }
 0x172   :  { %v4881_v29 = vpop.f32.mrf.mxu1  ;;  %v4770_v4 = vadd.f32 %v4769_v46, %v4768_v59  ;;  %v2318_v59 = vshrl.u32 %v4513_v51, 16 }
 0x173   :  { %v4882_v31 = vadd.f32 %v4881_v29, %v4880_v27  ;;  %v4771_v2 = vpop.f32.mrf.mxu0  ;;  %2581 = vmatmul.mubr.bf16.gmra.mxu0 %v6159_v39  ;;  %v2321_v27 = vshll.u32 %v4513_v51, 16 }
 0x174   :  { %v4883_v54 = vpop.f32.mrf.mxu1  ;;  %2915 = vmatmul.mubr.bf16.gmra.mxu1 %v6180_v5  ;;  %2588 = vmatprep.mubr.bf16.mxu0 %v8121_v9  ;;  %v2320_v9 = vrot.slane %v2318_v59, 4  ;;  %v8123_v59 = vld [vmem:[#allocation22_spill] sm:$0xff] }
 0x175   :  { %v6632_v49 = vadd.f32 %v4882_v31, %v4770_v4  ;;  %2922 = vmatprep.mubr.bf16.mxu1 %v6205_v47  ;;  %v4772_v55 = vpop.f32.mrf.mxu0 }
 0x176   :  { %v4884_v63 = vpop.f32.mrf.mxu1  ;;  %v4773_v1 = vadd.f32 %v4772_v55, %v4771_v2  ;;  %v4514_v55 = vpack.c.bf16 %v236_v44, %v136_v25 }
 0x177   :  { %v4885_v56 = vadd.f32 %v4884_v63, %v4883_v54  ;;  %v4774_v21 = vpop.f32.mrf.mxu0 }
 0x178   :  { %v4886_v26 = vpop.f32.mrf.mxu1 }
 0x179   :  { %v6641_v39 = vadd.f32 %v4885_v56, %v4773_v1  ;;  %v4775_v5 = vpop.f32.mrf.mxu0 }
 0x17a   :  { %v4887_v17 = vpop.f32.mrf.mxu1  ;;  %v4776_v23 = vadd.f32 %v4775_v5, %v4774_v21  ;;  %v2327_v5 = vshll.u32 %v4514_v55, 16 }
 0x17b   :  { %v4888_v47 = vadd.f32 %v4887_v17, %v4886_v26  ;;  %v4777_v34 = vpop.f32.mrf.mxu0  ;;  %2589 = vmatmul.mubr.bf16.gmra.mxu0 %v6188_v42 }
 0x17c   :  { %v4889_v6 = vpop.f32.mrf.mxu1  ;;  %2923 = vmatmul.mubr.bf16.gmra.mxu1 %v6209_v3  ;;  %2596 = vmatprep.mubr.bf16.mxu0 %v6201_v20  ;;  %v2323_v3 = vrot.slane %v2321_v27, 5 }
 0x17d   :  { %v6647_v13 = vadd.f32 %v4888_v47, %v4776_v23  ;;  %2930 = vmatprep.mubr.bf16.mxu1 %v6234_v16  ;;  %v4778_v48 = vpop.f32.mrf.mxu0 }
 0x17e   :  { %v4890_v22 = vpop.f32.mrf.mxu1  ;;  %v4779_v46 = vadd.f32 %v4778_v48, %v4777_v34  ;;  %v2324_v26 = vor.u32 %v2323_v3, %v2320_v9 }
 0x17f   :  { %v4891_v29 = vadd.f32 %v4890_v22, %v4889_v6  ;;  %v4780_v4 = vpop.f32.mrf.mxu0 }
 0x180   :  { %v4892_v31 = vpop.f32.mrf.mxu1  ;;  %v2325_v34 = vrot.slane %v2324_v26, 4 }
 0x181   :  { %v6651_v2 = vadd.f32 %v4891_v29, %v4779_v46  ;;  %v4781_v54 = vpop.f32.mrf.mxu0 }
 0x182   :  { %v4893_v42 = vpop.f32.mrf.mxu1  ;;  %v4782_v63 = vadd.f32 %v4781_v54, %v4780_v4 }
 0x183   :  { %v4894_v1 = vadd.f32 %v4893_v42, %v4892_v31  ;;  %v4783_v20 = vpop.f32.mrf.mxu0  ;;  %2597 = vmatmul.mubr.bf16.gmra.mxu0 %v6219_v8 }
 0x184   :  { %v4895_v56 = vpop.f32.mrf.mxu1  ;;  %2931 = vmatmul.mubr.bf16.gmra.mxu1 %v6239_v7  ;;  %2604 = vmatprep.mubr.bf16.mxu0 %v6230_v61  ;;  %v2329_v7 = vrot.slane %v2327_v5, 5 }
 0x185   :  { %v6655_v16 = vadd.f32 %v4894_v1, %v4782_v63  ;;  %2938 = vmatprep.mubr.bf16.mxu1 %v6266_v19  ;;  %v4784_v62 = vpop.f32.mrf.mxu0 }
 0x186   :  { %v4896_v21 = vpop.f32.mrf.mxu1  ;;  %v4785_v17 = vadd.f32 %v4784_v62, %v4783_v20  ;;  %v2330_v29 = vsel %vm5980_vm3, %v2325_v34, %v2329_v7 }
 0x187   :  { %v4897_v25 = vadd.f32 %v4896_v21, %v4895_v56  ;;  %v4786_v44 = vpop.f32.mrf.mxu0  ;;  %v8124_v56 = vld [vmem:[#allocation23_spill] sm:$0xff] }
 0x188   :  { %v4898_v51 = vpop.f32.mrf.mxu1 }
 0x189   :  { %v6659_v23 = vadd.f32 %v4897_v25, %v4785_v17  ;;  %v4787_v47 = vpop.f32.mrf.mxu0  ;;  %v4391_v17 = vcombine.low %v6506_v45, %v2330_v29  ;;  %v5294_v25 = vld [vmem:[#allocation2 + $0x120] sm:$0xff] }
 0x18a   :  { %v4899_v8 = vpop.f32.mrf.mxu1  ;;  %v4788_v6 = vadd.f32 %v4787_v47, %v4786_v44  ;;  %v4517_v44 = vpack.c.bf16 %v6553_v18, %v5294_v25 }
 0x18b   :  { %v4900_v48 = vadd.f32 %v4899_v8, %v4898_v51  ;;  %v4789_v22 = vpop.f32.mrf.mxu0  ;;  %2605 = vmatmul.mubr.bf16.gmra.mxu0 %v6252_v12  ;;  %v4518_v12 = vpack.c.bf16 %v6639_v37, %v6246_v52 }
 0x18c   :  { %v4901_v61 = vpop.f32.mrf.mxu1  ;;  %2939 = vmatmul.mubr.bf16.gmra.mxu1 %v6270_v32  ;;  %2612 = vmatprep.mubr.bf16.mxu0 %v8123_v59  ;;  %v4392_v32 = vcombine.high %v6506_v45, %v2330_v29 }
 0x18d   :  { %v6663_v19 = vadd.f32 %v4900_v48, %v4788_v6  ;;  %2946 = vmatprep.mubr.bf16.mxu1 %v6516_v36  ;;  %v4790_v27 = vpop.f32.mrf.mxu0 }
 0x18e   :  { %v4902_v46 = vpop.f32.mrf.mxu1  ;;  %v4791_v4 = vadd.f32 %v4790_v27, %v4789_v22 }
 0x18f   :  { %v4903_v31 = vadd.f32 %v4902_v46, %v4901_v61  ;;  %v4792_v54 = vpop.f32.mrf.mxu0 }
 0x190   :  { %v4904_v42 = vpop.f32.mrf.mxu1 }
 0x191   :  { %v6669_v9 = vadd.f32 %v4903_v31, %v4791_v4  ;;  %v4793_v3 = vpop.f32.mrf.mxu0 }
 0x192   :  { %v4905_v55 = vpop.f32.mrf.mxu1  ;;  %v4794_v63 = vadd.f32 %v4793_v3, %v4792_v54 }
 0x193   :  { %v4906_v36 = vadd.f32 %v4905_v55, %v4904_v42  ;;  %v4795_v1 = vpop.f32.mrf.mxu0  ;;  %2613 = vmatmul.mubr.bf16.gmra.mxu0 %v8124_v56 }
 0x194   :  { %v4907_v20 = vpop.f32.mrf.mxu1  ;;  %2947 = vmatmul.mubr.bf16.gmra.mxu1 %v6526_v33  ;;  %2620 = vmatprep.mubr.bf16.mxu0 %v4518_v12 }
 0x195   :  { %v6676_v24 = vadd.f32 %v4906_v36, %v4794_v63  ;;  %2954 = vmatprep.mubr.bf16.mxu1 %v4392_v32  ;;  %v4796_v62 = vpop.f32.mrf.mxu0 }
 0x196   :  { %v4908_v21 = vpop.f32.mrf.mxu1  ;;  %v4797_v26 = vadd.f32 %v4796_v62, %v4795_v1 }
 0x197   :  { %v4909_v52 = vadd.f32 %v4908_v21, %v4907_v20  ;;  %v4798_v37 = vpop.f32.mrf.mxu0 }
 0x198   :  { %v4910_v5 = vpop.f32.mrf.mxu1 }
 0x199   :  { %v6680_v51 = vadd.f32 %v4909_v52, %v4797_v26  ;;  %v4799_v47 = vpop.f32.mrf.mxu0 }
 0x19a   :  { %v4911_v8 = vpop.f32.mrf.mxu1  ;;  %v4800_v33 = vadd.f32 %v4799_v47, %v4798_v37 }
 0x19b   :  { %v4912_v34 = vadd.f32 %v4911_v8, %v4910_v5  ;;  %v4801_v7 = vpop.f32.mrf.mxu0  ;;  %2621 = vmatmul.mubr.bf16.gmra.mxu0 %v4517_v44 }
 0x19c   :  { %v4913_v6 = vpop.f32.mrf.mxu1  ;;  %2955 = vmatmul.mubr.bf16.gmra.mxu1 %v4391_v17 }
 0x19d   :  { %v6682_v48 = vadd.f32 %v4912_v34, %v4800_v33  ;;  %v4802_v22 = vpop.f32.mrf.mxu0 }
 0x19e   :  { %v4914_v61 = vpop.f32.mrf.mxu1  ;;  %v4803_v59 = vadd.f32 %v4802_v22, %v4801_v7 }
 0x19f   :  { %v4915_v27 = vadd.f32 %v4914_v61, %v4913_v6  ;;  %v4804_v45 = vpop.f32.mrf.mxu0 }
 0x1a0   :  { %v4916_v46 = vpop.f32.mrf.mxu1 }
 0x1a1   :  { %v6684_v29 = vadd.f32 %v4915_v27, %v4803_v59  ;;  %v4805_v18 = vpop.f32.mrf.mxu0 }
 0x1a2   :  { %v4917_v4 = vpop.f32.mrf.mxu1  ;;  %v4806_v31 = vadd.f32 %v4805_v18, %v4804_v45 }
 0x1a3   :  { %8125 = vst [vmem:[#allocation20_spill] sm:$0xff] %v6684_v29  ;;  %v4918_v54 = vadd.f32 %v4917_v4, %v4916_v46  ;;  %v4807_v42 = vpop.f32.mrf.mxu0 }
 0x1a4   :  { %v4919_v12 = vpop.f32.mrf.mxu1 }
 0x1a5   :  { %v6686_v32 = vadd.f32 %v4918_v54, %v4806_v31  ;;  %v4808_v3 = vpop.f32.mrf.mxu0 }
 0x1a6   :  { %v4920_v55 = vpop.f32.mrf.mxu1  ;;  %v4809_v63 = vadd.f32 %v4808_v3, %v4807_v42 }
 0x1a7   :  { %8126 = vst [vmem:[#allocation21_spill] sm:$0xff] %v6686_v32  ;;  %v4921_v36 = vadd.f32 %v4920_v55, %v4919_v12  ;;  %v4810_v1 = vpop.f32.mrf.mxu0 }
 0x1a8   :  { %v4922_v20 = vpop.f32.mrf.mxu1 }
 0x1a9   :  { %v6688_v56 = vadd.f32 %v4921_v36, %v4809_v63  ;;  %v4811_v62 = vpop.f32.mrf.mxu0 }
 0x1aa   :  { %v4923_v21 = vpop.f32.mrf.mxu1  ;;  %v4812_v26 = vadd.f32 %v4811_v62, %v4810_v1 }
 0x1ab   :  { %8127 = vst [vmem:[#allocation22_spill] sm:$0xff] %v6688_v56  ;;  %v4924_v52 = vadd.f32 %v4923_v21, %v4922_v20  ;;  %v4813_v37 = vpop.f32.mrf.mxu0 }
 0x1ac   :  { %v4925_v5 = vpop.f32.mrf.mxu1 }
 0x1ad   :  { %v6690_v17 = vadd.f32 %v4924_v52, %v4812_v26  ;;  %v4814_v25 = vpop.f32.mrf.mxu0 }
 0x1ae   :  { %v4926_v44 = vpop.f32.mrf.mxu1  ;;  %v4815_v47 = vadd.f32 %v4814_v25, %v4813_v37 }
 0x1af   :  { %8128 = vst [vmem:[#allocation23_spill] sm:$0xff] %v6690_v17  ;;  %v4927_v8 = vadd.f32 %v4926_v44, %v4925_v5  ;;  %v4816_v33 = vpop.f32.mrf.mxu0 }
 0x1b0   :  { %v4928_v34 = vpop.f32.mrf.mxu1 }
 0x1b1   :  { %v6692_v7 = vadd.f32 %v4927_v8, %v4815_v47  ;;  %v4817_v6 = vpop.f32.mrf.mxu0 }
 0x1b2   :  { %v4929_v22 = vpop.f32.mrf.mxu1  ;;  %v4818_v61 = vadd.f32 %v4817_v6, %v4816_v33 }
 0x1b3   :  { %8129 = vst [vmem:[#allocation35_spill] sm:$0xff] %v6692_v7  ;;  %v4930_v59 = vadd.f32 %v4929_v22, %v4928_v34  ;;  %v4819_v27 = vpop.f32.mrf.mxu0 }
 0x1b4   :  { %v4931_v45 = vpop.f32.mrf.mxu1 }
 0x1b5   :  { %v6694_v46 = vadd.f32 %v4930_v59, %v4818_v61  ;;  %v4820_v18 = vpop.f32.mrf.mxu0 }
 0x1b6   :  { %v4932_v4 = vpop.f32.mrf.mxu1  ;;  %v4821_v31 = vadd.f32 %v4820_v18, %v4819_v27 }
 0x1b7   :  { %8130 = vst [vmem:[#allocation36_spill] sm:$0xff] %v6694_v46  ;;  %v4933_v54 = vadd.f32 %v4932_v4, %v4931_v45  ;;  %v4822_v42 = vpop.f32.mrf.mxu0 }
 0x1b8   :  { %v4934_v12 = vpop.f32.mrf.mxu1 }
 0x1b9   :  { %v6696_v3 = vadd.f32 %v4933_v54, %v4821_v31  ;;  %v4823_v55 = vpop.f32.mrf.mxu0 }
 0x1ba   :  { %v4935_v63 = vpop.f32.mrf.mxu1  ;;  %v4824_v36 = vadd.f32 %v4823_v55, %v4822_v42 }
 0x1bb   :  { %8131 = vst [vmem:[#allocation37_spill] sm:$0xff] %v6696_v3  ;;  %v4936_v1 = vadd.f32 %v4935_v63, %v4934_v12  ;;  %v4825_v20 = vpop.f32.mrf.mxu0 }
 0x1bc   :  { %v4937_v62 = vpop.f32.mrf.mxu1 }
 0x1bd   :  { %v6698_v21 = vadd.f32 %v4936_v1, %v4824_v36  ;;  %v4826_v26 = vpop.f32.mrf.mxu0 }
 0x1be   :  { %v4938_v52 = vpop.f32.mrf.mxu1  ;;  %v4827_v37 = vadd.f32 %v4826_v26, %v4825_v20 }
 0x1bf   :  { %8132 = vst [vmem:[#allocation38_spill] sm:$0xff] %v6698_v21  ;;  %v4939_v5 = vadd.f32 %v4938_v52, %v4937_v62  ;;  %v4828_v25 = vpop.f32.mrf.mxu0  ;;  %v8144_v21 = vld [vmem:[#allocation10_spill] sm:$0xff] }
 0x1c0   :  { %v4940_v44 = vpop.f32.mrf.mxu1 }
 0x1c1   :  { %v6700_v47 = vadd.f32 %v4939_v5, %v4827_v37  ;;  %v4829_v8 = vpop.f32.mrf.mxu0 }
 0x1c2   :  { %v4941_v33 = vpop.f32.mrf.mxu1  ;;  %v4830_v34 = vadd.f32 %v4829_v8, %v4828_v25 }
 0x1c3   :  { %8133 = vst [vmem:[#allocation39_spill] sm:$0xff] %v6700_v47  ;;  %v4942_v6 = vadd.f32 %v4941_v33, %v4940_v44  ;;  %v4831_v22 = vpop.f32.mrf.mxu0 }
 0x1c4   :  { %v4943_v61 = vpop.f32.mrf.mxu1 }
 0x1c5   :  { %v6702_v59 = vadd.f32 %v4942_v6, %v4830_v34  ;;  %v4832_v27 = vpop.f32.mrf.mxu0 }
 0x1c6   :  { %v4944_v45 = vpop.f32.mrf.mxu1  ;;  %v4833_v18 = vadd.f32 %v4832_v27, %v4831_v22 }
 0x1c7   :  { %8134 = vst [vmem:[#allocation40_spill] sm:$0xff] %v6702_v59  ;;  %v4945_v4 = vadd.f32 %v4944_v45, %v4943_v61  ;;  %v4834_v31 = vpop.f32.mrf.mxu0 }
 0x1c8   :  { %v4946_v54 = vpop.f32.mrf.mxu1 }
 0x1c9   :  { %v6704_v42 = vadd.f32 %v4945_v4, %v4833_v18  ;;  %v4835_v12 = vpop.f32.mrf.mxu0 }
 0x1ca   :  { %v4947_v55 = vpop.f32.mrf.mxu1  ;;  %v4836_v63 = vadd.f32 %v4835_v12, %v4834_v31 }
 0x1cb   :  { %8135 = vst [vmem:[#allocation41_spill] sm:$0xff] %v6704_v42  ;;  %v4948_v36 = vadd.f32 %v4947_v55, %v4946_v54  ;;  %v4837_v1 = vpop.f32.mrf.mxu0 }
 0x1cc   :  { %v4949_v20 = vpop.f32.mrf.mxu1 }
 0x1cd   :  { %v6706_v62 = vadd.f32 %v4948_v36, %v4836_v63  ;;  %v4838_v26 = vpop.f32.mrf.mxu0 }
 0x1ce   :  { %v4950_v52 = vpop.f32.mrf.mxu1  ;;  %v4839_v37 = vadd.f32 %v4838_v26, %v4837_v1 }
 0x1cf   :  { %8136 = vst [vmem:[#allocation42_spill] sm:$0xff] %v6706_v62  ;;  %v4951_v5 = vadd.f32 %v4950_v52, %v4949_v20  ;;  %v4840_v25 = vpop.f32.mrf.mxu0 }
 0x1d0   :  { %v4952_v44 = vpop.f32.mrf.mxu1 }
 0x1d1   :  { %v6708_v8 = vadd.f32 %v4951_v5, %v4839_v37  ;;  %v4841_v33 = vpop.f32.mrf.mxu0 }
 0x1d2   :  { %v4953_v34 = vpop.f32.mrf.mxu1  ;;  %v4842_v6 = vadd.f32 %v4841_v33, %v4840_v25 }
 0x1d3   :  { %8137 = vst [vmem:[#allocation43_spill] sm:$0xff] %v6708_v8  ;;  %v4954_v22 = vadd.f32 %v4953_v34, %v4952_v44  ;;  %v4843_v61 = vpop.f32.mrf.mxu0 }
 0x1d4   :  { %v4955_v27 = vpop.f32.mrf.mxu1 }
 0x1d5   :  { %v6710_v45 = vadd.f32 %v4954_v22, %v4842_v6  ;;  %v4844_v18 = vpop.f32.mrf.mxu0 }
 0x1d6   :  { %v4956_v4 = vpop.f32.mrf.mxu1  ;;  %v4845_v31 = vadd.f32 %v4844_v18, %v4843_v61 }
 0x1d7   :  { %8138 = vst [vmem:[#allocation44_spill] sm:$0xff] %v6710_v45  ;;  %v4957_v54 = vadd.f32 %v4956_v4, %v4955_v27  ;;  %v4846_v12 = vpop.f32.mrf.mxu0 }
 0x1d8   :  { %v4958_v55 = vpop.f32.mrf.mxu1 }
 0x1d9   :  { %v6712_v63 = vadd.f32 %v4957_v54, %v4845_v31  ;;  %v4847_v36 = vpop.f32.mrf.mxu0 }
 0x1da   :  { %v4959_v1 = vpop.f32.mrf.mxu1  ;;  %v4848_v20 = vadd.f32 %v4847_v36, %v4846_v12 }
 0x1db   :  { %8139 = vst [vmem:[#allocation45_spill] sm:$0xff] %v6712_v63  ;;  %v4960_v26 = vadd.f32 %v4959_v1, %v4958_v55  ;;  %v4849_v52 = vpop.f32.mrf.mxu0 }
 0x1dc   :  { %v4961_v37 = vpop.f32.mrf.mxu1 }
 0x1dd   :  { %v6714_v5 = vadd.f32 %v4960_v26, %v4848_v20  ;;  %v4850_v25 = vpop.f32.mrf.mxu0 }
 0x1de   :  { %v4962_v44 = vpop.f32.mrf.mxu1  ;;  %v4851_v33 = vadd.f32 %v4850_v25, %v4849_v52  ;;  %v8143_v52 = vld [vmem:[#allocation15_spill] sm:$0xff] }
 0x1df   :  { %8140 = vst [vmem:[#allocation46_spill] sm:$0xff] %v6714_v5  ;;  %v4963_v34 = vadd.f32 %v4962_v44, %v4961_v37  ;;  %v4852_v6 = vpop.f32.mrf.mxu0 }
 0x1e0   :  { %v4964_v22 = vpop.f32.mrf.mxu1 }
 0x1e1   :  { %v6716_v61 = vadd.f32 %v4963_v34, %v4851_v33  ;;  %v4853_v27 = vpop.f32.mrf.mxu0 }
 0x1e2   :  { %v4965_v18 = vpop.f32.mrf.mxu1  ;;  %v4854_v4 = vadd.f32 %v4853_v27, %v4852_v6 }
 0x1e3   :  { %8141 = vst [vmem:[#allocation47_spill] sm:$0xff] %v6716_v61  ;;  %v4966_v31 = vadd.f32 %v4965_v18, %v4964_v22  ;;  %v4983_v54 = vpop.f32.mrf.mxu0 }
 0x1e4   :  { %v5095_v41 = vpop.f32.mrf.mxu1 }
 0x1e5   :  { %v6718_v12 = vadd.f32 %v4966_v31, %v4854_v4  ;;  %v4984_v55 = vpop.f32.mrf.mxu0 }
 0x1e6   :  { %v5096_v36 = vpop.f32.mrf.mxu1  ;;  %v4985_v1 = vadd.f32 %v4984_v55, %v4983_v54 }
 0x1e7   :  { %8142 = vst [vmem:[#allocation48_spill] sm:$0xff] %v6718_v12  ;;  %v5097_v20 = vadd.f32 %v5096_v36, %v5095_v41  ;;  %v4986_v26 = vpop.f32.mrf.mxu0 }
 0x1e8   :  { %v5098_v38 = vpop.f32.mrf.mxu1  ;;  %v2629_v37 = vadd.f32 %v4985_v1, %v8143_v52 }
 0x1e9   :  { %v2963_v25 = vadd.f32 %v5097_v20, %v6620_v57  ;;  %v4987_v44 = vpop.f32.mrf.mxu0 }
 0x1ea   :  { %v5099_v33 = vpop.f32.mrf.mxu1  ;;  %v4988_v28 = vadd.f32 %v4987_v44, %v4986_v26 }
 0x1eb   :  { %v4989_v34 = vpop.f32.mrf.mxu0  ;;  %v5100_v59 = vadd.f32 %v5099_v33, %v5098_v38  ;;  %v6751_v38 = vld [vmem:[%s7972_s3] ss:$0 sm:$0xff]  ;;  %v8145_v33 = vld [vmem:[#allocation24_spill] sm:$0xff] }
 0x1ec   :  { %v5101_v61 = vpop.f32.mrf.mxu1  ;;  %v2630_v3 = vadd.f32 %v4988_v28, %v8144_v21 }
 0x1ed   :  { %v4990_v6 = vpop.f32.mrf.mxu0  ;;  %v2964_v56 = vadd.f32 %v5100_v59, %v6624_v30 }
 0x1ee   :  { %v5102_v22 = vpop.f32.mrf.mxu1  ;;  %v4991_v0 = vadd.f32 %v4990_v6, %v4989_v34 }
 0x1ef   :  { %v4992_v27 = vpop.f32.mrf.mxu0  ;;  %v5103_v46 = vadd.f32 %v5102_v22, %v5101_v61  ;;  %v6755_v61 = vadd.f32 %v6751_v38, %v2630_v3  ;;  %v6763_v6 = vadd.f32 %v6751_v38, %v2964_v56  ;;  %v8147_v22 = vld [vmem:[#allocation25_spill] sm:$0xff]  ;;  %v8150_v56 = vld [vmem:[#allocation26_spill] sm:$0xff] }
 0x1f0   :  { %v5104_v18 = vpop.f32.mrf.mxu1  ;;  %v2631_v28 = vadd.f32 %v4991_v0, %v8145_v33  ;;  %v6770_v0 = vadd.f32 %v6751_v38, %v2963_v25 }
 0x1f1   :  { %v4993_v4 = vpop.f32.mrf.mxu0  ;;  %v2965_v34 = vadd.f32 %v5103_v46, %v6628_v60  ;;  %8146 = vst [vmem:[#allocation15_spill] sm:$0xff] %v6763_v6 }
 0x1f2   :  { %v5105_v31 = vpop.f32.mrf.mxu1  ;;  %v4994_v26 = vadd.f32 %v4993_v4, %v4992_v27  ;;  %v6767_v4 = vadd.f32 %v6751_v38, %v2629_v37  ;;  %8148 = vst [vmem:[#allocation10_spill] sm:$0xff] %v6770_v0  ;;  %v6778_v46 = vadd.f32 %v6751_v38, %v2631_v28  ;;  %v3136_v28 = vsel %vm3066_vm4, %v6770_v0, 0.0 }
 0x1f3   :  { %v4995_v12 = vpop.f32.mrf.mxu0  ;;  %v5106_v44 = vadd.f32 %v5105_v31, %v5104_v18  ;;  %v6784_v37 = vadd.f32 %v6751_v38, %v2965_v34 }
 0x1f4   :  { %v5107_v5 = vpop.f32.mrf.mxu1  ;;  %v2632_v27 = vadd.f32 %v4994_v26, %v8147_v22  ;;  %8149 = vst [vmem:[#allocation24_spill] sm:$0xff] %v6778_v46  ;;  %v3137_v26 = vsel %vm3066_vm4, %v6763_v6, 0.0  ;;  %v3070_v22 = vsel %vm3066_vm4, %v6778_v46, 0.0 }
 0x1f5   :  { %v4996_v54 = vpop.f32.mrf.mxu0  ;;  %v2966_v3 = vadd.f32 %v5106_v44, %v6632_v49 }
 0x1f6   :  { %v5108_v41 = vpop.f32.mrf.mxu1  ;;  %v4997_v21 = vadd.f32 %v4996_v54, %v4995_v12  ;;  %v6793_v44 = vadd.f32 %v6751_v38, %v2632_v27 }
 0x1f7   :  { %v4998_v55 = vpop.f32.mrf.mxu0  ;;  %v5109_v18 = vadd.f32 %v5108_v41, %v5107_v5  ;;  %v3068_v5 = vsel %vm3066_vm4, %v6755_v61, 0.0 }
 0x1f8   :  { %v5110_v36 = vpop.f32.mrf.mxu1  ;;  %v2633_v31 = vadd.f32 %v4997_v21, %v8150_v56  ;;  %v3138_v56 = vadd.f32 %v3137_v26, %v3136_v28  ;;  %v3072_v0 = vsel %vm3066_vm4, %v6793_v44, 0.0 }
 0x1f9   :  { %v4999_v43 = vpop.f32.mrf.mxu0  ;;  %v2967_v33 = vadd.f32 %v5109_v18, %v6641_v39 }
 0x1fa   :  { %v5111_v1 = vpop.f32.mrf.mxu1  ;;  %v5000_v54 = vadd.f32 %v4999_v43, %v4998_v55  ;;  %v3067_v55 = vsel %vm3066_vm4, %v6767_v4, 0.0  ;;  %v6810_v39 = vadd.f32 %v6751_v38, %v2633_v31 }
 0x1fb   :  { %v5001_v52 = vpop.f32.mrf.mxu0  ;;  %v5112_v25 = vadd.f32 %v5111_v1, %v5110_v36  ;;  %v6801_v36 = vadd.f32 %v6751_v38, %v2966_v3  ;;  %v3069_v18 = vadd.f32 %v3068_v5, %v3067_v55  ;;  %v3139_v3 = vsel %vm3066_vm4, %v6784_v37, 0.0 }
 0x1fc   :  { %v5113_v57 = vpop.f32.mrf.mxu1  ;;  %v6821_v46 = vadd.f32 %v6751_v38, %v2967_v33  ;;  %v3074_v33 = vsel %vm3066_vm4, %v6810_v39, 0.0  ;;  %v3140_v55 = vadd.f32 %v3139_v3, %v3138_v56 }
 0x1fd   :  { %v5002_v20 = vpop.f32.mrf.mxu0 }
 0x1fe   :  { %v5114_v63 = vpop.f32.mrf.mxu1  ;;  %v5003_v43 = vadd.f32 %v5002_v20, %v5001_v52  ;;  %v8151_v52 = vld [vmem:[#allocation27_spill] sm:$0xff] }
 0x1ff   :  { %v5004_v53 = vpop.f32.mrf.mxu0  ;;  %v5115_v1 = vadd.f32 %v5114_v63, %v5113_v57  ;;  %v2634_v20 = vadd.f32 %v5000_v54, %v8151_v52  ;;  %v2968_v63 = vadd.f32 %v5112_v25, %v6647_v13  ;;  %v3141_v54 = vsel %vm3066_vm4, %v6801_v36, 0.0 }
 0x200   :  { %v6722_v45 = vpop.f32.mrf.mxu1  ;;  %v2635_v31 = vadd.f32 %v5003_v43, %v6485_v50 }
 0x201   :  { %v5005_v58 = vpop.f32.mrf.mxu0  ;;  %v2969_v13 = vadd.f32 %v5115_v1, %v6651_v2  ;;  %v6838_v50 = vadd.f32 %v6751_v38, %v2634_v20  ;;  %v6844_v28 = vadd.f32 %v6751_v38, %v2968_v63 }
 0x202   :  { %v6724_v8 = vpop.f32.mrf.mxu1  ;;  %v5006_v27 = vadd.f32 %v5005_v58, %v5004_v53  ;;  %v3071_v53 = vadd.f32 %v3070_v22, %v3069_v18  ;;  %v3143_v22 = vsel %vm3066_vm4, %v6821_v46, 0.0  ;;  %v6851_v52 = vadd.f32 %v6751_v38, %v2635_v31  ;;  %v8153_v31 = vld [vmem:[#allocation19_spill] sm:$0xff] }
 0x203   :  { %v6726_v35 = vpop.f32.mrf.mxu0  ;;  %v5118_v58 = vadd.f32 %v6724_v8, %v6722_v45  ;;  %v8152_v8 = vld [vmem:[#allocation28_spill] sm:$0xff]  ;;  %v3076_v56 = vsel %vm3066_vm4, %v6838_v50, 0.0  ;;  %v3145_v63 = vsel %vm3066_vm4, %v6844_v28, 0.0 }
 0x204   :  { %v6728_v62 = vpop.f32.mrf.mxu1  ;;  %v2636_v45 = vadd.f32 %v5006_v27, %v8152_v8  ;;  %v3073_v2 = vadd.f32 %v3072_v0, %v3071_v53  ;;  %v6857_v27 = vadd.f32 %v6751_v38, %v2969_v13  ;;  %v3078_v13 = vsel %vm3066_vm4, %v6851_v52, 0.0 }
 0x205   :  { %v6730_v42 = vpop.f32.mrf.mxu0  ;;  %v2970_v20 = vadd.f32 %v5118_v58, %v6655_v16 }
 0x206   :  { %v6732_v10 = vpop.f32.mrf.mxu1  ;;  %v5009_v5 = vadd.f32 %v6730_v42, %v6726_v35  ;;  %v3075_v0 = vadd.f32 %v3074_v33, %v3073_v2  ;;  %v6863_v3 = vadd.f32 %v6751_v38, %v2636_v45  ;;  %v3147_v33 = vsel %vm3066_vm4, %v6857_v27, 0.0 }
 0x207   :  { %v6734_v40 = vpop.f32.mrf.mxu0  ;;  %v5121_v43 = vadd.f32 %v6732_v10, %v6728_v62  ;;  %v3142_v62 = vadd.f32 %v3141_v54, %v3140_v55  ;;  %v8155_v55 = vld [vmem:[#allocation29_spill] sm:$0xff] }
 0x208   :  { %v6736_v47 = vpop.f32.mrf.mxu1 }
 0x209   :  { %v6739_v7 = vpop.f32.mrf.mxu0  ;;  %v2971_v16 = vadd.f32 %v5121_v43, %v6659_v23  ;;  %v3080_v43 = vsel %vm3066_vm4, %v6863_v3, 0.0 }
 0x20a   :  { %v6741_v17 = vpop.f32.mrf.mxu1  ;;  %v5012_v35 = vadd.f32 %v6739_v7, %v6734_v40  ;;  %v2637_v40 = vadd.f32 %v5009_v5, %v6496_v14  ;;  %v6876_v5 = vadd.f32 %v6751_v38, %v2970_v20 }
 0x20b   :  { %v6744_v32 = vpop.f32.mrf.mxu0  ;;  %v5124_v10 = vadd.f32 %v6741_v17, %v6736_v47  ;;  %v3144_v47 = vadd.f32 %v3143_v22, %v3142_v62 }
 0x20c   :  { %v6746_v29 = vpop.f32.mrf.mxu1  ;;  %v2638_v58 = vadd.f32 %v5012_v35, %v8153_v31  ;;  %v6884_v8 = vadd.f32 %v6751_v38, %v2637_v40 }
 0x20d   :  { %v6758_v30 = vpop.f32.mrf.mxu0  ;;  %v2972_v23 = vadd.f32 %v5124_v10, %v6663_v19  ;;  %v6891_v19 = vadd.f32 %v6751_v38, %v2971_v16  ;;  %v3146_v2 = vadd.f32 %v3145_v63, %v3144_v47  ;;  %v3149_v10 = vsel %vm3066_vm4, %v6876_v5, 0.0 }
 0x20e   :  { %v6760_v59 = vpop.f32.mrf.mxu1  ;;  %v5015_v17 = vadd.f32 %v6758_v30, %v6744_v32  ;;  %v3077_v30 = vadd.f32 %v3076_v56, %v3075_v0  ;;  %v6896_v22 = vadd.f32 %v6751_v38, %v2638_v58  ;;  %v8157_v0 = vld [vmem:[#allocation30_spill] sm:$0xff]  ;;  %v3082_v16 = vsel %vm3066_vm4, %v6884_v8, 0.0  ;;  %v8158_v58 = vld [vmem:[#allocation31_spill] sm:$0xff] }
 0x20f   :  { %v6773_v12 = vpop.f32.mrf.mxu0  ;;  %v5127_v14 = vadd.f32 %v6760_v59, %v6746_v29  ;;  %8154 = vst [vmem:[#allocation25_spill] sm:$0xff] %v6891_v19  ;;  %v6902_v62 = vadd.f32 %v6751_v38, %v2972_v23  ;;  %v3151_v63 = vsel %vm3066_vm4, %v6891_v19, 0.0 }
 0x210   :  { %v6775_v60 = vpop.f32.mrf.mxu1  ;;  %v3079_v35 = vadd.f32 %v3078_v13, %v3077_v30 }
 0x211   :  { %v6786_v41 = vpop.f32.mrf.mxu0  ;;  %v2973_v20 = vadd.f32 %v5127_v14, %v6669_v9  ;;  %8156 = vst [vmem:[#allocation26_spill] sm:$0xff] %v6902_v62 }
 0x212   :  { %v6788_v49 = vpop.f32.mrf.mxu1  ;;  %v5018_v32 = vadd.f32 %v6786_v41, %v6773_v12  ;;  %v2639_v12 = vadd.f32 %v5015_v17, %v8155_v55  ;;  %v3081_v56 = vadd.f32 %v3080_v43, %v3079_v35 }
 0x213   :  { %v6803_v21 = vpop.f32.mrf.mxu0  ;;  %v5130_v29 = vadd.f32 %v6788_v49, %v6775_v60  ;;  %v6920_v23 = vadd.f32 %v6751_v38, %v2973_v20 }
 0x214   :  { %v6805_v34 = vpop.f32.mrf.mxu1  ;;  %v2640_v40 = vadd.f32 %v5018_v32, %v8157_v0  ;;  %v6913_v31 = vadd.f32 %v6751_v38, %v2639_v12 }
 0x215   :  { %v5020_v57 = vpop.f32.mrf.mxu0  ;;  %v2974_v9 = vadd.f32 %v5130_v29, %v6676_v24  ;;  %8159 = vst [vmem:[#allocation27_spill] sm:$0xff] %v6920_v23 }
 0x216   :  { %v6816_v6 = vpop.f32.mrf.mxu1  ;;  %v5021_v41 = vadd.f32 %v5020_v57, %v6803_v21  ;;  %v3148_v57 = vadd.f32 %v3147_v33, %v3146_v2  ;;  %v3153_v33 = vsel %vm3066_vm4, %v6902_v62, 0.0  ;;  %v6926_v29 = vadd.f32 %v6751_v38, %v2640_v40 }
 0x217   :  { %v6831_v25 = vpop.f32.mrf.mxu0  ;;  %v5133_v21 = vadd.f32 %v6816_v6, %v6805_v34  ;;  %v3084_v34 = vsel %vm3066_vm4, %v6896_v22, 0.0  ;;  %v6930_v12 = vadd.f32 %v6751_v38, %v2974_v9 }
 0x218   :  { %v6833_v26 = vpop.f32.mrf.mxu1  ;;  %v2641_v14 = vadd.f32 %v5021_v41, %v8158_v58  ;;  %v3150_v6 = vadd.f32 %v3149_v10, %v3148_v57 }
 0x219   :  { %v5023_v42 = vpop.f32.mrf.mxu0  ;;  %v2975_v43 = vadd.f32 %v5133_v21, %v6680_v51  ;;  %8160 = vst [vmem:[#allocation28_spill] sm:$0xff] %v6930_v12 }
 0x21a   :  { %v5135_v1 = vpop.f32.mrf.mxu1  ;;  %v5024_v13 = vadd.f32 %v5023_v42, %v6831_v25  ;;  %v3083_v42 = vadd.f32 %v3082_v16, %v3081_v56  ;;  %v3152_v55 = vadd.f32 %v3151_v63, %v3150_v6 }
 0x21b   :  { %v5025_v7 = vpop.f32.mrf.mxu0  ;;  %v5136_v24 = vadd.f32 %v5135_v1, %v6833_v26  ;;  %v3086_v26 = vsel %vm3066_vm4, %v6913_v31, 0.0  ;;  %v6935_v1 = vadd.f32 %v6751_v38, %v2641_v14  ;;  %v6944_v21 = vadd.f32 %v6751_v38, %v2975_v43 }
 0x21c   :  { %v5137_v18 = vpop.f32.mrf.mxu1  ;;  %v2642_v20 = vadd.f32 %v5024_v13, %v6531_v15  ;;  %v3085_v0 = vadd.f32 %v3084_v34, %v3083_v42  ;;  %v3154_v51 = vadd.f32 %v3153_v33, %v3152_v55  ;;  %v8163_v13 = vld [vmem:[#allocation3_spill] sm:$0xff] }
 0x21d   :  { %v5026_v53 = vpop.f32.mrf.mxu0  ;;  %8161 = vst [vmem:[#allocation19_spill] sm:$0xff] %v6944_v21  ;;  %v3090_v58 = vsel %vm3066_vm4, %v6935_v1, 0.0 }
 0x21e   :  { %v5138_v54 = vpop.f32.mrf.mxu1  ;;  %v5027_v25 = vadd.f32 %v5026_v53, %v5025_v7  ;;  %v3155_v7 = vsel %vm3066_vm4, %v6920_v23, 0.0  ;;  %v2976_v53 = vadd.f32 %v5136_v24, %v6682_v48  ;;  %v3087_v15 = vadd.f32 %v3086_v26, %v3085_v0 }
 0x21f   :  { %v5028_v59 = vpop.f32.mrf.mxu0  ;;  %v5139_v41 = vadd.f32 %v5138_v54, %v5137_v18  ;;  %v3088_v54 = vsel %vm3066_vm4, %v6926_v29, 0.0  ;;  %v6953_v14 = vadd.f32 %v6751_v38, %v2642_v20  ;;  %v8167_v20 = vld [vmem:[#allocation21_spill] sm:$0xff] }
 0x220   :  { %v5140_v45 = vpop.f32.mrf.mxu1  ;;  %v2643_v57 = vadd.f32 %v5027_v25, %v6535_v11  ;;  %v3156_v11 = vadd.f32 %v3155_v7, %v3154_v51  ;;  %v6957_v24 = vadd.f32 %v6751_v38, %v2976_v53  ;;  %v8165_v25 = vld [vmem:[#allocation4_spill] sm:$0xff]  ;;  %v8168_v7 = vld [vmem:[#allocation5_spill] sm:$0xff] }
 0x221   :  { %v5029_v60 = vpop.f32.mrf.mxu0 }
 0x222   :  { %v5141_v49 = vpop.f32.mrf.mxu1  ;;  %v5030_v10 = vadd.f32 %v5029_v60, %v5028_v59  ;;  %v3157_v59 = vsel %vm3066_vm4, %v6930_v12, 0.0  ;;  %v8162_v60 = vld [vmem:[#allocation20_spill] sm:$0xff]  ;;  %8164 = vst [vmem:[#allocation29_spill] sm:$0xff] %v6957_v24 }
 0x223   :  { %v5031_v17 = vpop.f32.mrf.mxu0  ;;  %v2977_v16 = vadd.f32 %v5139_v41, %v8162_v60  ;;  %v5142_v9 = vadd.f32 %v5141_v49, %v5140_v45  ;;  %v3159_v45 = vsel %vm3066_vm4, %v6944_v21, 0.0  ;;  %v6962_v49 = vadd.f32 %v6751_v38, %v2643_v57 }
 0x224   :  { %v5143_v47 = vpop.f32.mrf.mxu1  ;;  %v2644_v6 = vadd.f32 %v5030_v10, %v8163_v13  ;;  %v3158_v41 = vadd.f32 %v3157_v59, %v3156_v11  ;;  %v3161_v57 = vsel %vm3066_vm4, %v6957_v24, 0.0 }
 0x225   :  { %v5032_v32 = vpop.f32.mrf.mxu0  ;;  %v2978_v10 = vadd.f32 %v5142_v9, %v8167_v20  ;;  %v3094_v9 = vsel %vm3066_vm4, %v6962_v49, 0.0  ;;  %v8176_v20 = vld [vmem:[#allocation35_spill] sm:$0xff] }
 0x226   :  { %v5144_v30 = vpop.f32.mrf.mxu1  ;;  %v5033_v56 = vadd.f32 %v5032_v32, %v5031_v17  ;;  %v3089_v17 = vadd.f32 %v3088_v54, %v3087_v15  ;;  %v6972_v51 = vadd.f32 %v6751_v38, %v2644_v6  ;;  %v3160_v54 = vadd.f32 %v3159_v45, %v3158_v41 }
 0x227   :  { %v5034_v2 = vpop.f32.mrf.mxu0  ;;  %v5145_v32 = vadd.f32 %v5144_v30, %v5143_v47  ;;  %v3092_v30 = vsel %vm3066_vm4, %v6953_v14, 0.0 }
 0x228   :  { %v5146_v35 = vpop.f32.mrf.mxu1  ;;  %v2645_v42 = vadd.f32 %v5033_v56, %v8165_v25  ;;  %v3091_v26 = vadd.f32 %v3090_v58, %v3089_v17  ;;  %v8169_v56 = vld [vmem:[#allocation22_spill] sm:$0xff]  ;;  %v8174_v25 = vld [vmem:[#allocation7_spill] sm:$0xff] }
 0x229   :  { %v5035_v40 = vpop.f32.mrf.mxu0  ;;  %v2979_v15 = vadd.f32 %v5145_v32, %v8169_v56  ;;  %v8170_v58 = vld [vmem:[#allocation6_spill] sm:$0xff]  ;;  %v3096_v32 = vsel %vm3066_vm4, %v6972_v51, 0.0 }
 0x22a   :  { %v5147_v18 = vpop.f32.mrf.mxu1  ;;  %v5036_v34 = vadd.f32 %v5035_v40, %v5034_v2  ;;  %v6966_v2 = vadd.f32 %v6751_v38, %v2977_v16 }
 0x22b   :  { %v5037_v63 = vpop.f32.mrf.mxu0  ;;  %v5148_v40 = vadd.f32 %v5147_v18, %v5146_v35  ;;  %v6987_v18 = vadd.f32 %v6751_v38, %v2978_v10 }
 0x22c   :  { %v5149_v48 = vpop.f32.mrf.mxu1  ;;  %8166 = vst [vmem:[#allocation30_spill] sm:$0xff] %v6966_v2  ;;  %v2646_v53 = vadd.f32 %v5036_v34, %v8168_v7  ;;  %v3093_v34 = vadd.f32 %v3092_v30, %v3091_v26  ;;  %v3163_v35 = vsel %vm3066_vm4, %v6966_v2, 0.0  ;;  %v6997_v26 = vadd.f32 %v6751_v38, %v2979_v15 }
 0x22d   :  { %v5038_v33 = vpop.f32.mrf.mxu0  ;;  %8171 = vst [vmem:[#allocation31_spill] sm:$0xff] %v6987_v18 }
 0x22e   :  { %v5150_v43 = vpop.f32.mrf.mxu1  ;;  %v5039_v55 = vadd.f32 %v5038_v33, %v5037_v63  ;;  %v6981_v63 = vadd.f32 %v6751_v38, %v2645_v42  ;;  %v6992_v33 = vadd.f32 %v6751_v38, %v2646_v53  ;;  %v3095_v41 = vadd.f32 %v3094_v9, %v3093_v34  ;;  %8175 = vst [vmem:[#allocation3_spill] sm:$0xff] %v6997_v26 }
 0x22f   :  { %v5040_v0 = vpop.f32.mrf.mxu0  ;;  %v5151_v59 = vadd.f32 %v5150_v43, %v5149_v48  ;;  %v8173_v43 = vld [vmem:[#allocation23_spill] sm:$0xff] }
 0x230   :  { %v5152_v47 = vpop.f32.mrf.mxu1  ;;  %v2647_v13 = vadd.f32 %v5039_v55, %v8170_v58  ;;  %8172 = vst [vmem:[#allocation20_spill] sm:$0xff] %v6992_v33  ;;  %v2980_v45 = vadd.f32 %v5148_v40, %v8173_v43  ;;  %v3162_v55 = vadd.f32 %v3161_v57, %v3160_v54  ;;  %v3098_v30 = vsel %vm3066_vm4, %v6981_v63, 0.0  ;;  %v8178_v57 = vld [vmem:[#allocation36_spill] sm:$0xff] }
 0x231   :  { %v5041_v60 = vpop.f32.mrf.mxu0  ;;  %v2981_v10 = vadd.f32 %v5151_v59, %v8176_v20  ;;  %v3165_v54 = vsel %vm3066_vm4, %v6987_v18, 0.0  ;;  %v3100_v59 = vsel %vm3066_vm4, %v6992_v33, 0.0  ;;  %v8210_v33 = vld [vmem:[#allocation48_spill] sm:$0xff] }
 0x232   :  { %v5153_v16 = vpop.f32.mrf.mxu1  ;;  %v5042_v6 = vadd.f32 %v5041_v60, %v5040_v0  ;;  %v7003_v7 = vadd.f32 %v6751_v38, %v2647_v13  ;;  %v3164_v40 = vadd.f32 %v3163_v35, %v3162_v55  ;;  %v3097_v60 = vadd.f32 %v3096_v32, %v3095_v41 }
 0x233   :  { %v5154_v11 = vadd.f32 %v5153_v16, %v5152_v47  ;;  %v5043_v48 = vpop.f32.mrf.mxu0  ;;  %v7011_v58 = vadd.f32 %v6751_v38, %v2980_v45 }
 0x234   :  { %v5155_v17 = vpop.f32.mrf.mxu1  ;;  %v2648_v42 = vadd.f32 %v5042_v6, %v8174_v25  ;;  %8177 = vst [vmem:[#allocation4_spill] sm:$0xff] %v7003_v7  ;;  %v8181_v6 = vld [vmem:[#allocation8_spill] sm:$0xff]  ;;  %v3099_v35 = vadd.f32 %v3098_v30, %v3097_v60  ;;  %v3102_v45 = vsel %vm3066_vm4, %v7003_v7, 0.0  ;;  %v3166_v20 = vadd.f32 %v3165_v54, %v3164_v40  ;;  %v8186_v60 = vld [vmem:[#allocation9_spill] sm:$0xff] }
 0x235   :  { %v5044_v0 = vpop.f32.mrf.mxu0  ;;  %v2982_v15 = vadd.f32 %v5154_v11, %v8178_v57  ;;  %8179 = vst [vmem:[#allocation21_spill] sm:$0xff] %v7011_v58  ;;  %v8183_v11 = vld [vmem:[#allocation37_spill] sm:$0xff] }
 0x236   :  { %v5156_v47 = vpop.f32.mrf.mxu1  ;;  %v5045_v53 = vadd.f32 %v5044_v0, %v5043_v48  ;;  %v7014_v13 = vadd.f32 %v6751_v38, %v2648_v42  ;;  %v3167_v48 = vsel %vm3066_vm4, %v6997_v26, 0.0  ;;  %v3101_v0 = vadd.f32 %v3100_v59, %v3099_v35  ;;  %v8207_v7 = vld [vmem:[#allocation33_spill] sm:$0xff] }
 0x237   :  { %v5157_v56 = vadd.f32 %v5156_v47, %v5155_v17  ;;  %v5046_v16 = vpop.f32.mrf.mxu0  ;;  %v7020_v17 = vadd.f32 %v6751_v38, %v2981_v10  ;;  %v7029_v47 = vadd.f32 %v6751_v38, %v2982_v15 }
 0x238   :  { %v5158_v9 = vpop.f32.mrf.mxu1  ;;  %8180 = vst [vmem:[#allocation5_spill] sm:$0xff] %v7014_v13  ;;  %v2649_v34 = vadd.f32 %v5045_v53, %v8181_v6  ;;  %v3169_v53 = vsel %vm3066_vm4, %v7011_v58, 0.0  ;;  %v8187_v6 = vld [vmem:[#allocation38_spill] sm:$0xff] }
 0x239   :  { %8182 = vst [vmem:[#allocation22_spill] sm:$0xff] %v7020_v17  ;;  %v2983_v32 = vadd.f32 %v5157_v56, %v8183_v11  ;;  %v5047_v43 = vpop.f32.mrf.mxu0  ;;  %8185 = vst [vmem:[#allocation23_spill] sm:$0xff] %v7029_v47  ;;  %v3104_v56 = vsel %vm3066_vm4, %v7014_v13, 0.0  ;;  %v3168_v11 = vadd.f32 %v3167_v48, %v3166_v20  ;;  %v3171_v40 = vsel %vm3066_vm4, %v7020_v17, 0.0  ;;  %v8191_v17 = vld [vmem:[#allocation39_spill] sm:$0xff] }
 0x23a   :  { %v5159_v25 = vpop.f32.mrf.mxu1  ;;  %v7026_v55 = vadd.f32 %v6751_v38, %v2649_v34  ;;  %v5048_v42 = vadd.f32 %v5047_v43, %v5046_v16  ;;  %v3103_v16 = vadd.f32 %v3102_v45, %v3101_v0  ;;  %v3173_v48 = vsel %vm3066_vm4, %v7029_v47, 0.0 }
 0x23b   :  { %v5160_v41 = vadd.f32 %v5159_v25, %v5158_v9  ;;  %v5049_v30 = vpop.f32.mrf.mxu0  ;;  %v7040_v54 = vadd.f32 %v6751_v38, %v2983_v32 }
 0x23c   :  { %8184 = vst [vmem:[#allocation6_spill] sm:$0xff] %v7026_v55  ;;  %v5161_v10 = vpop.f32.mrf.mxu1  ;;  %v2650_v57 = vadd.f32 %v5048_v42, %v8186_v60  ;;  %v3106_v59 = vsel %vm3066_vm4, %v7026_v55, 0.0  ;;  %v3170_v42 = vadd.f32 %v3169_v53, %v3168_v11  ;;  %v8190_v60 = vld [vmem:[#allocation11_spill] sm:$0xff] }
 0x23d   :  { %v2984_v34 = vadd.f32 %v5160_v41, %v8187_v6  ;;  %8188 = vst [vmem:[#allocation7_spill] sm:$0xff] %v7040_v54  ;;  %v5050_v15 = vpop.f32.mrf.mxu0  ;;  %v3105_v41 = vadd.f32 %v3104_v56, %v3103_v16 }
 0x23e   :  { %v5162_v9 = vpop.f32.mrf.mxu1  ;;  %v7045_v35 = vadd.f32 %v6751_v38, %v2650_v57  ;;  %v5051_v43 = vadd.f32 %v5050_v15, %v5049_v30  ;;  %v3172_v58 = vadd.f32 %v3171_v40, %v3170_v42  ;;  %v8194_v42 = vld [vmem:[#allocation40_spill] sm:$0xff] }
 0x23f   :  { %v5163_v25 = vadd.f32 %v5162_v9, %v5161_v10  ;;  %v5052_v45 = vpop.f32.mrf.mxu0  ;;  %v7052_v0 = vadd.f32 %v6751_v38, %v2984_v34  ;;  %v3107_v30 = vadd.f32 %v3106_v59, %v3105_v41  ;;  %v3175_v10 = vsel %vm3066_vm4, %v7040_v54, 0.0  ;;  %v8193_v59 = vld [vmem:[#allocation12_spill] sm:$0xff] }
 0x240   :  { %v5164_v20 = vpop.f32.mrf.mxu1  ;;  %v3108_v32 = vsel %vm3066_vm4, %v7045_v35, 0.0  ;;  %v2651_v6 = vadd.f32 %v5051_v43, %v8190_v60  ;;  %v3174_v9 = vadd.f32 %v3173_v48, %v3172_v58 }
 0x241   :  { %8189 = vst [vmem:[#allocation35_spill] sm:$0xff] %v7052_v0  ;;  %v2985_v57 = vadd.f32 %v5163_v25, %v8191_v17  ;;  %v5053_v53 = vpop.f32.mrf.mxu0  ;;  %v3109_v47 = vadd.f32 %v3108_v32, %v3107_v30  ;;  %v3177_v17 = vsel %vm3066_vm4, %v7052_v0, 0.0 }
 0x242   :  { %v5165_v56 = vpop.f32.mrf.mxu1  ;;  %v7059_v11 = vadd.f32 %v6751_v38, %v2651_v6  ;;  %v5054_v15 = vadd.f32 %v5053_v53, %v5052_v45  ;;  %v3176_v6 = vadd.f32 %v3175_v10, %v3174_v9 }
 0x243   :  { %v7062_v16 = vadd.f32 %v6751_v38, %v2985_v57  ;;  %v5166_v34 = vadd.f32 %v5165_v56, %v5164_v20  ;;  %v5055_v43 = vpop.f32.mrf.mxu0 }
 0x244   :  { %v5167_v60 = vpop.f32.mrf.mxu1  ;;  %v3110_v40 = vsel %vm3066_vm4, %v7059_v11, 0.0  ;;  %v2652_v25 = vadd.f32 %v5054_v15, %v8193_v59  ;;  %v3178_v53 = vadd.f32 %v3177_v17, %v3176_v6 }
 0x245   :  { %8192 = vst [vmem:[#allocation36_spill] sm:$0xff] %v7062_v16  ;;  %v2986_v41 = vadd.f32 %v5166_v34, %v8194_v42  ;;  %v3111_v54 = vadd.f32 %v3110_v40, %v3109_v47  ;;  %v3179_v45 = vsel %vm3066_vm4, %v7062_v16, 0.0  ;;  %v5056_v20 = vpop.f32.mrf.mxu0  ;;  %v8195_v34 = vld [vmem:[#allocation13_spill] sm:$0xff] }
 0x246   :  { %v5168_v58 = vpop.f32.mrf.mxu1  ;;  %v7073_v48 = vadd.f32 %v6751_v38, %v2652_v25  ;;  %v5057_v57 = vadd.f32 %v5056_v20, %v5055_v43  ;;  %v8196_v40 = vld [vmem:[#allocation41_spill] sm:$0xff]  ;;  %v3180_v25 = vadd.f32 %v3179_v45, %v3178_v53  ;;  %v8198_v53 = vld [vmem:[#allocation42_spill] sm:$0xff] }
 0x247   :  { %v7076_v32 = vadd.f32 %v6751_v38, %v2986_v41  ;;  %v5169_v30 = vadd.f32 %v5168_v58, %v5167_v60  ;;  %v5058_v56 = vpop.f32.mrf.mxu0 }
 0x248   :  { %v5170_v15 = vpop.f32.mrf.mxu1  ;;  %v3112_v10 = vsel %vm3066_vm4, %v7073_v48, 0.0  ;;  %v2653_v9 = vadd.f32 %v5057_v57, %v8195_v34 }
 0x249   :  { %v3181_v47 = vsel %vm3066_vm4, %v7076_v32, 0.0  ;;  %v2987_v59 = vadd.f32 %v5169_v30, %v8196_v40  ;;  %v3113_v42 = vadd.f32 %v3112_v10, %v3111_v54  ;;  %v5059_v16 = vpop.f32.mrf.mxu0  ;;  %v8197_v54 = vld [vmem:[#allocation14_spill] sm:$0xff] }
 0x24a   :  { %v5171_v41 = vpop.f32.mrf.mxu1  ;;  %v7085_v43 = vadd.f32 %v6751_v38, %v2653_v9  ;;  %v5060_v17 = vadd.f32 %v5059_v16, %v5058_v56  ;;  %v3182_v20 = vadd.f32 %v3181_v47, %v3180_v25 }
 0x24b   :  { %v7088_v60 = vadd.f32 %v6751_v38, %v2987_v59  ;;  %v5172_v6 = vadd.f32 %v5171_v41, %v5170_v15  ;;  %v5061_v58 = vpop.f32.mrf.mxu0 }
 0x24c   :  { %v5173_v0 = vpop.f32.mrf.mxu1  ;;  %v3114_v57 = vsel %vm3066_vm4, %v7085_v43, 0.0  ;;  %v2654_v30 = vadd.f32 %v5060_v17, %v8197_v54 }
 0x24d   :  { %v3183_v45 = vsel %vm3066_vm4, %v7088_v60, 0.0  ;;  %v2988_v10 = vadd.f32 %v5172_v6, %v8198_v53  ;;  %v3115_v34 = vadd.f32 %v3114_v57, %v3113_v42  ;;  %v5062_v40 = vpop.f32.mrf.mxu0  ;;  %v8199_v42 = vld [vmem:[#allocation16_spill] sm:$0xff] }
 0x24e   :  { %v3184_v9 = vadd.f32 %v3183_v45, %v3182_v20  ;;  %v5174_v59 = vpop.f32.mrf.mxu1  ;;  %v7097_v16 = vadd.f32 %v6751_v38, %v2654_v30  ;;  %v5063_v15 = vadd.f32 %v5062_v40, %v5061_v58  ;;  %v8200_v20 = vld [vmem:[#allocation43_spill] sm:$0xff] }
 0x24f   :  { %v7100_v56 = vadd.f32 %v6751_v38, %v2988_v10  ;;  %v5175_v47 = vadd.f32 %v5174_v59, %v5173_v0  ;;  %v5064_v25 = vpop.f32.mrf.mxu0 }
 0x250   :  { %v5176_v41 = vpop.f32.mrf.mxu1  ;;  %v3116_v26 = vsel %vm3066_vm4, %v7097_v16, 0.0  ;;  %v2655_v6 = vadd.f32 %v5063_v15, %v8199_v42 }
 0x251   :  { %v3185_v17 = vsel %vm3066_vm4, %v7100_v56, 0.0  ;;  %v2989_v57 = vadd.f32 %v5175_v47, %v8200_v20  ;;  %v3117_v45 = vadd.f32 %v3116_v26, %v3115_v34  ;;  %v5065_v30 = vpop.f32.mrf.mxu0  ;;  %v8201_v26 = vld [vmem:[#allocation17_spill] sm:$0xff] }
 0x252   :  { %v3186_v54 = vadd.f32 %v3185_v17, %v3184_v9  ;;  %v5177_v53 = vpop.f32.mrf.mxu1  ;;  %v7109_v10 = vadd.f32 %v6751_v38, %v2655_v6  ;;  %v5066_v58 = vadd.f32 %v5065_v30, %v5064_v25  ;;  %v8202_v9 = vld [vmem:[#allocation44_spill] sm:$0xff] }
 0x253   :  { %v7112_v0 = vadd.f32 %v6751_v38, %v2989_v57  ;;  %v5178_v40 = vadd.f32 %v5177_v53, %v5176_v41  ;;  %v5067_v59 = vpop.f32.mrf.mxu0 }
 0x254   :  { %v5179_v18 = vpop.f32.mrf.mxu1  ;;  %v3118_v2 = vsel %vm3066_vm4, %v7109_v10, 0.0  ;;  %v2656_v34 = vadd.f32 %v5066_v58, %v8201_v26 }
 0x255   :  { %v3187_v15 = vsel %vm3066_vm4, %v7112_v0, 0.0  ;;  %v2990_v47 = vadd.f32 %v5178_v40, %v8202_v9  ;;  %v3119_v17 = vadd.f32 %v3118_v2, %v3117_v45  ;;  %v5068_v6 = vpop.f32.mrf.mxu0  ;;  %v8203_v2 = vld [vmem:[#allocation18_spill] sm:$0xff] }
 0x256   :  { %v3188_v42 = vadd.f32 %v3187_v15, %v3186_v54  ;;  %v5180_v20 = vpop.f32.mrf.mxu1  ;;  %v7121_v57 = vadd.f32 %v6751_v38, %v2656_v34  ;;  %v5069_v41 = vadd.f32 %v5068_v6, %v5067_v59  ;;  %v8204_v54 = vld [vmem:[#allocation45_spill] sm:$0xff] }
 0x257   :  { %v7124_v25 = vadd.f32 %v6751_v38, %v2990_v47  ;;  %v5181_v30 = vadd.f32 %v5180_v20, %v5179_v18  ;;  %v5070_v53 = vpop.f32.mrf.mxu0 }
 0x258   :  { %v5182_v24 = vpop.f32.mrf.mxu1  ;;  %v3120_v21 = vsel %vm3066_vm4, %v7121_v57, 0.0  ;;  %v2657_v45 = vadd.f32 %v5069_v41, %v8203_v2 }
 0x259   :  { %v3189_v58 = vsel %vm3066_vm4, %v7124_v25, 0.0  ;;  %v2991_v40 = vadd.f32 %v5181_v30, %v8204_v54  ;;  %v3121_v15 = vadd.f32 %v3120_v21, %v3119_v17  ;;  %v5071_v34 = vpop.f32.mrf.mxu0  ;;  %v8205_v21 = vld [vmem:[#allocation32_spill] sm:$0xff] }
 0x25a   :  { %v3190_v26 = vadd.f32 %v3189_v58, %v3188_v42  ;;  %v5183_v9 = vpop.f32.mrf.mxu1  ;;  %v7133_v47 = vadd.f32 %v6751_v38, %v2657_v45  ;;  %v5072_v59 = vadd.f32 %v5071_v34, %v5070_v53  ;;  %v8206_v42 = vld [vmem:[#allocation46_spill] sm:$0xff] }
 0x25b   :  { %v7136_v18 = vadd.f32 %v6751_v38, %v2991_v40  ;;  %v5184_v6 = vadd.f32 %v5183_v9, %v5182_v24  ;;  %v5073_v20 = vpop.f32.mrf.mxu0 }
 0x25c   :  { %v5185_v12 = vpop.f32.mrf.mxu1  ;;  %v3122_v55 = vsel %vm3066_vm4, %v7133_v47, 0.0  ;;  %v2658_v17 = vadd.f32 %v5072_v59, %v8205_v21  ;;  %v8208_v21 = vld [vmem:[#allocation47_spill] sm:$0xff] }
 0x25d   :  { %v3191_v41 = vsel %vm3066_vm4, %v7136_v18, 0.0  ;;  %v2992_v30 = vadd.f32 %v5184_v6, %v8206_v42  ;;  %v3123_v58 = vadd.f32 %v3122_v55, %v3121_v15  ;;  %v5074_v45 = vpop.f32.mrf.mxu0 }
 0x25e   :  { %v3192_v2 = vadd.f32 %v3191_v41, %v3190_v26  ;;  %v5186_v54 = vpop.f32.mrf.mxu1  ;;  %v3031_v40 = vadd.f32 %v6751_v38, %v2658_v17  ;;  %v5075_v53 = vadd.f32 %v5074_v45, %v5073_v20 }
 0x25f   :  { %v3063_v24 = vadd.f32 %v6751_v38, %v2992_v30  ;;  %v5187_v34 = vadd.f32 %v5186_v54, %v5185_v12  ;;  %v5076_v9 = vpop.f32.mrf.mxu0  ;;  %v8209_v54 = vld [vmem:[#allocation34_spill] sm:$0xff] }
 0x260   :  { %v5188_v23 = vpop.f32.mrf.mxu1  ;;  %v3124_v13 = vsel %vm3066_vm4, %v3031_v40, 0.0  ;;  %v2659_v59 = vadd.f32 %v5075_v53, %v8207_v7 }
 0x261   :  { %v3193_v62 = vsel %vm3066_vm4, %v3063_v24, 0.0  ;;  %v2993_v6 = vadd.f32 %v5187_v34, %v8208_v21  ;;  %v3125_v55 = vadd.f32 %v3124_v13, %v3123_v58  ;;  %v5077_v26 = vpop.f32.mrf.mxu0 }
 0x262   :  { %v3194_v15 = vadd.f32 %v3193_v62, %v3192_v2  ;;  %v5189_v41 = vpop.f32.mrf.mxu1  ;;  %v3032_v17 = vadd.f32 %v6751_v38, %v2659_v59  ;;  %v5078_v20 = vadd.f32 %v5077_v26, %v5076_v9 }
 0x263   :  { %v3064_v42 = vadd.f32 %v6751_v38, %v2993_v6  ;;  %v5190_v12 = vadd.f32 %v5189_v41, %v5188_v23 }
 0x264   :  { %v3126_v30 = vsel %vm3066_vm4, %v3032_v17, 0.0  ;;  %v2660_v19 = vadd.f32 %v5078_v20, %v8209_v54 }
 0x265   :  { %v3195_v45 = vsel %vm3066_vm4, %v3064_v42, 0.0  ;;  %v2994_v7 = vadd.f32 %v5190_v12, %v8210_v33  ;;  %v3127_v53 = vadd.f32 %v3126_v30, %v3125_v55 }
 0x266   :  { %v3196_v34 = vadd.f32 %v3195_v45, %v3194_v15  ;;  %v3033_v62 = vadd.f32 %v6751_v38, %v2660_v19 }
 0x267   :  { %v3065_v13 = vadd.f32 %v6751_v38, %v2994_v7 }
 0x268   :  { %v3128_v58 = vsel %vm3066_vm4, %v3033_v62, 0.0 }
 0x269   :  { %v3197_v2 = vsel %vm3066_vm4, %v3065_v13, 0.0  ;;  %v3129_v9 = vadd.f32 %v3128_v58, %v3127_v53 }
 0x26a   :  { %v3198_v23 = vadd.f32 %v3197_v2, %v3196_v34 }
 0x26b   :  { %v3130_v59 = vrot.slane %v3129_v9, 4 }
 0x26c   :  { %v3199_v21 = vrot.slane %v3198_v23, 4 }
 0x26d   :  { %v3131_v6 = vadd.f32 %v3130_v59, %v3129_v9 }
 0x26e   :  { %v3200_v26 = vadd.f32 %v3199_v21, %v3198_v23 }
 0x26f   :  { %v3132_v41 = vrot.slane %v3131_v6, 2 }
 0x270   :  { %v3201_v20 = vrot.slane %v3200_v26, 2 }
 0x271   :  { %v3133_v54 = vadd.f32 %v3132_v41, %v3131_v6 }
 0x272   :  { %v3202_v33 = vadd.f32 %v3201_v20, %v3200_v26 }
 0x273   :  { %v3134_v55 = vrot.slane %v3133_v54, 1 }
 0x274   :  { %v3203_v15 = vrot.slane %v3202_v33, 1 }
 0x275   :  { %v3135_v12 = vadd.f32 %v3134_v55, %v3133_v54 }
 0x276   :  { %v3204_v19 = vadd.f32 %v3203_v15, %v3202_v33 }
 0x278   :  { %v3205_v30 = vadd.f32 %v3204_v19, %v3135_v12 }
 0x27a   :  { %v7160_v38 = vmul.f32 0.001953125, %v3205_v30 }
 0x27c   :  { %v7164_v45 = vsub.f32 %v7045_v35, %v7160_v38  ;;  %v7168_v7 = vsub.f32 %v7059_v11, %v7160_v38  ;;  %v7172_v53 = vsub.f32 %v7073_v48, %v7160_v38  ;;  %v7176_v34 = vsub.f32 %v7085_v43, %v7160_v38 }
 0x27d   :  { %v7180_v58 = vsub.f32 %v7097_v16, %v7160_v38  ;;  %v7184_v35 = vsub.f32 %v7109_v10, %v7160_v38  ;;  %v7188_v11 = vsub.f32 %v7121_v57, %v7160_v38  ;;  %v7192_v48 = vsub.f32 %v7133_v47, %v7160_v38 }
 0x27e   :  { %8211 = vst [vmem:[#allocation8_spill] sm:$0xff] %v7164_v45  ;;  %8212 = vst [vmem:[#allocation37_spill] sm:$0xff] %v7168_v7  ;;  %v7195_v2 = vsub.f32 %v3031_v40, %v7160_v38  ;;  %v7198_v43 = vsub.f32 %v3032_v17, %v7160_v38  ;;  %v7201_v16 = vsub.f32 %v3033_v62, %v7160_v38 }
 0x27f   :  { %8213 = vst [vmem:[#allocation9_spill] sm:$0xff] %v7172_v53  ;;  %8214 = vst [vmem:[#allocation38_spill] sm:$0xff] %v7176_v34  ;;  %v7205_v10 = vsub.f32 %v7076_v32, %v7160_v38  ;;  %v7209_v57 = vsub.f32 %v7088_v60, %v7160_v38  ;;  %v7213_v47 = vsub.f32 %v7100_v56, %v7160_v38 }
 0x280   :  { %8215 = vst [vmem:[#allocation11_spill] sm:$0xff] %v7180_v58  ;;  %8216 = vst [vmem:[#allocation39_spill] sm:$0xff] %v7184_v35  ;;  %v7217_v40 = vsub.f32 %v7112_v0, %v7160_v38  ;;  %v7221_v17 = vsub.f32 %v7124_v25, %v7160_v38  ;;  %v7225_v32 = vsub.f32 %v7136_v18, %v7160_v38  ;;  %v8222_v18 = vld [vmem:[#allocation24_spill] sm:$0xff] }
 0x281   :  { %8217 = vst [vmem:[#allocation12_spill] sm:$0xff] %v7188_v11  ;;  %8218 = vst [vmem:[#allocation40_spill] sm:$0xff] %v7192_v48  ;;  %v7228_v62 = vsub.f32 %v3063_v24, %v7160_v38  ;;  %v7231_v60 = vsub.f32 %v3064_v42, %v7160_v38  ;;  %v7234_v56 = vsub.f32 %v3065_v13, %v7160_v38 }
 0x282   :  { %8219 = vst [vmem:[#allocation13_spill] sm:$0xff] %v7195_v2  ;;  %8220 = vst [vmem:[#allocation41_spill] sm:$0xff] %v7198_v43  ;;  %v7238_v0 = vsub.f32 %v6767_v4, %v7160_v38  ;;  %v7242_v25 = vsub.f32 %v6755_v61, %v7160_v38  ;;  %v7246_v9 = vsub.f32 %v8222_v18, %v7160_v38 }
 0x283   :  { %8221 = vst [vmem:[#allocation14_spill] sm:$0xff] %v7201_v16  ;;  %v7250_v24 = vsub.f32 %v6793_v44, %v7160_v38  ;;  %v7258_v4 = vsub.f32 %v6810_v39, %v7160_v38  ;;  %v7264_v23 = vsub.f32 %v6838_v50, %v7160_v38  ;;  %v7272_v26 = vsub.f32 %v6851_v52, %v7160_v38 }
 0x284   :  { %v3272_v42 = vmul.f32 %v7238_v0, %v7238_v0  ;;  %v3273_v13 = vmul.f32 %v7242_v25, %v7242_v25  ;;  %v3274_v61 = vmul.f32 %v7246_v9, %v7246_v9  ;;  %v7279_v50 = vsub.f32 %v6863_v3, %v7160_v38 }
 0x285   :  { %v3275_v44 = vmul.f32 %v7250_v24, %v7250_v24  ;;  %v3276_v39 = vmul.f32 %v7258_v4, %v7258_v4  ;;  %v3277_v54 = vmul.f32 %v7264_v23, %v7264_v23  ;;  %v7286_v52 = vsub.f32 %v6884_v8, %v7160_v38 }
 0x286   :  { %v3304_v59 = vsel %vm3066_vm4, %v3272_v42, 0.0  ;;  %v3305_v21 = vsel %vm3066_vm4, %v3273_v13, 0.0  ;;  %v3307_v41 = vsel %vm3066_vm4, %v3274_v61, 0.0  ;;  %v3278_v15 = vmul.f32 %v7272_v26, %v7272_v26  ;;  %v8225_v13 = vld [vmem:[#allocation10_spill] sm:$0xff] }
 0x287   :  { %v3306_v6 = vadd.f32 %v3305_v21, %v3304_v59  ;;  %v3309_v33 = vsel %vm3066_vm4, %v3275_v44, 0.0  ;;  %v3311_v12 = vsel %vm3066_vm4, %v3276_v39, 0.0  ;;  %v7293_v3 = vsub.f32 %v6896_v22, %v7160_v38  ;;  %v8226_v44 = vld [vmem:[#allocation15_spill] sm:$0xff] }
 0x288   :  { %v3279_v30 = vmul.f32 %v7279_v50, %v7279_v50  ;;  %v3313_v18 = vsel %vm3066_vm4, %v3277_v54, 0.0  ;;  %v7300_v42 = vsub.f32 %v6913_v31, %v7160_v38  ;;  %v7304_v61 = vsub.f32 %v8225_v13, %v7160_v38 }
 0x289   :  { %v3308_v20 = vadd.f32 %v3307_v41, %v3306_v6  ;;  %8223 = vst [vmem:[#allocation42_spill] sm:$0xff] %v7293_v3  ;;  %v7308_v59 = vsub.f32 %v8226_v44, %v7160_v38  ;;  %v3280_v22 = vmul.f32 %v7286_v52, %v7286_v52  ;;  %v3315_v21 = vsel %vm3066_vm4, %v3278_v15, 0.0 }
 0x28a   :  { %8224 = vst [vmem:[#allocation16_spill] sm:$0xff] %v7300_v42  ;;  %v7315_v39 = vsub.f32 %v6926_v29, %v7160_v38  ;;  %v7319_v31 = vsub.f32 %v6784_v37, %v7160_v38  ;;  %v3281_v41 = vmul.f32 %v7293_v3, %v7293_v3  ;;  %v7326_v54 = vsub.f32 %v6935_v1, %v7160_v38 }
 0x28b   :  { %v3310_v55 = vadd.f32 %v3309_v33, %v3308_v20  ;;  %v3317_v20 = vsel %vm3066_vm4, %v3279_v30, 0.0  ;;  %v7330_v33 = vsub.f32 %v6801_v36, %v7160_v38  ;;  %v3282_v29 = vmul.f32 %v7300_v42, %v7300_v42 }
 0x28c   :  { %8227 = vst [vmem:[#allocation43_spill] sm:$0xff] %v7315_v39  ;;  %8228 = vst [vmem:[#allocation17_spill] sm:$0xff] %v7326_v54  ;;  %v3319_v37 = vsel %vm3066_vm4, %v3280_v22, 0.0  ;;  %v3373_v15 = vmul.f32 %v7304_v61, %v7304_v61  ;;  %v7341_v1 = vsub.f32 %v6953_v14, %v7160_v38  ;;  %v7345_v36 = vsub.f32 %v6821_v46, %v7160_v38 }
 0x28d   :  { %v3312_v19 = vadd.f32 %v3311_v12, %v3310_v55  ;;  %v3374_v12 = vmul.f32 %v7308_v59, %v7308_v59  ;;  %v3283_v30 = vmul.f32 %v7315_v39, %v7315_v39  ;;  %v7354_v13 = vsub.f32 %v6962_v49, %v7160_v38  ;;  %v8244_v39 = vld [vmem:[#allocation28_spill] sm:$0xff] }
 0x28e   :  { %8229 = vst [vmem:[#allocation44_spill] sm:$0xff] %v7341_v1  ;;  %v7358_v14 = vsub.f32 %v6844_v28, %v7160_v38  ;;  %v3284_v46 = vmul.f32 %v7326_v54, %v7326_v54  ;;  %v3323_v22 = vsel %vm3066_vm4, %v3282_v29, 0.0  ;;  %v7369_v49 = vsub.f32 %v6972_v51, %v7160_v38  ;;  %v8241_v54 = vld [vmem:[#allocation27_spill] sm:$0xff] }
 0x28f   :  { %v3314_v8 = vadd.f32 %v3313_v18, %v3312_v19  ;;  %v3321_v18 = vsel %vm3066_vm4, %v3281_v41, 0.0  ;;  %8230 = vst [vmem:[#allocation18_spill] sm:$0xff] %v7354_v13  ;;  %v3406_v41 = vsel %vm3066_vm4, %v3374_v12, 0.0  ;;  %v7373_v28 = vsub.f32 %v6857_v27, %v7160_v38 }
 0x290   :  { %8231 = vst [vmem:[#allocation45_spill] sm:$0xff] %v7369_v49  ;;  %v3285_v29 = vmul.f32 %v7341_v1, %v7341_v1  ;;  %v7383_v51 = vsub.f32 %v6981_v63, %v7160_v38  ;;  %v7387_v27 = vsub.f32 %v6876_v5, %v7160_v38  ;;  %v8238_v1 = vld [vmem:[#allocation26_spill] sm:$0xff] }
 0x291   :  { %v3316_v6 = vadd.f32 %v3315_v21, %v3314_v8  ;;  %v3375_v8 = vmul.f32 %v7319_v31, %v7319_v31  ;;  %v3376_v21 = vmul.f32 %v7330_v33, %v7330_v33 }
 0x292   :  { %8232 = vst [vmem:[#allocation32_spill] sm:$0xff] %v7383_v51 }
 0x293   :  { %v3318_v55 = vadd.f32 %v3317_v20, %v3316_v6  ;;  %v3405_v6 = vsel %vm3066_vm4, %v3373_v15, 0.0  ;;  %v3377_v15 = vmul.f32 %v7345_v36, %v7345_v36  ;;  %v3408_v12 = vsel %vm3066_vm4, %v3375_v8, 0.0 }
 0x294   :  { %v3410_v8 = vsel %vm3066_vm4, %v3376_v21, 0.0 }
 0x295   :  { %v3320_v19 = vadd.f32 %v3319_v37, %v3318_v55  ;;  %v3407_v55 = vadd.f32 %v3406_v41, %v3405_v6  ;;  %v3325_v37 = vsel %vm3066_vm4, %v3283_v30, 0.0  ;;  %v3327_v30 = vsel %vm3066_vm4, %v3284_v46, 0.0  ;;  %v8233_v6 = vld [vmem:[#allocation20_spill] sm:$0xff]  ;;  %v8235_v41 = vld [vmem:[#allocation25_spill] sm:$0xff] }
 0x296   :  { %v7397_v63 = vsub.f32 %v8233_v6, %v7160_v38  ;;  %v7401_v5 = vsub.f32 %v8235_v41, %v7160_v38  ;;  %v3329_v46 = vsel %vm3066_vm4, %v3285_v29, 0.0  ;;  %v3412_v21 = vsel %vm3066_vm4, %v3377_v15, 0.0 }
 0x297   :  { %v3322_v44 = vadd.f32 %v3321_v18, %v3320_v19  ;;  %v3409_v18 = vadd.f32 %v3408_v12, %v3407_v55  ;;  %v3379_v12 = vmul.f32 %v7373_v28, %v7373_v28  ;;  %v7415_v41 = vsub.f32 %v8238_v1, %v7160_v38 }
 0x298   :  { %8234 = vst [vmem:[#allocation46_spill] sm:$0xff] %v7397_v63  ;;  %v7429_v1 = vsub.f32 %v8241_v54, %v7160_v38  ;;  %v7443_v54 = vsub.f32 %v8244_v39, %v7160_v38 }
 0x299   :  { %v3324_v20 = vadd.f32 %v3323_v22, %v3322_v44  ;;  %v3286_v44 = vmul.f32 %v7354_v13, %v7354_v13  ;;  %v3378_v22 = vmul.f32 %v7358_v14, %v7358_v14  ;;  %v3411_v55 = vadd.f32 %v3410_v8, %v3409_v18  ;;  %v8236_v13 = vld [vmem:[#allocation4_spill] sm:$0xff] }
 0x29a   :  { %v7411_v6 = vsub.f32 %v8236_v13, %v7160_v38  ;;  %v3380_v8 = vmul.f32 %v7387_v27, %v7387_v27 }
 0x29b   :  { %v3326_v19 = vadd.f32 %v3325_v37, %v3324_v20  ;;  %v3287_v37 = vmul.f32 %v7369_v49, %v7369_v49  ;;  %v3413_v18 = vadd.f32 %v3412_v21, %v3411_v55  ;;  %v3331_v29 = vsel %vm3066_vm4, %v3286_v44, 0.0  ;;  %v8239_v49 = vld [vmem:[#allocation5_spill] sm:$0xff] }
 0x29c   :  { %8237 = vst [vmem:[#allocation33_spill] sm:$0xff] %v7411_v6  ;;  %v3414_v15 = vsel %vm3066_vm4, %v3378_v22, 0.0  ;;  %v7425_v13 = vsub.f32 %v8239_v49, %v7160_v38  ;;  %v3381_v21 = vmul.f32 %v7401_v5, %v7401_v5  ;;  %v3416_v22 = vsel %vm3066_vm4, %v3379_v12, 0.0 }
 0x29d   :  { %v3328_v20 = vadd.f32 %v3327_v30, %v3326_v19  ;;  %v3288_v30 = vmul.f32 %v7383_v51, %v7383_v51  ;;  %v3415_v55 = vadd.f32 %v3414_v15, %v3413_v18  ;;  %v3333_v44 = vsel %vm3066_vm4, %v3287_v37, 0.0  ;;  %v8242_v51 = vld [vmem:[#allocation6_spill] sm:$0xff] }
 0x29e   :  { %8240 = vst [vmem:[#allocation47_spill] sm:$0xff] %v7425_v13  ;;  %v7439_v49 = vsub.f32 %v8242_v51, %v7160_v38  ;;  %v3382_v15 = vmul.f32 %v7415_v41, %v7415_v41  ;;  %v3418_v12 = vsel %vm3066_vm4, %v3380_v8, 0.0  ;;  %v3291_v39 = vmul.f32 %v7425_v13, %v7425_v13 }
 0x29f   :  { %v3330_v19 = vadd.f32 %v3329_v46, %v3328_v20  ;;  %v3289_v46 = vmul.f32 %v7397_v63, %v7397_v63  ;;  %v3417_v18 = vadd.f32 %v3416_v22, %v3415_v55  ;;  %v3335_v37 = vsel %vm3066_vm4, %v3288_v30, 0.0  ;;  %v8245_v63 = vld [vmem:[#allocation19_spill] sm:$0xff] }
 0x2a0   :  { %8243 = vst [vmem:[#allocation34_spill] sm:$0xff] %v7439_v49  ;;  %v7453_v51 = vsub.f32 %v8245_v63, %v7160_v38  ;;  %v3383_v55 = vmul.f32 %v7429_v1, %v7429_v1  ;;  %v3420_v30 = vsel %vm3066_vm4, %v3381_v21, 0.0  ;;  %v3292_v63 = vmul.f32 %v7439_v49, %v7439_v49 }
 0x2a1   :  { %v3332_v20 = vadd.f32 %v3331_v29, %v3330_v19  ;;  %v3290_v29 = vmul.f32 %v7411_v6, %v7411_v6  ;;  %v3419_v3 = vadd.f32 %v3418_v12, %v3417_v18  ;;  %v3384_v18 = vmul.f32 %v7443_v54, %v7443_v54 }
 0x2a3   :  { %v3334_v19 = vadd.f32 %v3333_v44, %v3332_v20  ;;  %v3337_v20 = vsel %vm3066_vm4, %v3289_v46, 0.0  ;;  %v8246_v44 = vld [vmem:[#allocation29_spill] sm:$0xff]  ;;  %v3421_v6 = vadd.f32 %v3420_v30, %v3419_v3  ;;  %v3422_v46 = vsel %vm3066_vm4, %v3382_v15, 0.0  ;;  %v8248_v30 = vld [vmem:[#allocation31_spill] sm:$0xff] }
 0x2a4   :  { %v7463_v22 = vsub.f32 %v8246_v44, %v7160_v38  ;;  %v3341_v3 = vsel %vm3066_vm4, %v3291_v39, 0.0  ;;  %v7483_v44 = vsub.f32 %v8248_v30, %v7160_v38  ;;  %v3426_v39 = vsel %vm3066_vm4, %v3384_v18, 0.0 }
 0x2a5   :  { %v3336_v42 = vadd.f32 %v3335_v37, %v3334_v19  ;;  %v3339_v19 = vsel %vm3066_vm4, %v3290_v29, 0.0  ;;  %v8247_v37 = vld [vmem:[#allocation30_spill] sm:$0xff]  ;;  %v3423_v13 = vadd.f32 %v3422_v46, %v3421_v6  ;;  %v3424_v29 = vsel %vm3066_vm4, %v3383_v55, 0.0  ;;  %v8249_v46 = vld [vmem:[#allocation3_spill] sm:$0xff] }
 0x2a6   :  { %v7473_v12 = vsub.f32 %v8247_v37, %v7160_v38  ;;  %v3343_v6 = vsel %vm3066_vm4, %v3292_v63, 0.0  ;;  %v7493_v37 = vsub.f32 %v8249_v46, %v7160_v38 }
 0x2a7   :  { %v3338_v8 = vadd.f32 %v3337_v20, %v3336_v42  ;;  %v3293_v42 = vmul.f32 %v7164_v45, %v7164_v45  ;;  %v3385_v20 = vmul.f32 %v7453_v51, %v7453_v51  ;;  %v3425_v49 = vadd.f32 %v3424_v29, %v3423_v13  ;;  %v8250_v29 = vld [vmem:[#allocation21_spill] sm:$0xff] }
 0x2a8   :  { %v7503_v30 = vsub.f32 %v8250_v29, %v7160_v38 }
 0x2a9   :  { %v3340_v21 = vadd.f32 %v3339_v19, %v3338_v8  ;;  %v3294_v8 = vmul.f32 %v7168_v7, %v7168_v7  ;;  %v3386_v19 = vmul.f32 %v7463_v22, %v7463_v22  ;;  %v3427_v45 = vadd.f32 %v3426_v39, %v3425_v49  ;;  %v8251_v39 = vld [vmem:[#allocation22_spill] sm:$0xff] }
 0x2aa   :  { %v3345_v13 = vsel %vm3066_vm4, %v3293_v42, 0.0  ;;  %v3428_v63 = vsel %vm3066_vm4, %v3385_v20, 0.0  ;;  %v7513_v46 = vsub.f32 %v8251_v39, %v7160_v38 }
 0x2ab   :  { %v3342_v15 = vadd.f32 %v3341_v3, %v3340_v21  ;;  %v3295_v21 = vmul.f32 %v7172_v53, %v7172_v53  ;;  %v3387_v3 = vmul.f32 %v7473_v12, %v7473_v12  ;;  %v3429_v7 = vadd.f32 %v3428_v63, %v3427_v45  ;;  %v8252_v63 = vld [vmem:[#allocation23_spill] sm:$0xff] }
 0x2ac   :  { %v3347_v49 = vsel %vm3066_vm4, %v3294_v8, 0.0  ;;  %v3430_v42 = vsel %vm3066_vm4, %v3386_v19, 0.0  ;;  %v7523_v29 = vsub.f32 %v8252_v63, %v7160_v38 }
 0x2ad   :  { %v3344_v55 = vadd.f32 %v3343_v6, %v3342_v15  ;;  %v3296_v15 = vmul.f32 %v7176_v34, %v7176_v34  ;;  %v3388_v6 = vmul.f32 %v7483_v44, %v7483_v44  ;;  %v3431_v53 = vadd.f32 %v3430_v42, %v3429_v7  ;;  %v8253_v42 = vld [vmem:[#allocation7_spill] sm:$0xff] }
 0x2ae   :  { %v3349_v45 = vsel %vm3066_vm4, %v3295_v21, 0.0  ;;  %v3432_v8 = vsel %vm3066_vm4, %v3387_v3, 0.0  ;;  %v7533_v39 = vsub.f32 %v8253_v42, %v7160_v38 }
 0x2af   :  { %v3346_v18 = vadd.f32 %v3345_v13, %v3344_v55  ;;  %v3297_v55 = vmul.f32 %v7180_v58, %v7180_v58  ;;  %v3389_v13 = vmul.f32 %v7493_v37, %v7493_v37  ;;  %v3433_v34 = vadd.f32 %v3432_v8, %v3431_v53  ;;  %v8254_v8 = vld [vmem:[#allocation35_spill] sm:$0xff] }
 0x2b0   :  { %v3351_v7 = vsel %vm3066_vm4, %v3296_v15, 0.0  ;;  %v3434_v21 = vsel %vm3066_vm4, %v3388_v6, 0.0  ;;  %v7543_v63 = vsub.f32 %v8254_v8, %v7160_v38 }
 0x2b1   :  { %v3348_v20 = vadd.f32 %v3347_v49, %v3346_v18  ;;  %v3298_v18 = vmul.f32 %v7184_v35, %v7184_v35  ;;  %v3390_v49 = vmul.f32 %v7503_v30, %v7503_v30  ;;  %v3435_v58 = vadd.f32 %v3434_v21, %v3433_v34  ;;  %v8255_v21 = vld [vmem:[#allocation36_spill] sm:$0xff] }
 0x2b2   :  { %v3353_v53 = vsel %vm3066_vm4, %v3297_v55, 0.0  ;;  %v3436_v15 = vsel %vm3066_vm4, %v3389_v13, 0.0  ;;  %v7553_v42 = vsub.f32 %v8255_v21, %v7160_v38  ;;  %v3394_v38 = vmul.f32 %v7543_v63, %v7543_v63 }
 0x2b3   :  { %v3350_v19 = vadd.f32 %v3349_v45, %v3348_v20  ;;  %v3299_v20 = vmul.f32 %v7188_v11, %v7188_v11  ;;  %v3391_v45 = vmul.f32 %v7513_v46, %v7513_v46  ;;  %v3437_v35 = vadd.f32 %v3436_v15, %v3435_v58 }
 0x2b4   :  { %v3355_v34 = vsel %vm3066_vm4, %v3298_v18, 0.0  ;;  %v3438_v55 = vsel %vm3066_vm4, %v3390_v49, 0.0  ;;  %v3395_v21 = vmul.f32 %v7553_v42, %v7553_v42 }
 0x2b5   :  { %v3352_v3 = vadd.f32 %v3351_v7, %v3350_v19  ;;  %v3300_v19 = vmul.f32 %v7192_v48, %v7192_v48  ;;  %v3392_v7 = vmul.f32 %v7523_v29, %v7523_v29  ;;  %v3439_v11 = vadd.f32 %v3438_v55, %v3437_v35 }
 0x2b6   :  { %v3357_v58 = vsel %vm3066_vm4, %v3299_v20, 0.0  ;;  %v3440_v18 = vsel %vm3066_vm4, %v3391_v45, 0.0  ;;  %v3302_v55 = vmul.f32 %v7198_v43, %v7198_v43 }
 0x2b7   :  { %v3354_v6 = vadd.f32 %v3353_v53, %v3352_v3  ;;  %v3301_v3 = vmul.f32 %v7195_v2, %v7195_v2  ;;  %v3393_v53 = vmul.f32 %v7533_v39, %v7533_v39  ;;  %v3441_v8 = vadd.f32 %v3440_v18, %v3439_v11 }
 0x2b8   :  { %v3359_v49 = vsel %vm3066_vm4, %v3300_v19, 0.0  ;;  %v3396_v19 = vmul.f32 %v7205_v10, %v7205_v10  ;;  %v3303_v18 = vmul.f32 %v7201_v16, %v7201_v16 }
 0x2b9   :  { %v3356_v13 = vadd.f32 %v3355_v34, %v3354_v6  ;;  %v3442_v6 = vsel %vm3066_vm4, %v3392_v7, 0.0  ;;  %v3361_v20 = vsel %vm3066_vm4, %v3301_v3, 0.0  ;;  %v3444_v45 = vsel %vm3066_vm4, %v3393_v53, 0.0 }
 0x2ba   :  { %v3443_v34 = vadd.f32 %v3442_v6, %v3441_v8  ;;  %v3397_v3 = vmul.f32 %v7209_v57, %v7209_v57  ;;  %v3448_v8 = vsel %vm3066_vm4, %v3395_v21, 0.0  ;;  %v3398_v6 = vmul.f32 %v7213_v47, %v7213_v47 }
 0x2bb   :  { %v3358_v15 = vadd.f32 %v3357_v58, %v3356_v13  ;;  %v3446_v58 = vsel %vm3066_vm4, %v3394_v38, 0.0  ;;  %v3365_v38 = vsel %vm3066_vm4, %v3303_v18, 0.0  ;;  %v3400_v21 = vmul.f32 %v7221_v17, %v7221_v17 }
 0x2bc   :  { %v3445_v13 = vadd.f32 %v3444_v45, %v3443_v34 }
 0x2bd   :  { %v3360_v35 = vadd.f32 %v3359_v49, %v3358_v15  ;;  %v3363_v15 = vsel %vm3066_vm4, %v3302_v55, 0.0  ;;  %v3452_v55 = vsel %vm3066_vm4, %v3397_v3, 0.0  ;;  %v3458_v3 = vsel %vm3066_vm4, %v3400_v21, 0.0 }
 0x2be   :  { %v3447_v7 = vadd.f32 %v3446_v58, %v3445_v13 }
 0x2bf   :  { %v3362_v11 = vadd.f32 %v3361_v20, %v3360_v35  ;;  %v3450_v35 = vsel %vm3066_vm4, %v3396_v19, 0.0  ;;  %v3399_v20 = vmul.f32 %v7217_v40, %v7217_v40 }
 0x2c0   :  { %v3449_v53 = vadd.f32 %v3448_v8, %v3447_v7  ;;  %v3401_v7 = vmul.f32 %v7225_v32, %v7225_v32  ;;  %v3402_v8 = vmul.f32 %v7228_v62, %v7228_v62 }
 0x2c1   :  { %v3364_v49 = vadd.f32 %v3363_v15, %v3362_v11  ;;  %v3454_v11 = vsel %vm3066_vm4, %v3398_v6, 0.0  ;;  %v3456_v19 = vsel %vm3066_vm4, %v3399_v20, 0.0 }
 0x2c2   :  { %v3451_v34 = vadd.f32 %v3450_v35, %v3449_v53  ;;  %v3403_v53 = vmul.f32 %v7231_v60, %v7231_v60  ;;  %v3460_v35 = vsel %vm3066_vm4, %v3401_v7, 0.0  ;;  %v3462_v20 = vsel %vm3066_vm4, %v3402_v8, 0.0 }
 0x2c3   :  { %v3366_v45 = vadd.f32 %v3365_v38, %v3364_v49  ;;  %v3404_v38 = vmul.f32 %v7234_v56, %v7234_v56 }
 0x2c4   :  { %v3453_v13 = vadd.f32 %v3452_v55, %v3451_v34 }
 0x2c5   :  { %v3367_v15 = vrot.slane %v3366_v45, 4  ;;  %v3466_v21 = vsel %vm3066_vm4, %v3404_v38, 0.0  ;;  %v3476_v38 = vld [vmem:[%s7973_s4] sm:$0x1]  ;;  %s5296_s4 = smov 64  }
 0x2c6   :  { %v3455_v58 = vadd.f32 %v3454_v11, %v3453_v13  ;;  %v3464_v13 = vsel %vm3066_vm4, %v3403_v53, 0.0 }
 0x2c7   :  { %v3368_v6 = vadd.f32 %v3367_v15, %v3366_v45 }
 0x2c8   :  { %v3457_v18 = vadd.f32 %v3456_v19, %v3455_v58 }
 0x2c9   :  { %v3369_v11 = vrot.slane %v3368_v6, 2 }
 0x2ca   :  { %v3459_v49 = vadd.f32 %v3458_v3, %v3457_v18 }
 0x2cb   :  { %v3370_v18 = vadd.f32 %v3369_v11, %v3368_v6 }
 0x2cc   :  { %v3461_v34 = vadd.f32 %v3460_v35, %v3459_v49 }
 0x2cd   :  { %v3371_v43 = vrot.slane %v3370_v18, 1 }
 0x2ce   :  { %v3463_v55 = vadd.f32 %v3462_v20, %v3461_v34  ;;  %v3481_v34 = vlaneseq }
 0x2cf   :  { %v3372_v15 = vadd.f32 %v3371_v43, %v3370_v18  ;;  %v7612_v43 = vld [vmem:[%s7974_s5] ss:$0 sm:$0xff] }
 0x2d0   :  { %v3465_v58 = vadd.f32 %v3464_v13, %v3463_v55  ;;  %v3482_v53 = vshrl.u32 %v3481_v34, 7 }
 0x2d2   :  { %v3467_v19 = vadd.f32 %v3466_v21, %v3465_v58  ;;  %v3483_v55 = vsub.s32 0, %v3482_v53 }
 0x2d4   :  { %v3468_v3 = vrot.slane %v3467_v19, 4 }
 0x2d6   :  { %v3469_v16 = vadd.f32 %v3468_v3, %v3467_v19 }
 0x2d8   :  { %v3470_v7 = vrot.slane %v3469_v16, 2 }
 0x2da   :  { %v3471_v45 = vadd.f32 %v3470_v7, %v3469_v16 }
 0x2dc   :  { %v3472_v49 = vrot.slane %v3471_v45, 1 }
 0x2de   :  { %v3473_v35 = vadd.f32 %v3472_v49, %v3471_v45 }
 0x2e0   :  { %v3474_v2 = vadd.f32 %v3473_v35, %v3372_v15 }
 0x2e2   :  { %v3475_v48 = vmul.f32 0.001953125, %v3474_v2 }
 0x2e4   :  { %v3477_v8 = vadd.f32 0.8, %v3475_v48 }
 0x2e6   :  { %5289 = vrsqrt.f32 %v3477_v8 }
 0x2f3   :  { %v5290_v20 = vpop.eup %5289 }
 0x2f4   :  { %v3479_v6 = vmul.f32 %v5290_v20, %v3476_v38 }
 0x2f6   :  { %v7607_v13 = vrot.slane %v3479_v6, %v3483_v55 }
 0x2f8   :  { %v3559_v48 = vmul.f32 %v7607_v13, %v7319_v31  ;;  %v3557_v2 = vmul.f32 %v7607_v13, %v7304_v61  ;;  %v3560_v16 = vmul.f32 %v7607_v13, %v7330_v33  ;;  %v3558_v11 = vmul.f32 %v7607_v13, %v7308_v59 }
 0x2f9   :  { %v3562_v58 = vmul.f32 %v7607_v13, %v7358_v14  ;;  %v3561_v21 = vmul.f32 %v7607_v13, %v7345_v36  ;;  %v3564_v36 = vmul.f32 %v7607_v13, %v7387_v27  ;;  %v3563_v45 = vmul.f32 %v7607_v13, %v7373_v28 }
 0x2fa   :  { %v3591_v19 = vadd.f32 %v7612_v43, %v3559_v48  ;;  %v3589_v18 = vadd.f32 %v7612_v43, %v3557_v2  ;;  %v3592_v31 = vadd.f32 %v7612_v43, %v3560_v16  ;;  %v3590_v61 = vadd.f32 %v7612_v43, %v3558_v11 }
 0x2fb   :  { %v3594_v3 = vadd.f32 %v7612_v43, %v3562_v58  ;;  %v3593_v14 = vadd.f32 %v7612_v43, %v3561_v21  ;;  %v3596_v53 = vadd.f32 %v7612_v43, %v3564_v36  ;;  %v3595_v27 = vadd.f32 %v7612_v43, %v3563_v45 }
 0x2fc   :  { %vm3719_vm5 = vcmp.gt.f32.partialorder %v3591_v19, 0.0  ;;  %v3751_v33 = vmul.f32 0.2, %v3591_v19  ;;  %vm3717_vm6 = vcmp.gt.f32.partialorder %v3589_v18, 0.0  ;;  %v3749_v59 = vmul.f32 0.2, %v3589_v18 }
 0x2fd   :  { %v3752_v7 = vmul.f32 0.2, %v3592_v31  ;;  %vm3720_vm7 = vcmp.gt.f32.partialorder %v3592_v31, 0.0  ;;  %v3750_v35 = vmul.f32 0.2, %v3590_v61  ;;  %vm3718_vm8 = vcmp.gt.f32.partialorder %v3590_v61, 0.0 }
 0x2fe   :  { %v3783_v15 = vsel %vm3719_vm5, %v3591_v19, %v3751_v33  ;;  %v3781_v49 = vsel %vm3717_vm6, %v3589_v18, %v3749_v59  ;;  %v3754_v8 = vmul.f32 0.2, %v3594_v3  ;;  %vm3722_vm9 = vcmp.gt.f32.partialorder %v3594_v3, 0.0 }
 0x2ff   :  { %3849 = vrot.lane.b32.xlu1 %v3783_v15, %s5296_s4  ;;  %3845 = vrot.lane.b32.xlu0 %v3781_v49, %s5296_s4  ;;  %v3784_v34 = vsel %vm3720_vm7, %v3592_v31, %v3752_v7  ;;  %v3782_v20 = vsel %vm3718_vm8, %v3590_v61, %v3750_v35  ;;  %v3753_v38 = vmul.f32 0.2, %v3593_v14  ;;  %v3566_v28 = vmul.f32 %v7607_v13, %v7415_v41 }
 0x300   :  { %v3565_v6 = vmul.f32 %v7607_v13, %v7401_v5  ;;  %vm3721_vm10 = vcmp.gt.f32.partialorder %v3593_v14, 0.0  ;;  %v3786_v55 = vsel %vm3722_vm9, %v3594_v3, %v3754_v8  ;;  %vm3724_vm11 = vcmp.gt.f32.partialorder %v3596_v53, 0.0 }
 0x301   :  { %v3756_v48 = vmul.f32 0.2, %v3596_v53  ;;  %v3568_v2 = vmul.f32 %v7607_v13, %v7443_v54  ;;  %v3567_v16 = vmul.f32 %v7607_v13, %v7429_v1  ;;  %v3785_v11 = vsel %vm3721_vm10, %v3593_v14, %v3753_v38 }
 0x302   :  { %v3755_v58 = vmul.f32 0.2, %v3595_v27  ;;  %v3598_v41 = vadd.f32 %v7612_v43, %v3566_v28  ;;  %v3597_v5 = vadd.f32 %v7612_v43, %v3565_v6  ;;  %vm3723_vm12 = vcmp.gt.f32.partialorder %v3595_v27, 0.0 }
 0x303   :  { %3851 = vrot.lane.b32.xlu1 %v3784_v34, %s5296_s4  ;;  %3847 = vrot.lane.b32.xlu0 %v3782_v20, %s5296_s4  ;;  %v3570_v21 = vmul.f32 %v7607_v13, %v7463_v22  ;;  %v3788_v19 = vsel %vm3724_vm11, %v3596_v53, %v3756_v48  ;;  %v3600_v54 = vadd.f32 %v7612_v43, %v3568_v2 }
 0x304   :  { %v3599_v18 = vadd.f32 %v7612_v43, %v3567_v16  ;;  %v3787_v1 = vsel %vm3723_vm12, %v3595_v27, %v3755_v58  ;;  %v3758_v31 = vmul.f32 0.2, %v3598_v41  ;;  %v3757_v61 = vmul.f32 0.2, %v3597_v5 }
 0x305   :  { %v3569_v3 = vmul.f32 %v7607_v13, %v7453_v51  ;;  %vm3726_vm13 = vcmp.gt.f32.partialorder %v3598_v41, 0.0  ;;  %vm3725_vm14 = vcmp.gt.f32.partialorder %v3597_v5, 0.0  ;;  %v3602_v33 = vadd.f32 %v7612_v43, %v3570_v21 }
 0x306   :  { %v3760_v22 = vmul.f32 0.2, %v3600_v54  ;;  %v3759_v59 = vmul.f32 0.2, %v3599_v18  ;;  %v3572_v7 = vmul.f32 %v7607_v13, %v7483_v44  ;;  %v3790_v14 = vsel %vm3726_vm13, %v3598_v41, %v3758_v31 }
 0x307   :  { %3855 = vrot.lane.b32.xlu1 %v3786_v55, %s5296_s4  ;;  %3853 = vrot.lane.b32.xlu0 %v3785_v11, %s5296_s4  ;;  %v3789_v36 = vsel %vm3725_vm14, %v3597_v5, %v3757_v61  ;;  %v3601_v45 = vadd.f32 %v7612_v43, %v3569_v3  ;;  %v3571_v51 = vmul.f32 %v7607_v13, %v7473_v12  ;;  %vm3728_vm15 = vcmp.gt.f32.partialorder %v3600_v54, 0.0 }
 0x308   :  { %vm3727_vm0 = vcmp.gt.f32.partialorder %v3599_v18, 0.0  ;;  %vm3730_vm1 = vcmp.gt.f32.partialorder %v3602_v33, 0.0  ;;  %v3762_v15 = vmul.f32 0.2, %v3602_v33  ;;  %v3604_v49 = vadd.f32 %v7612_v43, %v3572_v7 }
 0x309   :  { %v3574_v44 = vmul.f32 %v7607_v13, %v7503_v30  ;;  %v3573_v35 = vmul.f32 %v7607_v13, %v7493_v37  ;;  %v3792_v8 = vsel %vm3728_vm15, %v3600_v54, %v3760_v22  ;;  %v3791_v34 = vsel %vm3727_vm0, %v3599_v18, %v3759_v59 }
 0x30a   :  { %v3761_v53 = vmul.f32 0.2, %v3601_v45  ;;  %v3603_v12 = vadd.f32 %v7612_v43, %v3571_v51  ;;  %vm3729_vm2 = vcmp.gt.f32.partialorder %v3601_v45, 0.0  ;;  %v3576_v27 = vmul.f32 %v7607_v13, %v7523_v29 }
 0x30b   :  { %3859 = vrot.lane.b32.xlu1 %v3788_v19, %s5296_s4  ;;  %3857 = vrot.lane.b32.xlu0 %v3787_v1, %s5296_s4  ;;  %v3794_v20 = vsel %vm3730_vm1, %v3602_v33, %v3762_v15  ;;  %v3764_v38 = vmul.f32 0.2, %v3604_v49  ;;  %v3606_v30 = vadd.f32 %v7612_v43, %v3574_v44  ;;  %v3605_v28 = vadd.f32 %v7612_v43, %v3573_v35 }
 0x30c   :  { %v3793_v37 = vsel %vm3729_vm2, %v3601_v45, %v3761_v53  ;;  %vm3732_vm3 = vcmp.gt.f32.partialorder %v3604_v49, 0.0  ;;  %v3763_v6 = vmul.f32 0.2, %v3603_v12  ;;  %v3575_v55 = vmul.f32 %v7607_v13, %v7513_v46 }
 0x30d   :  { %vm3731_vm5 = vcmp.gt.f32.partialorder %v3603_v12, 0.0  ;;  %v3608_v48 = vadd.f32 %v7612_v43, %v3576_v27  ;;  %v3796_v29 = vsel %vm3732_vm3, %v3604_v49, %v3764_v38  ;;  %vm3734_vm6 = vcmp.gt.f32.partialorder %v3606_v30, 0.0 }
 0x30e   :  { %v3766_v2 = vmul.f32 0.2, %v3606_v30  ;;  %v3578_v16 = vmul.f32 %v7607_v13, %v7543_v63  ;;  %v3795_v11 = vsel %vm3731_vm5, %v3603_v12, %v3763_v6  ;;  %v3765_v58 = vmul.f32 0.2, %v3605_v28 }
 0x30f   :  { %3863 = vrot.lane.b32.xlu1 %v3790_v14, %s5296_s4  ;;  %3861 = vrot.lane.b32.xlu0 %v3789_v36, %s5296_s4  ;;  %v3607_v41 = vadd.f32 %v7612_v43, %v3575_v55  ;;  %v3577_v46 = vmul.f32 %v7607_v13, %v7533_v39  ;;  %vm3733_vm7 = vcmp.gt.f32.partialorder %v3605_v28, 0.0  ;;  %vm3736_vm8 = vcmp.gt.f32.partialorder %v3608_v48, 0.0 }
 0x310   :  { %v3798_v5 = vsel %vm3734_vm6, %v3606_v30, %v3766_v2  ;;  %v3768_v21 = vmul.f32 0.2, %v3608_v48  ;;  %v3610_v19 = vadd.f32 %v7612_v43, %v3578_v16  ;;  %v3580_v63 = vmul.f32 %v7607_v13, %v7205_v10 }
 0x311   :  { %v3797_v54 = vsel %vm3733_vm7, %v3605_v28, %v3765_v58  ;;  %v3767_v18 = vmul.f32 0.2, %v3607_v41  ;;  %v3609_v1 = vadd.f32 %v7612_v43, %v3577_v46  ;;  %v3579_v39 = vmul.f32 %v7607_v13, %v7553_v42 }
 0x312   :  { %vm3735_vm9 = vcmp.gt.f32.partialorder %v3607_v41, 0.0  ;;  %v3582_v31 = vmul.f32 %v7607_v13, %v7213_v47  ;;  %v3800_v61 = vsel %vm3736_vm8, %v3608_v48, %v3768_v21  ;;  %v3770_v3 = vmul.f32 0.2, %v3610_v19 }
 0x313   :  { %3867 = vrot.lane.b32.xlu1 %v3792_v8, %s5296_s4  ;;  %3865 = vrot.lane.b32.xlu0 %v3791_v34, %s5296_s4  ;;  %v3612_v33 = vadd.f32 %v7612_v43, %v3580_v63  ;;  %v3581_v10 = vmul.f32 %v7607_v13, %v7209_v57  ;;  %v3799_v22 = vsel %vm3735_vm9, %v3607_v41, %v3767_v18  ;;  %vm3738_vm10 = vcmp.gt.f32.partialorder %v3610_v19, 0.0 }
 0x314   :  { %v3769_v59 = vmul.f32 0.2, %v3609_v1  ;;  %v3611_v42 = vadd.f32 %v7612_v43, %v3579_v39  ;;  %vm3737_vm11 = vcmp.gt.f32.partialorder %v3609_v1, 0.0  ;;  %v3614_v7 = vadd.f32 %v7612_v43, %v3582_v31 }
 0x315   :  { %v3802_v47 = vsel %vm3738_vm10, %v3610_v19, %v3770_v3  ;;  %v3772_v14 = vmul.f32 0.2, %v3612_v33  ;;  %v3584_v36 = vmul.f32 %v7607_v13, %v7221_v17  ;;  %v3613_v57 = vadd.f32 %v7612_v43, %v3581_v10 }
 0x316   :  { %v3801_v45 = vsel %vm3737_vm11, %v3609_v1, %v3769_v59  ;;  %v3771_v51 = vmul.f32 0.2, %v3611_v42  ;;  %v3583_v15 = vmul.f32 %v7607_v13, %v7217_v40  ;;  %vm3740_vm12 = vcmp.gt.f32.partialorder %v3612_v33, 0.0 }
 0x317   :  { %3871 = vrot.lane.b32.xlu1 %v3794_v20, %s5296_s4  ;;  %3869 = vrot.lane.b32.xlu0 %v3793_v37, %s5296_s4  ;;  %vm3739_vm13 = vcmp.gt.f32.partialorder %v3611_v42, 0.0  ;;  %v3774_v49 = vmul.f32 0.2, %v3614_v7  ;;  %vm3742_vm14 = vcmp.gt.f32.partialorder %v3614_v7, 0.0  ;;  %v3616_v44 = vadd.f32 %v7612_v43, %v3584_v36 }
 0x318   :  { %v3586_v17 = vmul.f32 %v7607_v13, %v7228_v62  ;;  %v3585_v35 = vmul.f32 %v7607_v13, %v7225_v32  ;;  %v3804_v8 = vsel %vm3740_vm12, %v3612_v33, %v3772_v14  ;;  %v3803_v34 = vsel %vm3739_vm13, %v3611_v42, %v3771_v51 }
 0x319   :  { %v3773_v53 = vmul.f32 0.2, %v3613_v57  ;;  %v3615_v40 = vadd.f32 %v7612_v43, %v3583_v15  ;;  %vm3741_vm15 = vcmp.gt.f32.partialorder %v3613_v57, 0.0  ;;  %v3806_v12 = vsel %vm3742_vm14, %v3614_v7, %v3774_v49 }
 0x31a   :  { %v3776_v27 = vmul.f32 0.2, %v3616_v44  ;;  %v3618_v20 = vadd.f32 %v7612_v43, %v3586_v17  ;;  %v3617_v38 = vadd.f32 %v7612_v43, %v3585_v35  ;;  %v3588_v62 = vmul.f32 %v7607_v13, %v7234_v56  ;;  %v8257_v35 = vld [vmem:[#allocation16_spill] sm:$0xff] }
 0x31b   :  { %3875 = vrot.lane.b32.xlu1 %v3796_v29, %s5296_s4  ;;  %3873 = vrot.lane.b32.xlu0 %v3795_v11, %s5296_s4  ;;  %v3805_v32 = vsel %vm3741_vm15, %v3613_v57, %v3773_v53  ;;  %vm3744_vm0 = vcmp.gt.f32.partialorder %v3616_v44, 0.0  ;;  %v3775_v30 = vmul.f32 0.2, %v3615_v40  ;;  %v3587_v28 = vmul.f32 %v7607_v13, %v7231_v60 }
 0x31c   :  { %vm3743_vm1 = vcmp.gt.f32.partialorder %v3615_v40, 0.0  ;;  %v3808_v37 = vsel %vm3744_vm0, %v3616_v44, %v3776_v27  ;;  %v3778_v6 = vmul.f32 0.2, %v3618_v20  ;;  %v3777_v48 = vmul.f32 0.2, %v3617_v38 }
 0x31d   :  { %v3807_v55 = vsel %vm3743_vm1, %v3615_v40, %v3775_v30  ;;  %v3620_v29 = vadd.f32 %v7612_v43, %v3588_v62  ;;  %v3619_v2 = vadd.f32 %v7612_v43, %v3587_v28  ;;  %vm3746_vm2 = vcmp.gt.f32.partialorder %v3618_v20, 0.0 }
 0x31e   :  { %vm3745_vm3 = vcmp.gt.f32.partialorder %v3617_v38, 0.0  ;;  %v3810_v60 = vsel %vm3746_vm2, %v3618_v20, %v3778_v6  ;;  %v3488_v46 = vmul.f32 %v7607_v13, %v7246_v9  ;;  %v3489_v21 = vmul.f32 %v7607_v13, %v7250_v24  ;;  %v8259_v6 = vld [vmem:[#allocation17_spill] sm:$0xff] }
 0x31f   :  { %3879 = vrot.lane.b32.xlu1 %v3798_v5, %s5296_s4  ;;  %3877 = vrot.lane.b32.xlu0 %v3797_v54, %s5296_s4  ;;  %v3809_v56 = vsel %vm3745_vm3, %v3617_v38, %v3777_v48  ;;  %v3780_v16 = vmul.f32 0.2, %v3620_v29  ;;  %v3779_v11 = vmul.f32 0.2, %v3619_v2  ;;  %vm3748_vm5 = vcmp.gt.f32.partialorder %v3620_v29, 0.0  ;;  %v8260_v48 = vld [vmem:[#allocation44_spill] sm:$0xff] }
 0x320   :  { %vm3747_vm6 = vcmp.gt.f32.partialorder %v3619_v2, 0.0  ;;  %v3486_v5 = vmul.f32 %v7607_v13, %v7238_v0  ;;  %v3527_v19 = vadd.f32 %v7612_v43, %v3488_v46  ;;  %v3487_v63 = vmul.f32 %v7607_v13, %v7242_v25 }
 0x321   :  { %v3812_v58 = vsel %vm3748_vm5, %v3620_v29, %v3780_v16  ;;  %v3811_v41 = vsel %vm3747_vm6, %v3619_v2, %v3779_v11  ;;  %v3491_v18 = vmul.f32 %v7607_v13, %v7264_v23  ;;  %v3528_v39 = vadd.f32 %v7612_v43, %v3489_v21 }
 0x322   :  { %v3525_v54 = vadd.f32 %v7612_v43, %v3486_v5  ;;  %v3655_v1 = vmul.f32 0.2, %v3527_v19  ;;  %v3490_v9 = vmul.f32 %v7607_v13, %v7258_v4  ;;  %vm3623_vm7 = vcmp.gt.f32.partialorder %v3527_v19, 0.0 }
 0x323   :  { %3883 = vrot.lane.b32.xlu1 %v3800_v61, %s5296_s4  ;;  %3881 = vrot.lane.b32.xlu0 %v3799_v22, %s5296_s4  ;;  %v3526_v24 = vadd.f32 %v7612_v43, %v3487_v63  ;;  %v3492_v31 = vmul.f32 %v7607_v13, %v7272_v26  ;;  %v3493_v25 = vmul.f32 %v7607_v13, %v7279_v50  ;;  %v3656_v3 = vmul.f32 0.2, %v3528_v39  ;;  %v8256_v50 = vld [vmem:[#allocation42_spill] sm:$0xff] }
 0x324   :  { %v3653_v0 = vmul.f32 0.2, %v3525_v54  ;;  %vm3621_vm8 = vcmp.gt.f32.partialorder %v3525_v54, 0.0  ;;  %v3687_v61 = vsel %vm3623_vm7, %v3527_v19, %v3655_v1  ;;  %v3530_v23 = vadd.f32 %v7612_v43, %v3491_v18  ;;  %v8261_v19 = vld [vmem:[#allocation18_spill] sm:$0xff] }
 0x325   :  { %vm3624_vm9 = vcmp.gt.f32.partialorder %v3528_v39, 0.0  ;;  %v3654_v4 = vmul.f32 0.2, %v3526_v24  ;;  %v3529_v59 = vadd.f32 %v7612_v43, %v3490_v9  ;;  %vm3622_vm10 = vcmp.gt.f32.partialorder %v3526_v24, 0.0 }
 0x326   :  { %v3685_v22 = vsel %vm3621_vm8, %v3525_v54, %v3653_v0  ;;  %v3494_v26 = vmul.f32 %v7607_v13, %v7286_v52  ;;  %v3688_v14 = vsel %vm3624_vm9, %v3528_v39, %v3656_v3  ;;  %vm3626_vm11 = vcmp.gt.f32.partialorder %v3530_v23, 0.0  ;;  %v8262_v54 = vld [vmem:[#allocation45_spill] sm:$0xff] }
 0x327   :  { %3887 = vrot.lane.b32.xlu1 %v3802_v47, %s5296_s4  ;;  %3885 = vrot.lane.b32.xlu0 %v3801_v45, %s5296_s4  ;;  %v3495_v47 = vmul.f32 %v7607_v13, %v8256_v50  ;;  %v3658_v36 = vmul.f32 0.2, %v3530_v23  ;;  %v3686_v57 = vsel %vm3622_vm10, %v3526_v24, %v3654_v4  ;;  %v3657_v15 = vmul.f32 0.2, %v3529_v59 }
 0x328   :  { %v3532_v52 = vadd.f32 %v7612_v43, %v3493_v25  ;;  %v3531_v49 = vadd.f32 %v7612_v43, %v3492_v31  ;;  %vm3625_vm12 = vcmp.gt.f32.partialorder %v3529_v59, 0.0  ;;  %v3533_v30 = vadd.f32 %v7612_v43, %v3494_v26 }
 0x329   :  { %v3690_v40 = vsel %vm3626_vm11, %v3530_v23, %v3658_v36  ;;  %v3689_v38 = vsel %vm3625_vm12, %v3529_v59, %v3657_v15  ;;  %v3499_v29 = vmul.f32 %v7607_v13, %v8260_v48  ;;  %v3500_v63 = vmul.f32 %v7607_v13, %v8261_v19 }
 0x32a   :  { %v3660_v62 = vmul.f32 0.2, %v3532_v52  ;;  %vm3628_vm13 = vcmp.gt.f32.partialorder %v3532_v52, 0.0  ;;  %vm3627_vm14 = vcmp.gt.f32.partialorder %v3531_v49, 0.0  ;;  %vm3629_vm0 = vcmp.gt.f32.partialorder %v3533_v30, 0.0 }
 0x32b   :  { %3891 = vrot.lane.b32.xlu1 %v3804_v8, %s5296_s4  ;;  %3889 = vrot.lane.b32.xlu0 %v3803_v34, %s5296_s4  ;;  %v3496_v8 = vmul.f32 %v7607_v13, %v8257_v35  ;;  %v8258_v34 = vld [vmem:[#allocation43_spill] sm:$0xff]  ;;  %v3501_v18 = vmul.f32 %v7607_v13, %v8262_v54  ;;  %v3538_v9 = vadd.f32 %v7612_v43, %v3499_v29 }
 0x32c   :  { %v3497_v53 = vmul.f32 %v7607_v13, %v8258_v34  ;;  %v3692_v16 = vsel %vm3628_vm13, %v3532_v52, %v3660_v62  ;;  %v3539_v36 = vadd.f32 %v7612_v43, %v3500_v63  ;;  %v8266_v52 = vld [vmem:[#allocation47_spill] sm:$0xff] }
 0x32d   :  { %v3535_v46 = vadd.f32 %v7612_v43, %v3496_v8  ;;  %vm3634_vm3 = vcmp.gt.f32.partialorder %v3538_v9, 0.0 }
 0x32e   :  { %vm3635_vm7 = vcmp.gt.f32.partialorder %v3539_v36, 0.0 }
 0x32f   :  { %3895 = vrot.lane.b32.xlu1 %v3806_v12, %s5296_s4  ;;  %3893 = vrot.lane.b32.xlu0 %v3805_v32, %s5296_s4  ;;  %v3534_v12 = vadd.f32 %v7612_v43, %v3495_v47  ;;  %v3659_v32 = vmul.f32 0.2, %v3531_v49  ;;  %v3663_v25 = vmul.f32 0.2, %v3535_v46  ;;  %vm3631_vm2 = vcmp.gt.f32.partialorder %v3535_v46, 0.0 }
 0x331   :  { %vm3630_vm15 = vcmp.gt.f32.partialorder %v3534_v12, 0.0  ;;  %v3662_v2 = vmul.f32 0.2, %v3534_v12  ;;  %v3695_v50 = vsel %vm3631_vm2, %v3535_v46, %v3663_v25  ;;  %v8272_v25 = vld [vmem:[#allocation11_spill] sm:$0xff] }
 0x333   :  { %3899 = vrot.lane.b32.xlu1 %v3808_v37, %s5296_s4  ;;  %3897 = vrot.lane.b32.xlu0 %v3807_v55, %s5296_s4  ;;  %v3498_v55 = vmul.f32 %v7607_v13, %v8259_v6  ;;  %v3694_v1 = vsel %vm3630_vm15, %v3534_v12, %v3662_v2 }
 0x337   :  { %3903 = vrot.lane.b32.xlu1 %v3810_v60, %s5296_s4  ;;  %3901 = vrot.lane.b32.xlu0 %v3809_v56, %s5296_s4  ;;  %v3536_v60 = vadd.f32 %v7612_v43, %v3497_v53 }
 0x339   :  { %v3664_v39 = vmul.f32 0.2, %v3536_v60  ;;  %vm3632_vm1 = vcmp.gt.f32.partialorder %v3536_v60, 0.0 }
 0x33b   :  { %3907 = vrot.lane.b32.xlu1 %v3812_v58, %s5296_s4  ;;  %3905 = vrot.lane.b32.xlu0 %v3811_v41, %s5296_s4  ;;  %v3691_v58 = vsel %vm3627_vm14, %v3531_v49, %v3659_v32  ;;  %v3661_v41 = vmul.f32 0.2, %v3533_v30  ;;  %v3696_v59 = vsel %vm3632_vm1, %v3536_v60, %v3664_v39  ;;  %v3505_v49 = vmul.f32 %v7607_v13, %v8266_v52  ;;  %v8268_v32 = vld [vmem:[#allocation8_spill] sm:$0xff] }
 0x33d   :  { %v3693_v31 = vsel %vm3629_vm0, %v3533_v30, %v3661_v41  ;;  %v3507_v30 = vmul.f32 %v7607_v13, %v8268_v32  ;;  %v8270_v41 = vld [vmem:[#allocation9_spill] sm:$0xff] }
 0x33e   :  { %v3509_v46 = vmul.f32 %v7607_v13, %v8270_v41 }
 0x33f   :  { %v3546_v19 = vadd.f32 %v7612_v43, %v3507_v30 }
 0x341   :  { %vm3642_vm12 = vcmp.gt.f32.partialorder %v3546_v19, 0.0 }
 0x371   :  { %v3850_v33 = vpop.permute.xlu1 %3849  ;;  %v3846_v10 = vpop.permute.xlu0 %3845 }
 0x372   :  { %v3943_v42 = vsel %vm3066_vm4, %v3687_v61, %v3850_v33  ;;  %v3941_v7 = vsel %vm3066_vm4, %v3685_v22, %v3846_v10  ;;  %v3537_v61 = vadd.f32 %v7612_v43, %v3498_v55  ;;  %v8263_v33 = vld [vmem:[#allocation32_spill] sm:$0xff]  ;;  %v8264_v22 = vld [vmem:[#allocation46_spill] sm:$0xff] }
 0x373   :  { %3975 = vst [vmem:[%s7975_s6 + $0x10] sm:$0xff] %v3943_v42  ;;  %3973 = vst [vmem:[%s7975_s6] sm:$0xff] %v3941_v7  ;;  %v3502_v10 = vmul.f32 %v7607_v13, %v8263_v33  ;;  %v3503_v4 = vmul.f32 %v7607_v13, %v8264_v22  ;;  %v3666_v42 = vmul.f32 0.2, %v3538_v9 }
 0x374   :  { %v3665_v47 = vmul.f32 0.2, %v3537_v61  ;;  %vm3633_vm5 = vcmp.gt.f32.partialorder %v3537_v61, 0.0 }
 0x375   :  { %v3852_v45 = vpop.permute.xlu1 %3851  ;;  %v3848_v51 = vpop.permute.xlu0 %3847  ;;  %v3541_v12 = vadd.f32 %v7612_v43, %v3502_v10 }
 0x376   :  { %v3944_v44 = vsel %vm3066_vm4, %v3688_v14, %v3852_v45  ;;  %v3942_v17 = vsel %vm3066_vm4, %v3686_v57, %v3848_v51  ;;  %v3540_v14 = vadd.f32 %v7612_v43, %v3501_v18  ;;  %v8265_v57 = vld [vmem:[#allocation33_spill] sm:$0xff]  ;;  %v3697_v34 = vsel %vm3633_vm5, %v3537_v61, %v3665_v47 }
 0x377   :  { %3976 = vst [vmem:[%s7975_s6 + $0x18] sm:$0xff] %v3944_v44  ;;  %3974 = vst [vmem:[%s7975_s6 + $0x8] sm:$0xff] %v3942_v17  ;;  %v3504_v15 = vmul.f32 %v7607_v13, %v8265_v57  ;;  %v3698_v44 = vsel %vm3634_vm3, %v3538_v9, %v3666_v42  ;;  %v3542_v17 = vadd.f32 %v7612_v43, %v3503_v4  ;;  %v3669_v2 = vmul.f32 0.2, %v3541_v12 }
 0x378   :  { %v3668_v53 = vmul.f32 0.2, %v3540_v14  ;;  %vm3636_vm6 = vcmp.gt.f32.partialorder %v3540_v14, 0.0  ;;  %vm3637_vm9 = vcmp.gt.f32.partialorder %v3541_v12, 0.0  ;;  %v3511_v61 = vmul.f32 %v7607_v13, %v8272_v25 }
 0x379   :  { %v3856_v27 = vpop.permute.xlu1 %3855  ;;  %v3854_v20 = vpop.permute.xlu0 %3853  ;;  %vm3638_vm8 = vcmp.gt.f32.partialorder %v3542_v17, 0.0  ;;  %v3543_v60 = vadd.f32 %v7612_v43, %v3504_v15  ;;  %v3701_v18 = vsel %vm3637_vm9, %v3541_v12, %v3669_v2  ;;  %v8278_v2 = vld [vmem:[#allocation14_spill] sm:$0xff] }
 0x37a   :  { %v3946_v28 = vsel %vm3066_vm4, %v3690_v40, %v3856_v27  ;;  %v3945_v37 = vsel %vm3066_vm4, %v3689_v38, %v3854_v20  ;;  %v3667_v40 = vmul.f32 0.2, %v3539_v36  ;;  %v8267_v38 = vld [vmem:[#allocation34_spill] sm:$0xff]  ;;  %v3700_v55 = vsel %vm3636_vm6, %v3540_v14, %v3668_v53  ;;  %v8274_v14 = vld [vmem:[#allocation12_spill] sm:$0xff] }
 0x37b   :  { %3978 = vst [vmem:[%s7975_s6 + $0x28] sm:$0xff] %v3946_v28  ;;  %3977 = vst [vmem:[%s7975_s6 + $0x20] sm:$0xff] %v3945_v37  ;;  %v3506_v62 = vmul.f32 %v7607_v13, %v8267_v38  ;;  %v3670_v28 = vmul.f32 0.2, %v3542_v17  ;;  %v3544_v37 = vadd.f32 %v7612_v43, %v3505_v49  ;;  %vm3639_vm11 = vcmp.gt.f32.partialorder %v3543_v60, 0.0 }
 0x37c   :  { %v3699_v29 = vsel %vm3635_vm7, %v3539_v36, %v3667_v40  ;;  %v3513_v36 = vmul.f32 %v7607_v13, %v8274_v14  ;;  %v8276_v40 = vld [vmem:[#allocation13_spill] sm:$0xff] }
 0x37d   :  { %v3860_v56 = vpop.permute.xlu1 %3859  ;;  %v3858_v11 = vpop.permute.xlu0 %3857  ;;  %vm3640_vm10 = vcmp.gt.f32.partialorder %v3544_v37, 0.0  ;;  %v3545_v39 = vadd.f32 %v7612_v43, %v3506_v62  ;;  %v3515_v12 = vmul.f32 %v7607_v13, %v8276_v40 }
 0x37e   :  { %v3948_v5 = vsel %vm3066_vm4, %v3692_v16, %v3860_v56  ;;  %v3947_v21 = vsel %vm3066_vm4, %v3691_v58, %v3858_v11  ;;  %v8269_v11 = vld [vmem:[#allocation37_spill] sm:$0xff] }
 0x37f   :  { %3980 = vst [vmem:[%s7975_s6 + $0x38] sm:$0xff] %v3948_v5  ;;  %3979 = vst [vmem:[%s7975_s6 + $0x30] sm:$0xff] %v3947_v21  ;;  %v3508_v58 = vmul.f32 %v7607_v13, %v8269_v11  ;;  %v3702_v5 = vsel %vm3638_vm8, %v3542_v17, %v3670_v28  ;;  %v3672_v21 = vmul.f32 0.2, %v3544_v37  ;;  %v3673_v4 = vmul.f32 0.2, %v3545_v39 }
 0x380   :  { %vm3641_vm13 = vcmp.gt.f32.partialorder %v3545_v39, 0.0  ;;  %v3554_v11 = vadd.f32 %v7612_v43, %v3515_v12 }
 0x381   :  { %v3864_v0 = vpop.permute.xlu1 %3863  ;;  %v3862_v24 = vpop.permute.xlu0 %3861  ;;  %v3547_v42 = vadd.f32 %v7612_v43, %v3508_v58  ;;  %v3705_v52 = vsel %vm3641_vm13, %v3545_v39, %v3673_v4 }
 0x382   :  { %v3950_v3 = vsel %vm3066_vm4, %v3694_v1, %v3864_v0  ;;  %v3949_v23 = vsel %vm3066_vm4, %v3693_v31, %v3862_v24  ;;  %v3671_v1 = vmul.f32 0.2, %v3543_v60  ;;  %v8271_v24 = vld [vmem:[#allocation38_spill] sm:$0xff]  ;;  %vm3650_vm5 = vcmp.gt.f32.partialorder %v3554_v11, 0.0 }
 0x383   :  { %3982 = vst [vmem:[%s7975_s6 + $0x48] sm:$0xff] %v3950_v3  ;;  %3981 = vst [vmem:[%s7975_s6 + $0x40] sm:$0xff] %v3949_v23  ;;  %v3510_v31 = vmul.f32 %v7607_v13, %v8271_v24  ;;  %v3704_v3 = vsel %vm3640_vm10, %v3544_v37, %v3672_v21  ;;  %v3674_v23 = vmul.f32 0.2, %v3546_v19  ;;  %vm3643_vm15 = vcmp.gt.f32.partialorder %v3547_v42, 0.0 }
 0x384   :  { %v3703_v22 = vsel %vm3639_vm11, %v3543_v60, %v3671_v1  ;;  %v3517_v60 = vmul.f32 %v7607_v13, %v8278_v2 }
 0x385   :  { %v3868_v7 = vpop.permute.xlu1 %3867  ;;  %v3866_v26 = vpop.permute.xlu0 %3865  ;;  %v3549_v17 = vadd.f32 %v7612_v43, %v3510_v31 }
 0x386   :  { %v3952_v45 = vsel %vm3066_vm4, %v3696_v59, %v3868_v7  ;;  %v3951_v51 = vsel %vm3066_vm4, %v3695_v50, %v3866_v26  ;;  %v3548_v59 = vadd.f32 %v7612_v43, %v3509_v46  ;;  %v8273_v50 = vld [vmem:[#allocation39_spill] sm:$0xff] }
 0x387   :  { %3984 = vst [vmem:[%s7975_s6 + $0x58] sm:$0xff] %v3952_v45  ;;  %3983 = vst [vmem:[%s7975_s6 + $0x50] sm:$0xff] %v3951_v51  ;;  %v3512_v47 = vmul.f32 %v7607_v13, %v8273_v50  ;;  %v3706_v45 = vsel %vm3642_vm12, %v3546_v19, %v3674_v23  ;;  %v3550_v51 = vadd.f32 %v7612_v43, %v3511_v61  ;;  %v3677_v28 = vmul.f32 0.2, %v3549_v17 }
 0x388   :  { %v3676_v49 = vmul.f32 0.2, %v3548_v59  ;;  %vm3644_vm14 = vcmp.gt.f32.partialorder %v3548_v59, 0.0  ;;  %vm3645_vm1 = vcmp.gt.f32.partialorder %v3549_v17, 0.0 }
 0x389   :  { %v3872_v35 = vpop.permute.xlu1 %3871  ;;  %v3870_v8 = vpop.permute.xlu0 %3869  ;;  %vm3646_vm0 = vcmp.gt.f32.partialorder %v3550_v51, 0.0  ;;  %v3551_v37 = vadd.f32 %v7612_v43, %v3512_v47  ;;  %v3709_v46 = vsel %vm3645_vm1, %v3549_v17, %v3677_v28 }
 0x38a   :  { %v3954_v27 = vsel %vm3066_vm4, %v3698_v44, %v3872_v35  ;;  %v3953_v20 = vsel %vm3066_vm4, %v3697_v34, %v3870_v8  ;;  %v3675_v44 = vmul.f32 0.2, %v3547_v42  ;;  %v8275_v34 = vld [vmem:[#allocation40_spill] sm:$0xff]  ;;  %v3708_v62 = vsel %vm3644_vm14, %v3548_v59, %v3676_v49 }
 0x38b   :  { %3986 = vst [vmem:[%s7975_s6 + $0x68] sm:$0xff] %v3954_v27  ;;  %3985 = vst [vmem:[%s7975_s6 + $0x60] sm:$0xff] %v3953_v20  ;;  %v3514_v53 = vmul.f32 %v7607_v13, %v8275_v34  ;;  %v3678_v27 = vmul.f32 0.2, %v3550_v51  ;;  %v3552_v20 = vadd.f32 %v7612_v43, %v3513_v36  ;;  %vm3647_vm3 = vcmp.gt.f32.partialorder %v3551_v37, 0.0 }
 0x38c   :  { %v3707_v30 = vsel %vm3643_vm15, %v3547_v42, %v3675_v44 }
 0x38d   :  { %v3876_v6 = vpop.permute.xlu1 %3875  ;;  %v3874_v48 = vpop.permute.xlu0 %3873  ;;  %vm3648_vm2 = vcmp.gt.f32.partialorder %v3552_v20, 0.0  ;;  %v3553_v21 = vadd.f32 %v7612_v43, %v3514_v53 }
 0x38e   :  { %v3956_v56 = vsel %vm3066_vm4, %v3700_v55, %v3876_v6  ;;  %v3955_v16 = vsel %vm3066_vm4, %v3699_v29, %v3874_v48  ;;  %v8277_v48 = vld [vmem:[#allocation41_spill] sm:$0xff] }
 0x38f   :  { %3988 = vst [vmem:[%s7975_s6 + $0x78] sm:$0xff] %v3956_v56  ;;  %3987 = vst [vmem:[%s7975_s6 + $0x70] sm:$0xff] %v3955_v16  ;;  %v3516_v29 = vmul.f32 %v7607_v13, %v8277_v48  ;;  %v3710_v56 = vsel %vm3646_vm0, %v3550_v51, %v3678_v27  ;;  %v3680_v16 = vmul.f32 0.2, %v3552_v20  ;;  %vm3649_vm6 = vcmp.gt.f32.partialorder %v3553_v21, 0.0 }
 0x391   :  { %v3880_v63 = vpop.permute.xlu1 %3879  ;;  %v3878_v54 = vpop.permute.xlu0 %3877  ;;  %v3712_v13 = vsel %vm3648_vm2, %v3552_v20, %v3680_v16  ;;  %v3555_v24 = vadd.f32 %v7612_v43, %v3516_v29 }
 0x392   :  { %v3958_v9 = vsel %vm3066_vm4, %v3702_v5, %v3880_v63  ;;  %v3957_v0 = vsel %vm3066_vm4, %v3701_v18, %v3878_v54  ;;  %v3679_v5 = vmul.f32 0.2, %v3551_v37  ;;  %v3682_v54 = vmul.f32 0.2, %v3554_v11 }
 0x393   :  { %3990 = vst [vmem:[%s7975_s6 + $0x88] sm:$0xff] %v3958_v9  ;;  %3989 = vst [vmem:[%s7975_s6 + $0x80] sm:$0xff] %v3957_v0  ;;  %v3681_v9 = vmul.f32 0.2, %v3553_v21  ;;  %v3556_v0 = vadd.f32 %v7612_v43, %v3517_v60  ;;  %v3683_v43 = vmul.f32 0.2, %v3555_v24 }
 0x394   :  { %v3711_v39 = vsel %vm3647_vm3, %v3551_v37, %v3679_v5  ;;  %vm3651_vm8 = vcmp.gt.f32.partialorder %v3555_v24, 0.0 }
 0x395   :  { %v3884_v33 = vpop.permute.xlu1 %3883  ;;  %v3882_v10 = vpop.permute.xlu0 %3881  ;;  %vm3652_vm7 = vcmp.gt.f32.partialorder %v3556_v0, 0.0 }
 0x396   :  { %v3960_v7 = vsel %vm3066_vm4, %v3704_v3, %v3884_v33  ;;  %v3959_v26 = vsel %vm3066_vm4, %v3703_v22, %v3882_v10  ;;  %v3714_v3 = vsel %vm3650_vm5, %v3554_v11, %v3682_v54  ;;  %v3713_v33 = vsel %vm3649_vm6, %v3553_v21, %v3681_v9 }
 0x397   :  { %3992 = vst [vmem:[%s7975_s6 + $0x98] sm:$0xff] %v3960_v7  ;;  %3991 = vst [vmem:[%s7975_s6 + $0x90] sm:$0xff] %v3959_v26  ;;  %v3684_v10 = vmul.f32 0.2, %v3556_v0  ;;  %v3715_v26 = vsel %vm3651_vm8, %v3555_v24, %v3683_v43 }
 0x399   :  { %v3888_v57 = vpop.permute.xlu1 %3887  ;;  %v3886_v15 = vpop.permute.xlu0 %3885  ;;  %v3716_v42 = vsel %vm3652_vm7, %v3556_v0, %v3684_v10 }
 0x39a   :  { %v3962_v35 = vsel %vm3066_vm4, %v3706_v45, %v3888_v57  ;;  %v3961_v8 = vsel %vm3066_vm4, %v3705_v52, %v3886_v15 }
 0x39b   :  { %3994 = vst [vmem:[%s7975_s6 + $0xa8] sm:$0xff] %v3962_v35  ;;  %3993 = vst [vmem:[%s7975_s6 + $0xa0] sm:$0xff] %v3961_v8 }
 0x39d   :  { %v3892_v38 = vpop.permute.xlu1 %3891  ;;  %v3890_v32 = vpop.permute.xlu0 %3889 }
 0x39e   :  { %v3964_v6 = vsel %vm3066_vm4, %v3708_v62, %v3892_v38  ;;  %v3963_v55 = vsel %vm3066_vm4, %v3707_v30, %v3890_v32 }
 0x39f   :  { %3996 = vst [vmem:[%s7975_s6 + $0xb8] sm:$0xff] %v3964_v6  ;;  %3995 = vst [vmem:[%s7975_s6 + $0xb0] sm:$0xff] %v3963_v55 }
 0x3a1   :  { %v3896_v58 = vpop.permute.xlu1 %3895  ;;  %v3894_v41 = vpop.permute.xlu0 %3893 }
 0x3a2   :  { %v3966_v19 = vsel %vm3066_vm4, %v3710_v56, %v3896_v58  ;;  %v3965_v63 = vsel %vm3066_vm4, %v3709_v46, %v3894_v41 }
 0x3a3   :  { %3998 = vst [vmem:[%s7975_s6 + $0xc8] sm:$0xff] %v3966_v19  ;;  %3997 = vst [vmem:[%s7975_s6 + $0xc0] sm:$0xff] %v3965_v63 }
 0x3a5   :  { %v3900_v18 = vpop.permute.xlu1 %3899  ;;  %v3898_v1 = vpop.permute.xlu0 %3897 }
 0x3a6   :  { %v3968_v31 = vsel %vm3066_vm4, %v3712_v13, %v3900_v18  ;;  %v3967_v25 = vsel %vm3066_vm4, %v3711_v39, %v3898_v1 }
 0x3a7   :  { %4000 = vst [vmem:[%s7975_s6 + $0xd8] sm:$0xff] %v3968_v31  ;;  %3999 = vst [vmem:[%s7975_s6 + $0xd0] sm:$0xff] %v3967_v25 }
 0x3a9   :  { %v3904_v61 = vpop.permute.xlu1 %3903  ;;  %v3902_v23 = vpop.permute.xlu0 %3901 }
 0x3aa   :  { %v3970_v22 = vsel %vm3066_vm4, %v3714_v3, %v3904_v61  ;;  %v3969_v4 = vsel %vm3066_vm4, %v3713_v33, %v3902_v23 }
 0x3ab   :  { %4002 = vst [vmem:[%s7975_s6 + $0xe8] sm:$0xff] %v3970_v22  ;;  %4001 = vst [vmem:[%s7975_s6 + $0xe0] sm:$0xff] %v3969_v4 }
 0x3ad   :  { %v3908_v59 = vpop.permute.xlu1 %3907  ;;  %v3906_v7 = vpop.permute.xlu0 %3905 }
 0x3ae   :  { %v3972_v50 = vsel %vm3066_vm4, %v3716_v42, %v3908_v59  ;;  %v3971_v47 = vsel %vm3066_vm4, %v3715_v26, %v3906_v7 }
 0x3af   :  { %4004 = vst [vmem:[%s7975_s6 + $0xf8] sm:$0xff] %v3972_v50  ;;  %4003 = vst [vmem:[%s7975_s6 + $0xf0] sm:$0xff] %v3971_v47 }

</bundles_post_ra>
